<compile_context>
chip_gen: v6e
topology: v6e:2x2x1
jax: 0.10.0
libtpu: 0.0.40
codegen_flags: <defaults>
</compile_context>

<pallas_src>
import functools

import jax
import jax.numpy as jnp
from jax.experimental import pallas as pl
from jax.experimental.pallas import tpu as pltpu


# ----------------------------- Pallas kernels --------------------------------

def _matmul_bias_act_kernel(x_ref, w_ref, b_ref, o_ref, acc_ref, *, apply_relu):
    """acc += x @ w (f32); on last K step: out = maybe_relu(acc + bias)."""
    @pl.when(pl.program_id(2) == 0)
    def _init():
        acc_ref[...] = jnp.zeros_like(acc_ref)

    acc_ref[...] += jnp.dot(x_ref[...], w_ref[...],
                            preferred_element_type=jnp.float32)

    @pl.when(pl.program_id(2) == pl.num_programs(2) - 1)
    def _finalize():
        out = acc_ref[...] + b_ref[...]          # bias broadcast (1, tn), f32
        if apply_relu:
            out = jnp.maximum(out, 0.0)
        o_ref[...] = out.astype(o_ref.dtype)


def _matmul_bias_act_1step_kernel(x_ref, w_ref, b_ref, o_ref, *, apply_relu):
    """Single-K-step fast path: no accumulator scratch round-trip."""
    out = jnp.dot(x_ref[...], w_ref[...],
                  preferred_element_type=jnp.float32) + b_ref[...]
    if apply_relu:
        out = jnp.maximum(out, 0.0)
    o_ref[...] = out.astype(o_ref.dtype)


# ----------------------------- tiling helpers --------------------------------

_X_TILE_BYTES_BUDGET = 4 * 1024 * 1024   # per-buffer bf16 x-tile budget


def _choose_tm(M):
    """Full-extent block for small M; otherwise 512/256/128 (pad M if needed)."""
    if M <= 512:
        return M
    for t in (512, 256, 128):
        if M % t == 0:
            return t
    return 512   # caller zero-pads M up to a multiple of 512 and slices after


def _choose_tk(K, tm):
    for t in (4096, 2048, 1024, 512, 256, 128):
        if K % t == 0 and tm * t * 2 <= _X_TILE_BYTES_BUDGET:
            return t
    return 128


def matmul_bias_act(x, w, b, *, apply_relu, out_dtype=jnp.float32):
    """out = maybe_relu(x @ w + b); tiled, bf16 MXU inputs / f32 accumulation."""
    M, K = x.shape
    K2, N = w.shape
    assert K == K2
    assert K % 128 == 0 and N % 128 == 0, "K and N must be lane-dense (pad at prep)"
    b2 = b.reshape(1, N).astype(jnp.float32)

    tm = _choose_tm(M)
    tn = 128                                # lane-dense; N=256 -> 2 parallel j blocks
    tk = _choose_tk(K, tm)

    M_pad = pl.cdiv(M, tm) * tm
    x = x.astype(jnp.bfloat16)
    if M_pad != M:
        x = jnp.pad(x, ((0, M_pad - M), (0, 0)))

    grid = (M_pad // tm, N // tn, K // tk)
    single_k = grid[2] == 1
    if single_k:
        kernel = functools.partial(_matmul_bias_act_1step_kernel,
                                   apply_relu=apply_relu)
        scratch = []
    else:
        kernel = functools.partial(_matmul_bias_act_kernel, apply_relu=apply_relu)
        scratch = [pltpu.VMEM((tm, tn), jnp.float32)]

    out_itemsize = jnp.dtype(out_dtype).itemsize
    cost = pl.CostEstimate(
        flops=2 * M_pad * N * K,
        transcendentals=0,
        bytes_accessed=M_pad * K * 2 + K * N * 2 + M_pad * N * out_itemsize + N * 4,
    )

    out = pl.pallas_call(
        kernel,
        out_shape=jax.ShapeDtypeStruct((M_pad, N), out_dtype),
        grid_spec=pltpu.PrefetchScalarGridSpec(
            num_scalar_prefetch=0,
            grid=grid,
            in_specs=[
                pl.BlockSpec((tm, tk), lambda i, j, k: (i, k)),
                pl.BlockSpec((tk, tn), lambda i, j, k: (k, j)),
                pl.BlockSpec((1, tn), lambda i, j, k: (0, j)),
            ],
            out_specs=pl.BlockSpec((tm, tn), lambda i, j, k: (i, j)),
            scratch_shapes=scratch,
        ),
        compiler_params=pltpu.CompilerParams(
            dimension_semantics=("parallel", "parallel", "arbitrary"),
            vmem_limit_bytes=32 * 1024 * 1024,
        ),
        cost_estimate=cost,
    )(x, w.astype(jnp.bfloat16), b2)

    if M_pad != M:
        out = out[:M]
    return out


# ------------------------------ conv lowering --------------------------------

def im2col(x_nhwc, k=4, s=2, p=1):
    """Extract k x k patches (stride s, pad p). Returns (B*Ho*Wo, k*k*C), Ho, Wo."""
    B, H, W, C = x_nhwc.shape
    xp = jnp.pad(x_nhwc, ((0, 0), (p, p), (p, p), (0, 0)))
    Ho = (H + 2 * p - k) // s + 1
    Wo = (W + 2 * p - k) // s + 1
    cols = []
    for ky in range(k):
        for kx in range(k):
            cols.append(xp[:, ky:ky + s * Ho:s, kx:kx + s * Wo:s, :])  # (B,Ho,Wo,C)
    patches = jnp.stack(cols, axis=3)                                  # (B,Ho,Wo,kk,C)
    return patches.reshape(B * Ho * Wo, k * k * C), Ho, Wo


def conv_bn_relu(x_nhwc, w_mat, b_fold, out_dtype=jnp.bfloat16):
    """Conv2d(k=4,s=2,p=1) + folded BatchNorm(eval) + ReLU as one tiled matmul."""
    B = x_nhwc.shape[0]
    Cout = w_mat.shape[1]
    patches, Ho, Wo = im2col(x_nhwc, k=4, s=2, p=1)
    out = matmul_bias_act(patches, w_mat, b_fold, apply_relu=True,
                          out_dtype=out_dtype)
    return out.reshape(B, Ho, Wo, Cout)


# ------------------------------ parameters -----------------------------------

def init_params(key, num_attrs, latent_dim):
    ks = jax.random.split(key, 8)

    def lin(k, fan_in, fan_out):
        kw, kb = jax.random.split(k)
        w = jax.random.normal(kw, (fan_in, fan_out), jnp.float32) / jnp.sqrt(fan_in)
        b = jax.random.normal(kb, (fan_out,), jnp.float32) * 0.01
        return w, b

    def conv(k, cout, cin):
        kw, kb = jax.random.split(k)
        w = jax.random.normal(kw, (cout, cin, 4, 4), jnp.float32) / jnp.sqrt(cin * 16)
        b = jax.random.normal(kb, (cout,), jnp.float32) * 0.01
        return w, b

    def bn(c):
        return (jnp.ones((c,), jnp.float32), jnp.zeros((c,), jnp.float32),
                jnp.zeros((c,), jnp.float32), jnp.ones((c,), jnp.float32), 1e-5)

    p = {}
    p["l1_w"], p["l1_b"] = lin(ks[0], num_attrs, 64 * 64)
    p["c1_w"], p["c1_b"] = conv(ks[1], 32, 4)
    p["c2_w"], p["c2_b"] = conv(ks[2], 64, 32)
    p["c3_w"], p["c3_b"] = conv(ks[3], 128, 64)
    p["c4_w"], p["c4_b"] = conv(ks[4], 256, 128)
    p["bn1"], p["bn2"], p["bn3"], p["bn4"] = bn(32), bn(64), bn(128), bn(256)
    p["mu_w"], p["mu_b"] = lin(ks[5], 256 * 4 * 4, latent_dim)
    p["lv_w"], p["lv_b"] = lin(ks[6], 256 * 4 * 4, latent_dim)
    return p


def prepare_params(p, latent_dim):
    """One-time host-side prep: fold BN into conv weights, pad channels to 128
    lanes (zero rows/cols), permute + fuse + pad the FC weights."""
    q = {"l1_w": p["l1_w"], "l1_b": p["l1_b"]}

    def fold_conv(w_oihw, bias, bn, cin_pad, cout_pad):
        gamma, beta, mean, var, eps = bn
        s = gamma / jnp.sqrt(var + eps)                     # per-out-channel scale
        Cout, Cin, KH, KW = w_oihw.shape
        # (Cout,Cin,KH,KW) -> (KH,KW,Cin,Cout), matching im2col ordering [ky,kx,cin]
        w = jnp.transpose(w_oihw, (2, 3, 1, 0)) * s
        b = bias * s + (beta - mean * s)
        # Zero-pad input channels (absorbed as zero K rows) and output channels
        # (lane-dense stores; padded outputs stay exactly 0 through bias+ReLU).
        w = jnp.pad(w, ((0, 0), (0, 0), (0, cin_pad - Cin), (0, cout_pad - Cout)))
        b = jnp.pad(b, (0, cout_pad - Cout))
        return (w.reshape(KH * KW * cin_pad, cout_pad).astype(jnp.bfloat16),
                b.astype(jnp.float32))

    q["c1_w"], q["c1_b"] = fold_conv(p["c1_w"], p["c1_b"], p["bn1"], 8, 128)    # K=128
    q["c2_w"], q["c2_b"] = fold_conv(p["c2_w"], p["c2_b"], p["bn2"], 128, 128)  # K=2048
    q["c3_w"], q["c3_b"] = fold_conv(p["c3_w"], p["c3_b"], p["bn3"], 128, 128)  # K=2048
    q["c4_w"], q["c4_b"] = fold_conv(p["c4_w"], p["c4_b"], p["bn4"], 128, 256)  # K=2048

    # Fused fc_mu / fc_logvar: rows permuted NCHW->NHWC flatten order, N padded to 128.
    C, H, W = 256, 4, 4
    perm = jnp.transpose(jnp.arange(C * H * W).reshape(C, H, W), (1, 2, 0)).reshape(-1)
    w_fc = jnp.concatenate([p["mu_w"], p["lv_w"]], axis=1)[perm]        # (4096, 2L)
    b_fc = jnp.concatenate([p["mu_b"], p["lv_b"]])
    n_real = 2 * latent_dim
    n_pad = ((n_real + 127) // 128) * 128
    q["fc_w"] = jnp.pad(w_fc, ((0, 0), (0, n_pad - n_real))).astype(jnp.bfloat16)
    q["fc_b"] = jnp.pad(b_fc, (0, n_pad - n_real)).astype(jnp.float32)
    return q


# ------------------------------ forward ---------------------------------------

def encoder_forward(q, x_nchw, c, *, latent_dim):
    B = x_nchw.shape[0]

    # linear1(c): K = num_attrs is tiny -> left to XLA; produce embed directly
    # in NHWC so only the 3-channel image is transposed.
    embed = (c @ q["l1_w"] + q["l1_b"]).reshape(B, 64, 64, 1)
    x_nhwc = jnp.transpose(x_nchw, (0, 2, 3, 1))                        # (B,64,64,3)
    h = jnp.concatenate([x_nhwc, embed], axis=-1)                       # (B,64,64,4)
    # Pad input channels 4 -> 8 (zero weight rows) so conv1's K = 16*8 = 128.
    h = jnp.pad(h, ((0, 0), (0, 0), (0, 0), (0, 4))).astype(jnp.bfloat16)

    h = conv_bn_relu(h, q["c1_w"], q["c1_b"])            # (B,32,32,128) [32 real]
    h = conv_bn_relu(h, q["c2_w"], q["c2_b"])            # (B,16,16,128) [64 real]
    h = conv_bn_relu(h, q["c3_w"], q["c3_b"])            # (B, 8, 8,128)
    h = conv_bn_relu(h, q["c4_w"], q["c4_b"])            # (B, 4, 4,256) bf16
    # Dropout(0.5) -> identity in eval mode.

    # Returned flat keeps PyTorch's NCHW flatten order (tiny tensor, f32 cast here).
    flat = jnp.transpose(h, (0, 3, 1, 2)).reshape(B, -1).astype(jnp.float32)

    # Fused fc_mu / fc_logvar over the bf16 NHWC flatten (weights pre-permuted/padded).
    out = matmul_bias_act(h.reshape(B, -1), q["fc_w"], q["fc_b"],
                          apply_relu=False, out_dtype=jnp.float32)
    mu = out[:, :latent_dim]
    logvar = out[:, latent_dim:2 * latent_dim]
    return flat, mu, logvar


# ------------------------------ main -------------------------------------------

if __name__ == "__main__":
    B, num_attrs, latent_dim = 2, 10, 16
    key = jax.random.PRNGKey(0)
    kx, kc, kp = jax.random.split(key, 3)

    x = jax.random.normal(kx, (B, 3, 64, 64), jnp.float32)   # NCHW, like PyTorch
    c = jax.random.normal(kc, (B, num_attrs), jnp.float32)

    raw_params = init_params(kp, num_attrs, latent_dim)
    params = prepare_params(raw_params, latent_dim)

    fwd = jax.jit(functools.partial(encoder_forward, latent_dim=latent_dim))
    flat, mu, logvar = fwd(params, x, c)
    jax.block_until_ready((flat, mu, logvar))

    assert flat.shape == (B, 256 * 4 * 4)
    assert mu.shape == (B, latent_dim)
    assert logvar.shape == (B, latent_dim)
    assert bool(jnp.isfinite(flat).all())
    assert bool(jnp.isfinite(mu).all()) and bool(jnp.isfinite(logvar).all())
    print("KERNEL_OK")
</pallas_src>

<mosaic_0001>
module attributes {stable_mosaic.version = 11 : i64} {
  func.func @_matmul_bias_act_1step_kernel(%arg0: i32, %arg1: i32, %arg2: i32, %arg3: memref<512x128xbf16, #tpu.memory_space<vmem>>, %arg4: memref<128x128xbf16, #tpu.memory_space<vmem>>, %arg5: memref<1x128xf32, #tpu.memory_space<vmem>>, %arg6: memref<512x128xbf16, #tpu.memory_space<vmem>>) attributes {dimension_semantics = [#tpu.dimension_semantics<parallel>, #tpu.dimension_semantics<parallel>, #tpu.dimension_semantics<arbitrary>], iteration_bounds = array<i64: 4, 1, 1>, scalar_prefetch = 0 : i64, scratch_operands = 0 : i64, tpu.core_type = #tpu.core_type<tc>, window_params = [{transform_indices = @transform_0, window_bounds = array<i64: 512, 128>}, {transform_indices = @transform_1, window_bounds = array<i64: 128, 128>}, {transform_indices = @transform_2, window_bounds = array<i64: 1, 128>}, {transform_indices = @transform_3, window_bounds = array<i64: 512, 128>}]} {
    %c0 = arith.constant 0 : index
    %c0_0 = arith.constant 0 : index
    %0 = vector.load %arg3[%c0, %c0_0] : memref<512x128xbf16, #tpu.memory_space<vmem>>, vector<512x128xbf16>
    %c0_1 = arith.constant 0 : index
    %c0_2 = arith.constant 0 : index
    %1 = vector.load %arg4[%c0_1, %c0_2] : memref<128x128xbf16, #tpu.memory_space<vmem>>, vector<128x128xbf16>
    %cst = arith.constant dense<0.000000e+00> : vector<512x128xf32>
    %2 = tpu.matmul %0, %1, %cst {dimension_numbers = #tpu.dot_dimension_numbers<[1], [0], [0], [1], [0, 0, 1, 1], [], []>} : vector<512x128xbf16>, vector<128x128xbf16>, vector<512x128xf32> -> vector<512x128xf32>
    %c0_3 = arith.constant 0 : index
    %c0_4 = arith.constant 0 : index
    %3 = vector.load %arg5[%c0_3, %c0_4] : memref<1x128xf32, #tpu.memory_space<vmem>>, vector<1x128xf32>
    %4 = vector.broadcast %3 : vector<1x128xf32> to vector<512x128xf32>
    %5 = arith.addf %2, %4 : vector<512x128xf32>
    %cst_5 = arith.constant 0.000000e+00 : f32
    %6 = vector.broadcast %cst_5 : f32 to vector<512x128xf32>
    %7 = arith.maximumf %5, %6 : vector<512x128xf32>
    %8 = arith.truncf %7 : vector<512x128xf32> to vector<512x128xbf16>
    %c0_6 = arith.constant 0 : index
    %c0_7 = arith.constant 0 : index
    %9 = vector.load %arg6[%c0_6, %c0_7] : memref<512x128xbf16, #tpu.memory_space<vmem>>, vector<512x128xbf16>
    tpu.vector_store %arg6[%c0_6, %c0_7], %8 {strides = array<i32>} : memref<512x128xbf16, #tpu.memory_space<vmem>>, vector<512x128xbf16>,
    return
  }
  func.func @transform_0(%arg0: i32, %arg1: i32, %arg2: i32) -> (i32, i32) {
    %c0_i32 = arith.constant 0 : i32
    return %arg0, %arg2 : i32, i32
  }
  func.func @transform_1(%arg0: i32, %arg1: i32, %arg2: i32) -> (i32, i32) {
    %c0_i32 = arith.constant 0 : i32
    return %arg2, %arg1 : i32, i32
  }
  func.func @transform_2(%arg0: i32, %arg1: i32, %arg2: i32) -> (i32, i32) {
    %c0_i32 = arith.constant 0 : i32
    %c0_i32_0 = arith.constant 0 : i32
    return %c0_i32, %arg1 : i32, i32
  }
  func.func @transform_3(%arg0: i32, %arg1: i32, %arg2: i32) -> (i32, i32) {
    %c0_i32 = arith.constant 0 : i32
    return %arg0, %arg1 : i32, i32
  }
}

module attributes {stable_mosaic.version = 11 : i64} {
  func.func @_matmul_bias_act_1step_kernel(%arg0: i32, %arg1: i32, %arg2: i32, %arg3: memref<512x2048xbf16, #tpu.memory_space<vmem>>, %arg4: memref<2048x128xbf16, #tpu.memory_space<vmem>>, %arg5: memref<1x128xf32, #tpu.memory_space<vmem>>, %arg6: memref<512x128xbf16, #tpu.memory_space<vmem>>) attributes {dimension_semantics = [#tpu.dimension_semantics<parallel>, #tpu.dimension_semantics<parallel>, #tpu.dimension_semantics<arbitrary>], iteration_bounds = array<i64: 1, 1, 1>, scalar_prefetch = 0 : i64, scratch_operands = 0 : i64, tpu.core_type = #tpu.core_type<tc>, window_params = [{transform_indices = @transform_0, window_bounds = array<i64: 512, 2048>}, {transform_indices = @transform_1, window_bounds = array<i64: 2048, 128>}, {transform_indices = @transform_2, window_bounds = array<i64: 1, 128>}, {transform_indices = @transform_3, window_bounds = array<i64: 512, 128>}]} {
    %c0 = arith.constant 0 : index
    %c0_0 = arith.constant 0 : index
    %0 = vector.load %arg3[%c0, %c0_0] : memref<512x2048xbf16, #tpu.memory_space<vmem>>, vector<512x2048xbf16>
    %c0_1 = arith.constant 0 : index
    %c0_2 = arith.constant 0 : index
    %1 = vector.load %arg4[%c0_1, %c0_2] : memref<2048x128xbf16, #tpu.memory_space<vmem>>, vector<2048x128xbf16>
    %cst = arith.constant dense<0.000000e+00> : vector<512x128xf32>
    %2 = tpu.matmul %0, %1, %cst {dimension_numbers = #tpu.dot_dimension_numbers<[1], [0], [0], [1], [0, 0, 1, 1], [], []>} : vector<512x2048xbf16>, vector<2048x128xbf16>, vector<512x128xf32> -> vector<512x128xf32>
    %c0_3 = arith.constant 0 : index
    %c0_4 = arith.constant 0 : index
    %3 = vector.load %arg5[%c0_3, %c0_4] : memref<1x128xf32, #tpu.memory_space<vmem>>, vector<1x128xf32>
    %4 = vector.broadcast %3 : vector<1x128xf32> to vector<512x128xf32>
    %5 = arith.addf %2, %4 : vector<512x128xf32>
    %cst_5 = arith.constant 0.000000e+00 : f32
    %6 = vector.broadcast %cst_5 : f32 to vector<512x128xf32>
    %7 = arith.maximumf %5, %6 : vector<512x128xf32>
    %8 = arith.truncf %7 : vector<512x128xf32> to vector<512x128xbf16>
    %c0_6 = arith.constant 0 : index
    %c0_7 = arith.constant 0 : index
    %9 = vector.load %arg6[%c0_6, %c0_7] : memref<512x128xbf16, #tpu.memory_space<vmem>>, vector<512x128xbf16>
    tpu.vector_store %arg6[%c0_6, %c0_7], %8 {strides = array<i32>} : memref<512x128xbf16, #tpu.memory_space<vmem>>, vector<512x128xbf16>,
    return
  }
  func.func @transform_0(%arg0: i32, %arg1: i32, %arg2: i32) -> (i32, i32) {
    %c0_i32 = arith.constant 0 : i32
    return %arg0, %arg2 : i32, i32
  }
  func.func @transform_1(%arg0: i32, %arg1: i32, %arg2: i32) -> (i32, i32) {
    %c0_i32 = arith.constant 0 : i32
    return %arg2, %arg1 : i32, i32
  }
  func.func @transform_2(%arg0: i32, %arg1: i32, %arg2: i32) -> (i32, i32) {
    %c0_i32 = arith.constant 0 : i32
    %c0_i32_0 = arith.constant 0 : i32
    return %c0_i32, %arg1 : i32, i32
  }
  func.func @transform_3(%arg0: i32, %arg1: i32, %arg2: i32) -> (i32, i32) {
    %c0_i32 = arith.constant 0 : i32
    return %arg0, %arg1 : i32, i32
  }
}

module attributes {stable_mosaic.version = 11 : i64} {
  func.func @_matmul_bias_act_1step_kernel(%arg0: i32, %arg1: i32, %arg2: i32, %arg3: memref<128x2048xbf16, #tpu.memory_space<vmem>>, %arg4: memref<2048x128xbf16, #tpu.memory_space<vmem>>, %arg5: memref<1x128xf32, #tpu.memory_space<vmem>>, %arg6: memref<128x128xbf16, #tpu.memory_space<vmem>>) attributes {dimension_semantics = [#tpu.dimension_semantics<parallel>, #tpu.dimension_semantics<parallel>, #tpu.dimension_semantics<arbitrary>], iteration_bounds = array<i64: 1, 1, 1>, scalar_prefetch = 0 : i64, scratch_operands = 0 : i64, tpu.core_type = #tpu.core_type<tc>, window_params = [{transform_indices = @transform_0, window_bounds = array<i64: 128, 2048>}, {transform_indices = @transform_1, window_bounds = array<i64: 2048, 128>}, {transform_indices = @transform_2, window_bounds = array<i64: 1, 128>}, {transform_indices = @transform_3, window_bounds = array<i64: 128, 128>}]} {
    %c0 = arith.constant 0 : index
    %c0_0 = arith.constant 0 : index
    %0 = vector.load %arg3[%c0, %c0_0] : memref<128x2048xbf16, #tpu.memory_space<vmem>>, vector<128x2048xbf16>
    %c0_1 = arith.constant 0 : index
    %c0_2 = arith.constant 0 : index
    %1 = vector.load %arg4[%c0_1, %c0_2] : memref<2048x128xbf16, #tpu.memory_space<vmem>>, vector<2048x128xbf16>
    %cst = arith.constant dense<0.000000e+00> : vector<128x128xf32>
    %2 = tpu.matmul %0, %1, %cst {dimension_numbers = #tpu.dot_dimension_numbers<[1], [0], [0], [1], [0, 0, 1, 1], [], []>} : vector<128x2048xbf16>, vector<2048x128xbf16>, vector<128x128xf32> -> vector<128x128xf32>
    %c0_3 = arith.constant 0 : index
    %c0_4 = arith.constant 0 : index
    %3 = vector.load %arg5[%c0_3, %c0_4] : memref<1x128xf32, #tpu.memory_space<vmem>>, vector<1x128xf32>
    %4 = vector.broadcast %3 : vector<1x128xf32> to vector<128x128xf32>
    %5 = arith.addf %2, %4 : vector<128x128xf32>
    %cst_5 = arith.constant 0.000000e+00 : f32
    %6 = vector.broadcast %cst_5 : f32 to vector<128x128xf32>
    %7 = arith.maximumf %5, %6 : vector<128x128xf32>
    %8 = arith.truncf %7 : vector<128x128xf32> to vector<128x128xbf16>
    %c0_6 = arith.constant 0 : index
    %c0_7 = arith.constant 0 : index
    %9 = vector.load %arg6[%c0_6, %c0_7] : memref<128x128xbf16, #tpu.memory_space<vmem>>, vector<128x128xbf16>
    tpu.vector_store %arg6[%c0_6, %c0_7], %8 {strides = array<i32>} : memref<128x128xbf16, #tpu.memory_space<vmem>>, vector<128x128xbf16>,
    return
  }
  func.func @transform_0(%arg0: i32, %arg1: i32, %arg2: i32) -> (i32, i32) {
    %c0_i32 = arith.constant 0 : i32
    return %arg0, %arg2 : i32, i32
  }
  func.func @transform_1(%arg0: i32, %arg1: i32, %arg2: i32) -> (i32, i32) {
    %c0_i32 = arith.constant 0 : i32
    return %arg2, %arg1 : i32, i32
  }
  func.func @transform_2(%arg0: i32, %arg1: i32, %arg2: i32) -> (i32, i32) {
    %c0_i32 = arith.constant 0 : i32
    %c0_i32_0 = arith.constant 0 : i32
    return %c0_i32, %arg1 : i32, i32
  }
  func.func @transform_3(%arg0: i32, %arg1: i32, %arg2: i32) -> (i32, i32) {
    %c0_i32 = arith.constant 0 : i32
    return %arg0, %arg1 : i32, i32
  }
}

module attributes {stable_mosaic.version = 11 : i64} {
  func.func @_matmul_bias_act_1step_kernel(%arg0: i32, %arg1: i32, %arg2: i32, %arg3: memref<32x2048xbf16, #tpu.memory_space<vmem>>, %arg4: memref<2048x128xbf16, #tpu.memory_space<vmem>>, %arg5: memref<1x128xf32, #tpu.memory_space<vmem>>, %arg6: memref<32x128xbf16, #tpu.memory_space<vmem>>) attributes {dimension_semantics = [#tpu.dimension_semantics<parallel>, #tpu.dimension_semantics<parallel>, #tpu.dimension_semantics<arbitrary>], iteration_bounds = array<i64: 1, 2, 1>, scalar_prefetch = 0 : i64, scratch_operands = 0 : i64, tpu.core_type = #tpu.core_type<tc>, window_params = [{transform_indices = @transform_0, window_bounds = array<i64: 32, 2048>}, {transform_indices = @transform_1, window_bounds = array<i64: 2048, 128>}, {transform_indices = @transform_2, window_bounds = array<i64: 1, 128>}, {transform_indices = @transform_3, window_bounds = array<i64: 32, 128>}]} {
    %c0 = arith.constant 0 : index
    %c0_0 = arith.constant 0 : index
    %0 = vector.load %arg3[%c0, %c0_0] : memref<32x2048xbf16, #tpu.memory_space<vmem>>, vector<32x2048xbf16>
    %c0_1 = arith.constant 0 : index
    %c0_2 = arith.constant 0 : index
    %1 = vector.load %arg4[%c0_1, %c0_2] : memref<2048x128xbf16, #tpu.memory_space<vmem>>, vector<2048x128xbf16>
    %cst = arith.constant dense<0.000000e+00> : vector<32x128xf32>
    %2 = tpu.matmul %0, %1, %cst {dimension_numbers = #tpu.dot_dimension_numbers<[1], [0], [0], [1], [0, 0, 1, 1], [], []>} : vector<32x2048xbf16>, vector<2048x128xbf16>, vector<32x128xf32> -> vector<32x128xf32>
    %c0_3 = arith.constant 0 : index
    %c0_4 = arith.constant 0 : index
    %3 = vector.load %arg5[%c0_3, %c0_4] : memref<1x128xf32, #tpu.memory_space<vmem>>, vector<1x128xf32>
    %4 = vector.broadcast %3 : vector<1x128xf32> to vector<32x128xf32>
    %5 = arith.addf %2, %4 : vector<32x128xf32>
    %cst_5 = arith.constant 0.000000e+00 : f32
    %6 = vector.broadcast %cst_5 : f32 to vector<32x128xf32>
    %7 = arith.maximumf %5, %6 : vector<32x128xf32>
    %8 = arith.truncf %7 : vector<32x128xf32> to vector<32x128xbf16>
    %c0_6 = arith.constant 0 : index
    %c0_7 = arith.constant 0 : index
    %9 = vector.load %arg6[%c0_6, %c0_7] : memref<32x128xbf16, #tpu.memory_space<vmem>>, vector<32x128xbf16>
    tpu.vector_store %arg6[%c0_6, %c0_7], %8 {strides = array<i32>} : memref<32x128xbf16, #tpu.memory_space<vmem>>, vector<32x128xbf16>,
    return
  }
  func.func @transform_0(%arg0: i32, %arg1: i32, %arg2: i32) -> (i32, i32) {
    %c0_i32 = arith.constant 0 : i32
    return %arg0, %arg2 : i32, i32
  }
  func.func @transform_1(%arg0: i32, %arg1: i32, %arg2: i32) -> (i32, i32) {
    %c0_i32 = arith.constant 0 : i32
    return %arg2, %arg1 : i32, i32
  }
  func.func @transform_2(%arg0: i32, %arg1: i32, %arg2: i32) -> (i32, i32) {
    %c0_i32 = arith.constant 0 : i32
    %c0_i32_0 = arith.constant 0 : i32
    return %c0_i32, %arg1 : i32, i32
  }
  func.func @transform_3(%arg0: i32, %arg1: i32, %arg2: i32) -> (i32, i32) {
    %c0_i32 = arith.constant 0 : i32
    return %arg0, %arg1 : i32, i32
  }
}

module attributes {stable_mosaic.version = 11 : i64} {
  func.func @_matmul_bias_act_1step_kernel(%arg0: i32, %arg1: i32, %arg2: i32, %arg3: memref<2x4096xbf16, #tpu.memory_space<vmem>>, %arg4: memref<4096x128xbf16, #tpu.memory_space<vmem>>, %arg5: memref<1x128xf32, #tpu.memory_space<vmem>>, %arg6: memref<2x128xf32, #tpu.memory_space<vmem>>) attributes {dimension_semantics = [#tpu.dimension_semantics<parallel>, #tpu.dimension_semantics<parallel>, #tpu.dimension_semantics<arbitrary>], iteration_bounds = array<i64: 1, 1, 1>, scalar_prefetch = 0 : i64, scratch_operands = 0 : i64, tpu.core_type = #tpu.core_type<tc>, window_params = [{transform_indices = @transform_0, window_bounds = array<i64: 2, 4096>}, {transform_indices = @transform_1, window_bounds = array<i64: 4096, 128>}, {transform_indices = @transform_2, window_bounds = array<i64: 1, 128>}, {transform_indices = @transform_3, window_bounds = array<i64: 2, 128>}]} {
    %c0 = arith.constant 0 : index
    %c0_0 = arith.constant 0 : index
    %0 = vector.load %arg3[%c0, %c0_0] : memref<2x4096xbf16, #tpu.memory_space<vmem>>, vector<2x4096xbf16>
    %c0_1 = arith.constant 0 : index
    %c0_2 = arith.constant 0 : index
    %1 = vector.load %arg4[%c0_1, %c0_2] : memref<4096x128xbf16, #tpu.memory_space<vmem>>, vector<4096x128xbf16>
    %cst = arith.constant dense<0.000000e+00> : vector<2x128xf32>
    %2 = tpu.matmul %0, %1, %cst {dimension_numbers = #tpu.dot_dimension_numbers<[1], [0], [0], [1], [0, 0, 1, 1], [], []>} : vector<2x4096xbf16>, vector<4096x128xbf16>, vector<2x128xf32> -> vector<2x128xf32>
    %c0_3 = arith.constant 0 : index
    %c0_4 = arith.constant 0 : index
    %3 = vector.load %arg5[%c0_3, %c0_4] : memref<1x128xf32, #tpu.memory_space<vmem>>, vector<1x128xf32>
    %4 = vector.broadcast %3 : vector<1x128xf32> to vector<2x128xf32>
    %5 = arith.addf %2, %4 : vector<2x128xf32>
    %c0_5 = arith.constant 0 : index
    %c0_6 = arith.constant 0 : index
    %6 = vector.load %arg6[%c0_5, %c0_6] : memref<2x128xf32, #tpu.memory_space<vmem>>, vector<2x128xf32>
    tpu.vector_store %arg6[%c0_5, %c0_6], %5 {strides = array<i32>} : memref<2x128xf32, #tpu.memory_space<vmem>>, vector<2x128xf32>,
    return
  }
  func.func @transform_0(%arg0: i32, %arg1: i32, %arg2: i32) -> (i32, i32) {
    %c0_i32 = arith.constant 0 : i32
    return %arg0, %arg2 : i32, i32
  }
  func.func @transform_1(%arg0: i32, %arg1: i32, %arg2: i32) -> (i32, i32) {
    %c0_i32 = arith.constant 0 : i32
    return %arg2, %arg1 : i32, i32
  }
  func.func @transform_2(%arg0: i32, %arg1: i32, %arg2: i32) -> (i32, i32) {
    %c0_i32 = arith.constant 0 : i32
    %c0_i32_0 = arith.constant 0 : i32
    return %c0_i32, %arg1 : i32, i32
  }
  func.func @transform_3(%arg0: i32, %arg1: i32, %arg2: i32) -> (i32, i32) {
    %c0_i32 = arith.constant 0 : i32
    return %arg0, %arg1 : i32, i32
  }
}

</mosaic_0001>

<bundles_post_ra>
// kernel: encoder_forward.5
= control target key start
LH: loop header
LB: loop body
LE: loop exit
PB: predicated region body
PF: predicated region fallthrough
CT: control target
= control target key end

     0   :  { %s1988_s12 = smov 0   ;;  %s1990_s13 = smov 0   ;;  %s2189_s0 = inlined_call_operand.vmem [shape: bf16[2048,128], index: 0, kind: input, shape index: {}]   ;;  %s2190_s1 = inlined_call_operand.vmem [shape: bf16[128,128], index: 1, kind: input, shape index: {}]   ;;  %s2191_s2 = inlined_call_operand.vmem [shape: f32[1,128], index: 2, kind: input, shape index: {}]   ;;  %s2192_s3 = inlined_call_operand.vmem [shape: bf16[2048,128], index: 3, kind: output, shape index: {}]  }
   0x1   :  { %s1992_s14 = smov 0  }
   0x2 LB: > { %s32_s15 = sadd.s32 1, %s1962_s13  ;;  %p1377_p0 = scmp.ge.s32.totalorder %s1966_s14, 1  ;;  %s1966_s14 = sphi %s1992_s14, %s13_s14   ;;  %s1962_s13 = sphi %s1990_s13, %s2194_s13   ;;  %s1958_s12 = sphi %s1988_s12, %s2193_s12  }
   0x3   : > { %p34_p1 = scmp.ge.s32.totalorder %s32_s15, 4  ;;  %p188_p2 = scmp.lt.s32.totalorder %s1966_s14, 5 }
   0x5   : > { %s2196_s15 = smov (%p34_p1, %s32_s15), 0  ;;  %p189_p3 = pnand %p1377_p0, %p188_p2 }
   0x6   : > { %s1378_s18 = sshll.u32 (!%p189_p3), %s1958_s12, 6 }
   0x7   : > { %192 = sbr.rel (%p189_p3) target bundleno = 307 (0x133), region = 32  ;;  %p230_p4 = scmp.lt.s32.totalorder (!%p189_p3), %s1378_s18, 255 }
   0xc   : > { %v1904_v0 = vld [vmem:[%s2190_s1 + $0x38] sm:$0xff]   ;;  %v1905_v1 = vld [vmem:[%s2190_s1 + $0x30] sm:$0xff]   ;;  %s2198_s18 = smov (!%p230_p4, %s1378_s18), 255  ;;  %v1906_v2 = vld [vmem:[%s2190_s1 + $0x28] sm:$0xff]  }
   0xd   : > { %1784 = vmatprep.subr.bf16.mxu0 %v1904_v0  ;;  %1864 = vmatprep.subr.bf16.mxu1 %v1904_v0  ;;  %s1379_s23 = sshll.u32 %s2198_s18, 2  ;;  %v1907_v3 = vld [vmem:[%s2190_s1 + $0x20] sm:$0xff]   ;;  %v1908_v6 = vld [vmem:[%s2190_s1 + $0x18] sm:$0xff]   ;;  %v1909_v7 = vld [vmem:[%s2190_s1 + $0x10] sm:$0xff]  }
   0xe   : > { %1785 = vmatpush3.bf16.msra.mxu0 %v1904_v0  ;;  %1872 = vmatpush3.bf16.msra.mxu1 %v1904_v0  ;;  %s2023_s26 = scalar_lea.vmem %s2189_s0, %s1379_s23  ;;  %v1910_v8 = vld [vmem:[%s2190_s1 + $0x8] sm:$0xff]   ;;  %v1911_v9 = vld [vmem:[%s2190_s1] sm:$0xff]   ;;  %s2090_s17 = scalar_lea.vmem %s2192_s3, %s1379_s23 }
   0xf   : > { %1786 = vmatprep.subr.bf16.mxu0 %v1905_v1  ;;  %1865 = vmatprep.subr.bf16.mxu1 %v1905_v1  ;;  %v1912_v4 = vld [vmem:[%s2023_s26] sm:$0xff]   ;;  %v1914_v10 = vld [vmem:[%s2023_s26 + $0x8] sm:$0xff]   ;;  %v1916_v12 = vld [vmem:[%s2023_s26 + $0x10] sm:$0xff]  }
  0x10   : > { %v1913_v5 = vld [vmem:[%s2023_s26 + $0x80] sm:$0xff]   ;;  %1800 = vmatprep.mubr.bf16.mxu0 %v1912_v4  ;;  %v1915_v11 = vld [vmem:[%s2023_s26 + $0x88] sm:$0xff]   ;;  %v1917_v13 = vld [vmem:[%s2023_s26 + $0x90] sm:$0xff]  }
  0x11   : > { %1832 = vmatprep.mubr.bf16.mxu1 %v1913_v5  ;;  %v1918_v14 = vld [vmem:[%s2023_s26 + $0x18] sm:$0xff]   ;;  %v1920_v16 = vld [vmem:[%s2023_s26 + $0x20] sm:$0xff]   ;;  %v1922_v18 = vld [vmem:[%s2023_s26 + $0x28] sm:$0xff]  }
  0x12   : > { %1787 = vmatpush3.bf16.msra.mxu0 %v1905_v1  ;;  %1873 = vmatpush3.bf16.msra.mxu1 %v1905_v1  ;;  %v1919_v15 = vld [vmem:[%s2023_s26 + $0x98] sm:$0xff]   ;;  %v1921_v17 = vld [vmem:[%s2023_s26 + $0xa0] sm:$0xff]   ;;  %v1923_v19 = vld [vmem:[%s2023_s26 + $0xa8] sm:$0xff]  }
  0x13   : > { %1788 = vmatprep.subr.bf16.mxu0 %v1906_v2  ;;  %1866 = vmatprep.subr.bf16.mxu1 %v1906_v2  ;;  %v1924_v20 = vld [vmem:[%s2023_s26 + $0x30] sm:$0xff]   ;;  %v1926_v22 = vld [vmem:[%s2023_s26 + $0x38] sm:$0xff]   ;;  %v1928_v24 = vld [vmem:[%s2023_s26 + $0x40] sm:$0xff]  }
  0x14   : > { %v1925_v21 = vld [vmem:[%s2023_s26 + $0xb0] sm:$0xff]   ;;  %v1927_v23 = vld [vmem:[%s2023_s26 + $0xb8] sm:$0xff]   ;;  %v1929_v25 = vld [vmem:[%s2023_s26 + $0xc0] sm:$0xff]  }
  0x15   : > { %v1930_v26 = vld [vmem:[%s2023_s26 + $0x48] sm:$0xff]   ;;  %v1932_v28 = vld [vmem:[%s2023_s26 + $0x50] sm:$0xff]   ;;  %v1934_v30 = vld [vmem:[%s2023_s26 + $0x58] sm:$0xff]  }
  0x16   : > { %1789 = vmatpush3.bf16.msra.mxu0 %v1906_v2  ;;  %1874 = vmatpush3.bf16.msra.mxu1 %v1906_v2  ;;  %v1931_v27 = vld [vmem:[%s2023_s26 + $0xc8] sm:$0xff]   ;;  %v1933_v29 = vld [vmem:[%s2023_s26 + $0xd0] sm:$0xff]   ;;  %v1935_v31 = vld [vmem:[%s2023_s26 + $0xd8] sm:$0xff]  }
  0x17   : > { %1790 = vmatprep.subr.bf16.mxu0 %v1907_v3  ;;  %1867 = vmatprep.subr.bf16.mxu1 %v1907_v3  ;;  %v1936_v32 = vld [vmem:[%s2023_s26 + $0x60] sm:$0xff]   ;;  %v1938_v34 = vld [vmem:[%s2023_s26 + $0x68] sm:$0xff]   ;;  %v1940_v36 = vld [vmem:[%s2023_s26 + $0x70] sm:$0xff]  }
  0x18   : > { %v1937_v33 = vld [vmem:[%s2023_s26 + $0xe0] sm:$0xff]   ;;  %v1939_v35 = vld [vmem:[%s2023_s26 + $0xe8] sm:$0xff]   ;;  %v1941_v37 = vld [vmem:[%s2023_s26 + $0xf0] sm:$0xff]  }
  0x19   : > { %v1942_v38 = vld [vmem:[%s2023_s26 + $0x78] sm:$0xff]   ;;  %v2075_v40 = vld [vmem:[%s2191_s2] ss:$0 sm:$0xff] }
  0x1a   : > { %1791 = vmatpush3.bf16.msra.mxu0 %v1907_v3  ;;  %1875 = vmatpush3.bf16.msra.mxu1 %v1907_v3  ;;  %v1943_v39 = vld [vmem:[%s2023_s26 + $0xf8] sm:$0xff]  }
  0x1b   : > { %1792 = vmatprep.subr.bf16.mxu0 %v1908_v6  ;;  %1868 = vmatprep.subr.bf16.mxu1 %v1908_v6 }
  0x1e   : > { %1793 = vmatpush3.bf16.msra.mxu0 %v1908_v6  ;;  %1876 = vmatpush3.bf16.msra.mxu1 %v1908_v6 }
  0x1f   : > { %1794 = vmatprep.subr.bf16.mxu0 %v1909_v7  ;;  %1869 = vmatprep.subr.bf16.mxu1 %v1909_v7 }
  0x22   : > { %1795 = vmatpush3.bf16.msra.mxu0 %v1909_v7  ;;  %1877 = vmatpush3.bf16.msra.mxu1 %v1909_v7 }
  0x23   : > { %1796 = vmatprep.subr.bf16.mxu0 %v1910_v8  ;;  %1870 = vmatprep.subr.bf16.mxu1 %v1910_v8 }
  0x26   : > { %1797 = vmatpush3.bf16.msra.mxu0 %v1910_v8  ;;  %1878 = vmatpush3.bf16.msra.mxu1 %v1910_v8 }
  0x27   : > { %1798 = vmatprep.subr.bf16.mxu0 %v1911_v9  ;;  %1871 = vmatprep.subr.bf16.mxu1 %v1911_v9 }
  0x2a   : > { %1799 = vmatpush3.bf16.msra.mxu0 %v1911_v9  ;;  %1879 = vmatpush3.bf16.msra.mxu1 %v1911_v9 }
  0x2d   : > { %1801 = vmatmul.mubr.bf16.vlgmr.msra.gmra.mxu0 %v1914_v10  ;;  %1833 = vmatmul.mubr.bf16.vlgmr.msra.gmra.mxu1 %v1915_v11 }
  0x2e   : > { %1804 = vmatprep.mubr.bf16.mxu0 %v1916_v12  ;;  %1836 = vmatprep.mubr.bf16.mxu1 %v1917_v13 }
  0x35   : > { %1805 = vmatmul.mubr.bf16.gmra.mxu0 %v1918_v14  ;;  %1837 = vmatmul.mubr.bf16.gmra.mxu1 %v1919_v15 }
  0x36   : > { %1808 = vmatprep.mubr.bf16.mxu0 %v1920_v16  ;;  %1840 = vmatprep.mubr.bf16.mxu1 %v1921_v17 }
  0x3d   : > { %1809 = vmatmul.mubr.bf16.gmra.mxu0 %v1922_v18  ;;  %1841 = vmatmul.mubr.bf16.gmra.mxu1 %v1923_v19 }
  0x3e   : > { %1812 = vmatprep.mubr.bf16.mxu0 %v1924_v20  ;;  %1844 = vmatprep.mubr.bf16.mxu1 %v1925_v21 }
  0x45   : > { %1813 = vmatmul.mubr.bf16.gmra.mxu0 %v1926_v22  ;;  %1845 = vmatmul.mubr.bf16.gmra.mxu1 %v1927_v23 }
  0x46   : > { %1816 = vmatprep.mubr.bf16.mxu0 %v1928_v24  ;;  %1848 = vmatprep.mubr.bf16.mxu1 %v1929_v25 }
  0x4d   : > { %1817 = vmatmul.mubr.bf16.gmra.mxu0 %v1930_v26  ;;  %1849 = vmatmul.mubr.bf16.gmra.mxu1 %v1931_v27 }
  0x4e   : > { %1820 = vmatprep.mubr.bf16.mxu0 %v1932_v28  ;;  %1852 = vmatprep.mubr.bf16.mxu1 %v1933_v29 }
  0x55   : > { %1821 = vmatmul.mubr.bf16.gmra.mxu0 %v1934_v30  ;;  %1853 = vmatmul.mubr.bf16.gmra.mxu1 %v1935_v31 }
  0x56   : > { %1824 = vmatprep.mubr.bf16.mxu0 %v1936_v32  ;;  %1856 = vmatprep.mubr.bf16.mxu1 %v1937_v33 }
  0x5d   : > { %1825 = vmatmul.mubr.bf16.gmra.mxu0 %v1938_v34  ;;  %1857 = vmatmul.mubr.bf16.gmra.mxu1 %v1939_v35 }
  0x5e   : > { %1828 = vmatprep.mubr.bf16.mxu0 %v1940_v36  ;;  %1860 = vmatprep.mubr.bf16.mxu1 %v1941_v37 }
  0x65   : > { %1829 = vmatmul.mubr.bf16.gmra.mxu0 %v1942_v38  ;;  %1861 = vmatmul.mubr.bf16.gmra.mxu1 %v1943_v39 }
  0xed   : > { %v1802_v41 = vpop.f32.mrf.mxu0  ;;  %v1834_v42 = vpop.f32.mrf.mxu1 }
  0xee   : > { %v630_v43 = vadd.f32 %v1802_v41, %v2075_v40  ;;  %v758_v44 = vadd.f32 %v1834_v42, %v2075_v40 }
  0xef   : > { %v621_v45 = vpop.f32.mrf.mxu0  ;;  %v749_v46 = vpop.f32.mrf.mxu1 }
  0xf0   : > { %v622_v47 = vadd.f32 %v2075_v40, %v621_v45  ;;  %v750_v48 = vadd.f32 %v2075_v40, %v749_v46  ;;  %v878_v53 = vmax.f32 %v630_v43, 0.0  ;;  %v910_v54 = vmax.f32 %v758_v44, 0.0 }
  0xf1   : > { %v1803_v49 = vpop.f32.mrf.mxu0  ;;  %v1835_v50 = vpop.f32.mrf.mxu1 }
  0xf2   : > { %v633_v51 = vadd.f32 %v1803_v49, %v2075_v40  ;;  %v761_v52 = vadd.f32 %v1835_v50, %v2075_v40  ;;  %v876_v61 = vmax.f32 %v622_v47, 0.0  ;;  %v908_v62 = vmax.f32 %v750_v48, 0.0 }
  0xf3   : > { %v624_v55 = vpop.f32.mrf.mxu0  ;;  %v752_v56 = vpop.f32.mrf.mxu1 }
  0xf4   : > { %v879_v57 = vmax.f32 %v633_v51, 0.0  ;;  %v911_v58 = vmax.f32 %v761_v52, 0.0  ;;  %v625_v59 = vadd.f32 %v2075_v40, %v624_v55  ;;  %v753_v60 = vadd.f32 %v2075_v40, %v752_v56 }
  0xf5   : > { %v1806_v63 = vpop.f32.mrf.mxu0  ;;  %v1838_v0 = vpop.f32.mrf.mxu1 }
  0xf6   : > { %v1561_v1 = vpack.c.bf16 %v879_v57, %v878_v53  ;;  %v1641_v2 = vpack.c.bf16 %v911_v58, %v910_v54  ;;  %v877_v3 = vmax.f32 %v625_v59, 0.0  ;;  %v909_v4 = vmax.f32 %v753_v60, 0.0 }
  0xf7   : > { %v646_v5 = vadd.f32 %v1806_v63, %v2075_v40  ;;  %v774_v6 = vadd.f32 %v1838_v0, %v2075_v40  ;;  %v637_v7 = vpop.f32.mrf.mxu0  ;;  %v765_v8 = vpop.f32.mrf.mxu1 }
  0xf8   : > { %1713 = vst [vmem:[%s2090_s17 + $0x8] sm:$0xff] %v1561_v1   ;;  %1729 = vst [vmem:[%s2090_s17 + $0x88] sm:$0xff] %v1641_v2   ;;  %v1556_v9 = vpack.c.bf16 %v877_v3, %v876_v61  ;;  %v1636_v10 = vpack.c.bf16 %v909_v4, %v908_v62  ;;  %v638_v11 = vadd.f32 %v2075_v40, %v637_v7 }
  0xf9   : > { %v766_v12 = vadd.f32 %v2075_v40, %v765_v8  ;;  %v1807_v13 = vpop.f32.mrf.mxu0  ;;  %v1839_v14 = vpop.f32.mrf.mxu1  ;;  %v882_v17 = vmax.f32 %v646_v5, 0.0  ;;  %v914_v18 = vmax.f32 %v774_v6, 0.0 }
  0xfa   : > { %1557 = vst [vmem:[%s2090_s17] sm:$0xff] %v1556_v9   ;;  %1728 = vst [vmem:[%s2090_s17 + $0x80] sm:$0xff] %v1636_v10   ;;  %v649_v15 = vadd.f32 %v1807_v13, %v2075_v40  ;;  %v777_v16 = vadd.f32 %v1839_v14, %v2075_v40  ;;  %v880_v25 = vmax.f32 %v638_v11, 0.0 }
  0xfb   : > { %v640_v19 = vpop.f32.mrf.mxu0  ;;  %v768_v20 = vpop.f32.mrf.mxu1  ;;  %v912_v26 = vmax.f32 %v766_v12, 0.0 }
  0xfc   : > { %v883_v21 = vmax.f32 %v649_v15, 0.0  ;;  %v915_v22 = vmax.f32 %v777_v16, 0.0  ;;  %v641_v23 = vadd.f32 %v2075_v40, %v640_v19  ;;  %v769_v24 = vadd.f32 %v2075_v40, %v768_v20 }
  0xfd   : > { %v1810_v27 = vpop.f32.mrf.mxu0  ;;  %v1842_v28 = vpop.f32.mrf.mxu1 }
  0xfe   : > { %v1571_v29 = vpack.c.bf16 %v883_v21, %v882_v17  ;;  %v1651_v30 = vpack.c.bf16 %v915_v22, %v914_v18  ;;  %v881_v31 = vmax.f32 %v641_v23, 0.0  ;;  %v913_v32 = vmax.f32 %v769_v24, 0.0 }
  0xff   : > { %v662_v33 = vadd.f32 %v1810_v27, %v2075_v40  ;;  %v790_v34 = vadd.f32 %v1842_v28, %v2075_v40  ;;  %v653_v35 = vpop.f32.mrf.mxu0  ;;  %v781_v36 = vpop.f32.mrf.mxu1 }
 0x100   : > { %1715 = vst [vmem:[%s2090_s17 + $0x18] sm:$0xff] %v1571_v29   ;;  %1731 = vst [vmem:[%s2090_s17 + $0x98] sm:$0xff] %v1651_v30   ;;  %v1566_v37 = vpack.c.bf16 %v881_v31, %v880_v25  ;;  %v1646_v38 = vpack.c.bf16 %v913_v32, %v912_v26  ;;  %v654_v39 = vadd.f32 %v2075_v40, %v653_v35 }
 0x101   : > { %v782_v41 = vadd.f32 %v2075_v40, %v781_v36  ;;  %v1811_v42 = vpop.f32.mrf.mxu0  ;;  %v1843_v43 = vpop.f32.mrf.mxu1  ;;  %v886_v46 = vmax.f32 %v662_v33, 0.0  ;;  %v918_v47 = vmax.f32 %v790_v34, 0.0 }
 0x102   : > { %1714 = vst [vmem:[%s2090_s17 + $0x10] sm:$0xff] %v1566_v37   ;;  %1730 = vst [vmem:[%s2090_s17 + $0x90] sm:$0xff] %v1646_v38   ;;  %v665_v44 = vadd.f32 %v1811_v42, %v2075_v40  ;;  %v793_v45 = vadd.f32 %v1843_v43, %v2075_v40  ;;  %v884_v54 = vmax.f32 %v654_v39, 0.0 }
 0x103   : > { %v656_v48 = vpop.f32.mrf.mxu0  ;;  %v784_v49 = vpop.f32.mrf.mxu1  ;;  %v916_v55 = vmax.f32 %v782_v41, 0.0 }
 0x104   : > { %v887_v50 = vmax.f32 %v665_v44, 0.0  ;;  %v919_v51 = vmax.f32 %v793_v45, 0.0  ;;  %v657_v52 = vadd.f32 %v2075_v40, %v656_v48  ;;  %v785_v53 = vadd.f32 %v2075_v40, %v784_v49 }
 0x105   : > { %v1814_v56 = vpop.f32.mrf.mxu0  ;;  %v1846_v57 = vpop.f32.mrf.mxu1 }
 0x106   : > { %v1581_v58 = vpack.c.bf16 %v887_v50, %v886_v46  ;;  %v1661_v59 = vpack.c.bf16 %v919_v51, %v918_v47  ;;  %v885_v60 = vmax.f32 %v657_v52, 0.0  ;;  %v917_v61 = vmax.f32 %v785_v53, 0.0 }
 0x107   : > { %v678_v62 = vadd.f32 %v1814_v56, %v2075_v40  ;;  %v806_v63 = vadd.f32 %v1846_v57, %v2075_v40  ;;  %v669_v0 = vpop.f32.mrf.mxu0  ;;  %v797_v1 = vpop.f32.mrf.mxu1 }
 0x108   : > { %1717 = vst [vmem:[%s2090_s17 + $0x28] sm:$0xff] %v1581_v58   ;;  %1733 = vst [vmem:[%s2090_s17 + $0xa8] sm:$0xff] %v1661_v59   ;;  %v1576_v2 = vpack.c.bf16 %v885_v60, %v884_v54  ;;  %v1656_v3 = vpack.c.bf16 %v917_v61, %v916_v55  ;;  %v670_v4 = vadd.f32 %v2075_v40, %v669_v0 }
 0x109   : > { %v798_v5 = vadd.f32 %v2075_v40, %v797_v1  ;;  %v1815_v6 = vpop.f32.mrf.mxu0  ;;  %v1847_v7 = vpop.f32.mrf.mxu1  ;;  %v890_v10 = vmax.f32 %v678_v62, 0.0  ;;  %v922_v11 = vmax.f32 %v806_v63, 0.0 }
 0x10a   : > { %1716 = vst [vmem:[%s2090_s17 + $0x20] sm:$0xff] %v1576_v2   ;;  %1732 = vst [vmem:[%s2090_s17 + $0xa0] sm:$0xff] %v1656_v3   ;;  %v681_v8 = vadd.f32 %v1815_v6, %v2075_v40  ;;  %v809_v9 = vadd.f32 %v1847_v7, %v2075_v40  ;;  %v888_v18 = vmax.f32 %v670_v4, 0.0 }
 0x10b   : > { %v672_v12 = vpop.f32.mrf.mxu0  ;;  %v800_v13 = vpop.f32.mrf.mxu1  ;;  %v920_v19 = vmax.f32 %v798_v5, 0.0 }
 0x10c   : > { %v891_v14 = vmax.f32 %v681_v8, 0.0  ;;  %v923_v15 = vmax.f32 %v809_v9, 0.0  ;;  %v673_v16 = vadd.f32 %v2075_v40, %v672_v12  ;;  %v801_v17 = vadd.f32 %v2075_v40, %v800_v13 }
 0x10d   : > { %v1818_v20 = vpop.f32.mrf.mxu0  ;;  %v1850_v21 = vpop.f32.mrf.mxu1 }
 0x10e   : > { %v1591_v22 = vpack.c.bf16 %v891_v14, %v890_v10  ;;  %v1671_v23 = vpack.c.bf16 %v923_v15, %v922_v11  ;;  %v889_v24 = vmax.f32 %v673_v16, 0.0  ;;  %v921_v25 = vmax.f32 %v801_v17, 0.0 }
 0x10f   : > { %v694_v26 = vadd.f32 %v1818_v20, %v2075_v40  ;;  %v822_v27 = vadd.f32 %v1850_v21, %v2075_v40  ;;  %v685_v28 = vpop.f32.mrf.mxu0  ;;  %v813_v29 = vpop.f32.mrf.mxu1 }
 0x110   : > { %1719 = vst [vmem:[%s2090_s17 + $0x38] sm:$0xff] %v1591_v22   ;;  %1735 = vst [vmem:[%s2090_s17 + $0xb8] sm:$0xff] %v1671_v23   ;;  %v1586_v30 = vpack.c.bf16 %v889_v24, %v888_v18  ;;  %v1666_v31 = vpack.c.bf16 %v921_v25, %v920_v19  ;;  %v686_v32 = vadd.f32 %v2075_v40, %v685_v28 }
 0x111   : > { %v814_v33 = vadd.f32 %v2075_v40, %v813_v29  ;;  %v1819_v34 = vpop.f32.mrf.mxu0  ;;  %v1851_v35 = vpop.f32.mrf.mxu1  ;;  %v894_v38 = vmax.f32 %v694_v26, 0.0  ;;  %v926_v39 = vmax.f32 %v822_v27, 0.0 }
 0x112   : > { %1718 = vst [vmem:[%s2090_s17 + $0x30] sm:$0xff] %v1586_v30   ;;  %1734 = vst [vmem:[%s2090_s17 + $0xb0] sm:$0xff] %v1666_v31   ;;  %v697_v36 = vadd.f32 %v1819_v34, %v2075_v40  ;;  %v825_v37 = vadd.f32 %v1851_v35, %v2075_v40  ;;  %v892_v47 = vmax.f32 %v686_v32, 0.0 }
 0x113   : > { %v688_v41 = vpop.f32.mrf.mxu0  ;;  %v816_v42 = vpop.f32.mrf.mxu1  ;;  %v924_v48 = vmax.f32 %v814_v33, 0.0 }
 0x114   : > { %v895_v43 = vmax.f32 %v697_v36, 0.0  ;;  %v927_v44 = vmax.f32 %v825_v37, 0.0  ;;  %v689_v45 = vadd.f32 %v2075_v40, %v688_v41  ;;  %v817_v46 = vadd.f32 %v2075_v40, %v816_v42 }
 0x115   : > { %v1822_v49 = vpop.f32.mrf.mxu0  ;;  %v1854_v50 = vpop.f32.mrf.mxu1 }
 0x116   : > { %v1601_v51 = vpack.c.bf16 %v895_v43, %v894_v38  ;;  %v1681_v52 = vpack.c.bf16 %v927_v44, %v926_v39  ;;  %v893_v53 = vmax.f32 %v689_v45, 0.0  ;;  %v925_v54 = vmax.f32 %v817_v46, 0.0 }
 0x117   : > { %v710_v55 = vadd.f32 %v1822_v49, %v2075_v40  ;;  %v838_v56 = vadd.f32 %v1854_v50, %v2075_v40  ;;  %v701_v57 = vpop.f32.mrf.mxu0  ;;  %v829_v58 = vpop.f32.mrf.mxu1 }
 0x118   : > { %1721 = vst [vmem:[%s2090_s17 + $0x48] sm:$0xff] %v1601_v51   ;;  %1737 = vst [vmem:[%s2090_s17 + $0xc8] sm:$0xff] %v1681_v52   ;;  %v1596_v59 = vpack.c.bf16 %v893_v53, %v892_v47  ;;  %v1676_v60 = vpack.c.bf16 %v925_v54, %v924_v48  ;;  %v702_v61 = vadd.f32 %v2075_v40, %v701_v57 }
 0x119   : > { %v830_v62 = vadd.f32 %v2075_v40, %v829_v58  ;;  %v1823_v63 = vpop.f32.mrf.mxu0  ;;  %v1855_v0 = vpop.f32.mrf.mxu1  ;;  %v898_v3 = vmax.f32 %v710_v55, 0.0  ;;  %v930_v4 = vmax.f32 %v838_v56, 0.0 }
 0x11a   : > { %1720 = vst [vmem:[%s2090_s17 + $0x40] sm:$0xff] %v1596_v59   ;;  %1736 = vst [vmem:[%s2090_s17 + $0xc0] sm:$0xff] %v1676_v60   ;;  %v713_v1 = vadd.f32 %v1823_v63, %v2075_v40  ;;  %v841_v2 = vadd.f32 %v1855_v0, %v2075_v40  ;;  %v896_v11 = vmax.f32 %v702_v61, 0.0 }
 0x11b   : > { %v704_v5 = vpop.f32.mrf.mxu0  ;;  %v832_v6 = vpop.f32.mrf.mxu1  ;;  %v928_v12 = vmax.f32 %v830_v62, 0.0 }
 0x11c   : > { %v899_v7 = vmax.f32 %v713_v1, 0.0  ;;  %v931_v8 = vmax.f32 %v841_v2, 0.0  ;;  %v705_v9 = vadd.f32 %v2075_v40, %v704_v5  ;;  %v833_v10 = vadd.f32 %v2075_v40, %v832_v6 }
 0x11d   : > { %v1826_v13 = vpop.f32.mrf.mxu0  ;;  %v1858_v14 = vpop.f32.mrf.mxu1 }
 0x11e   : > { %v1611_v15 = vpack.c.bf16 %v899_v7, %v898_v3  ;;  %v1691_v16 = vpack.c.bf16 %v931_v8, %v930_v4  ;;  %v897_v17 = vmax.f32 %v705_v9, 0.0  ;;  %v929_v18 = vmax.f32 %v833_v10, 0.0 }
 0x11f   : > { %v726_v19 = vadd.f32 %v1826_v13, %v2075_v40  ;;  %v854_v20 = vadd.f32 %v1858_v14, %v2075_v40  ;;  %v717_v21 = vpop.f32.mrf.mxu0  ;;  %v845_v22 = vpop.f32.mrf.mxu1 }
 0x120   : > { %1723 = vst [vmem:[%s2090_s17 + $0x58] sm:$0xff] %v1611_v15   ;;  %1739 = vst [vmem:[%s2090_s17 + $0xd8] sm:$0xff] %v1691_v16   ;;  %v1606_v23 = vpack.c.bf16 %v897_v17, %v896_v11  ;;  %v1686_v24 = vpack.c.bf16 %v929_v18, %v928_v12  ;;  %v718_v25 = vadd.f32 %v2075_v40, %v717_v21 }
 0x121   : > { %v846_v26 = vadd.f32 %v2075_v40, %v845_v22  ;;  %v1827_v27 = vpop.f32.mrf.mxu0  ;;  %v1859_v28 = vpop.f32.mrf.mxu1  ;;  %v902_v31 = vmax.f32 %v726_v19, 0.0  ;;  %v934_v32 = vmax.f32 %v854_v20, 0.0 }
 0x122   : > { %1722 = vst [vmem:[%s2090_s17 + $0x50] sm:$0xff] %v1606_v23   ;;  %1738 = vst [vmem:[%s2090_s17 + $0xd0] sm:$0xff] %v1686_v24   ;;  %v729_v29 = vadd.f32 %v1827_v27, %v2075_v40  ;;  %v857_v30 = vadd.f32 %v1859_v28, %v2075_v40  ;;  %v900_v39 = vmax.f32 %v718_v25, 0.0 }
 0x123   : > { %v720_v33 = vpop.f32.mrf.mxu0  ;;  %v848_v34 = vpop.f32.mrf.mxu1  ;;  %v932_v41 = vmax.f32 %v846_v26, 0.0 }
 0x124   : > { %v903_v35 = vmax.f32 %v729_v29, 0.0  ;;  %v935_v36 = vmax.f32 %v857_v30, 0.0  ;;  %v721_v37 = vadd.f32 %v2075_v40, %v720_v33  ;;  %v849_v38 = vadd.f32 %v2075_v40, %v848_v34 }
 0x125   : > { %v1830_v42 = vpop.f32.mrf.mxu0  ;;  %v1862_v43 = vpop.f32.mrf.mxu1 }
 0x126   : > { %v1621_v44 = vpack.c.bf16 %v903_v35, %v902_v31  ;;  %v1701_v45 = vpack.c.bf16 %v935_v36, %v934_v32  ;;  %v901_v46 = vmax.f32 %v721_v37, 0.0  ;;  %v933_v47 = vmax.f32 %v849_v38, 0.0 }
 0x127   : > { %v742_v48 = vadd.f32 %v1830_v42, %v2075_v40  ;;  %v870_v49 = vadd.f32 %v1862_v43, %v2075_v40  ;;  %v733_v50 = vpop.f32.mrf.mxu0  ;;  %v861_v51 = vpop.f32.mrf.mxu1 }
 0x128   : > { %1725 = vst [vmem:[%s2090_s17 + $0x68] sm:$0xff] %v1621_v44   ;;  %1741 = vst [vmem:[%s2090_s17 + $0xe8] sm:$0xff] %v1701_v45   ;;  %v1616_v52 = vpack.c.bf16 %v901_v46, %v900_v39  ;;  %v1696_v53 = vpack.c.bf16 %v933_v47, %v932_v41  ;;  %v734_v54 = vadd.f32 %v2075_v40, %v733_v50 }
 0x129   : > { %v862_v55 = vadd.f32 %v2075_v40, %v861_v51  ;;  %v1831_v56 = vpop.f32.mrf.mxu0  ;;  %v1863_v57 = vpop.f32.mrf.mxu1  ;;  %v906_v60 = vmax.f32 %v742_v48, 0.0  ;;  %v938_v61 = vmax.f32 %v870_v49, 0.0 }
 0x12a   : > { %1724 = vst [vmem:[%s2090_s17 + $0x60] sm:$0xff] %v1616_v52   ;;  %1740 = vst [vmem:[%s2090_s17 + $0xe0] sm:$0xff] %v1696_v53   ;;  %v745_v58 = vadd.f32 %v1831_v56, %v2075_v40  ;;  %v873_v59 = vadd.f32 %v1863_v57, %v2075_v40  ;;  %v904_v4 = vmax.f32 %v734_v54, 0.0 }
 0x12b   : > { %v736_v62 = vpop.f32.mrf.mxu0  ;;  %v864_v63 = vpop.f32.mrf.mxu1  ;;  %v936_v5 = vmax.f32 %v862_v55, 0.0 }
 0x12c   : > { %v907_v0 = vmax.f32 %v745_v58, 0.0  ;;  %v939_v1 = vmax.f32 %v873_v59, 0.0  ;;  %v737_v2 = vadd.f32 %v2075_v40, %v736_v62  ;;  %v865_v3 = vadd.f32 %v2075_v40, %v864_v63 }
 0x12e   : > { %v1631_v6 = vpack.c.bf16 %v907_v0, %v906_v60  ;;  %v1711_v7 = vpack.c.bf16 %v939_v1, %v938_v61  ;;  %v905_v8 = vmax.f32 %v737_v2, 0.0  ;;  %v937_v9 = vmax.f32 %v865_v3, 0.0 }
 0x130   : > { %1727 = vst [vmem:[%s2090_s17 + $0x78] sm:$0xff] %v1631_v6   ;;  %1743 = vst [vmem:[%s2090_s17 + $0xf8] sm:$0xff] %v1711_v7   ;;  %v1626_v10 = vpack.c.bf16 %v905_v8, %v904_v4  ;;  %v1706_v11 = vpack.c.bf16 %v937_v9, %v936_v5 }
 0x132   : > { %1726 = vst [vmem:[%s2090_s17 + $0x70] sm:$0xff] %v1626_v10   ;;  %1742 = vst [vmem:[%s2090_s17 + $0xf0] sm:$0xff] %v1706_v11  }
 0x133 PF: > { %s13_s14 = sadd.s32 1, %s1966_s14   ;;  %s2193_s12 = smov %s1962_s13 }
 0x134   : > { %p10_p5 = scmp.ge.s32.totalorder %s13_s14, 6   ;;  %s2194_s13 = smov %s2196_s15 }
 0x136   :  { %12 = sbr.rel (!%p10_p5) target bundleno = 2 (0x2), region = 68 }

// kernel: encoder_forward.6
= control target key start
LH: loop header
LB: loop body
LE: loop exit
PB: predicated region body
PF: predicated region fallthrough
CT: control target
= control target key end

     0   :  { %v10791_v0 = vmov 0   ;;  %s10787_s1 = inlined_call_operand.vmem [shape: bf16[2048,128], index: 1, kind: input, shape index: {}]   ;;  %s10788_s0 = inlined_call_operand.vmem [shape: bf16[512,2048], index: 0, kind: input, shape index: {}]   ;;  %s10789_s2 = inlined_call_operand.vmem [shape: f32[1,128], index: 2, kind: input, shape index: {}]   ;;  %s10790_s3 = inlined_call_operand.vmem [shape: bf16[512,128], index: 3, kind: output, shape index: {}]  }
   0x1   :  { %4118 = vmatprep.subr.bf16.mxu0 %v10791_v0  ;;  %4407 = vmatprep.subr.bf16.mxu1 %v10791_v0  ;;  %v7779_v1 = vld [vmem:[%s10787_s1 + $0x38] sm:$0xff]   ;;  %v7781_v3 = vld [vmem:[%s10787_s1 + $0x30] sm:$0xff]   ;;  %v7783_v5 = vld [vmem:[%s10787_s1 + $0x28] sm:$0xff]  }
   0x2   :  { %v7780_v2 = vld [vmem:[%s10787_s1 + $0xb8] sm:$0xff]   ;;  %4119 = vmatpush1.bf16.msra.mxu0 %v7779_v1  ;;  %v7782_v4 = vld [vmem:[%s10787_s1 + $0xb0] sm:$0xff]   ;;  %v7784_v6 = vld [vmem:[%s10787_s1 + $0xa8] sm:$0xff]  }
   0x3   :  { %4408 = vmatpush1.bf16.msra.mxu1 %v7780_v2  ;;  %4120 = vmatprep.subr.bf16.mxu0 %v10791_v0  ;;  %v7785_v7 = vld [vmem:[%s10787_s1 + $0x20] sm:$0xff]   ;;  %v7787_v9 = vld [vmem:[%s10787_s1 + $0x18] sm:$0xff]   ;;  %v7789_v11 = vld [vmem:[%s10787_s1 + $0x10] sm:$0xff]  }
   0x4   :  { %4409 = vmatprep.subr.bf16.mxu1 %v10791_v0  ;;  %v7786_v8 = vld [vmem:[%s10787_s1 + $0xa0] sm:$0xff]   ;;  %v7788_v10 = vld [vmem:[%s10787_s1 + $0x98] sm:$0xff]   ;;  %v7790_v12 = vld [vmem:[%s10787_s1 + $0x90] sm:$0xff]  }
   0x5   :  { %v7791_v13 = vld [vmem:[%s10787_s1 + $0x8] sm:$0xff]   ;;  %v7793_v15 = vld [vmem:[%s10787_s1] sm:$0xff]   ;;  %v7795_v17 = vld [vmem:[%s10787_s1 + $0x78] sm:$0xff]  }
   0x6   :  { %4121 = vmatpush1.bf16.msra.mxu0 %v7781_v3  ;;  %v7792_v14 = vld [vmem:[%s10787_s1 + $0x88] sm:$0xff]   ;;  %v7794_v16 = vld [vmem:[%s10787_s1 + $0x80] sm:$0xff]   ;;  %v7796_v18 = vld [vmem:[%s10787_s1 + $0xf8] sm:$0xff]  }
   0x7   :  { %4410 = vmatpush1.bf16.msra.mxu1 %v7782_v4  ;;  %4122 = vmatprep.subr.bf16.mxu0 %v10791_v0  ;;  %v8004_v19 = vld [vmem:[%s10788_s0] sm:$0xff]  ;;  %v8014_v21 = vld [vmem:[%s10788_s0 + $0x8] sm:$0xff]  ;;  %v7797_v24 = vld [vmem:[%s10787_s1 + $0x70] sm:$0xff]  }
   0x8   :  { %4411 = vmatprep.subr.bf16.mxu1 %v10791_v0  ;;  %v8009_v20 = vld [vmem:[%s10788_s0 + $0x40] sm:$0xff]  ;;  %v8021_v23 = vld [vmem:[%s10788_s0 + $0x48] sm:$0xff]  ;;  %v7798_v26 = vld [vmem:[%s10787_s1 + $0xf0] sm:$0xff]  }
   0x9   :  { %v6820_v22 = vcombine.high %v8004_v19, %v8009_v20  ;;  %v6822_v25 = vcombine.high %v8014_v21, %v8021_v23  ;;  %v7799_v27 = vld [vmem:[%s10787_s1 + $0x68] sm:$0xff]   ;;  %v7801_v29 = vld [vmem:[%s10787_s1 + $0x60] sm:$0xff]   ;;  %v7803_v31 = vld [vmem:[%s10787_s1 + $0x58] sm:$0xff]   ;;  %v6819_v42 = vcombine.low %v8004_v19, %v8009_v20  ;;  %v6821_v44 = vcombine.low %v8014_v21, %v8021_v23 }
   0xa   :  { %4123 = vmatpush1.bf16.msra.mxu0 %v7783_v5  ;;  %v7800_v28 = vld [vmem:[%s10787_s1 + $0xe8] sm:$0xff]   ;;  %v7802_v30 = vld [vmem:[%s10787_s1 + $0xe0] sm:$0xff]   ;;  %v7804_v32 = vld [vmem:[%s10787_s1 + $0xd8] sm:$0xff]  }
   0xb   :  { %4412 = vmatpush1.bf16.msra.mxu1 %v7784_v6  ;;  %4124 = vmatprep.subr.bf16.mxu0 %v10791_v0  ;;  %v7805_v33 = vld [vmem:[%s10787_s1 + $0x50] sm:$0xff]   ;;  %v7807_v35 = vld [vmem:[%s10787_s1 + $0x48] sm:$0xff]   ;;  %v7809_v37 = vld [vmem:[%s10787_s1 + $0x40] sm:$0xff]  }
   0xc   :  { %4413 = vmatprep.subr.bf16.mxu1 %v10791_v0  ;;  %4150 = vmatprep.mubr.bf16.mxu0 %v6820_v22  ;;  %v7806_v34 = vld [vmem:[%s10787_s1 + $0xd0] sm:$0xff]   ;;  %v7808_v36 = vld [vmem:[%s10787_s1 + $0xc8] sm:$0xff]   ;;  %v7810_v38 = vld [vmem:[%s10787_s1 + $0xc0] sm:$0xff]  }
   0xd   :  { %4439 = vmatprep.mubr.bf16.mxu1 %v6822_v25  ;;  %v31_v39 = vld [vmem:[%s10788_s0 + $0x80] sm:$0xff]  ;;  %v32_v41 = vld [vmem:[%s10788_s0 + $0x88] sm:$0xff]  ;;  %v7811_v45 = vld [vmem:[%s10787_s1 + $0x138] sm:$0xff]  }
   0xe   :  { %4125 = vmatpush1.bf16.msra.mxu0 %v7785_v7  ;;  %v39_v40 = vld [vmem:[%s10788_s0 + $0xc0] sm:$0xff]  ;;  %v40_v43 = vld [vmem:[%s10788_s0 + $0xc8] sm:$0xff]  ;;  %v7812_v46 = vld [vmem:[%s10787_s1 + $0x1b8] sm:$0xff]  }
   0xf   :  { %4414 = vmatpush1.bf16.msra.mxu1 %v7786_v8  ;;  %4126 = vmatprep.subr.bf16.mxu0 %v10791_v0  ;;  %v6836_v47 = vcombine.high %v31_v39, %v39_v40  ;;  %v6838_v48 = vcombine.high %v32_v41, %v40_v43  ;;  %v47_v49 = vld [vmem:[%s10788_s0 + $0x100] sm:$0xff]  ;;  %v7813_v51 = vld [vmem:[%s10787_s1 + $0x130] sm:$0xff]   ;;  %v48_v53 = vld [vmem:[%s10788_s0 + $0x108] sm:$0xff]  ;;  %v6835_v55 = vcombine.low %v31_v39, %v39_v40 }
  0x10   :  { %4415 = vmatprep.subr.bf16.mxu1 %v10791_v0  ;;  %v55_v50 = vld [vmem:[%s10788_s0 + $0x140] sm:$0xff]  ;;  %v7814_v52 = vld [vmem:[%s10787_s1 + $0x1b0] sm:$0xff]   ;;  %v56_v54 = vld [vmem:[%s10788_s0 + $0x148] sm:$0xff]  ;;  %v6837_v56 = vcombine.low %v32_v41, %v40_v43 }
  0x11   :  { %v6852_v57 = vcombine.high %v47_v49, %v55_v50  ;;  %v6854_v58 = vcombine.high %v48_v53, %v56_v54  ;;  %v7815_v59 = vld [vmem:[%s10787_s1 + $0x128] sm:$0xff]   ;;  %v63_v61 = vld [vmem:[%s10788_s0 + $0x180] sm:$0xff]  ;;  %v6851_v4 = vcombine.low %v47_v49, %v55_v50  ;;  %v7819_v5 = vld [vmem:[%s10787_s1 + $0x118] sm:$0xff]   ;;  %v6853_v6 = vcombine.low %v48_v53, %v56_v54 }
  0x12   :  { %4127 = vmatpush1.bf16.msra.mxu0 %v7787_v9  ;;  %v7816_v60 = vld [vmem:[%s10787_s1 + $0x1a8] sm:$0xff]   ;;  %v71_v62 = vld [vmem:[%s10788_s0 + $0x1c0] sm:$0xff]  ;;  %v7820_v8 = vld [vmem:[%s10787_s1 + $0x198] sm:$0xff]  }
  0x13   :  { %4416 = vmatpush1.bf16.msra.mxu1 %v7788_v10  ;;  %4128 = vmatprep.subr.bf16.mxu0 %v10791_v0  ;;  %v64_v63 = vld [vmem:[%s10788_s0 + $0x188] sm:$0xff]  ;;  %v7817_v2 = vld [vmem:[%s10787_s1 + $0x120] sm:$0xff]   ;;  %v6868_v7 = vcombine.high %v63_v61, %v71_v62  ;;  %v7830_v39 = vld [vmem:[%s10787_s1 + $0x1f0] sm:$0xff]  }
  0x14   :  { %4417 = vmatprep.subr.bf16.mxu1 %v10791_v0  ;;  %v72_v1 = vld [vmem:[%s10788_s0 + $0x1c8] sm:$0xff]  ;;  %v7818_v3 = vld [vmem:[%s10787_s1 + $0x1a0] sm:$0xff]  }
  0x15   :  { %v6870_v9 = vcombine.high %v64_v63, %v72_v1  ;;  %v79_v10 = vld [vmem:[%s10788_s0 + $0x200] sm:$0xff]  ;;  %v7824_v20 = vld [vmem:[%s10787_s1 + $0x188] sm:$0xff]  }
  0x16   :  { %4129 = vmatpush1.bf16.msra.mxu0 %v7789_v11  ;;  %v87_v11 = vld [vmem:[%s10788_s0 + $0x240] sm:$0xff]  ;;  %v104_v25 = vld [vmem:[%s10788_s0 + $0x2c8] sm:$0xff] }
  0x17   :  { %4418 = vmatpush1.bf16.msra.mxu1 %v7790_v12  ;;  %4130 = vmatprep.subr.bf16.mxu0 %v10791_v0  ;;  %v80_v12 = vld [vmem:[%s10788_s0 + $0x208] sm:$0xff]  ;;  %v6884_v19 = vcombine.high %v79_v10, %v87_v11  ;;  %v95_v22 = vld [vmem:[%s10788_s0 + $0x280] sm:$0xff] }
  0x18   :  { %4419 = vmatprep.subr.bf16.mxu1 %v10791_v0  ;;  %v103_v23 = vld [vmem:[%s10788_s0 + $0x2c0] sm:$0xff]  ;;  %v7831_v41 = vld [vmem:[%s10787_s1 + $0x168] sm:$0xff]  }
  0x19   :  { %v6899_v40 = vcombine.low %v95_v22, %v103_v23  ;;  %v136_v49 = vld [vmem:[%s10788_s0 + $0x3c8] sm:$0xff]  ;;  %v143_v54 = vld [vmem:[%s10788_s0 + $0x400] sm:$0xff] }
  0x1a   :  { %4131 = vmatpush1.bf16.msra.mxu0 %v7791_v13  ;;  %v88_v13 = vld [vmem:[%s10788_s0 + $0x248] sm:$0xff] }
  0x1b   :  { %4420 = vmatpush1.bf16.msra.mxu1 %v7792_v14  ;;  %4132 = vmatprep.subr.bf16.mxu0 %v10791_v0  ;;  %v7821_v14 = vld [vmem:[%s10787_s1 + $0x110] sm:$0xff]   ;;  %v6886_v21 = vcombine.high %v80_v12, %v88_v13 }
  0x1c   :  { %4421 = vmatprep.subr.bf16.mxu1 %v10791_v0 }
  0x1e   :  { %4133 = vmatpush1.bf16.msra.mxu0 %v7793_v15  ;;  %v7822_v15 = vld [vmem:[%s10787_s1 + $0x190] sm:$0xff]  }
  0x1f   :  { %4422 = vmatpush1.bf16.msra.mxu1 %v7794_v16  ;;  %4134 = vmatprep.subr.bf16.mxu0 %v10791_v0  ;;  %v6867_v16 = vcombine.low %v63_v61, %v71_v62 }
  0x20   :  { %4423 = vmatprep.subr.bf16.mxu1 %v10791_v0 }
  0x22   :  { %4135 = vmatpush2.bf16.msra.mxu0 %v7795_v17  ;;  %v7823_v17 = vld [vmem:[%s10787_s1 + $0x108] sm:$0xff]  }
  0x23   :  { %4424 = vmatpush2.bf16.msra.mxu1 %v7796_v18  ;;  %4136 = vmatprep.subr.bf16.mxu0 %v10791_v0  ;;  %v6869_v18 = vcombine.low %v64_v63, %v72_v1  ;;  %v159_v1 = vld [vmem:[%s10788_s0 + $0x480] sm:$0xff] }
  0x24   :  { %4425 = vmatprep.subr.bf16.mxu1 %v10791_v0 }
  0x26   :  { %4137 = vmatpush2.bf16.msra.mxu0 %v7797_v24  ;;  %v96_v24 = vld [vmem:[%s10788_s0 + $0x288] sm:$0xff] }
  0x27   :  { %4426 = vmatpush2.bf16.msra.mxu1 %v7798_v26  ;;  %4138 = vmatprep.subr.bf16.mxu0 %v10791_v0  ;;  %v7825_v26 = vld [vmem:[%s10787_s1 + $0x100] sm:$0xff]  }
  0x28   :  { %4427 = vmatprep.subr.bf16.mxu1 %v10791_v0 }
  0x2a   :  { %4139 = vmatpush2.bf16.msra.mxu0 %v7799_v27  ;;  %v7826_v27 = vld [vmem:[%s10787_s1 + $0x180] sm:$0xff]  }
  0x2b   :  { %4428 = vmatpush2.bf16.msra.mxu1 %v7800_v28  ;;  %4140 = vmatprep.subr.bf16.mxu0 %v10791_v0  ;;  %v6883_v28 = vcombine.low %v79_v10, %v87_v11  ;;  %v183_v10 = vld [vmem:[%s10788_s0 + $0x540] sm:$0xff]  ;;  %v176_v11 = vld [vmem:[%s10788_s0 + $0x508] sm:$0xff] }
  0x2c   :  { %4429 = vmatprep.subr.bf16.mxu1 %v10791_v0 }
  0x2e   :  { %4141 = vmatpush2.bf16.msra.mxu0 %v7801_v29  ;;  %v7827_v29 = vld [vmem:[%s10787_s1 + $0x178] sm:$0xff]  }
  0x2f   :  { %4430 = vmatpush2.bf16.msra.mxu1 %v7802_v30  ;;  %4142 = vmatprep.subr.bf16.mxu0 %v10791_v0  ;;  %v6885_v30 = vcombine.low %v80_v12, %v88_v13  ;;  %v184_v12 = vld [vmem:[%s10788_s0 + $0x548] sm:$0xff]  ;;  %v7835_v13 = vld [vmem:[%s10787_s1 + $0x158] sm:$0xff]  }
  0x30   :  { %4431 = vmatprep.subr.bf16.mxu1 %v10791_v0 }
  0x32   :  { %4143 = vmatpush2.bf16.msra.mxu0 %v7803_v31  ;;  %v6900_v31 = vcombine.high %v95_v22, %v103_v23  ;;  %v200_v22 = vld [vmem:[%s10788_s0 + $0x5c8] sm:$0xff] }
  0x33   :  { %4432 = vmatpush2.bf16.msra.mxu1 %v7804_v32  ;;  %4144 = vmatprep.subr.bf16.mxu0 %v10791_v0  ;;  %v7828_v32 = vld [vmem:[%s10787_s1 + $0x1f8] sm:$0xff]  }
  0x34   :  { %4433 = vmatprep.subr.bf16.mxu1 %v10791_v0 }
  0x36   :  { %4145 = vmatpush2.bf16.msra.mxu0 %v7805_v33  ;;  %v6902_v33 = vcombine.high %v96_v24, %v104_v25 }
  0x37   :  { %4434 = vmatpush2.bf16.msra.mxu1 %v7806_v34  ;;  %4146 = vmatprep.subr.bf16.mxu0 %v10791_v0  ;;  %v111_v34 = vld [vmem:[%s10788_s0 + $0x300] sm:$0xff] }
  0x38   :  { %4435 = vmatprep.subr.bf16.mxu1 %v10791_v0 }
  0x3a   :  { %4147 = vmatpush2.bf16.msra.mxu0 %v7807_v35  ;;  %v119_v35 = vld [vmem:[%s10788_s0 + $0x340] sm:$0xff] }
  0x3b   :  { %4436 = vmatpush2.bf16.msra.mxu1 %v7808_v36  ;;  %4148 = vmatprep.subr.bf16.mxu0 %v10791_v0  ;;  %v112_v36 = vld [vmem:[%s10788_s0 + $0x308] sm:$0xff]  ;;  %v6916_v43 = vcombine.high %v111_v34, %v119_v35  ;;  %v6915_v50 = vcombine.low %v111_v34, %v119_v35 }
  0x3c   :  { %4437 = vmatprep.subr.bf16.mxu1 %v10791_v0 }
  0x3e   :  { %4149 = vmatpush2.bf16.msra.mxu0 %v7809_v37  ;;  %v120_v37 = vld [vmem:[%s10788_s0 + $0x348] sm:$0xff] }
  0x3f   :  { %4438 = vmatpush2.bf16.msra.mxu1 %v7810_v38  ;;  %4696 = vmatprep.subr.bf16.mxu0 %v10791_v0  ;;  %v7829_v38 = vld [vmem:[%s10787_s1 + $0x170] sm:$0xff]  }
  0x40   :  { %4985 = vmatprep.subr.bf16.mxu1 %v10791_v0 }
  0x41   :  { %4151 = vmatmul.mubr.bf16.vlgmr.msra.gmra.mxu0 %v6819_v42  ;;  %v6901_v42 = vcombine.low %v96_v24, %v104_v25  ;;  %v6981_v24 = vcombine.low %v176_v11, %v184_v12 }
  0x42   :  { %4440 = vmatmul.mubr.bf16.vlgmr.msra.gmra.mxu1 %v6821_v44  ;;  %4697 = vmatpush1.bf16.msra.mxu0 %v7811_v45  ;;  %v7832_v44 = vld [vmem:[%s10787_s1 + $0x1e8] sm:$0xff]   ;;  %v6918_v45 = vcombine.high %v112_v36, %v120_v37 }
  0x43   :  { %4986 = vmatpush1.bf16.msra.mxu1 %v7812_v46  ;;  %4158 = vmatprep.mubr.bf16.mxu0 %v6836_v47  ;;  %v127_v46 = vld [vmem:[%s10788_s0 + $0x380] sm:$0xff] }
  0x44   :  { %4447 = vmatprep.mubr.bf16.mxu1 %v6838_v48  ;;  %4698 = vmatprep.subr.bf16.mxu0 %v10791_v0  ;;  %v135_v47 = vld [vmem:[%s10788_s0 + $0x3c0] sm:$0xff]  ;;  %v128_v48 = vld [vmem:[%s10788_s0 + $0x388] sm:$0xff] }
  0x45   :  { %4987 = vmatprep.subr.bf16.mxu1 %v10791_v0  ;;  %v6934_v53 = vcombine.high %v128_v48, %v136_v49  ;;  %v6933_v61 = vcombine.low %v128_v48, %v136_v49  ;;  %v248_v48 = vld [vmem:[%s10788_s0 + $0x748] sm:$0xff] }
  0x46   :  { %4699 = vmatpush1.bf16.msra.mxu0 %v7813_v51  ;;  %v6917_v51 = vcombine.low %v112_v36, %v120_v37  ;;  %v223_v37 = vld [vmem:[%s10788_s0 + $0x680] sm:$0xff]  ;;  %v7839_v49 = vld [vmem:[%s10787_s1 + $0x148] sm:$0xff]  }
  0x47   :  { %4988 = vmatpush1.bf16.msra.mxu1 %v7814_v52  ;;  %4700 = vmatprep.subr.bf16.mxu0 %v10791_v0  ;;  %v6932_v52 = vcombine.high %v127_v46, %v135_v47 }
  0x48   :  { %4989 = vmatprep.subr.bf16.mxu1 %v10791_v0 }
  0x49   :  { %4159 = vmatmul.mubr.bf16.gmra.mxu0 %v6835_v55  ;;  %v7833_v55 = vld [vmem:[%s10787_s1 + $0x160] sm:$0xff]  }
  0x4a   :  { %4448 = vmatmul.mubr.bf16.gmra.mxu1 %v6837_v56  ;;  %4166 = vmatprep.mubr.bf16.mxu0 %v6852_v57  ;;  %v7834_v56 = vld [vmem:[%s10787_s1 + $0x1e0] sm:$0xff]  }
  0x4b   :  { %4455 = vmatprep.mubr.bf16.mxu1 %v6854_v58  ;;  %4701 = vmatpush1.bf16.msra.mxu0 %v7815_v59  ;;  %v151_v57 = vld [vmem:[%s10788_s0 + $0x440] sm:$0xff]  ;;  %v144_v58 = vld [vmem:[%s10788_s0 + $0x408] sm:$0xff] }
  0x4c   :  { %4990 = vmatpush1.bf16.msra.mxu1 %v7816_v60  ;;  %4702 = vmatprep.subr.bf16.mxu0 %v10791_v0  ;;  %v152_v59 = vld [vmem:[%s10788_s0 + $0x448] sm:$0xff]  ;;  %v6931_v60 = vcombine.low %v127_v46, %v135_v47  ;;  %v6948_v62 = vcombine.high %v143_v54, %v151_v57  ;;  %v247_v46 = vld [vmem:[%s10788_s0 + $0x740] sm:$0xff] }
  0x4d   :  { %4991 = vmatprep.subr.bf16.mxu1 %v10791_v0  ;;  %v6950_v63 = vcombine.high %v144_v58, %v152_v59  ;;  %v240_v47 = vld [vmem:[%s10788_s0 + $0x708] sm:$0xff] }
  0x4f   :  { %4703 = vmatpush1.bf16.msra.mxu0 %v7817_v2  ;;  %v167_v2 = vld [vmem:[%s10788_s0 + $0x4c0] sm:$0xff] }
  0x50   :  { %4992 = vmatpush1.bf16.msra.mxu1 %v7818_v3  ;;  %4704 = vmatprep.subr.bf16.mxu0 %v10791_v0  ;;  %v160_v3 = vld [vmem:[%s10788_s0 + $0x488] sm:$0xff] }
  0x51   :  { %4167 = vmatmul.mubr.bf16.gmra.mxu0 %v6851_v4  ;;  %4993 = vmatprep.subr.bf16.mxu1 %v10791_v0  ;;  %v168_v4 = vld [vmem:[%s10788_s0 + $0x4c8] sm:$0xff] }
  0x52   :  { %4456 = vmatmul.mubr.bf16.gmra.mxu1 %v6853_v6  ;;  %4174 = vmatprep.mubr.bf16.mxu0 %v6868_v7  ;;  %v6949_v6 = vcombine.low %v144_v58, %v152_v59  ;;  %v6964_v7 = vcombine.high %v159_v1, %v167_v2  ;;  %v264_v58 = vld [vmem:[%s10788_s0 + $0x7c8] sm:$0xff] }
  0x53   :  { %4463 = vmatprep.mubr.bf16.mxu1 %v6870_v9  ;;  %4705 = vmatpush1.bf16.msra.mxu0 %v7819_v5  ;;  %v6947_v5 = vcombine.low %v143_v54, %v151_v57  ;;  %v175_v9 = vld [vmem:[%s10788_s0 + $0x500] sm:$0xff]  ;;  %v7046_v54 = vcombine.high %v240_v47, %v248_v48  ;;  %v256_v57 = vld [vmem:[%s10788_s0 + $0x788] sm:$0xff] }
  0x54   :  { %4994 = vmatpush1.bf16.msra.mxu1 %v7820_v8  ;;  %4706 = vmatprep.subr.bf16.mxu0 %v10791_v0  ;;  %v6966_v8 = vcombine.high %v160_v3, %v168_v4  ;;  %v6979_v23 = vcombine.low %v175_v9, %v183_v10 }
  0x55   :  { %4995 = vmatprep.subr.bf16.mxu1 %v10791_v0 }
  0x57   :  { %4707 = vmatpush1.bf16.msra.mxu0 %v7821_v14  ;;  %v7836_v14 = vld [vmem:[%s10787_s1 + $0x1d8] sm:$0xff]  }
  0x58   :  { %4996 = vmatpush1.bf16.msra.mxu1 %v7822_v15  ;;  %4708 = vmatprep.subr.bf16.mxu0 %v10791_v0  ;;  %v6963_v15 = vcombine.low %v159_v1, %v167_v2  ;;  %v279_v1 = vld [vmem:[%s10788_s0 + $0x840] sm:$0xff]  ;;  %v272_v2 = vld [vmem:[%s10788_s0 + $0x808] sm:$0xff] }
  0x59   :  { %4175 = vmatmul.mubr.bf16.gmra.mxu0 %v6867_v16  ;;  %4997 = vmatprep.subr.bf16.mxu1 %v10791_v0  ;;  %v6965_v16 = vcombine.low %v160_v3, %v168_v4  ;;  %v280_v3 = vld [vmem:[%s10788_s0 + $0x848] sm:$0xff]  ;;  %v7841_v4 = vld [vmem:[%s10787_s1 + $0x140] sm:$0xff]  }
  0x5a   :  { %4464 = vmatmul.mubr.bf16.gmra.mxu1 %v6869_v18  ;;  %4182 = vmatprep.mubr.bf16.mxu0 %v6884_v19  ;;  %v6982_v18 = vcombine.high %v176_v11, %v184_v12  ;;  %v191_v19 = vld [vmem:[%s10788_s0 + $0x580] sm:$0xff]  ;;  %v288_v12 = vld [vmem:[%s10788_s0 + $0x888] sm:$0xff] }
  0x5b   :  { %4471 = vmatprep.mubr.bf16.mxu1 %v6886_v21  ;;  %4709 = vmatpush1.bf16.msra.mxu0 %v7823_v17  ;;  %v6980_v17 = vcombine.high %v175_v9, %v183_v10  ;;  %v192_v21 = vld [vmem:[%s10788_s0 + $0x588] sm:$0xff]  ;;  %v7078_v9 = vcombine.high %v272_v2, %v280_v3  ;;  %v287_v10 = vld [vmem:[%s10788_s0 + $0x880] sm:$0xff] }
  0x5c   :  { %4998 = vmatpush1.bf16.msra.mxu1 %v7824_v20  ;;  %4710 = vmatprep.subr.bf16.mxu0 %v10791_v0  ;;  %v199_v20 = vld [vmem:[%s10788_s0 + $0x5c0] sm:$0xff]  ;;  %v6997_v34 = vcombine.low %v192_v21, %v200_v22 }
  0x5d   :  { %4999 = vmatprep.subr.bf16.mxu1 %v10791_v0  ;;  %v6996_v25 = vcombine.high %v191_v19, %v199_v20  ;;  %v295_v11 = vld [vmem:[%s10788_s0 + $0x8c0] sm:$0xff] }
  0x5f   :  { %4711 = vmatpush1.bf16.msra.mxu0 %v7825_v26  ;;  %v6998_v26 = vcombine.high %v192_v21, %v200_v22  ;;  %v312_v21 = vld [vmem:[%s10788_s0 + $0x948] sm:$0xff]  ;;  %v7091_v22 = vcombine.low %v287_v10, %v295_v11 }
  0x60   :  { %5000 = vmatpush1.bf16.msra.mxu1 %v7826_v27  ;;  %4712 = vmatprep.subr.bf16.mxu0 %v10791_v0  ;;  %v207_v27 = vld [vmem:[%s10788_s0 + $0x600] sm:$0xff] }
  0x61   :  { %4183 = vmatmul.mubr.bf16.gmra.mxu0 %v6883_v28  ;;  %5001 = vmatprep.subr.bf16.mxu1 %v10791_v0  ;;  %v215_v28 = vld [vmem:[%s10788_s0 + $0x640] sm:$0xff] }
  0x62   :  { %4472 = vmatmul.mubr.bf16.gmra.mxu1 %v6885_v30  ;;  %4190 = vmatprep.mubr.bf16.mxu0 %v6900_v31  ;;  %v216_v30 = vld [vmem:[%s10788_s0 + $0x648] sm:$0xff]  ;;  %v7837_v31 = vld [vmem:[%s10787_s1 + $0x150] sm:$0xff]   ;;  %v7012_v35 = vcombine.high %v207_v27, %v215_v28 }
  0x63   :  { %4479 = vmatprep.mubr.bf16.mxu1 %v6902_v33  ;;  %4713 = vmatpush2.bf16.msra.mxu0 %v7827_v29  ;;  %v208_v29 = vld [vmem:[%s10788_s0 + $0x608] sm:$0xff]  ;;  %v6995_v33 = vcombine.low %v191_v19, %v199_v20  ;;  %v311_v19 = vld [vmem:[%s10788_s0 + $0x940] sm:$0xff] }
  0x64   :  { %5002 = vmatpush2.bf16.msra.mxu1 %v7828_v32  ;;  %4714 = vmatprep.subr.bf16.mxu0 %v10791_v0  ;;  %v7838_v32 = vld [vmem:[%s10787_s1 + $0x1d0] sm:$0xff]   ;;  %v7014_v36 = vcombine.high %v208_v29, %v216_v30  ;;  %v304_v20 = vld [vmem:[%s10788_s0 + $0x908] sm:$0xff] }
  0x65   :  { %5003 = vmatprep.subr.bf16.mxu1 %v10791_v0 }
  0x67   :  { %4715 = vmatpush2.bf16.msra.mxu0 %v7829_v38  ;;  %v231_v38 = vld [vmem:[%s10788_s0 + $0x6c0] sm:$0xff] }
  0x68   :  { %5004 = vmatpush2.bf16.msra.mxu1 %v7830_v39  ;;  %4716 = vmatprep.subr.bf16.mxu0 %v10791_v0  ;;  %v224_v39 = vld [vmem:[%s10788_s0 + $0x688] sm:$0xff] }
  0x69   :  { %4191 = vmatmul.mubr.bf16.gmra.mxu0 %v6899_v40  ;;  %5005 = vmatprep.subr.bf16.mxu1 %v10791_v0  ;;  %v232_v40 = vld [vmem:[%s10788_s0 + $0x6c8] sm:$0xff] }
  0x6a   :  { %4480 = vmatmul.mubr.bf16.gmra.mxu1 %v6901_v42  ;;  %4198 = vmatprep.mubr.bf16.mxu0 %v6916_v43  ;;  %v7013_v42 = vcombine.low %v208_v29, %v216_v30  ;;  %v7028_v43 = vcombine.high %v223_v37, %v231_v38  ;;  %v328_v29 = vld [vmem:[%s10788_s0 + $0x9c8] sm:$0xff] }
  0x6b   :  { %4487 = vmatprep.mubr.bf16.mxu1 %v6918_v45  ;;  %4717 = vmatpush2.bf16.msra.mxu0 %v7831_v41  ;;  %v7011_v41 = vcombine.low %v207_v27, %v215_v28  ;;  %v239_v45 = vld [vmem:[%s10788_s0 + $0x700] sm:$0xff]  ;;  %v320_v28 = vld [vmem:[%s10788_s0 + $0x988] sm:$0xff] }
  0x6c   :  { %5006 = vmatpush2.bf16.msra.mxu1 %v7832_v44  ;;  %4718 = vmatprep.subr.bf16.mxu0 %v10791_v0  ;;  %v7030_v44 = vcombine.high %v224_v39, %v232_v40  ;;  %v7043_v59 = vcombine.low %v239_v45, %v247_v46  ;;  %v327_v27 = vld [vmem:[%s10788_s0 + $0x9c0] sm:$0xff] }
  0x6d   :  { %5007 = vmatprep.subr.bf16.mxu1 %v10791_v0 }
  0x6f   :  { %4719 = vmatpush2.bf16.msra.mxu0 %v7833_v55  ;;  %v255_v55 = vld [vmem:[%s10788_s0 + $0x780] sm:$0xff] }
  0x70   :  { %5008 = vmatpush2.bf16.msra.mxu1 %v7834_v56  ;;  %4720 = vmatprep.subr.bf16.mxu0 %v10791_v0  ;;  %v263_v56 = vld [vmem:[%s10788_s0 + $0x7c0] sm:$0xff] }
  0x71   :  { %4199 = vmatmul.mubr.bf16.gmra.mxu0 %v6915_v50  ;;  %5009 = vmatprep.subr.bf16.mxu1 %v10791_v0  ;;  %v7840_v50 = vld [vmem:[%s10787_s1 + $0x1c8] sm:$0xff]  }
  0x72   :  { %4488 = vmatmul.mubr.bf16.gmra.mxu1 %v6917_v51  ;;  %4206 = vmatprep.mubr.bf16.mxu0 %v6932_v52  ;;  %v7027_v51 = vcombine.low %v223_v37, %v231_v38  ;;  %v7029_v52 = vcombine.low %v224_v39, %v232_v40  ;;  %v344_v37 = vld [vmem:[%s10788_s0 + $0xa48] sm:$0xff]  ;;  %v7125_v39 = vcombine.low %v320_v28, %v328_v29 }
  0x73   :  { %4495 = vmatprep.mubr.bf16.mxu1 %v6934_v53  ;;  %4721 = vmatpush2.bf16.msra.mxu0 %v7835_v13  ;;  %v7044_v53 = vcombine.high %v239_v45, %v247_v46  ;;  %v296_v13 = vld [vmem:[%s10788_s0 + $0x8c8] sm:$0xff] }
  0x74   :  { %5010 = vmatpush2.bf16.msra.mxu1 %v7836_v14  ;;  %4722 = vmatprep.subr.bf16.mxu0 %v10791_v0  ;;  %v360_v45 = vld [vmem:[%s10788_s0 + $0xac8] sm:$0xff] }
  0x75   :  { %5011 = vmatprep.subr.bf16.mxu1 %v10791_v0 }
  0x77   :  { %4723 = vmatpush2.bf16.msra.mxu0 %v7837_v31  ;;  %v7109_v31 = vcombine.low %v304_v20, %v312_v21 }
  0x78   :  { %5012 = vmatpush2.bf16.msra.mxu1 %v7838_v32  ;;  %4724 = vmatprep.subr.bf16.mxu0 %v10791_v0 }
  0x79   :  { %4207 = vmatmul.mubr.bf16.gmra.mxu0 %v6931_v60  ;;  %5013 = vmatprep.subr.bf16.mxu1 %v10791_v0  ;;  %v7045_v60 = vcombine.low %v240_v47, %v248_v48 }
  0x7a   :  { %4496 = vmatmul.mubr.bf16.gmra.mxu1 %v6933_v61  ;;  %4214 = vmatprep.mubr.bf16.mxu0 %v6948_v62  ;;  %v7060_v61 = vcombine.high %v255_v55, %v263_v56  ;;  %v7062_v62 = vcombine.high %v256_v57, %v264_v58 }
  0x7b   :  { %4503 = vmatprep.mubr.bf16.mxu1 %v6950_v63  ;;  %4725 = vmatpush2.bf16.msra.mxu0 %v7839_v49  ;;  %v271_v63 = vld [vmem:[%s10788_s0 + $0x800] sm:$0xff] }
  0x7c   :  { %5014 = vmatpush2.bf16.msra.mxu1 %v7840_v50  ;;  %4726 = vmatprep.subr.bf16.mxu0 %v10791_v0  ;;  %v7075_v14 = vcombine.low %v271_v63, %v279_v1  ;;  %v367_v50 = vld [vmem:[%s10788_s0 + $0xb00] sm:$0xff] }
  0x7d   :  { %5015 = vmatprep.subr.bf16.mxu1 %v10791_v0 }
  0x7f   :  { %4727 = vmatpush2.bf16.msra.mxu0 %v7841_v4  ;;  %v407_v4 = vld [vmem:[%s10788_s0 + $0xc40] sm:$0xff] }
  0x80   :  { %5274 = vmatprep.subr.bf16.mxu0 %v10791_v0 }
  0x81   :  { %4215 = vmatmul.mubr.bf16.gmra.mxu0 %v6947_v5  ;;  %v7842_v5 = vld [vmem:[%s10787_s1 + $0x1c0] sm:$0xff]  }
  0x82   :  { %4504 = vmatmul.mubr.bf16.gmra.mxu1 %v6949_v6  ;;  %4222 = vmatprep.mubr.bf16.mxu0 %v6964_v7  ;;  %v7059_v6 = vcombine.low %v255_v55, %v263_v56  ;;  %v7061_v7 = vcombine.low %v256_v57, %v264_v58  ;;  %v383_v58 = vld [vmem:[%s10788_s0 + $0xb80] sm:$0xff] }
  0x83   :  { %4511 = vmatprep.mubr.bf16.mxu1 %v6966_v8  ;;  %v7076_v8 = vcombine.high %v271_v63, %v279_v1  ;;  %5016 = vmatpush2.bf16.msra.mxu1 %v7842_v5  ;;  %v400_v5 = vld [vmem:[%s10788_s0 + $0xc08] sm:$0xff] }
  0x84   :  { %5563 = vmatprep.subr.bf16.mxu1 %v10791_v0 }
  0x89   :  { %4223 = vmatmul.mubr.bf16.gmra.mxu0 %v6963_v15  ;;  %v7077_v15 = vcombine.low %v272_v2, %v280_v3  ;;  %v399_v3 = vld [vmem:[%s10788_s0 + $0xc00] sm:$0xff] }
  0x8a   :  { %4512 = vmatmul.mubr.bf16.gmra.mxu1 %v6965_v16  ;;  %4230 = vmatprep.mubr.bf16.mxu0 %v6980_v17  ;;  %v7092_v16 = vcombine.high %v287_v10, %v295_v11  ;;  %v7094_v17 = vcombine.high %v288_v12, %v296_v13  ;;  %v415_v11 = vld [vmem:[%s10788_s0 + $0xc80] sm:$0xff] }
  0x8b   :  { %4519 = vmatprep.mubr.bf16.mxu1 %v6982_v18  ;;  %v303_v18 = vld [vmem:[%s10788_s0 + $0x900] sm:$0xff] }
  0x8c   :  { %v7107_v30 = vcombine.low %v303_v18, %v311_v19 }
  0x91   :  { %4231 = vmatmul.mubr.bf16.gmra.mxu0 %v6979_v23  ;;  %v7093_v23 = vcombine.low %v288_v12, %v296_v13  ;;  %v423_v12 = vld [vmem:[%s10788_s0 + $0xcc0] sm:$0xff]  ;;  %v416_v13 = vld [vmem:[%s10788_s0 + $0xc88] sm:$0xff] }
  0x92   :  { %4520 = vmatmul.mubr.bf16.gmra.mxu1 %v6981_v24  ;;  %4238 = vmatprep.mubr.bf16.mxu0 %v6996_v25  ;;  %v7108_v24 = vcombine.high %v303_v18, %v311_v19  ;;  %v7110_v25 = vcombine.high %v304_v20, %v312_v21  ;;  %v8518_v18 = vld [vmem:[%s10789_s2] ss:$0 sm:$0xff] }
  0x93   :  { %4527 = vmatprep.mubr.bf16.mxu1 %v6998_v26  ;;  %v319_v26 = vld [vmem:[%s10788_s0 + $0x980] sm:$0xff] }
  0x94   :  { %v7124_v32 = vcombine.high %v319_v26, %v327_v27  ;;  %v7123_v38 = vcombine.low %v319_v26, %v327_v27 }
  0x99   :  { %4239 = vmatmul.mubr.bf16.gmra.mxu0 %v6995_v33  ;;  %v7126_v33 = vcombine.high %v320_v28, %v328_v29  ;;  %v432_v28 = vld [vmem:[%s10788_s0 + $0xd08] sm:$0xff] }
  0x9a   :  { %4528 = vmatmul.mubr.bf16.gmra.mxu1 %v6997_v34  ;;  %4246 = vmatprep.mubr.bf16.mxu0 %v7012_v35  ;;  %v335_v34 = vld [vmem:[%s10788_s0 + $0xa00] sm:$0xff]  ;;  %v440_v29 = vld [vmem:[%s10788_s0 + $0xd48] sm:$0xff] }
  0x9b   :  { %4535 = vmatprep.mubr.bf16.mxu1 %v7014_v36  ;;  %v343_v35 = vld [vmem:[%s10788_s0 + $0xa40] sm:$0xff]  ;;  %v336_v36 = vld [vmem:[%s10788_s0 + $0xa08] sm:$0xff] }
  0x9c   :  { %v7140_v40 = vcombine.high %v335_v34, %v343_v35  ;;  %v7139_v46 = vcombine.low %v335_v34, %v343_v35  ;;  %v7141_v47 = vcombine.low %v336_v36, %v344_v37 }
  0xa1   :  { %4247 = vmatmul.mubr.bf16.gmra.mxu0 %v7011_v41  ;;  %v7142_v41 = vcombine.high %v336_v36, %v344_v37  ;;  %v7238_v37 = vcombine.high %v432_v28, %v440_v29 }
  0xa2   :  { %4536 = vmatmul.mubr.bf16.gmra.mxu1 %v7013_v42  ;;  %4254 = vmatprep.mubr.bf16.mxu0 %v7028_v43  ;;  %v351_v42 = vld [vmem:[%s10788_s0 + $0xa80] sm:$0xff] }
  0xa3   :  { %4543 = vmatprep.mubr.bf16.mxu1 %v7030_v44  ;;  %v359_v43 = vld [vmem:[%s10788_s0 + $0xac0] sm:$0xff]  ;;  %v352_v44 = vld [vmem:[%s10788_s0 + $0xa88] sm:$0xff] }
  0xa4   :  { %v7156_v48 = vcombine.high %v351_v42, %v359_v43  ;;  %v7158_v49 = vcombine.high %v352_v44, %v360_v45  ;;  %v7157_v55 = vcombine.low %v352_v44, %v360_v45  ;;  %v447_v44 = vld [vmem:[%s10788_s0 + $0xd80] sm:$0xff] }
  0xa5   :  { %v455_v45 = vld [vmem:[%s10788_s0 + $0xdc0] sm:$0xff] }
  0xa9   :  { %4255 = vmatmul.mubr.bf16.gmra.mxu0 %v7027_v51  ;;  %v375_v51 = vld [vmem:[%s10788_s0 + $0xb40] sm:$0xff] }
  0xaa   :  { %4544 = vmatmul.mubr.bf16.gmra.mxu1 %v7029_v52  ;;  %4262 = vmatprep.mubr.bf16.mxu0 %v7044_v53  ;;  %v368_v52 = vld [vmem:[%s10788_s0 + $0xb08] sm:$0xff]  ;;  %v7172_v56 = vcombine.high %v367_v50, %v375_v51 }
  0xab   :  { %4551 = vmatprep.mubr.bf16.mxu1 %v7046_v54  ;;  %v376_v53 = vld [vmem:[%s10788_s0 + $0xb48] sm:$0xff]  ;;  %v7155_v54 = vcombine.low %v351_v42, %v359_v43 }
  0xac   :  { %v7174_v57 = vcombine.high %v368_v52, %v376_v53  ;;  %v7173_v63 = vcombine.low %v368_v52, %v376_v53 }
  0xb1   :  { %4263 = vmatmul.mubr.bf16.gmra.mxu0 %v7043_v59  ;;  %v391_v59 = vld [vmem:[%s10788_s0 + $0xbc0] sm:$0xff] }
  0xb2   :  { %4552 = vmatmul.mubr.bf16.gmra.mxu1 %v7045_v60  ;;  %4270 = vmatprep.mubr.bf16.mxu0 %v7060_v61  ;;  %v384_v60 = vld [vmem:[%s10788_s0 + $0xb88] sm:$0xff]  ;;  %v7188_v1 = vcombine.high %v383_v58, %v391_v59 }
  0xb3   :  { %4559 = vmatprep.mubr.bf16.mxu1 %v7062_v62  ;;  %v392_v61 = vld [vmem:[%s10788_s0 + $0xbc8] sm:$0xff]  ;;  %v7171_v62 = vcombine.low %v367_v50, %v375_v51 }
  0xb4   :  { %v7190_v2 = vcombine.high %v384_v60, %v392_v61 }
  0xb9   :  { %4271 = vmatmul.mubr.bf16.gmra.mxu0 %v7059_v6  ;;  %v408_v6 = vld [vmem:[%s10788_s0 + $0xc48] sm:$0xff] }
  0xba   :  { %4560 = vmatmul.mubr.bf16.gmra.mxu1 %v7061_v7  ;;  %4278 = vmatprep.mubr.bf16.mxu0 %v7076_v8  ;;  %v7187_v7 = vcombine.low %v383_v58, %v391_v59  ;;  %v7189_v8 = vcombine.low %v384_v60, %v392_v61  ;;  %v7206_v10 = vcombine.high %v400_v5, %v408_v6 }
  0xbb   :  { %4567 = vmatprep.mubr.bf16.mxu1 %v7078_v9  ;;  %v7204_v9 = vcombine.high %v399_v3, %v407_v4 }
  0xc1   :  { %4279 = vmatmul.mubr.bf16.gmra.mxu0 %v7075_v14  ;;  %v424_v14 = vld [vmem:[%s10788_s0 + $0xcc8] sm:$0xff] }
  0xc2   :  { %4568 = vmatmul.mubr.bf16.gmra.mxu1 %v7077_v15  ;;  %4286 = vmatprep.mubr.bf16.mxu0 %v7092_v16  ;;  %v7203_v15 = vcombine.low %v399_v3, %v407_v4  ;;  %v7205_v16 = vcombine.low %v400_v5, %v408_v6  ;;  %v7222_v19 = vcombine.high %v416_v13, %v424_v14  ;;  %v464_v5 = vld [vmem:[%s10788_s0 + $0xe08] sm:$0xff] }
  0xc3   :  { %4575 = vmatprep.mubr.bf16.mxu1 %v7094_v17  ;;  %v7220_v17 = vcombine.high %v415_v11, %v423_v12  ;;  %v7221_v34 = vcombine.low %v416_v13, %v424_v14  ;;  %v472_v6 = vld [vmem:[%s10788_s0 + $0xe48] sm:$0xff] }
  0xc4   :  { %v7270_v14 = vcombine.high %v464_v5, %v472_v6 }
  0xc9   :  { %4287 = vmatmul.mubr.bf16.gmra.mxu0 %v7091_v22 }
  0xca   :  { %4576 = vmatmul.mubr.bf16.gmra.mxu1 %v7093_v23  ;;  %4294 = vmatprep.mubr.bf16.mxu0 %v7108_v24  ;;  %v431_v24 = vld [vmem:[%s10788_s0 + $0xd00] sm:$0xff] }
  0xcb   :  { %4583 = vmatprep.mubr.bf16.mxu1 %v7110_v25  ;;  %v439_v25 = vld [vmem:[%s10788_s0 + $0xd40] sm:$0xff] }
  0xcc   :  { %v7236_v35 = vcombine.high %v431_v24, %v439_v25  ;;  %v7235_v51 = vcombine.low %v431_v24, %v439_v25 }
  0xd1   :  { %4295 = vmatmul.mubr.bf16.gmra.mxu0 %v7107_v30 }
  0xd2   :  { %4584 = vmatmul.mubr.bf16.gmra.mxu1 %v7109_v31  ;;  %4302 = vmatprep.mubr.bf16.mxu0 %v7124_v32  ;;  %v7219_v31 = vcombine.low %v415_v11, %v423_v12 }
  0xd3   :  { %4591 = vmatprep.mubr.bf16.mxu1 %v7126_v33 }
  0xd9   :  { %4303 = vmatmul.mubr.bf16.gmra.mxu0 %v7123_v38 }
  0xda   :  { %4592 = vmatmul.mubr.bf16.gmra.mxu1 %v7125_v39  ;;  %4310 = vmatprep.mubr.bf16.mxu0 %v7140_v40 }
  0xdb   :  { %4599 = vmatprep.mubr.bf16.mxu1 %v7142_v41 }
  0xe1   :  { %4311 = vmatmul.mubr.bf16.gmra.mxu0 %v7139_v46 }
  0xe2   :  { %4600 = vmatmul.mubr.bf16.gmra.mxu1 %v7141_v47  ;;  %4318 = vmatprep.mubr.bf16.mxu0 %v7156_v48  ;;  %v448_v48 = vld [vmem:[%s10788_s0 + $0xd88] sm:$0xff] }
  0xe3   :  { %4607 = vmatprep.mubr.bf16.mxu1 %v7158_v49  ;;  %v456_v49 = vld [vmem:[%s10788_s0 + $0xdc8] sm:$0xff] }
  0xe4   :  { %v7253_v11 = vcombine.low %v448_v48, %v456_v49 }
  0xe9   :  { %4319 = vmatmul.mubr.bf16.gmra.mxu0 %v7155_v54  ;;  %v7237_v54 = vcombine.low %v432_v28, %v440_v29  ;;  %v488_v28 = vld [vmem:[%s10788_s0 + $0xec8] sm:$0xff] }
  0xea   :  { %4608 = vmatmul.mubr.bf16.gmra.mxu1 %v7157_v55  ;;  %4326 = vmatprep.mubr.bf16.mxu0 %v7172_v56  ;;  %v7252_v55 = vcombine.high %v447_v44, %v455_v45 }
  0xeb   :  { %4615 = vmatprep.mubr.bf16.mxu1 %v7174_v57  ;;  %v7254_v57 = vcombine.high %v448_v48, %v456_v49  ;;  %v496_v49 = vld [vmem:[%s10788_s0 + $0xf08] sm:$0xff] }
  0xf1   :  { %4327 = vmatmul.mubr.bf16.gmra.mxu0 %v7171_v62 }
  0xf2   :  { %4616 = vmatmul.mubr.bf16.gmra.mxu1 %v7173_v63  ;;  %4334 = vmatprep.mubr.bf16.mxu0 %v7188_v1  ;;  %v463_v1 = vld [vmem:[%s10788_s0 + $0xe00] sm:$0xff] }
  0xf3   :  { %4623 = vmatprep.mubr.bf16.mxu1 %v7190_v2  ;;  %v471_v2 = vld [vmem:[%s10788_s0 + $0xe40] sm:$0xff] }
  0xf4   :  { %v7268_v12 = vcombine.high %v463_v1, %v471_v2 }
  0xf9   :  { %4335 = vmatmul.mubr.bf16.gmra.mxu0 %v7187_v7 }
  0xfa   :  { %4624 = vmatmul.mubr.bf16.gmra.mxu1 %v7189_v8  ;;  %4342 = vmatprep.mubr.bf16.mxu0 %v7204_v9  ;;  %v7251_v8 = vcombine.low %v447_v44, %v455_v45  ;;  %v495_v44 = vld [vmem:[%s10788_s0 + $0xf00] sm:$0xff] }
  0xfb   :  { %4631 = vmatprep.mubr.bf16.mxu1 %v7206_v10  ;;  %v503_v45 = vld [vmem:[%s10788_s0 + $0xf40] sm:$0xff] }
 0x101   :  { %v4152_v20 = vpop.f32.mrf.mxu0  ;;  %4343 = vmatmul.mubr.bf16.gmra.mxu0 %v7203_v15 }
 0x102   :  { %v4153_v21 = vadd.f32 %v8518_v18, %v4152_v20  ;;  %v4441_v22 = vpop.f32.mrf.mxu1  ;;  %4632 = vmatmul.mubr.bf16.gmra.mxu1 %v7205_v16  ;;  %4350 = vmatprep.mubr.bf16.mxu0 %v7220_v17 }
 0x103   :  { %v4154_v23 = vpop.f32.mrf.mxu0  ;;  %4639 = vmatprep.mubr.bf16.mxu1 %v7222_v19 }
 0x104   :  { %v8527_v26 = vadd.f32 %v4441_v22, %v4153_v21  ;;  %v4443_v27 = vpop.f32.mrf.mxu1  ;;  %v479_v22 = vld [vmem:[%s10788_s0 + $0xe80] sm:$0xff] }
 0x105   :  { %v4155_v30 = vpop.f32.mrf.mxu0  ;;  %v487_v23 = vld [vmem:[%s10788_s0 + $0xec0] sm:$0xff]  ;;  %v480_v27 = vld [vmem:[%s10788_s0 + $0xe88] sm:$0xff] }
 0x106   :  { %v4156_v32 = vadd.f32 %v8518_v18, %v4155_v30  ;;  %v4444_v33 = vpop.f32.mrf.mxu1  ;;  %v7267_v30 = vcombine.low %v463_v1, %v471_v2 }
 0x107   :  { %v4157_v36 = vpop.f32.mrf.mxu0 }
 0x108   :  { %v8536_v38 = vadd.f32 %v4444_v33, %v4156_v32  ;;  %v4446_v39 = vpop.f32.mrf.mxu1  ;;  %v7269_v33 = vcombine.low %v464_v5, %v472_v6  ;;  %v7286_v36 = vcombine.high %v480_v27, %v488_v28  ;;  %v519_v5 = vld [vmem:[%s10788_s0 + $0xfc0] sm:$0xff] }
 0x109   :  { %v4160_v40 = vpop.f32.mrf.mxu0  ;;  %4351 = vmatmul.mubr.bf16.gmra.mxu0 %v7219_v31 }
 0x10a   :  { %v4161_v41 = vadd.f32 %v8518_v18, %v4160_v40  ;;  %v4449_v42 = vpop.f32.mrf.mxu1  ;;  %4640 = vmatmul.mubr.bf16.gmra.mxu1 %v7221_v34  ;;  %4358 = vmatprep.mubr.bf16.mxu0 %v7236_v35  ;;  %v7284_v34 = vcombine.high %v479_v22, %v487_v23 }
 0x10b   :  { %v4162_v43 = vpop.f32.mrf.mxu0  ;;  %4647 = vmatprep.mubr.bf16.mxu1 %v7238_v37 }
 0x10c   :  { %v8545_v46 = vadd.f32 %v4449_v42, %v4161_v41  ;;  %v4451_v47 = vpop.f32.mrf.mxu1 }
 0x10d   :  { %v4163_v50 = vpop.f32.mrf.mxu0 }
 0x10e   :  { %v4164_v52 = vadd.f32 %v8518_v18, %v4163_v50  ;;  %v4452_v53 = vpop.f32.mrf.mxu1  ;;  %v504_v50 = vld [vmem:[%s10788_s0 + $0xf48] sm:$0xff] }
 0x10f   :  { %v4165_v56 = vpop.f32.mrf.mxu0 }
 0x110   :  { %v8554_v58 = vadd.f32 %v4452_v53, %v4164_v52  ;;  %v4454_v59 = vpop.f32.mrf.mxu1  ;;  %v7283_v52 = vcombine.low %v479_v22, %v487_v23  ;;  %v7300_v56 = vcombine.high %v495_v44, %v503_v45 }
 0x111   :  { %v4168_v60 = vpop.f32.mrf.mxu0  ;;  %4359 = vmatmul.mubr.bf16.gmra.mxu0 %v7235_v51  ;;  %v7302_v59 = vcombine.high %v496_v49, %v504_v50 }
 0x112   :  { %v4169_v61 = vadd.f32 %v8518_v18, %v4168_v60  ;;  %v4457_v62 = vpop.f32.mrf.mxu1  ;;  %4648 = vmatmul.mubr.bf16.gmra.mxu1 %v7237_v54  ;;  %4366 = vmatprep.mubr.bf16.mxu0 %v7252_v55  ;;  %v7285_v55 = vcombine.low %v480_v27, %v488_v28  ;;  %v17_v28 = vld [vmem:[%s10788_s0 + $0x10] sm:$0xff] }
 0x113   :  { %v4170_v63 = vpop.f32.mrf.mxu0  ;;  %4655 = vmatprep.mubr.bf16.mxu1 %v7254_v57 }
 0x114   :  { %v8563_v3 = vadd.f32 %v4457_v62, %v4169_v61  ;;  %v4459_v4 = vpop.f32.mrf.mxu1 }
 0x115   :  { %v4171_v7 = vpop.f32.mrf.mxu0  ;;  %v511_v4 = vld [vmem:[%s10788_s0 + $0xf80] sm:$0xff] }
 0x116   :  { %v4172_v9 = vadd.f32 %v8518_v18, %v4171_v7  ;;  %v4460_v10 = vpop.f32.mrf.mxu1 }
 0x117   :  { %v4173_v13 = vpop.f32.mrf.mxu0 }
 0x118   :  { %v8572_v15 = vadd.f32 %v4460_v10, %v4172_v9  ;;  %v4462_v16 = vpop.f32.mrf.mxu1  ;;  %v520_v9 = vld [vmem:[%s10788_s0 + $0xfc8] sm:$0xff] }
 0x119   :  { %v4176_v17 = vpop.f32.mrf.mxu0  ;;  %4367 = vmatmul.mubr.bf16.gmra.mxu0 %v7251_v8  ;;  %v512_v8 = vld [vmem:[%s10788_s0 + $0xf88] sm:$0xff]  ;;  %v7316_v16 = vcombine.high %v511_v4, %v519_v5 }
 0x11a   :  { %v4177_v19 = vadd.f32 %v8518_v18, %v4176_v17  ;;  %v4465_v20 = vpop.f32.mrf.mxu1  ;;  %4656 = vmatmul.mubr.bf16.gmra.mxu1 %v7253_v11  ;;  %4374 = vmatprep.mubr.bf16.mxu0 %v7268_v12  ;;  %v7299_v11 = vcombine.low %v495_v44, %v503_v45 }
 0x11b   :  { %v4178_v21 = vpop.f32.mrf.mxu0  ;;  %4663 = vmatprep.mubr.bf16.mxu1 %v7270_v14  ;;  %v7301_v14 = vcombine.low %v496_v49, %v504_v50 }
 0x11c   :  { %v8581_v24 = vadd.f32 %v4465_v20, %v4177_v19  ;;  %v4467_v25 = vpop.f32.mrf.mxu1  ;;  %v7318_v19 = vcombine.high %v512_v8, %v520_v9 }
 0x11d   :  { %v4179_v29 = vpop.f32.mrf.mxu0 }
 0x11e   :  { %v4180_v31 = vadd.f32 %v8518_v18, %v4179_v29  ;;  %v4468_v32 = vpop.f32.mrf.mxu1  ;;  %v25_v29 = vld [vmem:[%s10788_s0 + $0x50] sm:$0xff] }
 0x11f   :  { %v4181_v35 = vpop.f32.mrf.mxu0 }
 0x120   :  { %v8590_v37 = vadd.f32 %v4468_v32, %v4180_v31  ;;  %v4470_v39 = vpop.f32.mrf.mxu1  ;;  %v18_v32 = vld [vmem:[%s10788_s0 + $0x18] sm:$0xff]  ;;  %v7315_v35 = vcombine.low %v511_v4, %v519_v5 }
 0x121   :  { %v4184_v40 = vpop.f32.mrf.mxu0  ;;  %4375 = vmatmul.mubr.bf16.gmra.mxu0 %v7267_v30  ;;  %v7844_v5 = vld [vmem:[%s10787_s1 + $0x2b8] sm:$0xff]  }
 0x122   :  { %v4185_v41 = vadd.f32 %v8518_v18, %v4184_v40  ;;  %v4473_v42 = vpop.f32.mrf.mxu1  ;;  %4664 = vmatmul.mubr.bf16.gmra.mxu1 %v7269_v33  ;;  %4382 = vmatprep.mubr.bf16.mxu0 %v7284_v34  ;;  %v26_v33 = vld [vmem:[%s10788_s0 + $0x58] sm:$0xff]  ;;  %v7317_v40 = vcombine.low %v512_v8, %v520_v9 }
 0x123   :  { %v4186_v43 = vpop.f32.mrf.mxu0  ;;  %4671 = vmatprep.mubr.bf16.mxu1 %v7286_v36 }
 0x124   :  { %v8599_v47 = vadd.f32 %v4473_v42, %v4185_v41  ;;  %v4475_v48 = vpop.f32.mrf.mxu1  ;;  %v6824_v41 = vcombine.high %v17_v28, %v25_v29  ;;  %v6826_v43 = vcombine.high %v18_v32, %v26_v33 }
 0x125   :  { %v4187_v51 = vpop.f32.mrf.mxu0 }
 0x126   :  { %v4188_v53 = vadd.f32 %v8518_v18, %v4187_v51  ;;  %v4476_v54 = vpop.f32.mrf.mxu1 }
 0x127   :  { %v4189_v57 = vpop.f32.mrf.mxu0 }
 0x128   :  { %v8608_v60 = vadd.f32 %v4476_v54, %v4188_v53  ;;  %v4478_v61 = vpop.f32.mrf.mxu1  ;;  %v33_v54 = vld [vmem:[%s10788_s0 + $0x90] sm:$0xff]  ;;  %v6823_v57 = vcombine.low %v17_v28, %v25_v29 }
 0x129   :  { %v4192_v62 = vpop.f32.mrf.mxu0  ;;  %4383 = vmatmul.mubr.bf16.gmra.mxu0 %v7283_v52  ;;  %v42_v61 = vld [vmem:[%s10788_s0 + $0xd8] sm:$0xff] }
 0x12a   :  { %v4193_v63 = vadd.f32 %v8518_v18, %v4192_v62  ;;  %v4481_v1 = vpop.f32.mrf.mxu1  ;;  %4672 = vmatmul.mubr.bf16.gmra.mxu1 %v7285_v55  ;;  %4390 = vmatprep.mubr.bf16.mxu0 %v7300_v56  ;;  %v41_v55 = vld [vmem:[%s10788_s0 + $0xd0] sm:$0xff] }
 0x12b   :  { %v4194_v2 = vpop.f32.mrf.mxu0  ;;  %4679 = vmatprep.mubr.bf16.mxu1 %v7302_v59  ;;  %v34_v59 = vld [vmem:[%s10788_s0 + $0x98] sm:$0xff]  ;;  %v6839_v29 = vcombine.low %v33_v54, %v41_v55 }
 0x12c   :  { %v8617_v6 = vadd.f32 %v4481_v1, %v4193_v63  ;;  %v4483_v7 = vpop.f32.mrf.mxu1  ;;  %v6825_v1 = vcombine.low %v18_v32, %v26_v33  ;;  %v7843_v2 = vld [vmem:[%s10787_s1 + $0x238] sm:$0xff]   ;;  %v6841_v33 = vcombine.low %v34_v59, %v42_v61 }
 0x12d   :  { %v4195_v10 = vpop.f32.mrf.mxu0  ;;  %v6840_v7 = vcombine.high %v33_v54, %v41_v55 }
 0x12e   :  { %v4196_v12 = vadd.f32 %v8518_v18, %v4195_v10  ;;  %v4484_v13 = vpop.f32.mrf.mxu1  ;;  %v6842_v10 = vcombine.high %v34_v59, %v42_v61  ;;  %v7850_v59 = vld [vmem:[%s10787_s1 + $0x2a0] sm:$0xff]  }
 0x12f   :  { %v4197_v17 = vpop.f32.mrf.mxu0 }
 0x130   :  { %v8626_v20 = vadd.f32 %v4484_v13, %v4196_v12  ;;  %v4486_v21 = vpop.f32.mrf.mxu1  ;;  %v49_v17 = vld [vmem:[%s10788_s0 + $0x110] sm:$0xff] }
 0x131   :  { %v4200_v22 = vpop.f32.mrf.mxu0  ;;  %4391 = vmatmul.mubr.bf16.gmra.mxu0 %v7299_v11  ;;  %v7846_v21 = vld [vmem:[%s10787_s1 + $0x2b0] sm:$0xff]  }
 0x132   :  { %v4201_v23 = vadd.f32 %v8518_v18, %v4200_v22  ;;  %v4489_v25 = vpop.f32.mrf.mxu1  ;;  %4680 = vmatmul.mubr.bf16.gmra.mxu1 %v7301_v14  ;;  %4398 = vmatprep.mubr.bf16.mxu0 %v7316_v16  ;;  %v7845_v14 = vld [vmem:[%s10787_s1 + $0x230] sm:$0xff]  }
 0x133   :  { %v4202_v27 = vpop.f32.mrf.mxu0  ;;  %4687 = vmatprep.mubr.bf16.mxu1 %v7318_v19  ;;  %v57_v19 = vld [vmem:[%s10788_s0 + $0x150] sm:$0xff] }
 0x134   :  { %v8635_v30 = vadd.f32 %v4489_v25, %v4201_v23  ;;  %v4491_v31 = vpop.f32.mrf.mxu1  ;;  %v50_v25 = vld [vmem:[%s10788_s0 + $0x118] sm:$0xff] }
 0x135   :  { %v4203_v34 = vpop.f32.mrf.mxu0  ;;  %v58_v27 = vld [vmem:[%s10788_s0 + $0x158] sm:$0xff] }
 0x136   :  { %v4204_v36 = vadd.f32 %v8518_v18, %v4203_v34  ;;  %v4492_v39 = vpop.f32.mrf.mxu1  ;;  %v6856_v34 = vcombine.high %v49_v17, %v57_v19 }
 0x137   :  { %v4205_v42 = vpop.f32.mrf.mxu0 }
 0x138   :  { %v8644_v44 = vadd.f32 %v4492_v39, %v4204_v36  ;;  %v4494_v45 = vpop.f32.mrf.mxu1  ;;  %v6858_v36 = vcombine.high %v50_v25, %v58_v27  ;;  %v7847_v39 = vld [vmem:[%s10787_s1 + $0x228] sm:$0xff]  }
 0x139   :  { %v4208_v48 = vpop.f32.mrf.mxu0  ;;  %4399 = vmatmul.mubr.bf16.gmra.mxu0 %v7315_v35  ;;  %v7848_v42 = vld [vmem:[%s10787_s1 + $0x2a8] sm:$0xff]  }
 0x13a   :  { %v4209_v49 = vadd.f32 %v8518_v18, %v4208_v48  ;;  %v4497_v50 = vpop.f32.mrf.mxu1  ;;  %4688 = vmatmul.mubr.bf16.gmra.mxu1 %v7317_v40  ;;  %4728 = vmatprep.mubr.bf16.mxu0 %v6824_v41 }
 0x13b   :  { %v4210_v51 = vpop.f32.mrf.mxu0  ;;  %5017 = vmatprep.mubr.bf16.mxu1 %v6826_v43 }
 0x13c   :  { %v8647_v52 = vadd.f32 %v4497_v50, %v4209_v49  ;;  %v4499_v53 = vpop.f32.mrf.mxu1  ;;  %v8708_v50 = vld [vmem:[%s10788_s0 + $0x190] sm:$0xff] }
 0x13d   :  { %v4211_v56 = vpop.f32.mrf.mxu0  ;;  %v8713_v51 = vld [vmem:[%s10788_s0 + $0x1d0] sm:$0xff]  ;;  %v7849_v53 = vld [vmem:[%s10787_s1 + $0x220] sm:$0xff]  }
 0x13e   :  { %v4212_v62 = vadd.f32 %v8518_v18, %v4211_v56  ;;  %v4500_v63 = vpop.f32.mrf.mxu1  ;;  %v66_v56 = vld [vmem:[%s10788_s0 + $0x198] sm:$0xff] }
 0x13f   :  { %v4213_v4 = vpop.f32.mrf.mxu0 }
 0x140   :  { %v8668_v8 = vadd.f32 %v4500_v63, %v4212_v62  ;;  %v4502_v9 = vpop.f32.mrf.mxu1  ;;  %v6855_v62 = vcombine.low %v49_v17, %v57_v19  ;;  %v6872_v4 = vcombine.high %v8708_v50, %v8713_v51  ;;  %v8748_v19 = vld [vmem:[%s10788_s0 + $0x210] sm:$0xff] }
 0x141   :  { %v4216_v11 = vpop.f32.mrf.mxu0  ;;  %4729 = vmatmul.mubr.bf16.vlgmr.msra.gmra.mxu0 %v6823_v57  ;;  %v74_v57 = vld [vmem:[%s10788_s0 + $0x1d8] sm:$0xff] }
 0x142   :  { %v4217_v12 = vadd.f32 %v8518_v18, %v4216_v11  ;;  %v4505_v13 = vpop.f32.mrf.mxu1  ;;  %5018 = vmatmul.mubr.bf16.vlgmr.msra.gmra.mxu1 %v6825_v1  ;;  %5275 = vmatpush1.bf16.msra.mxu0 %v7843_v2  ;;  %v6857_v2 = vcombine.low %v50_v25, %v58_v27  ;;  %v7851_v9 = vld [vmem:[%s10787_s1 + $0x218] sm:$0xff]  }
 0x143   :  { %v4218_v16 = vpop.f32.mrf.mxu0  ;;  %5564 = vmatpush1.bf16.msra.mxu1 %v7844_v5  ;;  %4736 = vmatprep.mubr.bf16.mxu0 %v6840_v7  ;;  %v6874_v7 = vcombine.high %v66_v56, %v74_v57 }
 0x144   :  { %v8683_v22 = vadd.f32 %v4505_v13, %v4217_v12  ;;  %v4507_v23 = vpop.f32.mrf.mxu1  ;;  %5025 = vmatprep.mubr.bf16.mxu1 %v6842_v10  ;;  %5276 = vmatprep.subr.bf16.mxu0 %v10791_v0  ;;  %v7852_v12 = vld [vmem:[%s10787_s1 + $0x298] sm:$0xff]  }
 0x145   :  { %v4219_v28 = vpop.f32.mrf.mxu0  ;;  %5565 = vmatprep.subr.bf16.mxu1 %v10791_v0  ;;  %v7853_v23 = vld [vmem:[%s10787_s1 + $0x210] sm:$0xff]  }
 0x146   :  { %v4220_v31 = vadd.f32 %v8518_v18, %v4219_v28  ;;  %v4508_v32 = vpop.f32.mrf.mxu1  ;;  %5277 = vmatpush1.bf16.msra.mxu0 %v7845_v14  ;;  %v82_v28 = vld [vmem:[%s10788_s0 + $0x218] sm:$0xff] }
 0x147   :  { %v4221_v35 = vpop.f32.mrf.mxu0  ;;  %5566 = vmatpush1.bf16.msra.mxu1 %v7846_v21  ;;  %5278 = vmatprep.subr.bf16.mxu0 %v10791_v0  ;;  %v8753_v21 = vld [vmem:[%s10788_s0 + $0x250] sm:$0xff] }
 0x148   :  { %v8698_v40 = vadd.f32 %v4508_v32, %v4220_v31  ;;  %v4510_v41 = vpop.f32.mrf.mxu1  ;;  %5567 = vmatprep.subr.bf16.mxu1 %v10791_v0  ;;  %v7854_v31 = vld [vmem:[%s10787_s1 + $0x290] sm:$0xff]  }
 0x149   :  { %v4224_v43 = vpop.f32.mrf.mxu0  ;;  %4737 = vmatmul.mubr.bf16.gmra.mxu0 %v6839_v29  ;;  %v90_v29 = vld [vmem:[%s10788_s0 + $0x258] sm:$0xff] }
 0x14a   :  { %v4225_v45 = vadd.f32 %v8518_v18, %v4224_v43  ;;  %v4513_v48 = vpop.f32.mrf.mxu1  ;;  %5026 = vmatmul.mubr.bf16.gmra.mxu1 %v6841_v33  ;;  %4744 = vmatprep.mubr.bf16.mxu0 %v6856_v34  ;;  %v6871_v33 = vcombine.low %v8708_v50, %v8713_v51  ;;  %v7855_v43 = vld [vmem:[%s10787_s1 + $0x208] sm:$0xff]  }
 0x14b   :  { %v4226_v49 = vpop.f32.mrf.mxu0  ;;  %5033 = vmatprep.mubr.bf16.mxu1 %v6858_v36  ;;  %5279 = vmatpush1.bf16.msra.mxu0 %v7847_v39  ;;  %v6873_v36 = vcombine.low %v66_v56, %v74_v57  ;;  %v6888_v39 = vcombine.high %v8748_v19, %v8753_v21  ;;  %v8790_v56 = vld [vmem:[%s10788_s0 + $0x290] sm:$0xff] }
 0x14c   :  { %v8718_v54 = vadd.f32 %v4513_v48, %v4225_v45  ;;  %v4515_v55 = vpop.f32.mrf.mxu1  ;;  %5568 = vmatpush1.bf16.msra.mxu1 %v7848_v42  ;;  %5280 = vmatprep.subr.bf16.mxu0 %v10791_v0  ;;  %v6890_v42 = vcombine.high %v82_v28, %v90_v29  ;;  %v7856_v49 = vld [vmem:[%s10787_s1 + $0x288] sm:$0xff]   ;;  %v8795_v57 = vld [vmem:[%s10788_s0 + $0x2d0] sm:$0xff] }
 0x14d   :  { %v4227_v61 = vpop.f32.mrf.mxu0  ;;  %5569 = vmatprep.subr.bf16.mxu1 %v10791_v0 }
 0x14e   :  { %v4228_v63 = vadd.f32 %v8518_v18, %v4227_v61  ;;  %v4516_v1 = vpop.f32.mrf.mxu1 }
 0x14f   :  { %v4229_v5 = vpop.f32.mrf.mxu0  ;;  %5281 = vmatpush1.bf16.msra.mxu0 %v7849_v53 }
 0x150   :  { %v8737_v10 = vadd.f32 %v4516_v1, %v4228_v63  ;;  %v4518_v11 = vpop.f32.mrf.mxu1  ;;  %5570 = vmatpush1.bf16.msra.mxu1 %v7850_v59  ;;  %5282 = vmatprep.subr.bf16.mxu0 %v10791_v0  ;;  %v7857_v59 = vld [vmem:[%s10787_s1 + $0x200] sm:$0xff]   ;;  %v98_v63 = vld [vmem:[%s10788_s0 + $0x298] sm:$0xff]  ;;  %v6887_v5 = vcombine.low %v8748_v19, %v8753_v21 }
 0x151   :  { %v4232_v13 = vpop.f32.mrf.mxu0  ;;  %4745 = vmatmul.mubr.bf16.gmra.mxu0 %v6855_v62  ;;  %5571 = vmatprep.subr.bf16.mxu1 %v10791_v0  ;;  %v106_v1 = vld [vmem:[%s10788_s0 + $0x2d8] sm:$0xff]  ;;  %v6889_v11 = vcombine.low %v82_v28, %v90_v29 }
 0x152   :  { %v4233_v14 = vadd.f32 %v8518_v18, %v4232_v13  ;;  %v4521_v16 = vpop.f32.mrf.mxu1  ;;  %5034 = vmatmul.mubr.bf16.gmra.mxu1 %v6857_v2  ;;  %4752 = vmatprep.mubr.bf16.mxu0 %v6872_v4  ;;  %v7858_v2 = vld [vmem:[%s10787_s1 + $0x280] sm:$0xff]   ;;  %v7860_v19 = vld [vmem:[%s10787_s1 + $0x2f8] sm:$0xff]  }
 0x153   :  { %v4234_v17 = vpop.f32.mrf.mxu0  ;;  %5041 = vmatprep.mubr.bf16.mxu1 %v6874_v7  ;;  %5283 = vmatpush1.bf16.msra.mxu0 %v7851_v9 }
 0x154   :  { %v8758_v25 = vadd.f32 %v4521_v16, %v4233_v14  ;;  %v4523_v27 = vpop.f32.mrf.mxu1  ;;  %5572 = vmatpush1.bf16.msra.mxu1 %v7852_v12  ;;  %5284 = vmatprep.subr.bf16.mxu0 %v10791_v0  ;;  %v6904_v12 = vcombine.high %v8790_v56, %v8795_v57  ;;  %v6906_v14 = vcombine.high %v98_v63, %v106_v1  ;;  %v7859_v16 = vld [vmem:[%s10787_s1 + $0x278] sm:$0xff]  }
 0x155   :  { %v4235_v32 = vpop.f32.mrf.mxu0  ;;  %5573 = vmatprep.subr.bf16.mxu1 %v10791_v0 }
 0x156   :  { %v4236_v34 = vadd.f32 %v8518_v18, %v4235_v32  ;;  %v4524_v35 = vpop.f32.mrf.mxu1  ;;  %v121_v32 = vld [vmem:[%s10788_s0 + $0x350] sm:$0xff] }
 0x157   :  { %v4237_v41 = vpop.f32.mrf.mxu0  ;;  %5285 = vmatpush1.bf16.msra.mxu0 %v7853_v23 }
 0x158   :  { %v8779_v45 = vadd.f32 %v4524_v35, %v4236_v34  ;;  %v4526_v48 = vpop.f32.mrf.mxu1  ;;  %5574 = vmatpush1.bf16.msra.mxu1 %v7854_v31  ;;  %5286 = vmatprep.subr.bf16.mxu0 %v10791_v0  ;;  %v113_v31 = vld [vmem:[%s10788_s0 + $0x310] sm:$0xff] }
 0x159   :  { %v4240_v50 = vpop.f32.mrf.mxu0  ;;  %4753 = vmatmul.mubr.bf16.gmra.mxu0 %v6871_v33  ;;  %5575 = vmatprep.subr.bf16.mxu1 %v10791_v0  ;;  %v7861_v33 = vld [vmem:[%s10787_s1 + $0x270] sm:$0xff]  }
 0x15a   :  { %v4241_v51 = vadd.f32 %v8518_v18, %v4240_v50  ;;  %v4529_v53 = vpop.f32.mrf.mxu1  ;;  %5042 = vmatmul.mubr.bf16.gmra.mxu1 %v6873_v36  ;;  %4760 = vmatprep.mubr.bf16.mxu0 %v6888_v39  ;;  %v114_v36 = vld [vmem:[%s10788_s0 + $0x318] sm:$0xff]  ;;  %v7862_v41 = vld [vmem:[%s10787_s1 + $0x2f0] sm:$0xff]   ;;  %v6905_v50 = vcombine.low %v98_v63, %v106_v1 }
 0x15b   :  { %v4242_v55 = vpop.f32.mrf.mxu0  ;;  %5049 = vmatprep.mubr.bf16.mxu1 %v6890_v42  ;;  %5287 = vmatpush1.bf16.msra.mxu0 %v7855_v43  ;;  %v122_v39 = vld [vmem:[%s10788_s0 + $0x358] sm:$0xff]  ;;  %v6903_v43 = vcombine.low %v8790_v56, %v8795_v57  ;;  %v7864_v56 = vld [vmem:[%s10787_s1 + $0x2e8] sm:$0xff]  }
 0x15c   :  { %v8800_v61 = vadd.f32 %v4529_v53, %v4241_v51  ;;  %v4531_v62 = vpop.f32.mrf.mxu1  ;;  %5576 = vmatpush1.bf16.msra.mxu1 %v7856_v49  ;;  %5288 = vmatprep.subr.bf16.mxu0 %v10791_v0  ;;  %v6920_v51 = vcombine.high %v113_v31, %v121_v32  ;;  %v6922_v55 = vcombine.high %v114_v36, %v122_v39 }
 0x15d   :  { %v4243_v4 = vpop.f32.mrf.mxu0  ;;  %5577 = vmatprep.subr.bf16.mxu1 %v10791_v0 }
 0x15e   :  { %v4244_v7 = vadd.f32 %v8518_v18, %v4243_v4  ;;  %v4532_v9 = vpop.f32.mrf.mxu1 }
 0x15f   :  { %v4245_v13 = vpop.f32.mrf.mxu0  ;;  %5289 = vmatpush1.bf16.msra.mxu0 %v7857_v59  ;;  %v7863_v59 = vld [vmem:[%s10787_s1 + $0x268] sm:$0xff]  }
 0x160   :  { %v8821_v17 = vadd.f32 %v4532_v9, %v4244_v7  ;;  %v4534_v23 = vpop.f32.mrf.mxu1  ;;  %5578 = vmatpush1.bf16.msra.mxu1 %v7858_v2  ;;  %5290 = vmatprep.subr.bf16.mxu0 %v10791_v0  ;;  %v137_v7 = vld [vmem:[%s10788_s0 + $0x3d0] sm:$0xff]  ;;  %v138_v13 = vld [vmem:[%s10788_s0 + $0x3d8] sm:$0xff] }
 0x161   :  { %v4248_v21 = vpop.f32.mrf.mxu0  ;;  %4761 = vmatmul.mubr.bf16.gmra.mxu0 %v6887_v5  ;;  %5579 = vmatprep.subr.bf16.mxu1 %v10791_v0  ;;  %v129_v5 = vld [vmem:[%s10788_s0 + $0x390] sm:$0xff] }
 0x162   :  { %v4249_v27 = vadd.f32 %v8518_v18, %v4248_v21  ;;  %v4537_v28 = vpop.f32.mrf.mxu1  ;;  %5050 = vmatmul.mubr.bf16.gmra.mxu1 %v6889_v11  ;;  %4768 = vmatprep.mubr.bf16.mxu0 %v6904_v12  ;;  %v130_v12 = vld [vmem:[%s10788_s0 + $0x398] sm:$0xff]  ;;  %v6921_v21 = vcombine.low %v114_v36, %v122_v39  ;;  %v153_v36 = vld [vmem:[%s10788_s0 + $0x450] sm:$0xff] }
 0x163   :  { %v4250_v29 = vpop.f32.mrf.mxu0  ;;  %5057 = vmatprep.mubr.bf16.mxu1 %v6906_v14  ;;  %5291 = vmatpush2.bf16.msra.mxu0 %v7859_v16  ;;  %v6919_v16 = vcombine.low %v113_v31, %v121_v32  ;;  %v145_v32 = vld [vmem:[%s10788_s0 + $0x410] sm:$0xff]  ;;  %v146_v39 = vld [vmem:[%s10788_s0 + $0x418] sm:$0xff] }
 0x164   :  { %v8838_v34 = vadd.f32 %v4537_v28, %v4249_v27  ;;  %v4539_v35 = vpop.f32.mrf.mxu1  ;;  %5580 = vmatpush2.bf16.msra.mxu1 %v7860_v19  ;;  %5292 = vmatprep.subr.bf16.mxu0 %v10791_v0  ;;  %v6936_v27 = vcombine.high %v129_v5, %v137_v7  ;;  %v6938_v29 = vcombine.high %v130_v12, %v138_v13 }
 0x165   :  { %v4251_v42 = vpop.f32.mrf.mxu0  ;;  %5581 = vmatprep.subr.bf16.mxu1 %v10791_v0 }
 0x166   :  { %v4252_v48 = vadd.f32 %v8518_v18, %v4251_v42  ;;  %v4540_v49 = vpop.f32.mrf.mxu1 }
 0x167   :  { %v4253_v53 = vpop.f32.mrf.mxu0  ;;  %5293 = vmatpush2.bf16.msra.mxu0 %v7861_v33 }
 0x168   :  { %v8857_v62 = vadd.f32 %v4540_v49, %v4252_v48  ;;  %v4542_v2 = vpop.f32.mrf.mxu1  ;;  %5582 = vmatpush2.bf16.msra.mxu1 %v7862_v41  ;;  %5294 = vmatprep.subr.bf16.mxu0 %v10791_v0  ;;  %v7866_v53 = vld [vmem:[%s10787_s1 + $0x2e0] sm:$0xff]  }
 0x169   :  { %v4256_v57 = vpop.f32.mrf.mxu0  ;;  %4769 = vmatmul.mubr.bf16.gmra.mxu0 %v6903_v43  ;;  %5583 = vmatprep.subr.bf16.mxu1 %v10791_v0 }
 0x16a   :  { %v4257_v63 = vadd.f32 %v8518_v18, %v4256_v57  ;;  %v4545_v1 = vpop.f32.mrf.mxu1  ;;  %5058 = vmatmul.mubr.bf16.gmra.mxu1 %v6905_v50  ;;  %4776 = vmatprep.mubr.bf16.mxu0 %v6920_v51  ;;  %v154_v50 = vld [vmem:[%s10788_s0 + $0x458] sm:$0xff]  ;;  %v7865_v51 = vld [vmem:[%s10787_s1 + $0x260] sm:$0xff]   ;;  %v6937_v57 = vcombine.low %v130_v12, %v138_v13  ;;  %v161_v13 = vld [vmem:[%s10788_s0 + $0x490] sm:$0xff] }
 0x16b   :  { %v4258_v4 = vpop.f32.mrf.mxu0  ;;  %5065 = vmatprep.mubr.bf16.mxu1 %v6922_v55  ;;  %5295 = vmatpush2.bf16.msra.mxu0 %v7863_v59  ;;  %v6935_v59 = vcombine.low %v129_v5, %v137_v7 }
 0x16c   :  { %v8871_v9 = vadd.f32 %v4545_v1, %v4257_v63  ;;  %v4547_v11 = vpop.f32.mrf.mxu1  ;;  %5584 = vmatpush2.bf16.msra.mxu1 %v7864_v56  ;;  %5296 = vmatprep.subr.bf16.mxu0 %v10791_v0  ;;  %v6952_v63 = vcombine.high %v145_v32, %v153_v36  ;;  %v6954_v4 = vcombine.high %v146_v39, %v154_v50 }
 0x16d   :  { %v4259_v14 = vpop.f32.mrf.mxu0  ;;  %5585 = vmatprep.subr.bf16.mxu1 %v10791_v0 }
 0x16e   :  { %v4260_v23 = vadd.f32 %v8518_v18, %v4259_v14  ;;  %v4548_v19 = vpop.f32.mrf.mxu1 }
 0x16f   :  { %v4261_v28 = vpop.f32.mrf.mxu0  ;;  %5297 = vmatpush2.bf16.msra.mxu0 %v7865_v51 }
 0x170   :  { %v8882_v33 = vadd.f32 %v4548_v19, %v4260_v23  ;;  %v4550_v35 = vpop.f32.mrf.mxu1  ;;  %5586 = vmatpush2.bf16.msra.mxu1 %v7866_v53  ;;  %5298 = vmatprep.subr.bf16.mxu0 %v10791_v0  ;;  %v169_v23 = vld [vmem:[%s10788_s0 + $0x4d0] sm:$0xff]  ;;  %v170_v28 = vld [vmem:[%s10788_s0 + $0x4d8] sm:$0xff] }
 0x171   :  { %v4264_v41 = vpop.f32.mrf.mxu0  ;;  %4777 = vmatmul.mubr.bf16.gmra.mxu0 %v6919_v16  ;;  %5587 = vmatprep.subr.bf16.mxu1 %v10791_v0  ;;  %v6951_v35 = vcombine.low %v145_v32, %v153_v36  ;;  %v177_v32 = vld [vmem:[%s10788_s0 + $0x510] sm:$0xff] }
 0x172   :  { %v4265_v42 = vadd.f32 %v8518_v18, %v4264_v41  ;;  %v4553_v43 = vpop.f32.mrf.mxu1  ;;  %5066 = vmatmul.mubr.bf16.gmra.mxu1 %v6921_v21  ;;  %4784 = vmatprep.mubr.bf16.mxu0 %v6936_v27  ;;  %v162_v27 = vld [vmem:[%s10788_s0 + $0x498] sm:$0xff]  ;;  %v185_v36 = vld [vmem:[%s10788_s0 + $0x550] sm:$0xff] }
 0x173   :  { %v4266_v31 = vpop.f32.mrf.mxu0  ;;  %5073 = vmatprep.mubr.bf16.mxu1 %v6938_v29  ;;  %v6970_v51 = vcombine.high %v162_v27, %v170_v28 }
 0x174   :  { %v8894_v48 = vadd.f32 %v4553_v43, %v4265_v42  ;;  %v4555_v49 = vpop.f32.mrf.mxu1  ;;  %v6953_v43 = vcombine.low %v146_v39, %v154_v50  ;;  %v6968_v31 = vcombine.high %v161_v13, %v169_v23  ;;  %v178_v39 = vld [vmem:[%s10788_s0 + $0x518] sm:$0xff] }
 0x175   :  { %v4267_v55 = vpop.f32.mrf.mxu0 }
 0x176   :  { %v4268_v2 = vadd.f32 %v8518_v18, %v4267_v55  ;;  %v4556_v56 = vpop.f32.mrf.mxu1 }
 0x177   :  { %v4269_v1 = vpop.f32.mrf.mxu0 }
 0x178   :  { %v8908_v11 = vadd.f32 %v4556_v56, %v4268_v2  ;;  %v4558_v14 = vpop.f32.mrf.mxu1  ;;  %v186_v1 = vld [vmem:[%s10788_s0 + $0x558] sm:$0xff] }
 0x179   :  { %v4272_v16 = vpop.f32.mrf.mxu0  ;;  %4785 = vmatmul.mubr.bf16.gmra.mxu0 %v6935_v59  ;;  %v7868_v14 = vld [vmem:[%s10787_s1 + $0x2d8] sm:$0xff]  }
 0x17a   :  { %v4273_v5 = vadd.f32 %v8518_v18, %v4272_v16  ;;  %v4561_v7 = vpop.f32.mrf.mxu1  ;;  %5074 = vmatmul.mubr.bf16.gmra.mxu1 %v6937_v57  ;;  %4792 = vmatprep.mubr.bf16.mxu0 %v6952_v63 }
 0x17b   :  { %v4274_v12 = vpop.f32.mrf.mxu0  ;;  %5081 = vmatprep.mubr.bf16.mxu1 %v6954_v4  ;;  %v7867_v4 = vld [vmem:[%s10787_s1 + $0x258] sm:$0xff]   ;;  %5588 = vmatpush2.bf16.msra.mxu1 %v7868_v14  ;;  %v6985_v14 = vcombine.low %v178_v39, %v186_v1 }
 0x17c   :  { %v8917_v19 = vadd.f32 %v4561_v7, %v4273_v5  ;;  %v4563_v21 = vpop.f32.mrf.mxu1  ;;  %v6967_v5 = vcombine.low %v161_v13, %v169_v23  ;;  %5299 = vmatpush2.bf16.msra.mxu0 %v7867_v4  ;;  %5589 = vmatprep.subr.bf16.mxu1 %v10791_v0 }
 0x17d   :  { %v4275_v29 = vpop.f32.mrf.mxu0  ;;  %v6969_v21 = vcombine.low %v162_v27, %v170_v28  ;;  %5300 = vmatprep.subr.bf16.mxu0 %v10791_v0  ;;  %v193_v28 = vld [vmem:[%s10788_s0 + $0x590] sm:$0xff] }
 0x17e   :  { %v4276_v41 = vadd.f32 %v8518_v18, %v4275_v29  ;;  %v4564_v42 = vpop.f32.mrf.mxu1  ;;  %v6984_v29 = vcombine.high %v177_v32, %v185_v36 }
 0x17f   :  { %v4277_v49 = vpop.f32.mrf.mxu0 }
 0x180   :  { %v8926_v53 = vadd.f32 %v4564_v42, %v4276_v41  ;;  %v4566_v55 = vpop.f32.mrf.mxu1  ;;  %v6986_v41 = vcombine.high %v178_v39, %v186_v1  ;;  %v201_v49 = vld [vmem:[%s10788_s0 + $0x5d0] sm:$0xff]  ;;  %v210_v1 = vld [vmem:[%s10788_s0 + $0x618] sm:$0xff] }
 0x181   :  { %v4280_v59 = vpop.f32.mrf.mxu0  ;;  %4793 = vmatmul.mubr.bf16.gmra.mxu0 %v6951_v35  ;;  %v217_v39 = vld [vmem:[%s10788_s0 + $0x650] sm:$0xff] }
 0x182   :  { %v4281_v2 = vadd.f32 %v8518_v18, %v4280_v59  ;;  %v4569_v56 = vpop.f32.mrf.mxu1  ;;  %5082 = vmatmul.mubr.bf16.gmra.mxu1 %v6953_v43  ;;  %4800 = vmatprep.mubr.bf16.mxu0 %v6968_v31  ;;  %v194_v59 = vld [vmem:[%s10788_s0 + $0x598] sm:$0xff] }
 0x183   :  { %v4282_v57 = vpop.f32.mrf.mxu0  ;;  %5089 = vmatprep.mubr.bf16.mxu1 %v6970_v51 }
 0x184   :  { %v8938_v50 = vadd.f32 %v4569_v56, %v4281_v2  ;;  %v4571_v63 = vpop.f32.mrf.mxu1  ;;  %v202_v2 = vld [vmem:[%s10788_s0 + $0x5d8] sm:$0xff]  ;;  %v6983_v57 = vcombine.low %v177_v32, %v185_v36  ;;  %v209_v36 = vld [vmem:[%s10788_s0 + $0x610] sm:$0xff] }
 0x185   :  { %v4283_v16 = vpop.f32.mrf.mxu0 }
 0x186   :  { %v4284_v7 = vadd.f32 %v8518_v18, %v4283_v16  ;;  %v4572_v12 = vpop.f32.mrf.mxu1  ;;  %v7000_v16 = vcombine.high %v193_v28, %v201_v49 }
 0x187   :  { %v4285_v35 = vpop.f32.mrf.mxu0 }
 0x188   :  { %v8952_v42 = vadd.f32 %v4572_v12, %v4284_v7  ;;  %v4574_v43 = vpop.f32.mrf.mxu1  ;;  %v7002_v7 = vcombine.high %v194_v59, %v202_v2  ;;  %v8975_v35 = vld [vmem:[%s10789_s2] ss:$0 sm:$0xff] }
 0x189   :  { %v4288_v31 = vpop.f32.mrf.mxu0  ;;  %4801 = vmatmul.mubr.bf16.gmra.mxu0 %v6967_v5 }
 0x18a   :  { %v4289_v13 = vadd.f32 %v8518_v18, %v4288_v31  ;;  %v4577_v23 = vpop.f32.mrf.mxu1  ;;  %5090 = vmatmul.mubr.bf16.gmra.mxu1 %v6969_v21  ;;  %4808 = vmatprep.mubr.bf16.mxu0 %v6984_v29 }
 0x18b   :  { %v4290_v27 = vpop.f32.mrf.mxu0  ;;  %5097 = vmatprep.mubr.bf16.mxu1 %v6986_v41 }
 0x18c   :  { %v8961_v51 = vadd.f32 %v4577_v23, %v4289_v13  ;;  %v4579_v55 = vpop.f32.mrf.mxu1  ;;  %v218_v13 = vld [vmem:[%s10788_s0 + $0x658] sm:$0xff]  ;;  %v7869_v23 = vld [vmem:[%s10787_s1 + $0x250] sm:$0xff]  }
 0x18d   :  { %v4291_v56 = vpop.f32.mrf.mxu0  ;;  %v7870_v27 = vld [vmem:[%s10787_s1 + $0x2d0] sm:$0xff]   ;;  %5301 = vmatpush2.bf16.msra.mxu0 %v7869_v23  ;;  %v234_v23 = vld [vmem:[%s10788_s0 + $0x6d8] sm:$0xff] }
 0x18e   :  { %v4292_v63 = vadd.f32 %v8518_v18, %v4291_v56  ;;  %v4580_v4 = vpop.f32.mrf.mxu1  ;;  %v6999_v56 = vcombine.low %v193_v28, %v201_v49  ;;  %5590 = vmatpush2.bf16.msra.mxu1 %v7870_v27  ;;  %5302 = vmatprep.subr.bf16.mxu0 %v10791_v0 }
 0x18f   :  { %v4293_v5 = vpop.f32.mrf.mxu0  ;;  %5591 = vmatprep.subr.bf16.mxu1 %v10791_v0 }
 0x190   :  { %v8970_v12 = vadd.f32 %v4580_v4, %v4292_v63  ;;  %v4582_v21 = vpop.f32.mrf.mxu1  ;;  %v7001_v4 = vcombine.low %v194_v59, %v202_v2  ;;  %v7018_v5 = vcombine.high %v210_v1, %v218_v13  ;;  %v225_v2 = vld [vmem:[%s10788_s0 + $0x690] sm:$0xff] }
 0x191   :  { %v4296_v29 = vpop.f32.mrf.mxu0  ;;  %4809 = vmatmul.mubr.bf16.gmra.mxu0 %v6983_v57 }
 0x192   :  { %v4297_v41 = vadd.f32 %v8975_v35, %v4296_v29  ;;  %v4585_v32 = vpop.f32.mrf.mxu1  ;;  %5098 = vmatmul.mubr.bf16.gmra.mxu1 %v6985_v14  ;;  %4816 = vmatprep.mubr.bf16.mxu0 %v7000_v16  ;;  %v7016_v14 = vcombine.high %v209_v36, %v217_v39 }
 0x193   :  { %v4298_v18 = vpop.f32.mrf.mxu0  ;;  %5105 = vmatprep.mubr.bf16.mxu1 %v7002_v7 }
 0x194   :  { %v8987_v43 = vadd.f32 %v4585_v32, %v4297_v41  ;;  %v4587_v31 = vpop.f32.mrf.mxu1  ;;  %v233_v41 = vld [vmem:[%s10788_s0 + $0x6d0] sm:$0xff] }
 0x195   :  { %v4299_v55 = vpop.f32.mrf.mxu0  ;;  %v226_v31 = vld [vmem:[%s10788_s0 + $0x698] sm:$0xff] }
 0x196   :  { %v4300_v57 = vadd.f32 %v8975_v35, %v4299_v55  ;;  %v4588_v63 = vpop.f32.mrf.mxu1  ;;  %v7015_v55 = vcombine.low %v209_v36, %v217_v39  ;;  %v241_v36 = vld [vmem:[%s10788_s0 + $0x710] sm:$0xff] }
 0x197   :  { %v4301_v16 = vpop.f32.mrf.mxu0  ;;  %v249_v39 = vld [vmem:[%s10788_s0 + $0x750] sm:$0xff] }
 0x198   :  { %v9001_v7 = vadd.f32 %v4588_v63, %v4300_v57  ;;  %v4590_v21 = vpop.f32.mrf.mxu1  ;;  %v7017_v63 = vcombine.low %v210_v1, %v218_v13  ;;  %v7034_v16 = vcombine.high %v226_v31, %v234_v23  ;;  %v242_v1 = vld [vmem:[%s10788_s0 + $0x718] sm:$0xff] }
 0x199   :  { %v4304_v29 = vpop.f32.mrf.mxu0  ;;  %4817 = vmatmul.mubr.bf16.gmra.mxu0 %v6999_v56 }
 0x19a   :  { %v4305_v28 = vadd.f32 %v8975_v35, %v4304_v29  ;;  %v4593_v49 = vpop.f32.mrf.mxu1  ;;  %5106 = vmatmul.mubr.bf16.gmra.mxu1 %v7001_v4  ;;  %4824 = vmatprep.mubr.bf16.mxu0 %v7016_v14  ;;  %v7032_v4 = vcombine.high %v225_v2, %v233_v41 }
 0x19b   :  { %v4306_v59 = vpop.f32.mrf.mxu0  ;;  %5113 = vmatprep.mubr.bf16.mxu1 %v7018_v5 }
 0x19c   :  { %v9010_v32 = vadd.f32 %v4593_v49, %v4305_v28  ;;  %v4595_v18 = vpop.f32.mrf.mxu1 }
 0x19d   :  { %v4307_v27 = vpop.f32.mrf.mxu0 }
 0x19e   :  { %v4308_v56 = vadd.f32 %v8975_v35, %v4307_v27  ;;  %v4596_v57 = vpop.f32.mrf.mxu1  ;;  %v250_v27 = vld [vmem:[%s10788_s0 + $0x758] sm:$0xff] }
 0x19f   :  { %v4309_v14 = vpop.f32.mrf.mxu0 }
 0x1a0   :  { %v9019_v5 = vadd.f32 %v4596_v57, %v4308_v56  ;;  %v4598_v21 = vpop.f32.mrf.mxu1  ;;  %v7872_v56 = vld [vmem:[%s10787_s1 + $0x2c8] sm:$0xff]  }
 0x1a1   :  { %v4312_v29 = vpop.f32.mrf.mxu0  ;;  %4825 = vmatmul.mubr.bf16.gmra.mxu0 %v7015_v55  ;;  %v7871_v55 = vld [vmem:[%s10787_s1 + $0x248] sm:$0xff]   ;;  %v7048_v21 = vcombine.high %v241_v36, %v249_v39  ;;  %5592 = vmatpush2.bf16.msra.mxu1 %v7872_v56 }
 0x1a2   :  { %v4313_v28 = vadd.f32 %v8975_v35, %v4312_v29  ;;  %v4601_v49 = vpop.f32.mrf.mxu1  ;;  %5114 = vmatmul.mubr.bf16.gmra.mxu1 %v7017_v63  ;;  %4832 = vmatprep.mubr.bf16.mxu0 %v7032_v4  ;;  %v7031_v63 = vcombine.low %v225_v2, %v233_v41 }
 0x1a3   :  { %v4314_v59 = vpop.f32.mrf.mxu0  ;;  %5121 = vmatprep.mubr.bf16.mxu1 %v7034_v16  ;;  %v7033_v16 = vcombine.low %v226_v31, %v234_v23  ;;  %5303 = vmatpush2.bf16.msra.mxu0 %v7871_v55  ;;  %v257_v23 = vld [vmem:[%s10788_s0 + $0x790] sm:$0xff] }
 0x1a4   :  { %v9031_v13 = vadd.f32 %v4601_v49, %v4313_v28  ;;  %v4603_v18 = vpop.f32.mrf.mxu1  ;;  %v7050_v28 = vcombine.high %v242_v1, %v250_v27  ;;  %5304 = vmatprep.subr.bf16.mxu0 %v10791_v0  ;;  %5593 = vmatprep.subr.bf16.mxu1 %v10791_v0  ;;  %v265_v55 = vld [vmem:[%s10788_s0 + $0x7d0] sm:$0xff] }
 0x1a5   :  { %v4315_v57 = vpop.f32.mrf.mxu0 }
 0x1a6   :  { %10793 = vst [vmem:[#allocation2_spill] sm:$0xff] %v9031_v13  ;;  %v4316_v4 = vadd.f32 %v8975_v35, %v4315_v57  ;;  %v4604_v14 = vpop.f32.mrf.mxu1 }
 0x1a7   :  { %v4317_v29 = vpop.f32.mrf.mxu0 }
 0x1a8   :  { %v9045_v49 = vadd.f32 %v4604_v14, %v4316_v4  ;;  %v4606_v59 = vpop.f32.mrf.mxu1  ;;  %v266_v4 = vld [vmem:[%s10788_s0 + $0x7d8] sm:$0xff] }
 0x1a9   :  { %v4320_v18 = vpop.f32.mrf.mxu0  ;;  %4833 = vmatmul.mubr.bf16.gmra.mxu0 %v7031_v63  ;;  %v258_v63 = vld [vmem:[%s10788_s0 + $0x798] sm:$0xff]  ;;  %v7064_v59 = vcombine.high %v257_v23, %v265_v55 }
 0x1aa   :  { %10794 = vst [vmem:[#allocation3_spill] sm:$0xff] %v9045_v49  ;;  %v4321_v2 = vadd.f32 %v8975_v35, %v4320_v18  ;;  %v4609_v41 = vpop.f32.mrf.mxu1  ;;  %5122 = vmatmul.mubr.bf16.gmra.mxu1 %v7033_v16  ;;  %4840 = vmatprep.mubr.bf16.mxu0 %v7048_v21  ;;  %v7047_v16 = vcombine.low %v241_v36, %v249_v39  ;;  %v273_v36 = vld [vmem:[%s10788_s0 + $0x810] sm:$0xff] }
 0x1ab   :  { %v4322_v31 = vpop.f32.mrf.mxu0  ;;  %5129 = vmatprep.mubr.bf16.mxu1 %v7050_v28  ;;  %v7049_v28 = vcombine.low %v242_v1, %v250_v27  ;;  %v281_v39 = vld [vmem:[%s10788_s0 + $0x850] sm:$0xff]  ;;  %v274_v1 = vld [vmem:[%s10788_s0 + $0x818] sm:$0xff] }
 0x1ac   :  { %v9054_v56 = vadd.f32 %v4609_v41, %v4321_v2  ;;  %v4611_v57 = vpop.f32.mrf.mxu1  ;;  %v7066_v31 = vcombine.high %v258_v63, %v266_v4 }
 0x1ad   :  { %v4323_v14 = vpop.f32.mrf.mxu0 }
 0x1ae   :  { %10795 = vst [vmem:[#allocation4_spill] sm:$0xff] %v9054_v56  ;;  %v4324_v21 = vadd.f32 %v8975_v35, %v4323_v14  ;;  %v4612_v29 = vpop.f32.mrf.mxu1 }
 0x1af   :  { %v4325_v18 = vpop.f32.mrf.mxu0 }
 0x1b0   :  { %v9063_v2 = vadd.f32 %v4612_v29, %v4324_v21  ;;  %v4614_v41 = vpop.f32.mrf.mxu1  ;;  %v7874_v21 = vld [vmem:[%s10787_s1 + $0x2c0] sm:$0xff]  }
 0x1b1   :  { %v4328_v57 = vpop.f32.mrf.mxu0  ;;  %4841 = vmatmul.mubr.bf16.gmra.mxu0 %v7047_v16  ;;  %v7873_v16 = vld [vmem:[%s10787_s1 + $0x240] sm:$0xff]   ;;  %5594 = vmatpush2.bf16.msra.mxu1 %v7874_v21 }
 0x1b2   :  { %10796 = vst [vmem:[#allocation5_spill] sm:$0xff] %v9063_v2  ;;  %v4329_v0 = vadd.f32 %v8975_v35, %v4328_v57  ;;  %v4617_v56 = vpop.f32.mrf.mxu1  ;;  %5130 = vmatmul.mubr.bf16.gmra.mxu1 %v7049_v28  ;;  %4848 = vmatprep.mubr.bf16.mxu0 %v7064_v59  ;;  %v7063_v28 = vcombine.low %v257_v23, %v265_v55  ;;  %v10798_v57 = vmov 0  }
 0x1b3   :  { %v4330_v49 = vpop.f32.mrf.mxu0  ;;  %5137 = vmatprep.mubr.bf16.mxu1 %v7066_v31  ;;  %5305 = vmatpush2.bf16.msra.mxu0 %v7873_v16  ;;  %v297_v16 = vld [vmem:[%s10788_s0 + $0x8d0] sm:$0xff] }
 0x1b4   :  { %v9075_v27 = vadd.f32 %v4617_v56, %v4329_v0  ;;  %v4619_v14 = vpop.f32.mrf.mxu1  ;;  %v282_v49 = vld [vmem:[%s10788_s0 + $0x858] sm:$0xff]  ;;  %v7065_v0 = vcombine.low %v258_v63, %v266_v4  ;;  %v7080_v56 = vcombine.high %v273_v36, %v281_v39  ;;  %5852 = vmatprep.subr.bf16.mxu0 %v10798_v57  ;;  %6141 = vmatprep.subr.bf16.mxu1 %v10798_v57  ;;  %v289_v4 = vld [vmem:[%s10788_s0 + $0x890] sm:$0xff] }
 0x1b5   :  { %v4331_v29 = vpop.f32.mrf.mxu0  ;;  %v7082_v41 = vcombine.high %v274_v1, %v282_v49 }
 0x1b6   :  { %10797 = vst [vmem:[#allocation6_spill] sm:$0xff] %v9075_v27  ;;  %v4332_v59 = vadd.f32 %v8975_v35, %v4331_v29  ;;  %v4620_v18 = vpop.f32.mrf.mxu1  ;;  %v298_v29 = vld [vmem:[%s10788_s0 + $0x8d8] sm:$0xff] }
 0x1b7   :  { %v4333_v31 = vpop.f32.mrf.mxu0 }
 0x1b8   :  { %v9089_v14 = vadd.f32 %v4620_v18, %v4332_v59  ;;  %v4622_v27 = vpop.f32.mrf.mxu1  ;;  %v7079_v59 = vcombine.low %v273_v36, %v281_v39  ;;  %v7096_v31 = vcombine.high %v289_v4, %v297_v16  ;;  %v305_v36 = vld [vmem:[%s10788_s0 + $0x910] sm:$0xff] }
 0x1b9   :  { %v4336_v2 = vpop.f32.mrf.mxu0  ;;  %4849 = vmatmul.mubr.bf16.gmra.mxu0 %v7063_v28  ;;  %v313_v39 = vld [vmem:[%s10788_s0 + $0x950] sm:$0xff] }
 0x1ba   :  { %10799 = vst [vmem:[#allocation7_spill] sm:$0xff] %v9089_v14  ;;  %v4337_v23 = vadd.f32 %v8975_v35, %v4336_v2  ;;  %v4625_v55 = vpop.f32.mrf.mxu1  ;;  %5138 = vmatmul.mubr.bf16.gmra.mxu1 %v7065_v0  ;;  %4856 = vmatprep.mubr.bf16.mxu0 %v7080_v56  ;;  %v290_v2 = vld [vmem:[%s10788_s0 + $0x898] sm:$0xff]  ;;  %v7081_v56 = vcombine.low %v274_v1, %v282_v49 }
 0x1bb   :  { %v4338_v63 = vpop.f32.mrf.mxu0  ;;  %5145 = vmatprep.mubr.bf16.mxu1 %v7082_v41 }
 0x1bc   :  { %v9098_v21 = vadd.f32 %v4625_v55, %v4337_v23  ;;  %v4627_v27 = vpop.f32.mrf.mxu1  ;;  %v7098_v63 = vcombine.high %v290_v2, %v298_v29 }
 0x1bd   :  { %v4339_v28 = vpop.f32.mrf.mxu0 }
 0x1be   :  { %10800 = vst [vmem:[#allocation8_spill] sm:$0xff] %v9098_v21  ;;  %v4340_v18 = vadd.f32 %v8975_v35, %v4339_v28  ;;  %v4628_v0 = vpop.f32.mrf.mxu1  ;;  %v306_v28 = vld [vmem:[%s10788_s0 + $0x918] sm:$0xff] }
 0x1bf   :  { %v4341_v41 = vpop.f32.mrf.mxu0 }
 0x1c0   :  { %v9107_v23 = vadd.f32 %v4628_v0, %v4340_v18  ;;  %v4630_v55 = vpop.f32.mrf.mxu1  ;;  %v7095_v18 = vcombine.low %v289_v4, %v297_v16  ;;  %v7112_v41 = vcombine.high %v305_v36, %v313_v39  ;;  %v321_v4 = vld [vmem:[%s10788_s0 + $0x990] sm:$0xff] }
 0x1c1   :  { %v4344_v27 = vpop.f32.mrf.mxu0  ;;  %4857 = vmatmul.mubr.bf16.gmra.mxu0 %v7079_v59  ;;  %v329_v16 = vld [vmem:[%s10788_s0 + $0x9d0] sm:$0xff] }
 0x1c2   :  { %10801 = vst [vmem:[#allocation9_spill] sm:$0xff] %v9107_v23  ;;  %v4345_v21 = vadd.f32 %v8975_v35, %v4344_v27  ;;  %v4633_v14 = vpop.f32.mrf.mxu1  ;;  %5146 = vmatmul.mubr.bf16.gmra.mxu1 %v7081_v56  ;;  %4864 = vmatprep.mubr.bf16.mxu0 %v7096_v31  ;;  %v7097_v31 = vcombine.low %v290_v2, %v298_v29 }
 0x1c3   :  { %v4346_v13 = vpop.f32.mrf.mxu0  ;;  %5153 = vmatprep.mubr.bf16.mxu1 %v7098_v63 }
 0x1c4   :  { %v9116_v1 = vadd.f32 %v4633_v14, %v4345_v21  ;;  %v4635_v49 = vpop.f32.mrf.mxu1  ;;  %v314_v13 = vld [vmem:[%s10788_s0 + $0x958] sm:$0xff] }
 0x1c5   :  { %v4347_v59 = vpop.f32.mrf.mxu0  ;;  %v7114_v55 = vcombine.high %v306_v28, %v314_v13 }
 0x1c6   :  { %10802 = vst [vmem:[#allocation10_spill] sm:$0xff] %v9116_v1  ;;  %v4348_v0 = vadd.f32 %v8975_v35, %v4347_v59  ;;  %v4636_v56 = vpop.f32.mrf.mxu1  ;;  %v322_v59 = vld [vmem:[%s10788_s0 + $0x998] sm:$0xff] }
 0x1c7   :  { %v4349_v63 = vpop.f32.mrf.mxu0 }
 0x1c8   :  { %v9125_v14 = vadd.f32 %v4636_v56, %v4348_v0  ;;  %v4638_v21 = vpop.f32.mrf.mxu1  ;;  %v7111_v0 = vcombine.low %v305_v36, %v313_v39  ;;  %v7128_v63 = vcombine.high %v321_v4, %v329_v16  ;;  %v337_v36 = vld [vmem:[%s10788_s0 + $0xa10] sm:$0xff] }
 0x1c9   :  { %v4352_v27 = vpop.f32.mrf.mxu0  ;;  %4865 = vmatmul.mubr.bf16.gmra.mxu0 %v7095_v18  ;;  %v345_v39 = vld [vmem:[%s10788_s0 + $0xa50] sm:$0xff] }
 0x1ca   :  { %10803 = vst [vmem:[#allocation11_spill] sm:$0xff] %v9125_v14  ;;  %v4353_v49 = vadd.f32 %v8975_v35, %v4352_v27  ;;  %v4641_v1 = vpop.f32.mrf.mxu1  ;;  %5154 = vmatmul.mubr.bf16.gmra.mxu1 %v7097_v31  ;;  %4872 = vmatprep.mubr.bf16.mxu0 %v7112_v41  ;;  %v7113_v41 = vcombine.low %v306_v28, %v314_v13 }
 0x1cb   :  { %v4354_v23 = vpop.f32.mrf.mxu0  ;;  %5161 = vmatprep.mubr.bf16.mxu1 %v7114_v55 }
 0x1cc   :  { %v9134_v2 = vadd.f32 %v4641_v1, %v4353_v49  ;;  %v4643_v29 = vpop.f32.mrf.mxu1  ;;  %v330_v23 = vld [vmem:[%s10788_s0 + $0x9d8] sm:$0xff] }
 0x1cd   :  { %v4355_v18 = vpop.f32.mrf.mxu0  ;;  %v7130_v21 = vcombine.high %v322_v59, %v330_v23 }
 0x1ce   :  { %10804 = vst [vmem:[#allocation12_spill] sm:$0xff] %v9134_v2  ;;  %v4356_v56 = vadd.f32 %v8975_v35, %v4355_v18  ;;  %v4644_v31 = vpop.f32.mrf.mxu1  ;;  %v338_v18 = vld [vmem:[%s10788_s0 + $0xa18] sm:$0xff] }
 0x1cf   :  { %v4357_v55 = vpop.f32.mrf.mxu0 }
 0x1d0   :  { %v9143_v1 = vadd.f32 %v4644_v31, %v4356_v56  ;;  %v4646_v27 = vpop.f32.mrf.mxu1  ;;  %v7127_v56 = vcombine.low %v321_v4, %v329_v16  ;;  %v7144_v55 = vcombine.high %v337_v36, %v345_v39  ;;  %v353_v4 = vld [vmem:[%s10788_s0 + $0xa90] sm:$0xff] }
 0x1d1   :  { %v4360_v49 = vpop.f32.mrf.mxu0  ;;  %4873 = vmatmul.mubr.bf16.gmra.mxu0 %v7111_v0  ;;  %v361_v16 = vld [vmem:[%s10788_s0 + $0xad0] sm:$0xff] }
 0x1d2   :  { %10805 = vst [vmem:[#allocation13_spill] sm:$0xff] %v9143_v1  ;;  %v4361_v29 = vadd.f32 %v8975_v35, %v4360_v49  ;;  %v4649_v2 = vpop.f32.mrf.mxu1  ;;  %5162 = vmatmul.mubr.bf16.gmra.mxu1 %v7113_v41  ;;  %4880 = vmatprep.mubr.bf16.mxu0 %v7128_v63  ;;  %v7129_v63 = vcombine.low %v322_v59, %v330_v23 }
 0x1d3   :  { %v4362_v14 = vpop.f32.mrf.mxu0  ;;  %5169 = vmatprep.mubr.bf16.mxu1 %v7130_v21 }
 0x1d4   :  { %v9152_v28 = vadd.f32 %v4649_v2, %v4361_v29  ;;  %v4651_v13 = vpop.f32.mrf.mxu1  ;;  %v346_v14 = vld [vmem:[%s10788_s0 + $0xa58] sm:$0xff] }
 0x1d5   :  { %v4363_v0 = vpop.f32.mrf.mxu0  ;;  %v7146_v27 = vcombine.high %v338_v18, %v346_v14 }
 0x1d6   :  { %10806 = vst [vmem:[#allocation14_spill] sm:$0xff] %v9152_v28  ;;  %v4364_v31 = vadd.f32 %v8975_v35, %v4363_v0  ;;  %v4652_v41 = vpop.f32.mrf.mxu1  ;;  %v354_v0 = vld [vmem:[%s10788_s0 + $0xa98] sm:$0xff] }
 0x1d7   :  { %v4365_v21 = vpop.f32.mrf.mxu0 }
 0x1d8   :  { %v9161_v2 = vadd.f32 %v4652_v41, %v4364_v31  ;;  %v4654_v49 = vpop.f32.mrf.mxu1  ;;  %v7143_v31 = vcombine.low %v337_v36, %v345_v39  ;;  %v7160_v21 = vcombine.high %v353_v4, %v361_v16  ;;  %v369_v36 = vld [vmem:[%s10788_s0 + $0xb10] sm:$0xff] }
 0x1d9   :  { %v4368_v29 = vpop.f32.mrf.mxu0  ;;  %4881 = vmatmul.mubr.bf16.gmra.mxu0 %v7127_v56  ;;  %v377_v39 = vld [vmem:[%s10788_s0 + $0xb50] sm:$0xff] }
 0x1da   :  { %10807 = vst [vmem:[#allocation15_spill] sm:$0xff] %v9161_v2  ;;  %v4369_v13 = vadd.f32 %v8975_v35, %v4368_v29  ;;  %v4657_v28 = vpop.f32.mrf.mxu1  ;;  %5170 = vmatmul.mubr.bf16.gmra.mxu1 %v7129_v63  ;;  %4888 = vmatprep.mubr.bf16.mxu0 %v7144_v55  ;;  %v7145_v55 = vcombine.low %v338_v18, %v346_v14 }
 0x1db   :  { %v4370_v1 = vpop.f32.mrf.mxu0  ;;  %5177 = vmatprep.mubr.bf16.mxu1 %v7146_v27 }
 0x1dc   :  { %v9170_v59 = vadd.f32 %v4657_v28, %v4369_v13  ;;  %v4659_v23 = vpop.f32.mrf.mxu1  ;;  %v362_v1 = vld [vmem:[%s10788_s0 + $0xad8] sm:$0xff] }
 0x1dd   :  { %v4371_v56 = vpop.f32.mrf.mxu0  ;;  %v7162_v49 = vcombine.high %v354_v0, %v362_v1 }
 0x1de   :  { %10808 = vst [vmem:[#allocation16_spill] sm:$0xff] %v9170_v59  ;;  %v4372_v41 = vadd.f32 %v8975_v35, %v4371_v56  ;;  %v4660_v63 = vpop.f32.mrf.mxu1  ;;  %v370_v56 = vld [vmem:[%s10788_s0 + $0xb18] sm:$0xff] }
 0x1df   :  { %v4373_v27 = vpop.f32.mrf.mxu0 }
 0x1e0   :  { %v9179_v28 = vadd.f32 %v4660_v63, %v4372_v41  ;;  %v4662_v29 = vpop.f32.mrf.mxu1  ;;  %v7159_v41 = vcombine.low %v353_v4, %v361_v16  ;;  %v7176_v27 = vcombine.high %v369_v36, %v377_v39  ;;  %v385_v4 = vld [vmem:[%s10788_s0 + $0xb90] sm:$0xff] }
 0x1e1   :  { %v4376_v13 = vpop.f32.mrf.mxu0  ;;  %4889 = vmatmul.mubr.bf16.gmra.mxu0 %v7143_v31  ;;  %v393_v16 = vld [vmem:[%s10788_s0 + $0xbd0] sm:$0xff] }
 0x1e2   :  { %10809 = vst [vmem:[#allocation17_spill] sm:$0xff] %v9179_v28  ;;  %v4377_v23 = vadd.f32 %v8975_v35, %v4376_v13  ;;  %v4665_v59 = vpop.f32.mrf.mxu1  ;;  %5178 = vmatmul.mubr.bf16.gmra.mxu1 %v7145_v55  ;;  %4896 = vmatprep.mubr.bf16.mxu0 %v7160_v21  ;;  %v7161_v21 = vcombine.low %v354_v0, %v362_v1 }
 0x1e3   :  { %v4378_v2 = vpop.f32.mrf.mxu0  ;;  %5185 = vmatprep.mubr.bf16.mxu1 %v7162_v49 }
 0x1e4   :  { %v9188_v18 = vadd.f32 %v4665_v59, %v4377_v23  ;;  %v4667_v14 = vpop.f32.mrf.mxu1  ;;  %v378_v2 = vld [vmem:[%s10788_s0 + $0xb58] sm:$0xff] }
 0x1e5   :  { %v4379_v31 = vpop.f32.mrf.mxu0  ;;  %v7178_v29 = vcombine.high %v370_v56, %v378_v2 }
 0x1e6   :  { %10810 = vst [vmem:[#allocation18_spill] sm:$0xff] %v9188_v18  ;;  %v4380_v63 = vadd.f32 %v8975_v35, %v4379_v31  ;;  %v4668_v55 = vpop.f32.mrf.mxu1  ;;  %v386_v31 = vld [vmem:[%s10788_s0 + $0xb98] sm:$0xff] }
 0x1e7   :  { %v4381_v49 = vpop.f32.mrf.mxu0 }
 0x1e8   :  { %v9197_v59 = vadd.f32 %v4668_v55, %v4380_v63  ;;  %v4670_v13 = vpop.f32.mrf.mxu1  ;;  %v7175_v63 = vcombine.low %v369_v36, %v377_v39  ;;  %v7192_v49 = vcombine.high %v385_v4, %v393_v16  ;;  %v401_v36 = vld [vmem:[%s10788_s0 + $0xc10] sm:$0xff] }
 0x1e9   :  { %v4384_v23 = vpop.f32.mrf.mxu0  ;;  %4897 = vmatmul.mubr.bf16.gmra.mxu0 %v7159_v41  ;;  %v409_v39 = vld [vmem:[%s10788_s0 + $0xc50] sm:$0xff] }
 0x1ea   :  { %10811 = vst [vmem:[#allocation19_spill] sm:$0xff] %v9197_v59  ;;  %v4385_v14 = vadd.f32 %v8975_v35, %v4384_v23  ;;  %v4673_v18 = vpop.f32.mrf.mxu1  ;;  %5186 = vmatmul.mubr.bf16.gmra.mxu1 %v7161_v21  ;;  %4904 = vmatprep.mubr.bf16.mxu0 %v7176_v27  ;;  %v7177_v27 = vcombine.low %v370_v56, %v378_v2 }
 0x1eb   :  { %v4386_v28 = vpop.f32.mrf.mxu0  ;;  %5193 = vmatprep.mubr.bf16.mxu1 %v7178_v29 }
 0x1ec   :  { %v9206_v0 = vadd.f32 %v4673_v18, %v4385_v14  ;;  %v4675_v1 = vpop.f32.mrf.mxu1  ;;  %v394_v28 = vld [vmem:[%s10788_s0 + $0xbd8] sm:$0xff] }
 0x1ed   :  { %v4387_v41 = vpop.f32.mrf.mxu0  ;;  %v7194_v13 = vcombine.high %v386_v31, %v394_v28 }
 0x1ee   :  { %10812 = vst [vmem:[#allocation20_spill] sm:$0xff] %v9206_v0  ;;  %v4388_v55 = vadd.f32 %v8975_v35, %v4387_v41  ;;  %v4676_v21 = vpop.f32.mrf.mxu1  ;;  %v402_v41 = vld [vmem:[%s10788_s0 + $0xc18] sm:$0xff] }
 0x1ef   :  { %v4389_v29 = vpop.f32.mrf.mxu0 }
 0x1f0   :  { %v9215_v18 = vadd.f32 %v4676_v21, %v4388_v55  ;;  %v4678_v23 = vpop.f32.mrf.mxu1  ;;  %v7191_v55 = vcombine.low %v385_v4, %v393_v16  ;;  %v7208_v29 = vcombine.high %v401_v36, %v409_v39  ;;  %v417_v4 = vld [vmem:[%s10788_s0 + $0xc90] sm:$0xff] }
 0x1f1   :  { %v4392_v14 = vpop.f32.mrf.mxu0  ;;  %4905 = vmatmul.mubr.bf16.gmra.mxu0 %v7175_v63  ;;  %v425_v16 = vld [vmem:[%s10788_s0 + $0xcd0] sm:$0xff] }
 0x1f2   :  { %10813 = vst [vmem:[#allocation21_spill] sm:$0xff] %v9215_v18  ;;  %v4393_v1 = vadd.f32 %v8975_v35, %v4392_v14  ;;  %v4681_v0 = vpop.f32.mrf.mxu1  ;;  %5194 = vmatmul.mubr.bf16.gmra.mxu1 %v7177_v27  ;;  %4912 = vmatprep.mubr.bf16.mxu0 %v7192_v49  ;;  %v7193_v49 = vcombine.low %v386_v31, %v394_v28 }
 0x1f3   :  { %v4394_v59 = vpop.f32.mrf.mxu0  ;;  %5201 = vmatprep.mubr.bf16.mxu1 %v7194_v13 }
 0x1f4   :  { %v9224_v56 = vadd.f32 %v4681_v0, %v4393_v1  ;;  %v4683_v2 = vpop.f32.mrf.mxu1  ;;  %v410_v59 = vld [vmem:[%s10788_s0 + $0xc58] sm:$0xff] }
 0x1f5   :  { %v4395_v63 = vpop.f32.mrf.mxu0  ;;  %v7210_v23 = vcombine.high %v402_v41, %v410_v59 }
 0x1f6   :  { %10814 = vst [vmem:[#allocation22_spill] sm:$0xff] %v9224_v56  ;;  %v4396_v21 = vadd.f32 %v8975_v35, %v4395_v63  ;;  %v4684_v27 = vpop.f32.mrf.mxu1  ;;  %v418_v63 = vld [vmem:[%s10788_s0 + $0xc98] sm:$0xff] }
 0x1f7   :  { %v4397_v13 = vpop.f32.mrf.mxu0 }
 0x1f8   :  { %v9233_v0 = vadd.f32 %v4684_v27, %v4396_v21  ;;  %v4686_v14 = vpop.f32.mrf.mxu1  ;;  %v7207_v21 = vcombine.low %v401_v36, %v409_v39  ;;  %v7224_v13 = vcombine.high %v417_v4, %v425_v16  ;;  %v441_v36 = vld [vmem:[%s10788_s0 + $0xd50] sm:$0xff] }
 0x1f9   :  { %v4400_v1 = vpop.f32.mrf.mxu0  ;;  %4913 = vmatmul.mubr.bf16.gmra.mxu0 %v7191_v55 }
 0x1fa   :  { %10815 = vst [vmem:[#allocation23_spill] sm:$0xff] %v9233_v0  ;;  %v4401_v2 = vadd.f32 %v8975_v35, %v4400_v1  ;;  %v4689_v56 = vpop.f32.mrf.mxu1  ;;  %5202 = vmatmul.mubr.bf16.gmra.mxu1 %v7193_v49  ;;  %4920 = vmatprep.mubr.bf16.mxu0 %v7208_v29  ;;  %v7209_v29 = vcombine.low %v402_v41, %v410_v59  ;;  %v442_v59 = vld [vmem:[%s10788_s0 + $0xd58] sm:$0xff] }
 0x1fb   :  { %v4402_v18 = vpop.f32.mrf.mxu0  ;;  %5209 = vmatprep.mubr.bf16.mxu1 %v7210_v23 }
 0x1fc   :  { %v9242_v31 = vadd.f32 %v4689_v56, %v4401_v2  ;;  %v4691_v28 = vpop.f32.mrf.mxu1  ;;  %v426_v18 = vld [vmem:[%s10788_s0 + $0xcd8] sm:$0xff] }
 0x1fd   :  { %v4403_v55 = vpop.f32.mrf.mxu0  ;;  %v7226_v14 = vcombine.high %v418_v63, %v426_v18 }
 0x1fe   :  { %10816 = vst [vmem:[#allocation24_spill] sm:$0xff] %v9242_v31  ;;  %v4404_v27 = vadd.f32 %v8975_v35, %v4403_v55  ;;  %v4692_v49 = vpop.f32.mrf.mxu1  ;;  %v433_v35 = vld [vmem:[%s10788_s0 + $0xd10] sm:$0xff]  ;;  %v7223_v55 = vcombine.low %v417_v4, %v425_v16 }
 0x1ff   :  { %v4405_v23 = vpop.f32.mrf.mxu0  ;;  %v457_v4 = vld [vmem:[%s10788_s0 + $0xdd0] sm:$0xff] }
 0x200   :  { %v9251_v56 = vadd.f32 %v4692_v49, %v4404_v27  ;;  %v4694_v1 = vpop.f32.mrf.mxu1  ;;  %v7225_v49 = vcombine.low %v418_v63, %v426_v18  ;;  %v458_v18 = vld [vmem:[%s10788_s0 + $0xdd8] sm:$0xff] }
 0x201   :  { %v4730_v2 = vpop.f32.mrf.mxu0  ;;  %4921 = vmatmul.mubr.bf16.gmra.mxu0 %v7207_v21 }
 0x202   :  { %v4731_v28 = vadd.f32 %v4730_v2, %v8527_v26  ;;  %v5019_v31 = vpop.f32.mrf.mxu1  ;;  %5210 = vmatmul.mubr.bf16.gmra.mxu1 %v7209_v29  ;;  %4928 = vmatprep.mubr.bf16.mxu0 %v7224_v13  ;;  %v434_v26 = vld [vmem:[%s10788_s0 + $0xd18] sm:$0xff]  ;;  %v7240_v29 = vcombine.high %v433_v35, %v441_v36 }
 0x203   :  { %v4732_v0 = vpop.f32.mrf.mxu0  ;;  %5217 = vmatprep.mubr.bf16.mxu1 %v7226_v14  ;;  %v7242_v23 = vcombine.high %v434_v26, %v442_v59 }
 0x204   :  { %v9260_v39 = vadd.f32 %v5019_v31, %v4731_v28  ;;  %v5021_v41 = vpop.f32.mrf.mxu1 }
 0x205   :  { %v4733_v0 = vpop.f32.mrf.mxu0 }
 0x206   :  { %v4734_v21 = vadd.f32 %v4733_v0, %v8536_v38  ;;  %v5022_v27 = vpop.f32.mrf.mxu1  ;;  %v449_v38 = vld [vmem:[%s10788_s0 + $0xd90] sm:$0xff] }
 0x207   :  { %v4735_v13 = vpop.f32.mrf.mxu0 }
 0x208   :  { %v9269_v31 = vadd.f32 %v5022_v27, %v4734_v21  ;;  %v5024_v14 = vpop.f32.mrf.mxu1 }
 0x209   :  { %v4738_v1 = vpop.f32.mrf.mxu0  ;;  %4929 = vmatmul.mubr.bf16.gmra.mxu0 %v7223_v55  ;;  %v7239_v55 = vcombine.low %v433_v35, %v441_v36  ;;  %v473_v35 = vld [vmem:[%s10788_s0 + $0xe50] sm:$0xff] }
 0x20a   :  { %v4739_v2 = vadd.f32 %v4738_v1, %v8545_v46  ;;  %v5027_v28 = vpop.f32.mrf.mxu1  ;;  %5218 = vmatmul.mubr.bf16.gmra.mxu1 %v7225_v49  ;;  %4936 = vmatprep.mubr.bf16.mxu0 %v7240_v29  ;;  %v450_v46 = vld [vmem:[%s10788_s0 + $0xd98] sm:$0xff]  ;;  %v7241_v49 = vcombine.low %v434_v26, %v442_v59  ;;  %v7256_v29 = vcombine.high %v449_v38, %v457_v4 }
 0x20b   :  { %v4740_v41 = vpop.f32.mrf.mxu0  ;;  %5225 = vmatprep.mubr.bf16.mxu1 %v7242_v23  ;;  %v7258_v23 = vcombine.high %v450_v46, %v458_v18  ;;  %v474_v59 = vld [vmem:[%s10788_s0 + $0xe58] sm:$0xff] }
 0x20c   :  { %v9278_v16 = vadd.f32 %v5027_v28, %v4739_v2  ;;  %v5029_v63 = vpop.f32.mrf.mxu1 }
 0x20d   :  { %v4741_v0 = vpop.f32.mrf.mxu0 }
 0x20e   :  { %v4742_v21 = vadd.f32 %v4741_v0, %v8554_v58  ;;  %v5030_v27 = vpop.f32.mrf.mxu1  ;;  %v465_v58 = vld [vmem:[%s10788_s0 + $0xe10] sm:$0xff] }
 0x20f   :  { %v4743_v13 = vpop.f32.mrf.mxu0 }
 0x210   :  { %v9287_v14 = vadd.f32 %v5030_v27, %v4742_v21  ;;  %v5032_v1 = vpop.f32.mrf.mxu1 }
 0x211   :  { %v4746_v2 = vpop.f32.mrf.mxu0  ;;  %4937 = vmatmul.mubr.bf16.gmra.mxu0 %v7239_v55  ;;  %v7255_v55 = vcombine.low %v449_v38, %v457_v4  ;;  %v489_v38 = vld [vmem:[%s10788_s0 + $0xed0] sm:$0xff] }
 0x212   :  { %v4747_v28 = vadd.f32 %v4746_v2, %v8563_v3  ;;  %v5035_v41 = vpop.f32.mrf.mxu1  ;;  %5226 = vmatmul.mubr.bf16.gmra.mxu1 %v7241_v49  ;;  %4944 = vmatprep.mubr.bf16.mxu0 %v7256_v29  ;;  %v466_v3 = vld [vmem:[%s10788_s0 + $0xe18] sm:$0xff]  ;;  %v7257_v49 = vcombine.low %v450_v46, %v458_v18  ;;  %v7272_v29 = vcombine.high %v465_v58, %v473_v35 }
 0x213   :  { %v4748_v63 = vpop.f32.mrf.mxu0  ;;  %5233 = vmatprep.mubr.bf16.mxu1 %v7258_v23  ;;  %v7274_v23 = vcombine.high %v466_v3, %v474_v59  ;;  %v490_v18 = vld [vmem:[%s10788_s0 + $0xed8] sm:$0xff] }
 0x214   :  { %v9296_v36 = vadd.f32 %v5035_v41, %v4747_v28  ;;  %v5037_v26 = vpop.f32.mrf.mxu1 }
 0x215   :  { %v4749_v0 = vpop.f32.mrf.mxu0 }
 0x216   :  { %v4750_v21 = vadd.f32 %v4749_v0, %v8572_v15  ;;  %v5038_v27 = vpop.f32.mrf.mxu1  ;;  %v481_v15 = vld [vmem:[%s10788_s0 + $0xe90] sm:$0xff] }
 0x217   :  { %v4751_v13 = vpop.f32.mrf.mxu0 }
 0x218   :  { %v9305_v1 = vadd.f32 %v5038_v27, %v4750_v21  ;;  %v5040_v2 = vpop.f32.mrf.mxu1 }
 0x219   :  { %v4754_v28 = vpop.f32.mrf.mxu0  ;;  %4945 = vmatmul.mubr.bf16.gmra.mxu0 %v7255_v55  ;;  %v7271_v55 = vcombine.low %v465_v58, %v473_v35  ;;  %v505_v58 = vld [vmem:[%s10788_s0 + $0xf50] sm:$0xff] }
 0x21a   :  { %v4755_v41 = vadd.f32 %v4754_v28, %v8581_v24  ;;  %v5043_v63 = vpop.f32.mrf.mxu1  ;;  %5234 = vmatmul.mubr.bf16.gmra.mxu1 %v7257_v49  ;;  %4952 = vmatprep.mubr.bf16.mxu0 %v7272_v29  ;;  %v482_v24 = vld [vmem:[%s10788_s0 + $0xe98] sm:$0xff]  ;;  %v7273_v49 = vcombine.low %v466_v3, %v474_v59  ;;  %v7288_v29 = vcombine.high %v481_v15, %v489_v38 }
 0x21b   :  { %v4756_v26 = vpop.f32.mrf.mxu0  ;;  %5241 = vmatprep.mubr.bf16.mxu1 %v7274_v23  ;;  %v7290_v23 = vcombine.high %v482_v24, %v490_v18  ;;  %v506_v59 = vld [vmem:[%s10788_s0 + $0xf58] sm:$0xff] }
 0x21c   :  { %v9314_v4 = vadd.f32 %v5043_v63, %v4755_v41  ;;  %v5045_v46 = vpop.f32.mrf.mxu1 }
 0x21d   :  { %v4757_v0 = vpop.f32.mrf.mxu0 }
 0x21e   :  { %v4758_v21 = vadd.f32 %v4757_v0, %v8590_v37  ;;  %v5046_v27 = vpop.f32.mrf.mxu1  ;;  %v497_v37 = vld [vmem:[%s10788_s0 + $0xf10] sm:$0xff] }
 0x21f   :  { %v4759_v13 = vpop.f32.mrf.mxu0 }
 0x220   :  { %v9323_v2 = vadd.f32 %v5046_v27, %v4758_v21  ;;  %v5048_v28 = vpop.f32.mrf.mxu1 }
 0x221   :  { %v4762_v41 = vpop.f32.mrf.mxu0  ;;  %4953 = vmatmul.mubr.bf16.gmra.mxu0 %v7271_v55  ;;  %v7287_v55 = vcombine.low %v481_v15, %v489_v38  ;;  %v521_v15 = vld [vmem:[%s10788_s0 + $0xfd0] sm:$0xff] }
 0x222   :  { %v4763_v63 = vadd.f32 %v4762_v41, %v8599_v47  ;;  %v5051_v26 = vpop.f32.mrf.mxu1  ;;  %5242 = vmatmul.mubr.bf16.gmra.mxu1 %v7273_v49  ;;  %4960 = vmatprep.mubr.bf16.mxu0 %v7288_v29  ;;  %v498_v47 = vld [vmem:[%s10788_s0 + $0xf18] sm:$0xff]  ;;  %v7289_v49 = vcombine.low %v482_v24, %v490_v18  ;;  %v7304_v29 = vcombine.high %v497_v37, %v505_v58 }
 0x223   :  { %v4764_v46 = vpop.f32.mrf.mxu0  ;;  %5249 = vmatprep.mubr.bf16.mxu1 %v7290_v23  ;;  %v7306_v23 = vcombine.high %v498_v47, %v506_v59  ;;  %v522_v18 = vld [vmem:[%s10788_s0 + $0xfd8] sm:$0xff] }
 0x224   :  { %v9332_v35 = vadd.f32 %v5051_v26, %v4763_v63  ;;  %v5053_v3 = vpop.f32.mrf.mxu1 }
 0x225   :  { %v4765_v0 = vpop.f32.mrf.mxu0 }
 0x226   :  { %v4766_v21 = vadd.f32 %v4765_v0, %v8608_v60  ;;  %v5054_v27 = vpop.f32.mrf.mxu1  ;;  %v513_v60 = vld [vmem:[%s10788_s0 + $0xf90] sm:$0xff] }
 0x227   :  { %v4767_v13 = vpop.f32.mrf.mxu0 }
 0x228   :  { %v9341_v28 = vadd.f32 %v5054_v27, %v4766_v21  ;;  %v5056_v41 = vpop.f32.mrf.mxu1 }
 0x229   :  { %v4770_v63 = vpop.f32.mrf.mxu0  ;;  %4961 = vmatmul.mubr.bf16.gmra.mxu0 %v7287_v55  ;;  %v7303_v55 = vcombine.low %v497_v37, %v505_v58  ;;  %v27_v37 = vld [vmem:[%s10788_s0 + $0x60] sm:$0xff] }
 0x22a   :  { %v4771_v26 = vadd.f32 %v4770_v63, %v8617_v6  ;;  %v5059_v46 = vpop.f32.mrf.mxu1  ;;  %5250 = vmatmul.mubr.bf16.gmra.mxu1 %v7289_v49  ;;  %4968 = vmatprep.mubr.bf16.mxu0 %v7304_v29  ;;  %v514_v6 = vld [vmem:[%s10788_s0 + $0xf98] sm:$0xff]  ;;  %v7305_v49 = vcombine.low %v498_v47, %v506_v59  ;;  %v7320_v29 = vcombine.high %v513_v60, %v521_v15  ;;  %v28_v59 = vld [vmem:[%s10788_s0 + $0x68] sm:$0xff] }
 0x22b   :  { %v4772_v3 = vpop.f32.mrf.mxu0  ;;  %5257 = vmatprep.mubr.bf16.mxu1 %v7306_v23  ;;  %v7322_v23 = vcombine.high %v514_v6, %v522_v18 }
 0x22c   :  { %v9350_v38 = vadd.f32 %v5059_v46, %v4771_v26  ;;  %v5061_v24 = vpop.f32.mrf.mxu1 }
 0x22d   :  { %v4773_v0 = vpop.f32.mrf.mxu0 }
 0x22e   :  { %v4774_v21 = vadd.f32 %v4773_v0, %v8626_v20  ;;  %v5062_v27 = vpop.f32.mrf.mxu1  ;;  %v19_v20 = vld [vmem:[%s10788_s0 + $0x20] sm:$0xff] }
 0x22f   :  { %v4775_v13 = vpop.f32.mrf.mxu0 }
 0x230   :  { %v9359_v41 = vadd.f32 %v5062_v27, %v4774_v21  ;;  %v5064_v63 = vpop.f32.mrf.mxu1 }
 0x231   :  { %v4778_v26 = vpop.f32.mrf.mxu0  ;;  %4969 = vmatmul.mubr.bf16.gmra.mxu0 %v7303_v55  ;;  %v7319_v55 = vcombine.low %v513_v60, %v521_v15  ;;  %v35_v15 = vld [vmem:[%s10788_s0 + $0xa0] sm:$0xff] }
 0x232   :  { %v4779_v46 = vadd.f32 %v4778_v26, %v8635_v30  ;;  %v5067_v3 = vpop.f32.mrf.mxu1  ;;  %5258 = vmatmul.mubr.bf16.gmra.mxu1 %v7305_v49  ;;  %4976 = vmatprep.mubr.bf16.mxu0 %v7320_v29  ;;  %v20_v30 = vld [vmem:[%s10788_s0 + $0x28] sm:$0xff]  ;;  %v7321_v49 = vcombine.low %v514_v6, %v522_v18  ;;  %v6828_v29 = vcombine.high %v19_v20, %v27_v37  ;;  %v43_v6 = vld [vmem:[%s10788_s0 + $0xe0] sm:$0xff] }
 0x233   :  { %v4780_v24 = vpop.f32.mrf.mxu0  ;;  %5265 = vmatprep.mubr.bf16.mxu1 %v7322_v23  ;;  %v6830_v23 = vcombine.high %v20_v30, %v28_v59 }
 0x234   :  { %v9368_v58 = vadd.f32 %v5067_v3, %v4779_v46  ;;  %v5069_v47 = vpop.f32.mrf.mxu1 }
 0x235   :  { %v4781_v0 = vpop.f32.mrf.mxu0 }
 0x236   :  { %v4782_v21 = vadd.f32 %v4781_v0, %v8644_v44  ;;  %v5070_v27 = vpop.f32.mrf.mxu1  ;;  %v6827_v0 = vcombine.low %v19_v20, %v27_v37  ;;  %v7876_v20 = vld [vmem:[%s10787_s1 + $0x3b8] sm:$0xff]   ;;  %v6844_v37 = vcombine.high %v35_v15, %v43_v6 }
 0x237   :  { %v4783_v13 = vpop.f32.mrf.mxu0 }
 0x238   :  { %v9377_v63 = vadd.f32 %v5070_v27, %v4782_v21  ;;  %v5072_v26 = vpop.f32.mrf.mxu1 }
 0x239   :  { %v4786_v46 = vpop.f32.mrf.mxu0  ;;  %4977 = vmatmul.mubr.bf16.gmra.mxu0 %v7319_v55  ;;  %v44_v55 = vld [vmem:[%s10788_s0 + $0xe8] sm:$0xff] }
 0x23a   :  { %v4787_v3 = vadd.f32 %v4786_v46, %v8647_v52  ;;  %v5075_v24 = vpop.f32.mrf.mxu1  ;;  %5266 = vmatmul.mubr.bf16.gmra.mxu1 %v7321_v49  ;;  %5306 = vmatprep.mubr.bf16.mxu0 %v6828_v29  ;;  %v36_v52 = vld [vmem:[%s10788_s0 + $0xa8] sm:$0xff]  ;;  %v6829_v49 = vcombine.low %v20_v30, %v28_v59  ;;  %v7875_v29 = vld [vmem:[%s10787_s1 + $0x338] sm:$0xff]   ;;  %v7877_v30 = vld [vmem:[%s10787_s1 + $0x330] sm:$0xff]  }
 0x23b   :  { %v4788_v47 = vpop.f32.mrf.mxu0  ;;  %5595 = vmatprep.mubr.bf16.mxu1 %v6830_v23  ;;  %v6846_v46 = vcombine.high %v36_v52, %v44_v55 }
 0x23c   :  { %v9380_v60 = vadd.f32 %v5075_v24, %v4787_v3  ;;  %v5077_v44 = vpop.f32.mrf.mxu1  ;;  %v51_v47 = vld [vmem:[%s10788_s0 + $0x120] sm:$0xff] }
 0x23d   :  { %v4789_v18 = vpop.f32.mrf.mxu0  ;;  %v59_v44 = vld [vmem:[%s10788_s0 + $0x160] sm:$0xff] }
 0x23e   :  { %v4790_v21 = vadd.f32 %v4789_v18, %v8668_v8  ;;  %v5078_v27 = vpop.f32.mrf.mxu1 }
 0x23f   :  { %v4791_v13 = vpop.f32.mrf.mxu0 }
 0x240   :  { %v9401_v23 = vadd.f32 %v5078_v27, %v4790_v21  ;;  %v5080_v26 = vpop.f32.mrf.mxu1  ;;  %v52_v21 = vld [vmem:[%s10788_s0 + $0x128] sm:$0xff] }
 0x241   :  { %v4794_v3 = vpop.f32.mrf.mxu0  ;;  %5307 = vmatmul.mubr.bf16.vlgmr.msra.gmra.mxu0 %v6827_v0  ;;  %v60_v27 = vld [vmem:[%s10788_s0 + $0x168] sm:$0xff]  ;;  %v6860_v26 = vcombine.high %v51_v47, %v59_v44 }
 0x242   :  { %v4795_v8 = vadd.f32 %v4794_v3, %v8683_v22  ;;  %v5083_v24 = vpop.f32.mrf.mxu1  ;;  %5596 = vmatmul.mubr.bf16.vlgmr.msra.gmra.mxu1 %v6829_v49  ;;  %5853 = vmatpush1.bf16.msra.mxu0 %v7875_v29  ;;  %v7878_v22 = vld [vmem:[%s10787_s1 + $0x3b0] sm:$0xff]   ;;  %v6843_v29 = vcombine.low %v35_v15, %v43_v6  ;;  %v6862_v3 = vcombine.high %v52_v21, %v60_v27 }
 0x243   :  { %v4796_v59 = vpop.f32.mrf.mxu0  ;;  %6142 = vmatpush1.bf16.msra.mxu1 %v7876_v20  ;;  %5314 = vmatprep.mubr.bf16.mxu0 %v6844_v37  ;;  %v6845_v37 = vcombine.low %v36_v52, %v44_v55 }
 0x244   :  { %v9416_v18 = vadd.f32 %v5083_v24, %v4795_v8  ;;  %v5085_v0 = vpop.f32.mrf.mxu1  ;;  %5603 = vmatprep.mubr.bf16.mxu1 %v6846_v46  ;;  %5854 = vmatprep.subr.bf16.mxu0 %v10798_v57  ;;  %v7879_v8 = vld [vmem:[%s10787_s1 + $0x328] sm:$0xff]   ;;  %v9441_v59 = vld [vmem:[%s10788_s0 + $0x1a0] sm:$0xff] }
 0x245   :  { %v4797_v49 = vpop.f32.mrf.mxu0  ;;  %6143 = vmatprep.subr.bf16.mxu1 %v10798_v57 }
 0x246   :  { %v4798_v13 = vadd.f32 %v4797_v49, %v8698_v40  ;;  %v5086_v20 = vpop.f32.mrf.mxu1  ;;  %5855 = vmatpush1.bf16.msra.mxu0 %v7877_v30  ;;  %v7880_v40 = vld [vmem:[%s10787_s1 + $0x3a8] sm:$0xff]  }
 0x247   :  { %v4799_v46 = vpop.f32.mrf.mxu0  ;;  %6144 = vmatpush1.bf16.msra.mxu1 %v7878_v22  ;;  %5856 = vmatprep.subr.bf16.mxu0 %v10798_v57  ;;  %v9446_v22 = vld [vmem:[%s10788_s0 + $0x1e0] sm:$0xff] }
 0x248   :  { %v9431_v24 = vadd.f32 %v5086_v20, %v4798_v13  ;;  %v5088_v15 = vpop.f32.mrf.mxu1  ;;  %6145 = vmatprep.subr.bf16.mxu1 %v10798_v57  ;;  %v76_v13 = vld [vmem:[%s10788_s0 + $0x1e8] sm:$0xff]  ;;  %v7882_v20 = vld [vmem:[%s10787_s1 + $0x3a0] sm:$0xff]  }
 0x249   :  { %v4802_v6 = vpop.f32.mrf.mxu0  ;;  %5315 = vmatmul.mubr.bf16.gmra.mxu0 %v6843_v29  ;;  %v68_v29 = vld [vmem:[%s10788_s0 + $0x1a8] sm:$0xff]  ;;  %v6876_v15 = vcombine.high %v9441_v59, %v9446_v22 }
 0x24a   :  { %v4803_v52 = vadd.f32 %v4802_v6, %v8718_v54  ;;  %v5091_v55 = vpop.f32.mrf.mxu1  ;;  %5604 = vmatmul.mubr.bf16.gmra.mxu1 %v6845_v37  ;;  %5322 = vmatprep.mubr.bf16.mxu0 %v6860_v26  ;;  %v7881_v54 = vld [vmem:[%s10787_s1 + $0x320] sm:$0xff]   ;;  %v6859_v26 = vcombine.low %v51_v47, %v59_v44 }
 0x24b   :  { %v4804_v30 = vpop.f32.mrf.mxu0  ;;  %5611 = vmatprep.mubr.bf16.mxu1 %v6862_v3  ;;  %5857 = vmatpush1.bf16.msra.mxu0 %v7879_v8  ;;  %v6861_v8 = vcombine.low %v52_v21, %v60_v27 }
 0x24c   :  { %v9451_v0 = vadd.f32 %v5091_v55, %v4803_v52  ;;  %v5093_v49 = vpop.f32.mrf.mxu1  ;;  %6146 = vmatpush1.bf16.msra.mxu1 %v7880_v40  ;;  %5858 = vmatprep.subr.bf16.mxu0 %v10798_v57  ;;  %v6878_v52 = vcombine.high %v68_v29, %v76_v13  ;;  %v7883_v40 = vld [vmem:[%s10787_s1 + $0x318] sm:$0xff]  }
 0x24d   :  { %v4805_v37 = vpop.f32.mrf.mxu0  ;;  %6147 = vmatprep.subr.bf16.mxu1 %v10798_v57  ;;  %v9486_v49 = vld [vmem:[%s10788_s0 + $0x260] sm:$0xff] }
 0x24e   :  { %v4806_v46 = vadd.f32 %v4805_v37, %v8737_v10  ;;  %v5094_v3 = vpop.f32.mrf.mxu1  ;;  %v7884_v10 = vld [vmem:[%s10787_s1 + $0x398] sm:$0xff]  }
 0x24f   :  { %v4807_v6 = vpop.f32.mrf.mxu0  ;;  %5859 = vmatpush1.bf16.msra.mxu0 %v7881_v54  ;;  %v9481_v54 = vld [vmem:[%s10788_s0 + $0x220] sm:$0xff] }
 0x250   :  { %v9470_v55 = vadd.f32 %v5094_v3, %v4806_v46  ;;  %v5096_v30 = vpop.f32.mrf.mxu1  ;;  %6148 = vmatpush1.bf16.msra.mxu1 %v7882_v20  ;;  %5860 = vmatprep.subr.bf16.mxu0 %v10798_v57  ;;  %v92_v46 = vld [vmem:[%s10788_s0 + $0x268] sm:$0xff]  ;;  %v7886_v3 = vld [vmem:[%s10787_s1 + $0x390] sm:$0xff]  }
 0x251   :  { %v4810_v47 = vpop.f32.mrf.mxu0  ;;  %5323 = vmatmul.mubr.bf16.gmra.mxu0 %v6859_v26  ;;  %6149 = vmatprep.subr.bf16.mxu1 %v10798_v57  ;;  %v84_v26 = vld [vmem:[%s10788_s0 + $0x228] sm:$0xff]  ;;  %v6892_v30 = vcombine.high %v9481_v54, %v9486_v49 }
 0x252   :  { %v4811_v44 = vadd.f32 %v4810_v47, %v8758_v25  ;;  %v5099_v21 = vpop.f32.mrf.mxu1  ;;  %5612 = vmatmul.mubr.bf16.gmra.mxu1 %v6861_v8  ;;  %5330 = vmatprep.mubr.bf16.mxu0 %v6876_v15  ;;  %v7885_v25 = vld [vmem:[%s10787_s1 + $0x310] sm:$0xff]   ;;  %v6875_v15 = vcombine.low %v9441_v59, %v9446_v22  ;;  %v6894_v47 = vcombine.high %v84_v26, %v92_v46 }
 0x253   :  { %v4812_v27 = vpop.f32.mrf.mxu0  ;;  %5619 = vmatprep.mubr.bf16.mxu1 %v6878_v52  ;;  %5861 = vmatpush1.bf16.msra.mxu0 %v7883_v40  ;;  %v6877_v40 = vcombine.low %v68_v29, %v76_v13 }
 0x254   :  { %v9491_v20 = vadd.f32 %v5099_v21, %v4811_v44  ;;  %v5101_v37 = vpop.f32.mrf.mxu1  ;;  %6150 = vmatpush1.bf16.msra.mxu1 %v7884_v10  ;;  %5862 = vmatprep.subr.bf16.mxu0 %v10798_v57  ;;  %v7887_v44 = vld [vmem:[%s10787_s1 + $0x308] sm:$0xff]  }
 0x255   :  { %v4813_v8 = vpop.f32.mrf.mxu0  ;;  %6151 = vmatprep.subr.bf16.mxu1 %v10798_v57  ;;  %v9528_v37 = vld [vmem:[%s10788_s0 + $0x2e0] sm:$0xff] }
 0x256   :  { %v4814_v6 = vadd.f32 %v4813_v8, %v8779_v45  ;;  %v5102_v52 = vpop.f32.mrf.mxu1  ;;  %v7888_v45 = vld [vmem:[%s10787_s1 + $0x388] sm:$0xff]  }
 0x257   :  { %v4815_v10 = vpop.f32.mrf.mxu0  ;;  %5863 = vmatpush1.bf16.msra.mxu0 %v7885_v25  ;;  %v9523_v25 = vld [vmem:[%s10788_s0 + $0x2a0] sm:$0xff] }
 0x258   :  { %v9512_v21 = vadd.f32 %v5102_v52, %v4814_v6  ;;  %v5104_v27 = vpop.f32.mrf.mxu1  ;;  %6152 = vmatpush1.bf16.msra.mxu1 %v7886_v3  ;;  %5864 = vmatprep.subr.bf16.mxu0 %v10798_v57  ;;  %v108_v6 = vld [vmem:[%s10788_s0 + $0x2e8] sm:$0xff]  ;;  %v7890_v52 = vld [vmem:[%s10787_s1 + $0x380] sm:$0xff]  }
 0x259   :  { %v4818_v59 = vpop.f32.mrf.mxu0  ;;  %5331 = vmatmul.mubr.bf16.gmra.mxu0 %v6875_v15  ;;  %6153 = vmatprep.subr.bf16.mxu1 %v10798_v57  ;;  %v100_v15 = vld [vmem:[%s10788_s0 + $0x2a8] sm:$0xff]  ;;  %v6908_v27 = vcombine.high %v9523_v25, %v9528_v37 }
 0x25a   :  { %v4819_v22 = vadd.f32 %v4818_v59, %v8800_v61  ;;  %v5107_v29 = vpop.f32.mrf.mxu1  ;;  %5620 = vmatmul.mubr.bf16.gmra.mxu1 %v6877_v40  ;;  %5338 = vmatprep.mubr.bf16.mxu0 %v6892_v30  ;;  %v7889_v61 = vld [vmem:[%s10787_s1 + $0x300] sm:$0xff]   ;;  %v6891_v30 = vcombine.low %v9481_v54, %v9486_v49  ;;  %v6910_v59 = vcombine.high %v100_v15, %v108_v6 }
 0x25b   :  { %v4820_v13 = vpop.f32.mrf.mxu0  ;;  %5627 = vmatprep.mubr.bf16.mxu1 %v6894_v47  ;;  %5865 = vmatpush1.bf16.msra.mxu0 %v7887_v44  ;;  %v6893_v44 = vcombine.low %v84_v26, %v92_v46 }
 0x25c   :  { %v9533_v3 = vadd.f32 %v5107_v29, %v4819_v22  ;;  %v5109_v8 = vpop.f32.mrf.mxu1  ;;  %6154 = vmatpush1.bf16.msra.mxu1 %v7888_v45  ;;  %5866 = vmatprep.subr.bf16.mxu0 %v10798_v57  ;;  %v7891_v22 = vld [vmem:[%s10787_s1 + $0x378] sm:$0xff]  }
 0x25d   :  { %v4821_v40 = vpop.f32.mrf.mxu0  ;;  %6155 = vmatprep.subr.bf16.mxu1 %v10798_v57  ;;  %v123_v8 = vld [vmem:[%s10788_s0 + $0x360] sm:$0xff] }
 0x25e   :  { %v4822_v10 = vadd.f32 %v4821_v40, %v8821_v17  ;;  %v5110_v47 = vpop.f32.mrf.mxu1  ;;  %v7892_v17 = vld [vmem:[%s10787_s1 + $0x3f8] sm:$0xff]  }
 0x25f   :  { %v4823_v45 = vpop.f32.mrf.mxu0  ;;  %5867 = vmatpush1.bf16.msra.mxu0 %v7889_v61  ;;  %v115_v61 = vld [vmem:[%s10788_s0 + $0x320] sm:$0xff] }
 0x260   :  { %v9554_v29 = vadd.f32 %v5110_v47, %v4822_v10  ;;  %v5112_v13 = vpop.f32.mrf.mxu1  ;;  %6156 = vmatpush1.bf16.msra.mxu1 %v7890_v52  ;;  %5868 = vmatprep.subr.bf16.mxu0 %v10798_v57  ;;  %v7893_v52 = vld [vmem:[%s10787_s1 + $0x370] sm:$0xff]   ;;  %v124_v10 = vld [vmem:[%s10788_s0 + $0x368] sm:$0xff] }
 0x261   :  { %v4826_v54 = vpop.f32.mrf.mxu0  ;;  %5339 = vmatmul.mubr.bf16.gmra.mxu0 %v6891_v30  ;;  %6157 = vmatprep.subr.bf16.mxu1 %v10798_v57  ;;  %v116_v30 = vld [vmem:[%s10788_s0 + $0x328] sm:$0xff]  ;;  %v7894_v47 = vld [vmem:[%s10787_s1 + $0x3f0] sm:$0xff]   ;;  %v6924_v13 = vcombine.high %v115_v61, %v123_v8 }
 0x262   :  { %v4827_v49 = vadd.f32 %v4826_v54, %v8838_v34  ;;  %v5115_v26 = vpop.f32.mrf.mxu1  ;;  %5628 = vmatmul.mubr.bf16.gmra.mxu1 %v6893_v44  ;;  %5346 = vmatprep.mubr.bf16.mxu0 %v6908_v27  ;;  %v6907_v27 = vcombine.low %v9523_v25, %v9528_v37 }
 0x263   :  { %v4828_v46 = vpop.f32.mrf.mxu0  ;;  %5635 = vmatprep.mubr.bf16.mxu1 %v6910_v59  ;;  %5869 = vmatpush2.bf16.msra.mxu0 %v7891_v22  ;;  %v6909_v22 = vcombine.low %v100_v15, %v108_v6 }
 0x264   :  { %v9571_v40 = vadd.f32 %v5115_v26, %v4827_v49  ;;  %v5117_v34 = vpop.f32.mrf.mxu1  ;;  %6158 = vmatpush2.bf16.msra.mxu1 %v7892_v17  ;;  %5870 = vmatprep.subr.bf16.mxu0 %v10798_v57  ;;  %v6926_v49 = vcombine.high %v116_v30, %v124_v10  ;;  %v7895_v17 = vld [vmem:[%s10787_s1 + $0x368] sm:$0xff]  }
 0x265   :  { %v4829_v44 = vpop.f32.mrf.mxu0  ;;  %6159 = vmatprep.subr.bf16.mxu1 %v10798_v57  ;;  %v139_v34 = vld [vmem:[%s10788_s0 + $0x3e0] sm:$0xff] }
 0x266   :  { %v4830_v45 = vadd.f32 %v4829_v44, %v8857_v62  ;;  %v5118_v59 = vpop.f32.mrf.mxu1  ;;  %v7896_v62 = vld [vmem:[%s10787_s1 + $0x3e8] sm:$0xff]  }
 0x267   :  { %v4831_v54 = vpop.f32.mrf.mxu0  ;;  %5871 = vmatpush2.bf16.msra.mxu0 %v7893_v52  ;;  %v131_v52 = vld [vmem:[%s10788_s0 + $0x3a0] sm:$0xff] }
 0x268   :  { %v9590_v26 = vadd.f32 %v5118_v59, %v4830_v45  ;;  %v5120_v46 = vpop.f32.mrf.mxu1  ;;  %6160 = vmatpush2.bf16.msra.mxu1 %v7894_v47  ;;  %5872 = vmatprep.subr.bf16.mxu0 %v10798_v57  ;;  %v6923_v59 = vcombine.low %v115_v61, %v123_v8  ;;  %v6925_v54 = vcombine.low %v116_v30, %v124_v10  ;;  %v155_v8 = vld [vmem:[%s10788_s0 + $0x460] sm:$0xff]  ;;  %v148_v30 = vld [vmem:[%s10788_s0 + $0x428] sm:$0xff] }
 0x269   :  { %v4834_v25 = vpop.f32.mrf.mxu0  ;;  %5347 = vmatmul.mubr.bf16.gmra.mxu0 %v6907_v27  ;;  %6161 = vmatprep.subr.bf16.mxu1 %v10798_v57  ;;  %v140_v27 = vld [vmem:[%s10788_s0 + $0x3e8] sm:$0xff] }
 0x26a   :  { %v4835_v37 = vadd.f32 %v4834_v25, %v8871_v9  ;;  %v5123_v15 = vpop.f32.mrf.mxu1  ;;  %5636 = vmatmul.mubr.bf16.gmra.mxu1 %v6909_v22  ;;  %5354 = vmatprep.mubr.bf16.mxu0 %v6924_v13  ;;  %v132_v9 = vld [vmem:[%s10788_s0 + $0x3a8] sm:$0xff] }
 0x26b   :  { %v4836_v6 = vpop.f32.mrf.mxu0  ;;  %5643 = vmatprep.mubr.bf16.mxu1 %v6926_v49  ;;  %5873 = vmatpush2.bf16.msra.mxu0 %v7895_v17  ;;  %v6940_v49 = vcombine.high %v131_v52, %v139_v34  ;;  %v6942_v46 = vcombine.high %v132_v9, %v140_v27 }
 0x26c   :  { %v9604_v47 = vadd.f32 %v5123_v15, %v4835_v37  ;;  %v5125_v44 = vpop.f32.mrf.mxu1  ;;  %6162 = vmatpush2.bf16.msra.mxu1 %v7896_v62  ;;  %5874 = vmatprep.subr.bf16.mxu0 %v10798_v57 }
 0x26d   :  { %v4837_v45 = vpop.f32.mrf.mxu0  ;;  %6163 = vmatprep.subr.bf16.mxu1 %v10798_v57  ;;  %v156_v44 = vld [vmem:[%s10788_s0 + $0x468] sm:$0xff] }
 0x26e   :  { %v4838_v22 = vadd.f32 %v4837_v45, %v8882_v33  ;;  %v5126_v13 = vpop.f32.mrf.mxu1  ;;  %v147_v33 = vld [vmem:[%s10788_s0 + $0x420] sm:$0xff] }
 0x26f   :  { %v4839_v17 = vpop.f32.mrf.mxu0  ;;  %v7897_v45 = vld [vmem:[%s10787_s1 + $0x360] sm:$0xff]  }
 0x270   :  { %v9615_v25 = vadd.f32 %v5126_v13, %v4838_v22  ;;  %v5128_v37 = vpop.f32.mrf.mxu1  ;;  %v6939_v13 = vcombine.low %v131_v52, %v139_v34  ;;  %v6941_v17 = vcombine.low %v132_v9, %v140_v27  ;;  %5875 = vmatpush2.bf16.msra.mxu0 %v7897_v45  ;;  %v163_v9 = vld [vmem:[%s10788_s0 + $0x4a0] sm:$0xff] }
 0x271   :  { %v4842_v15 = vpop.f32.mrf.mxu0  ;;  %5355 = vmatmul.mubr.bf16.gmra.mxu0 %v6923_v59  ;;  %v7898_v59 = vld [vmem:[%s10787_s1 + $0x3e0] sm:$0xff]   ;;  %5876 = vmatprep.subr.bf16.mxu0 %v10798_v57 }
 0x272   :  { %v4843_v62 = vadd.f32 %v4842_v15, %v8894_v48  ;;  %v5131_v6 = vpop.f32.mrf.mxu1  ;;  %5644 = vmatmul.mubr.bf16.gmra.mxu1 %v6925_v54  ;;  %5362 = vmatprep.mubr.bf16.mxu0 %v6940_v49  ;;  %v6958_v15 = vcombine.high %v148_v30, %v156_v44  ;;  %v171_v27 = vld [vmem:[%s10788_s0 + $0x4e0] sm:$0xff] }
 0x273   :  { %v4844_v61 = vpop.f32.mrf.mxu0  ;;  %5651 = vmatprep.mubr.bf16.mxu1 %v6942_v46  ;;  %v6956_v46 = vcombine.high %v147_v33, %v155_v8  ;;  %6164 = vmatpush2.bf16.msra.mxu1 %v7898_v59  ;;  %v172_v59 = vld [vmem:[%s10788_s0 + $0x4e8] sm:$0xff] }
 0x274   :  { %v9627_v10 = vadd.f32 %v5131_v6, %v4843_v62  ;;  %v5133_v48 = vpop.f32.mrf.mxu1  ;;  %6165 = vmatprep.subr.bf16.mxu1 %v10798_v57 }
 0x275   :  { %v4845_v22 = vpop.f32.mrf.mxu0 }
 0x276   :  { %v4846_v54 = vadd.f32 %v4845_v22, %v8908_v11  ;;  %v5134_v49 = vpop.f32.mrf.mxu1 }
 0x277   :  { %v4847_v37 = vpop.f32.mrf.mxu0 }
 0x278   :  { %v9641_v62 = vadd.f32 %v5134_v49, %v4846_v54  ;;  %v5136_v6 = vpop.f32.mrf.mxu1 }
 0x279   :  { %v4850_v61 = vpop.f32.mrf.mxu0  ;;  %5363 = vmatmul.mubr.bf16.gmra.mxu0 %v6939_v13  ;;  %v6955_v13 = vcombine.low %v147_v33, %v155_v8  ;;  %v187_v33 = vld [vmem:[%s10788_s0 + $0x560] sm:$0xff]  ;;  %v180_v8 = vld [vmem:[%s10788_s0 + $0x528] sm:$0xff] }
 0x27a   :  { %v4851_v52 = vadd.f32 %v4850_v61, %v8917_v19  ;;  %v5139_v34 = vpop.f32.mrf.mxu1  ;;  %5652 = vmatmul.mubr.bf16.gmra.mxu1 %v6941_v17  ;;  %5370 = vmatprep.mubr.bf16.mxu0 %v6956_v46  ;;  %v164_v19 = vld [vmem:[%s10788_s0 + $0x4a8] sm:$0xff]  ;;  %v6957_v17 = vcombine.low %v148_v30, %v156_v44  ;;  %v6972_v46 = vcombine.high %v163_v9, %v171_v27 }
 0x27b   :  { %v4852_v11 = vpop.f32.mrf.mxu0  ;;  %5659 = vmatprep.mubr.bf16.mxu1 %v6958_v15  ;;  %v6974_v15 = vcombine.high %v164_v19, %v172_v59  ;;  %v188_v44 = vld [vmem:[%s10788_s0 + $0x568] sm:$0xff] }
 0x27c   :  { %v9650_v48 = vadd.f32 %v5139_v34, %v4851_v52  ;;  %v5141_v45 = vpop.f32.mrf.mxu1 }
 0x27d   :  { %v4853_v22 = vpop.f32.mrf.mxu0 }
 0x27e   :  { %v4854_v54 = vadd.f32 %v4853_v22, %v8926_v53  ;;  %v5142_v49 = vpop.f32.mrf.mxu1  ;;  %v179_v53 = vld [vmem:[%s10788_s0 + $0x520] sm:$0xff]  ;;  %v7899_v22 = vld [vmem:[%s10787_s1 + $0x358] sm:$0xff]  }
 0x27f   :  { %v4855_v37 = vpop.f32.mrf.mxu0  ;;  %5877 = vmatpush2.bf16.msra.mxu0 %v7899_v22 }
 0x280   :  { %v9659_v6 = vadd.f32 %v5142_v49, %v4854_v54  ;;  %v5144_v61 = vpop.f32.mrf.mxu1  ;;  %v6971_v49 = vcombine.low %v163_v9, %v171_v27  ;;  %v6973_v37 = vcombine.low %v164_v19, %v172_v59  ;;  %5878 = vmatprep.subr.bf16.mxu0 %v10798_v57  ;;  %v195_v19 = vld [vmem:[%s10788_s0 + $0x5a0] sm:$0xff] }
 0x281   :  { %v4858_v52 = vpop.f32.mrf.mxu0  ;;  %5371 = vmatmul.mubr.bf16.gmra.mxu0 %v6955_v13  ;;  %v7900_v13 = vld [vmem:[%s10787_s1 + $0x3d8] sm:$0xff]   ;;  %v203_v59 = vld [vmem:[%s10788_s0 + $0x5e0] sm:$0xff] }
 0x282   :  { %v4859_v34 = vadd.f32 %v4858_v52, %v8938_v50  ;;  %v5147_v11 = vpop.f32.mrf.mxu1  ;;  %5660 = vmatmul.mubr.bf16.gmra.mxu1 %v6957_v17  ;;  %5378 = vmatprep.mubr.bf16.mxu0 %v6972_v46  ;;  %v6990_v52 = vcombine.high %v180_v8, %v188_v44 }
 0x283   :  { %v4860_v45 = vpop.f32.mrf.mxu0  ;;  %5667 = vmatprep.mubr.bf16.mxu1 %v6974_v15  ;;  %v6988_v15 = vcombine.high %v179_v53, %v187_v33  ;;  %6166 = vmatpush2.bf16.msra.mxu1 %v7900_v13  ;;  %v204_v13 = vld [vmem:[%s10788_s0 + $0x5e8] sm:$0xff] }
 0x284   :  { %v9671_v30 = vadd.f32 %v5147_v11, %v4859_v34  ;;  %v5149_v50 = vpop.f32.mrf.mxu1  ;;  %6167 = vmatprep.subr.bf16.mxu1 %v10798_v57 }
 0x285   :  { %v4861_v54 = vpop.f32.mrf.mxu0 }
 0x286   :  { %v4862_v17 = vadd.f32 %v4861_v54, %v8952_v42  ;;  %v5150_v46 = vpop.f32.mrf.mxu1 }
 0x287   :  { %v4863_v61 = vpop.f32.mrf.mxu0 }
 0x288   :  { %v9685_v34 = vadd.f32 %v5150_v46, %v4862_v17  ;;  %v5152_v11 = vpop.f32.mrf.mxu1 }
 0x289   :  { %v4866_v45 = vpop.f32.mrf.mxu0  ;;  %5379 = vmatmul.mubr.bf16.gmra.mxu0 %v6971_v49  ;;  %v6987_v49 = vcombine.low %v179_v53, %v187_v33  ;;  %v219_v53 = vld [vmem:[%s10788_s0 + $0x660] sm:$0xff]  ;;  %v212_v33 = vld [vmem:[%s10788_s0 + $0x628] sm:$0xff] }
 0x28a   :  { %v4867_v9 = vadd.f32 %v4866_v45, %v8961_v51  ;;  %v5155_v27 = vpop.f32.mrf.mxu1  ;;  %5668 = vmatmul.mubr.bf16.gmra.mxu1 %v6973_v37  ;;  %5386 = vmatprep.mubr.bf16.mxu0 %v6988_v15  ;;  %v196_v51 = vld [vmem:[%s10788_s0 + $0x5a8] sm:$0xff]  ;;  %v6989_v37 = vcombine.low %v180_v8, %v188_v44  ;;  %v7004_v15 = vcombine.high %v195_v19, %v203_v59 }
 0x28b   :  { %v4868_v42 = vpop.f32.mrf.mxu0  ;;  %5675 = vmatprep.mubr.bf16.mxu1 %v6990_v52  ;;  %v7006_v52 = vcombine.high %v196_v51, %v204_v13  ;;  %v220_v44 = vld [vmem:[%s10788_s0 + $0x668] sm:$0xff] }
 0x28c   :  { %v9694_v50 = vadd.f32 %v5155_v27, %v4867_v9  ;;  %v5157_v22 = vpop.f32.mrf.mxu1 }
 0x28d   :  { %v4869_v54 = vpop.f32.mrf.mxu0 }
 0x28e   :  { %v4870_v17 = vadd.f32 %v4869_v54, %v8970_v12  ;;  %v5158_v46 = vpop.f32.mrf.mxu1  ;;  %v211_v12 = vld [vmem:[%s10788_s0 + $0x620] sm:$0xff]  ;;  %v7901_v54 = vld [vmem:[%s10787_s1 + $0x350] sm:$0xff]  }
 0x28f   :  { %v4871_v61 = vpop.f32.mrf.mxu0  ;;  %5879 = vmatpush2.bf16.msra.mxu0 %v7901_v54 }
 0x290   :  { %v9703_v11 = vadd.f32 %v5158_v46, %v4870_v17  ;;  %v5160_v45 = vpop.f32.mrf.mxu1  ;;  %v7003_v46 = vcombine.low %v195_v19, %v203_v59  ;;  %v7005_v61 = vcombine.low %v196_v51, %v204_v13  ;;  %5880 = vmatprep.subr.bf16.mxu0 %v10798_v57  ;;  %v227_v51 = vld [vmem:[%s10788_s0 + $0x6a0] sm:$0xff] }
 0x291   :  { %v4874_v9 = vpop.f32.mrf.mxu0  ;;  %5387 = vmatmul.mubr.bf16.gmra.mxu0 %v6987_v49  ;;  %v7902_v49 = vld [vmem:[%s10787_s1 + $0x3d0] sm:$0xff]   ;;  %v235_v13 = vld [vmem:[%s10788_s0 + $0x6e0] sm:$0xff] }
 0x292   :  { %v4875_v27 = vadd.f32 %v4874_v9, %v8987_v43  ;;  %v5163_v42 = vpop.f32.mrf.mxu1  ;;  %5676 = vmatmul.mubr.bf16.gmra.mxu1 %v6989_v37  ;;  %5394 = vmatprep.mubr.bf16.mxu0 %v7004_v15  ;;  %v7022_v9 = vcombine.high %v212_v33, %v220_v44 }
 0x293   :  { %v4876_v22 = vpop.f32.mrf.mxu0  ;;  %5683 = vmatprep.mubr.bf16.mxu1 %v7006_v52  ;;  %v7020_v52 = vcombine.high %v211_v12, %v219_v53  ;;  %6168 = vmatpush2.bf16.msra.mxu1 %v7902_v49  ;;  %v236_v49 = vld [vmem:[%s10788_s0 + $0x6e8] sm:$0xff] }
 0x294   :  { %v9715_v8 = vadd.f32 %v5163_v42, %v4875_v27  ;;  %v5165_v43 = vpop.f32.mrf.mxu1  ;;  %6169 = vmatprep.subr.bf16.mxu1 %v10798_v57 }
 0x295   :  { %v4877_v17 = vpop.f32.mrf.mxu0 }
 0x296   :  { %v4878_v37 = vadd.f32 %v4877_v17, %v9001_v7  ;;  %v5166_v15 = vpop.f32.mrf.mxu1 }
 0x297   :  { %v4879_v45 = vpop.f32.mrf.mxu0 }
 0x298   :  { %v9729_v27 = vadd.f32 %v5166_v15, %v4878_v37  ;;  %v5168_v42 = vpop.f32.mrf.mxu1 }
 0x299   :  { %v4882_v22 = vpop.f32.mrf.mxu0  ;;  %5395 = vmatmul.mubr.bf16.gmra.mxu0 %v7003_v46  ;;  %v7019_v46 = vcombine.low %v211_v12, %v219_v53  ;;  %v251_v12 = vld [vmem:[%s10788_s0 + $0x760] sm:$0xff]  ;;  %v244_v53 = vld [vmem:[%s10788_s0 + $0x728] sm:$0xff] }
 0x29a   :  { %v4883_v19 = vadd.f32 %v4882_v22, %v9010_v32  ;;  %v5171_v59 = vpop.f32.mrf.mxu1  ;;  %5684 = vmatmul.mubr.bf16.gmra.mxu1 %v7005_v61  ;;  %5402 = vmatprep.mubr.bf16.mxu0 %v7020_v52  ;;  %v228_v32 = vld [vmem:[%s10788_s0 + $0x6a8] sm:$0xff]  ;;  %v7021_v61 = vcombine.low %v212_v33, %v220_v44  ;;  %v7036_v52 = vcombine.high %v227_v51, %v235_v13 }
 0x29b   :  { %v4884_v7 = vpop.f32.mrf.mxu0  ;;  %5691 = vmatprep.mubr.bf16.mxu1 %v7022_v9  ;;  %v7038_v9 = vcombine.high %v228_v32, %v236_v49 }
 0x29c   :  { %v9738_v43 = vadd.f32 %v5171_v59, %v4883_v19  ;;  %v5173_v54 = vpop.f32.mrf.mxu1  ;;  %v10819_v59 = vld [vmem:[#allocation2_spill] sm:$0xff] }
 0x29d   :  { %v4885_v17 = vpop.f32.mrf.mxu0 }
 0x29e   :  { %10817 = vst [vmem:[#allocation25_spill] sm:$0xff] %v9738_v43  ;;  %v4886_v37 = vadd.f32 %v4885_v17, %v9019_v5  ;;  %v5174_v15 = vpop.f32.mrf.mxu1  ;;  %v243_v5 = vld [vmem:[%s10788_s0 + $0x720] sm:$0xff]  ;;  %v7903_v17 = vld [vmem:[%s10787_s1 + $0x348] sm:$0xff]  }
 0x29f   :  { %v4887_v45 = vpop.f32.mrf.mxu0  ;;  %5881 = vmatpush2.bf16.msra.mxu0 %v7903_v17 }
 0x2a0   :  { %v9747_v42 = vadd.f32 %v5174_v15, %v4886_v37  ;;  %v5176_v22 = vpop.f32.mrf.mxu1  ;;  %v7035_v15 = vcombine.low %v227_v51, %v235_v13  ;;  %5882 = vmatprep.subr.bf16.mxu0 %v10798_v57 }
 0x2a1   :  { %v4890_v19 = vpop.f32.mrf.mxu0  ;;  %5403 = vmatmul.mubr.bf16.gmra.mxu0 %v7019_v46  ;;  %v7904_v46 = vld [vmem:[%s10787_s1 + $0x3c8] sm:$0xff]   ;;  %v7052_v22 = vcombine.high %v243_v5, %v251_v12 }
 0x2a2   :  { %10818 = vst [vmem:[#allocation26_spill] sm:$0xff] %v9747_v42  ;;  %v4891_v7 = vadd.f32 %v4890_v19, %v10819_v59  ;;  %v5179_v54 = vpop.f32.mrf.mxu1  ;;  %5692 = vmatmul.mubr.bf16.gmra.mxu1 %v7021_v61  ;;  %5410 = vmatprep.mubr.bf16.mxu0 %v7036_v52  ;;  %v10821_v61 = vld [vmem:[#allocation3_spill] sm:$0xff] }
 0x2a3   :  { %v4892_v43 = vpop.f32.mrf.mxu0  ;;  %5699 = vmatprep.mubr.bf16.mxu1 %v7038_v9  ;;  %v7037_v9 = vcombine.low %v228_v32, %v236_v49  ;;  %6170 = vmatpush2.bf16.msra.mxu1 %v7904_v46  ;;  %v259_v49 = vld [vmem:[%s10788_s0 + $0x7a0] sm:$0xff] }
 0x2a4   :  { %v9759_v33 = vadd.f32 %v5179_v54, %v4891_v7  ;;  %v5181_v44 = vpop.f32.mrf.mxu1  ;;  %v252_v43 = vld [vmem:[%s10788_s0 + $0x768] sm:$0xff]  ;;  %6171 = vmatprep.subr.bf16.mxu1 %v10798_v57  ;;  %v267_v57 = vld [vmem:[%s10788_s0 + $0x7e0] sm:$0xff] }
 0x2a5   :  { %v4893_v37 = vpop.f32.mrf.mxu0  ;;  %v7054_v59 = vcombine.high %v244_v53, %v252_v43 }
 0x2a6   :  { %10820 = vst [vmem:[#allocation2_spill] sm:$0xff] %v9759_v33  ;;  %v4894_v52 = vadd.f32 %v4893_v37, %v10821_v61  ;;  %v5182_v45 = vpop.f32.mrf.mxu1  ;;  %v10823_v33 = vld [vmem:[#allocation4_spill] sm:$0xff]  ;;  %v268_v37 = vld [vmem:[%s10788_s0 + $0x7e8] sm:$0xff]  ;;  %v7051_v61 = vcombine.low %v243_v5, %v251_v12  ;;  %v275_v5 = vld [vmem:[%s10788_s0 + $0x820] sm:$0xff] }
 0x2a7   :  { %v4895_v19 = vpop.f32.mrf.mxu0  ;;  %v283_v12 = vld [vmem:[%s10788_s0 + $0x860] sm:$0xff] }
 0x2a8   :  { %v9773_v7 = vadd.f32 %v5182_v45, %v4894_v52  ;;  %v5184_v54 = vpop.f32.mrf.mxu1  ;;  %v10825_v52 = vld [vmem:[#allocation5_spill] sm:$0xff]  ;;  %v7068_v19 = vcombine.high %v259_v49, %v267_v57 }
 0x2a9   :  { %v4898_v44 = vpop.f32.mrf.mxu0  ;;  %5411 = vmatmul.mubr.bf16.gmra.mxu0 %v7035_v15 }
 0x2aa   :  { %10822 = vst [vmem:[#allocation3_spill] sm:$0xff] %v9773_v7  ;;  %v4899_v51 = vadd.f32 %v4898_v44, %v10823_v33  ;;  %v5187_v13 = vpop.f32.mrf.mxu1  ;;  %5700 = vmatmul.mubr.bf16.gmra.mxu1 %v7037_v9  ;;  %5418 = vmatprep.mubr.bf16.mxu0 %v7052_v22  ;;  %v260_v33 = vld [vmem:[%s10788_s0 + $0x7a8] sm:$0xff]  ;;  %v7053_v22 = vcombine.low %v244_v53, %v252_v43 }
 0x2ab   :  { %v4900_v32 = vpop.f32.mrf.mxu0  ;;  %5707 = vmatprep.mubr.bf16.mxu1 %v7054_v59  ;;  %v7070_v54 = vcombine.high %v260_v33, %v268_v37  ;;  %v276_v53 = vld [vmem:[%s10788_s0 + $0x828] sm:$0xff] }
 0x2ac   :  { %v9782_v17 = vadd.f32 %v5187_v13, %v4899_v51  ;;  %v5189_v46 = vpop.f32.mrf.mxu1  ;;  %v10827_v32 = vld [vmem:[#allocation6_spill] sm:$0xff] }
 0x2ad   :  { %v4901_v15 = vpop.f32.mrf.mxu0 }
 0x2ae   :  { %10824 = vst [vmem:[#allocation4_spill] sm:$0xff] %v9782_v17  ;;  %v4902_v45 = vadd.f32 %v4901_v15, %v10825_v52  ;;  %v5190_v9 = vpop.f32.mrf.mxu1  ;;  %v7906_v52 = vld [vmem:[%s10787_s1 + $0x3c0] sm:$0xff]  }
 0x2af   :  { %v4903_v59 = vpop.f32.mrf.mxu0  ;;  %6172 = vmatpush2.bf16.msra.mxu1 %v7906_v52  ;;  %v300_v52 = vld [vmem:[%s10788_s0 + $0x8e8] sm:$0xff] }
 0x2b0   :  { %v9791_v44 = vadd.f32 %v5190_v9, %v4902_v45  ;;  %v5192_v51 = vpop.f32.mrf.mxu1  ;;  %v7067_v9 = vcombine.low %v259_v49, %v267_v57  ;;  %v291_v57 = vld [vmem:[%s10788_s0 + $0x8a0] sm:$0xff] }
 0x2b1   :  { %v4906_v13 = vpop.f32.mrf.mxu0  ;;  %5419 = vmatmul.mubr.bf16.gmra.mxu0 %v7051_v61  ;;  %v7905_v61 = vld [vmem:[%s10787_s1 + $0x340] sm:$0xff]  }
 0x2b2   :  { %10826 = vst [vmem:[#allocation5_spill] sm:$0xff] %v9791_v44  ;;  %v4907_v46 = vadd.f32 %v4906_v13, %v10827_v32  ;;  %v5195_v17 = vpop.f32.mrf.mxu1  ;;  %5708 = vmatmul.mubr.bf16.gmra.mxu1 %v7053_v22  ;;  %5426 = vmatprep.mubr.bf16.mxu0 %v7068_v19  ;;  %v10829_v22 = vld [vmem:[#allocation7_spill] sm:$0xff] }
 0x2b3   :  { %v4908_v7 = vpop.f32.mrf.mxu0  ;;  %5715 = vmatprep.mubr.bf16.mxu1 %v7070_v54  ;;  %v7084_v54 = vcombine.high %v275_v5, %v283_v12  ;;  %5883 = vmatpush2.bf16.msra.mxu0 %v7905_v61 }
 0x2b4   :  { %v9803_v43 = vadd.f32 %v5195_v17, %v4907_v46  ;;  %v5197_v15 = vpop.f32.mrf.mxu1  ;;  %v284_v7 = vld [vmem:[%s10788_s0 + $0x868] sm:$0xff]  ;;  %v7069_v17 = vcombine.low %v260_v33, %v268_v37  ;;  %v299_v33 = vld [vmem:[%s10788_s0 + $0x8e0] sm:$0xff] }
 0x2b5   :  { %v4909_v45 = vpop.f32.mrf.mxu0  ;;  %v7086_v13 = vcombine.high %v276_v53, %v284_v7 }
 0x2b6   :  { %10828 = vst [vmem:[#allocation6_spill] sm:$0xff] %v9803_v43  ;;  %v4910_v19 = vadd.f32 %v4909_v45, %v10829_v22  ;;  %v5198_v59 = vpop.f32.mrf.mxu1  ;;  %v10830_v43 = vld [vmem:[#allocation8_spill] sm:$0xff]  ;;  %v10832_v22 = vld [vmem:[#allocation9_spill] sm:$0xff] }
 0x2b7   :  { %v4911_v51 = vpop.f32.mrf.mxu0 }
 0x2b8   :  { %v9815_v32 = vadd.f32 %v5198_v59, %v4910_v19  ;;  %v5200_v46 = vpop.f32.mrf.mxu1 }
 0x2b9   :  { %v4914_v15 = vpop.f32.mrf.mxu0  ;;  %5427 = vmatmul.mubr.bf16.gmra.mxu0 %v7067_v9  ;;  %v7083_v9 = vcombine.low %v275_v5, %v283_v12  ;;  %v307_v5 = vld [vmem:[%s10788_s0 + $0x920] sm:$0xff] }
 0x2ba   :  { %v4915_v44 = vadd.f32 %v4914_v15, %v10830_v43  ;;  %v5203_v42 = vpop.f32.mrf.mxu1  ;;  %5716 = vmatmul.mubr.bf16.gmra.mxu1 %v7069_v17  ;;  %5434 = vmatprep.mubr.bf16.mxu0 %v7084_v54  ;;  %v292_v43 = vld [vmem:[%s10788_s0 + $0x8a8] sm:$0xff]  ;;  %v7085_v17 = vcombine.low %v276_v53, %v284_v7  ;;  %v7100_v54 = vcombine.high %v291_v57, %v299_v33  ;;  %v10834_v15 = vld [vmem:[#allocation10_spill] sm:$0xff] }
 0x2bb   :  { %v4916_v49 = vpop.f32.mrf.mxu0  ;;  %5723 = vmatprep.mubr.bf16.mxu1 %v7086_v13  ;;  %v7102_v13 = vcombine.high %v292_v43, %v300_v52  ;;  %v315_v12 = vld [vmem:[%s10788_s0 + $0x960] sm:$0xff] }
 0x2bc   :  { %v9824_v37 = vadd.f32 %v5203_v42, %v4915_v44  ;;  %v5205_v61 = vpop.f32.mrf.mxu1 }
 0x2bd   :  { %v4917_v45 = vpop.f32.mrf.mxu0 }
 0x2be   :  { %10831 = vst [vmem:[#allocation7_spill] sm:$0xff] %v9824_v37  ;;  %v4918_v19 = vadd.f32 %v4917_v45, %v10832_v22  ;;  %v5206_v59 = vpop.f32.mrf.mxu1  ;;  %v308_v45 = vld [vmem:[%s10788_s0 + $0x928] sm:$0xff]  ;;  %v7099_v22 = vcombine.low %v291_v57, %v299_v33  ;;  %v323_v57 = vld [vmem:[%s10788_s0 + $0x9a0] sm:$0xff] }
 0x2bf   :  { %v4919_v51 = vpop.f32.mrf.mxu0  ;;  %v331_v33 = vld [vmem:[%s10788_s0 + $0x9e0] sm:$0xff] }
 0x2c0   :  { %v9833_v42 = vadd.f32 %v5206_v59, %v4918_v19  ;;  %v5208_v44 = vpop.f32.mrf.mxu1  ;;  %v10836_v19 = vld [vmem:[#allocation11_spill] sm:$0xff]  ;;  %v7116_v51 = vcombine.high %v307_v5, %v315_v12 }
 0x2c1   :  { %v4922_v46 = vpop.f32.mrf.mxu0  ;;  %5435 = vmatmul.mubr.bf16.gmra.mxu0 %v7083_v9 }
 0x2c2   :  { %10833 = vst [vmem:[#allocation8_spill] sm:$0xff] %v9833_v42  ;;  %v4923_v49 = vadd.f32 %v4922_v46, %v10834_v15  ;;  %v5211_v61 = vpop.f32.mrf.mxu1  ;;  %5724 = vmatmul.mubr.bf16.gmra.mxu1 %v7085_v17  ;;  %5442 = vmatprep.mubr.bf16.mxu0 %v7100_v54  ;;  %v7101_v54 = vcombine.low %v292_v43, %v300_v52 }
 0x2c3   :  { %v4924_v37 = vpop.f32.mrf.mxu0  ;;  %5731 = vmatprep.mubr.bf16.mxu1 %v7102_v13 }
 0x2c4   :  { %v9842_v53 = vadd.f32 %v5211_v61, %v4923_v49  ;;  %v5213_v7 = vpop.f32.mrf.mxu1  ;;  %v316_v37 = vld [vmem:[%s10788_s0 + $0x968] sm:$0xff]  ;;  %v10838_v61 = vld [vmem:[#allocation12_spill] sm:$0xff] }
 0x2c5   :  { %v4925_v9 = vpop.f32.mrf.mxu0  ;;  %v7118_v44 = vcombine.high %v308_v45, %v316_v37 }
 0x2c6   :  { %10835 = vst [vmem:[#allocation9_spill] sm:$0xff] %v9842_v53  ;;  %v4926_v59 = vadd.f32 %v4925_v9, %v10836_v19  ;;  %v5214_v17 = vpop.f32.mrf.mxu1  ;;  %v324_v9 = vld [vmem:[%s10788_s0 + $0x9a8] sm:$0xff]  ;;  %v7115_v19 = vcombine.low %v307_v5, %v315_v12  ;;  %v339_v5 = vld [vmem:[%s10788_s0 + $0xa20] sm:$0xff] }
 0x2c7   :  { %v4927_v13 = vpop.f32.mrf.mxu0  ;;  %v347_v12 = vld [vmem:[%s10788_s0 + $0xa60] sm:$0xff] }
 0x2c8   :  { %v9851_v46 = vadd.f32 %v5214_v17, %v4926_v59  ;;  %v5216_v15 = vpop.f32.mrf.mxu1  ;;  %v10840_v59 = vld [vmem:[#allocation13_spill] sm:$0xff]  ;;  %v7132_v13 = vcombine.high %v323_v57, %v331_v33 }
 0x2c9   :  { %v4930_v49 = vpop.f32.mrf.mxu0  ;;  %5443 = vmatmul.mubr.bf16.gmra.mxu0 %v7099_v22 }
 0x2ca   :  { %10837 = vst [vmem:[#allocation10_spill] sm:$0xff] %v9851_v46  ;;  %v4931_v7 = vadd.f32 %v4930_v49, %v10838_v61  ;;  %v5219_v53 = vpop.f32.mrf.mxu1  ;;  %5732 = vmatmul.mubr.bf16.gmra.mxu1 %v7101_v54  ;;  %5450 = vmatprep.mubr.bf16.mxu0 %v7116_v51  ;;  %v7117_v51 = vcombine.low %v308_v45, %v316_v37 }
 0x2cb   :  { %v4932_v42 = vpop.f32.mrf.mxu0  ;;  %5739 = vmatprep.mubr.bf16.mxu1 %v7118_v44 }
 0x2cc   :  { %v9860_v43 = vadd.f32 %v5219_v53, %v4931_v7  ;;  %v5221_v52 = vpop.f32.mrf.mxu1  ;;  %v332_v42 = vld [vmem:[%s10788_s0 + $0x9e8] sm:$0xff]  ;;  %v10842_v7 = vld [vmem:[#allocation14_spill] sm:$0xff] }
 0x2cd   :  { %v4933_v22 = vpop.f32.mrf.mxu0  ;;  %v7134_v15 = vcombine.high %v324_v9, %v332_v42 }
 0x2ce   :  { %10839 = vst [vmem:[#allocation11_spill] sm:$0xff] %v9860_v43  ;;  %v4934_v17 = vadd.f32 %v4933_v22, %v10840_v59  ;;  %v5222_v54 = vpop.f32.mrf.mxu1  ;;  %v340_v22 = vld [vmem:[%s10788_s0 + $0xa28] sm:$0xff]  ;;  %v7131_v59 = vcombine.low %v323_v57, %v331_v33  ;;  %v355_v57 = vld [vmem:[%s10788_s0 + $0xaa0] sm:$0xff] }
 0x2cf   :  { %v4935_v44 = vpop.f32.mrf.mxu0  ;;  %v363_v33 = vld [vmem:[%s10788_s0 + $0xae0] sm:$0xff] }
 0x2d0   :  { %v9869_v53 = vadd.f32 %v5222_v54, %v4934_v17  ;;  %v5224_v49 = vpop.f32.mrf.mxu1  ;;  %v10844_v17 = vld [vmem:[#allocation15_spill] sm:$0xff]  ;;  %v7148_v44 = vcombine.high %v339_v5, %v347_v12 }
 0x2d1   :  { %v4938_v61 = vpop.f32.mrf.mxu0  ;;  %5451 = vmatmul.mubr.bf16.gmra.mxu0 %v7115_v19 }
 0x2d2   :  { %10841 = vst [vmem:[#allocation12_spill] sm:$0xff] %v9869_v53  ;;  %v4939_v52 = vadd.f32 %v4938_v61, %v10842_v7  ;;  %v5227_v43 = vpop.f32.mrf.mxu1  ;;  %5740 = vmatmul.mubr.bf16.gmra.mxu1 %v7117_v51  ;;  %5458 = vmatprep.mubr.bf16.mxu0 %v7132_v13  ;;  %v7133_v13 = vcombine.low %v324_v9, %v332_v42 }
 0x2d3   :  { %v4940_v46 = vpop.f32.mrf.mxu0  ;;  %5747 = vmatprep.mubr.bf16.mxu1 %v7134_v15 }
 0x2d4   :  { %v9878_v45 = vadd.f32 %v5227_v43, %v4939_v52  ;;  %v5229_v37 = vpop.f32.mrf.mxu1  ;;  %v348_v46 = vld [vmem:[%s10788_s0 + $0xa68] sm:$0xff]  ;;  %v10846_v52 = vld [vmem:[#allocation16_spill] sm:$0xff] }
 0x2d5   :  { %v4941_v19 = vpop.f32.mrf.mxu0  ;;  %v7150_v49 = vcombine.high %v340_v22, %v348_v46 }
 0x2d6   :  { %10843 = vst [vmem:[#allocation13_spill] sm:$0xff] %v9878_v45  ;;  %v4942_v54 = vadd.f32 %v4941_v19, %v10844_v17  ;;  %v5230_v51 = vpop.f32.mrf.mxu1  ;;  %v356_v19 = vld [vmem:[%s10788_s0 + $0xaa8] sm:$0xff]  ;;  %v7147_v17 = vcombine.low %v339_v5, %v347_v12  ;;  %v371_v5 = vld [vmem:[%s10788_s0 + $0xb20] sm:$0xff] }
 0x2d7   :  { %v4943_v15 = vpop.f32.mrf.mxu0  ;;  %v379_v12 = vld [vmem:[%s10788_s0 + $0xb60] sm:$0xff] }
 0x2d8   :  { %v9887_v43 = vadd.f32 %v5230_v51, %v4942_v54  ;;  %v5232_v61 = vpop.f32.mrf.mxu1  ;;  %v10848_v54 = vld [vmem:[#allocation17_spill] sm:$0xff]  ;;  %v7164_v15 = vcombine.high %v355_v57, %v363_v33 }
 0x2d9   :  { %v4946_v7 = vpop.f32.mrf.mxu0  ;;  %5459 = vmatmul.mubr.bf16.gmra.mxu0 %v7131_v59 }
 0x2da   :  { %10845 = vst [vmem:[#allocation14_spill] sm:$0xff] %v9887_v43  ;;  %v4947_v37 = vadd.f32 %v4946_v7, %v10846_v52  ;;  %v5235_v45 = vpop.f32.mrf.mxu1  ;;  %5748 = vmatmul.mubr.bf16.gmra.mxu1 %v7133_v13  ;;  %5466 = vmatprep.mubr.bf16.mxu0 %v7148_v44  ;;  %v7149_v44 = vcombine.low %v340_v22, %v348_v46 }
 0x2db   :  { %v4948_v53 = vpop.f32.mrf.mxu0  ;;  %5755 = vmatprep.mubr.bf16.mxu1 %v7150_v49 }
 0x2dc   :  { %v9896_v9 = vadd.f32 %v5235_v45, %v4947_v37  ;;  %v5237_v42 = vpop.f32.mrf.mxu1  ;;  %v364_v53 = vld [vmem:[%s10788_s0 + $0xae8] sm:$0xff]  ;;  %v10850_v37 = vld [vmem:[#allocation18_spill] sm:$0xff] }
 0x2dd   :  { %v4949_v59 = vpop.f32.mrf.mxu0  ;;  %v7166_v61 = vcombine.high %v356_v19, %v364_v53 }
 0x2de   :  { %10847 = vst [vmem:[#allocation15_spill] sm:$0xff] %v9896_v9  ;;  %v4950_v51 = vadd.f32 %v4949_v59, %v10848_v54  ;;  %v5238_v13 = vpop.f32.mrf.mxu1  ;;  %v372_v59 = vld [vmem:[%s10788_s0 + $0xb28] sm:$0xff]  ;;  %v7163_v54 = vcombine.low %v355_v57, %v363_v33  ;;  %v387_v57 = vld [vmem:[%s10788_s0 + $0xba0] sm:$0xff] }
 0x2df   :  { %v4951_v49 = vpop.f32.mrf.mxu0  ;;  %v395_v33 = vld [vmem:[%s10788_s0 + $0xbe0] sm:$0xff] }
 0x2e0   :  { %v9905_v45 = vadd.f32 %v5238_v13, %v4950_v51  ;;  %v5240_v7 = vpop.f32.mrf.mxu1  ;;  %v10852_v51 = vld [vmem:[#allocation19_spill] sm:$0xff]  ;;  %v7180_v49 = vcombine.high %v371_v5, %v379_v12 }
 0x2e1   :  { %v4954_v52 = vpop.f32.mrf.mxu0  ;;  %5467 = vmatmul.mubr.bf16.gmra.mxu0 %v7147_v17 }
 0x2e2   :  { %10849 = vst [vmem:[#allocation16_spill] sm:$0xff] %v9905_v45  ;;  %v4955_v42 = vadd.f32 %v4954_v52, %v10850_v37  ;;  %v5243_v9 = vpop.f32.mrf.mxu1  ;;  %5756 = vmatmul.mubr.bf16.gmra.mxu1 %v7149_v44  ;;  %5474 = vmatprep.mubr.bf16.mxu0 %v7164_v15  ;;  %v7165_v15 = vcombine.low %v356_v19, %v364_v53 }
 0x2e3   :  { %v4956_v43 = vpop.f32.mrf.mxu0  ;;  %5763 = vmatprep.mubr.bf16.mxu1 %v7166_v61 }
 0x2e4   :  { %v9914_v22 = vadd.f32 %v5243_v9, %v4955_v42  ;;  %v5245_v46 = vpop.f32.mrf.mxu1  ;;  %v380_v43 = vld [vmem:[%s10788_s0 + $0xb68] sm:$0xff]  ;;  %v10854_v42 = vld [vmem:[#allocation20_spill] sm:$0xff] }
 0x2e5   :  { %v4957_v17 = vpop.f32.mrf.mxu0  ;;  %v7182_v7 = vcombine.high %v372_v59, %v380_v43 }
 0x2e6   :  { %10851 = vst [vmem:[#allocation17_spill] sm:$0xff] %v9914_v22  ;;  %v4958_v13 = vadd.f32 %v4957_v17, %v10852_v51  ;;  %v5246_v44 = vpop.f32.mrf.mxu1  ;;  %v388_v17 = vld [vmem:[%s10788_s0 + $0xba8] sm:$0xff]  ;;  %v7179_v51 = vcombine.low %v371_v5, %v379_v12  ;;  %v403_v5 = vld [vmem:[%s10788_s0 + $0xc20] sm:$0xff] }
 0x2e7   :  { %v4959_v61 = vpop.f32.mrf.mxu0  ;;  %v411_v12 = vld [vmem:[%s10788_s0 + $0xc60] sm:$0xff] }
 0x2e8   :  { %v9923_v9 = vadd.f32 %v5246_v44, %v4958_v13  ;;  %v5248_v52 = vpop.f32.mrf.mxu1  ;;  %v10856_v13 = vld [vmem:[#allocation21_spill] sm:$0xff]  ;;  %v7196_v61 = vcombine.high %v387_v57, %v395_v33 }
 0x2e9   :  { %v4962_v37 = vpop.f32.mrf.mxu0  ;;  %5475 = vmatmul.mubr.bf16.gmra.mxu0 %v7163_v54 }
 0x2ea   :  { %10853 = vst [vmem:[#allocation18_spill] sm:$0xff] %v9923_v9  ;;  %v4963_v46 = vadd.f32 %v4962_v37, %v10854_v42  ;;  %v5251_v22 = vpop.f32.mrf.mxu1  ;;  %5764 = vmatmul.mubr.bf16.gmra.mxu1 %v7165_v15  ;;  %5482 = vmatprep.mubr.bf16.mxu0 %v7180_v49  ;;  %v7181_v49 = vcombine.low %v372_v59, %v380_v43 }
 0x2eb   :  { %v4964_v45 = vpop.f32.mrf.mxu0  ;;  %5771 = vmatprep.mubr.bf16.mxu1 %v7182_v7 }
 0x2ec   :  { %v9932_v19 = vadd.f32 %v5251_v22, %v4963_v46  ;;  %v5253_v53 = vpop.f32.mrf.mxu1  ;;  %v396_v45 = vld [vmem:[%s10788_s0 + $0xbe8] sm:$0xff]  ;;  %v10858_v46 = vld [vmem:[#allocation22_spill] sm:$0xff] }
 0x2ed   :  { %v4965_v54 = vpop.f32.mrf.mxu0  ;;  %v7198_v52 = vcombine.high %v388_v17, %v396_v45 }
 0x2ee   :  { %10855 = vst [vmem:[#allocation19_spill] sm:$0xff] %v9932_v19  ;;  %v4966_v44 = vadd.f32 %v4965_v54, %v10856_v13  ;;  %v5254_v15 = vpop.f32.mrf.mxu1  ;;  %v404_v54 = vld [vmem:[%s10788_s0 + $0xc28] sm:$0xff]  ;;  %v7195_v13 = vcombine.low %v387_v57, %v395_v33  ;;  %v419_v57 = vld [vmem:[%s10788_s0 + $0xca0] sm:$0xff] }
 0x2ef   :  { %v4967_v7 = vpop.f32.mrf.mxu0  ;;  %v427_v33 = vld [vmem:[%s10788_s0 + $0xce0] sm:$0xff] }
 0x2f0   :  { %v9941_v22 = vadd.f32 %v5254_v15, %v4966_v44  ;;  %v5256_v37 = vpop.f32.mrf.mxu1  ;;  %v10860_v44 = vld [vmem:[#allocation23_spill] sm:$0xff]  ;;  %v7212_v7 = vcombine.high %v403_v5, %v411_v12 }
 0x2f1   :  { %v4970_v42 = vpop.f32.mrf.mxu0  ;;  %5483 = vmatmul.mubr.bf16.gmra.mxu0 %v7179_v51 }
 0x2f2   :  { %10857 = vst [vmem:[#allocation20_spill] sm:$0xff] %v9941_v22  ;;  %v4971_v53 = vadd.f32 %v4970_v42, %v10858_v46  ;;  %v5259_v19 = vpop.f32.mrf.mxu1  ;;  %5772 = vmatmul.mubr.bf16.gmra.mxu1 %v7181_v49  ;;  %5490 = vmatprep.mubr.bf16.mxu0 %v7196_v61  ;;  %v7197_v61 = vcombine.low %v388_v17, %v396_v45 }
 0x2f3   :  { %v4972_v9 = vpop.f32.mrf.mxu0  ;;  %5779 = vmatprep.mubr.bf16.mxu1 %v7198_v52 }
 0x2f4   :  { %v9950_v59 = vadd.f32 %v5259_v19, %v4971_v53  ;;  %v5261_v43 = vpop.f32.mrf.mxu1  ;;  %v412_v9 = vld [vmem:[%s10788_s0 + $0xc68] sm:$0xff]  ;;  %v10861_v53 = vld [vmem:[#allocation24_spill] sm:$0xff] }
 0x2f5   :  { %v4973_v51 = vpop.f32.mrf.mxu0  ;;  %v7214_v37 = vcombine.high %v404_v54, %v412_v9 }
 0x2f6   :  { %10859 = vst [vmem:[#allocation21_spill] sm:$0xff] %v9950_v59  ;;  %v4974_v15 = vadd.f32 %v4973_v51, %v10860_v44  ;;  %v5262_v49 = vpop.f32.mrf.mxu1  ;;  %v420_v51 = vld [vmem:[%s10788_s0 + $0xca8] sm:$0xff]  ;;  %v7211_v44 = vcombine.low %v403_v5, %v411_v12  ;;  %v443_v5 = vld [vmem:[%s10788_s0 + $0xd60] sm:$0xff] }
 0x2f7   :  { %v4975_v52 = vpop.f32.mrf.mxu0 }
 0x2f8   :  { %v9959_v19 = vadd.f32 %v5262_v49, %v4974_v15  ;;  %v5264_v42 = vpop.f32.mrf.mxu1 }
 0x2f9   :  { %v4978_v46 = vpop.f32.mrf.mxu0  ;;  %5491 = vmatmul.mubr.bf16.gmra.mxu0 %v7195_v13 }
 0x2fa   :  { %v4979_v43 = vadd.f32 %v4978_v46, %v10861_v53  ;;  %v5267_v59 = vpop.f32.mrf.mxu1  ;;  %5780 = vmatmul.mubr.bf16.gmra.mxu1 %v7197_v61  ;;  %5498 = vmatprep.mubr.bf16.mxu0 %v7212_v7  ;;  %v7213_v61 = vcombine.low %v404_v54, %v412_v9  ;;  %v7228_v7 = vcombine.high %v419_v57, %v427_v33  ;;  %v444_v9 = vld [vmem:[%s10788_s0 + $0xd68] sm:$0xff] }
 0x2fb   :  { %v4980_v22 = vpop.f32.mrf.mxu0  ;;  %5787 = vmatprep.mubr.bf16.mxu1 %v7214_v37 }
 0x2fc   :  { %v9968_v17 = vadd.f32 %v5267_v59, %v4979_v43  ;;  %v5269_v45 = vpop.f32.mrf.mxu1  ;;  %v428_v22 = vld [vmem:[%s10788_s0 + $0xce8] sm:$0xff] }
 0x2fd   :  { %v4981_v13 = vpop.f32.mrf.mxu0  ;;  %v7230_v37 = vcombine.high %v420_v51, %v428_v22 }
 0x2fe   :  { %v4982_v15 = vadd.f32 %v4981_v13, %v9251_v56  ;;  %v5270_v49 = vpop.f32.mrf.mxu1  ;;  %v435_v56 = vld [vmem:[%s10788_s0 + $0xd20] sm:$0xff] }
 0x2ff   :  { %v4983_v52 = vpop.f32.mrf.mxu0 }
 0x300   :  { %v9977_v59 = vadd.f32 %v5270_v49, %v4982_v15  ;;  %v5272_v42 = vpop.f32.mrf.mxu1 }
 0x301   :  { %v5308_v46 = vpop.f32.mrf.mxu0  ;;  %5499 = vmatmul.mubr.bf16.gmra.mxu0 %v7211_v44  ;;  %v7227_v44 = vcombine.low %v419_v57, %v427_v33  ;;  %v459_v57 = vld [vmem:[%s10788_s0 + $0xde0] sm:$0xff] }
 0x302   :  { %v5309_v53 = vadd.f32 %v5308_v46, %v9260_v39  ;;  %v5597_v43 = vpop.f32.mrf.mxu1  ;;  %5788 = vmatmul.mubr.bf16.gmra.mxu1 %v7213_v61  ;;  %5506 = vmatprep.mubr.bf16.mxu0 %v7228_v7  ;;  %v436_v39 = vld [vmem:[%s10788_s0 + $0xd28] sm:$0xff]  ;;  %v7229_v61 = vcombine.low %v420_v51, %v428_v22  ;;  %v7244_v7 = vcombine.high %v435_v56, %v443_v5 }
 0x303   :  { %v5310_v45 = vpop.f32.mrf.mxu0  ;;  %5795 = vmatprep.mubr.bf16.mxu1 %v7230_v37  ;;  %v7246_v37 = vcombine.high %v436_v39, %v444_v9  ;;  %v460_v22 = vld [vmem:[%s10788_s0 + $0xde8] sm:$0xff] }
 0x304   :  { %v9986_v12 = vadd.f32 %v5597_v43, %v5309_v53  ;;  %v5599_v54 = vpop.f32.mrf.mxu1 }
 0x305   :  { %v5311_v13 = vpop.f32.mrf.mxu0 }
 0x306   :  { %v5312_v15 = vadd.f32 %v5311_v13, %v9269_v31  ;;  %v5600_v49 = vpop.f32.mrf.mxu1  ;;  %v451_v31 = vld [vmem:[%s10788_s0 + $0xda0] sm:$0xff] }
 0x307   :  { %v5313_v52 = vpop.f32.mrf.mxu0 }
 0x308   :  { %v9995_v42 = vadd.f32 %v5600_v49, %v5312_v15  ;;  %v5602_v46 = vpop.f32.mrf.mxu1 }
 0x309   :  { %v5316_v53 = vpop.f32.mrf.mxu0  ;;  %5507 = vmatmul.mubr.bf16.gmra.mxu0 %v7227_v44  ;;  %v7243_v44 = vcombine.low %v435_v56, %v443_v5  ;;  %v475_v56 = vld [vmem:[%s10788_s0 + $0xe60] sm:$0xff] }
 0x30a   :  { %v5317_v43 = vadd.f32 %v5316_v53, %v9278_v16  ;;  %v5605_v45 = vpop.f32.mrf.mxu1  ;;  %5796 = vmatmul.mubr.bf16.gmra.mxu1 %v7229_v61  ;;  %5514 = vmatprep.mubr.bf16.mxu0 %v7244_v7  ;;  %v452_v16 = vld [vmem:[%s10788_s0 + $0xda8] sm:$0xff]  ;;  %v7245_v61 = vcombine.low %v436_v39, %v444_v9  ;;  %v7260_v7 = vcombine.high %v451_v31, %v459_v57 }
 0x30b   :  { %v5318_v54 = vpop.f32.mrf.mxu0  ;;  %5803 = vmatprep.mubr.bf16.mxu1 %v7246_v37  ;;  %v7262_v37 = vcombine.high %v452_v16, %v460_v22  ;;  %v476_v9 = vld [vmem:[%s10788_s0 + $0xe68] sm:$0xff] }
 0x30c   :  { %v10004_v33 = vadd.f32 %v5605_v45, %v5317_v43  ;;  %v5607_v51 = vpop.f32.mrf.mxu1 }
 0x30d   :  { %v5319_v13 = vpop.f32.mrf.mxu0 }
 0x30e   :  { %v5320_v15 = vadd.f32 %v5319_v13, %v9287_v14  ;;  %v5608_v49 = vpop.f32.mrf.mxu1  ;;  %v467_v14 = vld [vmem:[%s10788_s0 + $0xe20] sm:$0xff] }
 0x30f   :  { %v5321_v52 = vpop.f32.mrf.mxu0 }
 0x310   :  { %v10013_v46 = vadd.f32 %v5608_v49, %v5320_v15  ;;  %v5610_v53 = vpop.f32.mrf.mxu1 }
 0x311   :  { %v5324_v43 = vpop.f32.mrf.mxu0  ;;  %5515 = vmatmul.mubr.bf16.gmra.mxu0 %v7243_v44  ;;  %v7259_v44 = vcombine.low %v451_v31, %v459_v57  ;;  %v491_v31 = vld [vmem:[%s10788_s0 + $0xee0] sm:$0xff] }
 0x312   :  { %v5325_v45 = vadd.f32 %v5324_v43, %v9296_v36  ;;  %v5613_v54 = vpop.f32.mrf.mxu1  ;;  %5804 = vmatmul.mubr.bf16.gmra.mxu1 %v7245_v61  ;;  %5522 = vmatprep.mubr.bf16.mxu0 %v7260_v7  ;;  %v468_v36 = vld [vmem:[%s10788_s0 + $0xe28] sm:$0xff]  ;;  %v7261_v61 = vcombine.low %v452_v16, %v460_v22  ;;  %v7276_v7 = vcombine.high %v467_v14, %v475_v56 }
 0x313   :  { %v5326_v51 = vpop.f32.mrf.mxu0  ;;  %5811 = vmatprep.mubr.bf16.mxu1 %v7262_v37  ;;  %v7278_v37 = vcombine.high %v468_v36, %v476_v9  ;;  %v492_v22 = vld [vmem:[%s10788_s0 + $0xee8] sm:$0xff] }
 0x314   :  { %v10022_v5 = vadd.f32 %v5613_v54, %v5325_v45  ;;  %v5615_v39 = vpop.f32.mrf.mxu1 }
 0x315   :  { %v5327_v13 = vpop.f32.mrf.mxu0 }
 0x316   :  { %v5328_v15 = vadd.f32 %v5327_v13, %v9305_v1  ;;  %v5616_v49 = vpop.f32.mrf.mxu1  ;;  %v483_v1 = vld [vmem:[%s10788_s0 + $0xea0] sm:$0xff] }
 0x317   :  { %v5329_v52 = vpop.f32.mrf.mxu0 }
 0x318   :  { %v10031_v53 = vadd.f32 %v5616_v49, %v5328_v15  ;;  %v5618_v43 = vpop.f32.mrf.mxu1 }
 0x319   :  { %v5332_v45 = vpop.f32.mrf.mxu0  ;;  %5523 = vmatmul.mubr.bf16.gmra.mxu0 %v7259_v44  ;;  %v7275_v44 = vcombine.low %v467_v14, %v475_v56  ;;  %v507_v14 = vld [vmem:[%s10788_s0 + $0xf60] sm:$0xff] }
 0x31a   :  { %v5333_v54 = vadd.f32 %v5332_v45, %v9314_v4  ;;  %v5621_v51 = vpop.f32.mrf.mxu1  ;;  %5812 = vmatmul.mubr.bf16.gmra.mxu1 %v7261_v61  ;;  %5530 = vmatprep.mubr.bf16.mxu0 %v7276_v7  ;;  %v484_v4 = vld [vmem:[%s10788_s0 + $0xea8] sm:$0xff]  ;;  %v7277_v61 = vcombine.low %v468_v36, %v476_v9  ;;  %v7292_v7 = vcombine.high %v483_v1, %v491_v31 }
 0x31b   :  { %v5334_v39 = vpop.f32.mrf.mxu0  ;;  %5819 = vmatprep.mubr.bf16.mxu1 %v7278_v37  ;;  %v7294_v37 = vcombine.high %v484_v4, %v492_v22  ;;  %v508_v9 = vld [vmem:[%s10788_s0 + $0xf68] sm:$0xff] }
 0x31c   :  { %v10040_v57 = vadd.f32 %v5621_v51, %v5333_v54  ;;  %v5623_v16 = vpop.f32.mrf.mxu1 }
 0x31d   :  { %v5335_v13 = vpop.f32.mrf.mxu0 }
 0x31e   :  { %v5336_v15 = vadd.f32 %v5335_v13, %v9323_v2  ;;  %v5624_v49 = vpop.f32.mrf.mxu1  ;;  %v499_v2 = vld [vmem:[%s10788_s0 + $0xf20] sm:$0xff] }
 0x31f   :  { %v5337_v52 = vpop.f32.mrf.mxu0 }
 0x320   :  { %v10049_v43 = vadd.f32 %v5624_v49, %v5336_v15  ;;  %v5626_v45 = vpop.f32.mrf.mxu1 }
 0x321   :  { %v5340_v54 = vpop.f32.mrf.mxu0  ;;  %5531 = vmatmul.mubr.bf16.gmra.mxu0 %v7275_v44  ;;  %v7291_v44 = vcombine.low %v483_v1, %v491_v31  ;;  %v523_v1 = vld [vmem:[%s10788_s0 + $0xfe0] sm:$0xff] }
 0x322   :  { %v5341_v51 = vadd.f32 %v5340_v54, %v9332_v35  ;;  %v5629_v39 = vpop.f32.mrf.mxu1  ;;  %5820 = vmatmul.mubr.bf16.gmra.mxu1 %v7277_v61  ;;  %5538 = vmatprep.mubr.bf16.mxu0 %v7292_v7  ;;  %v500_v35 = vld [vmem:[%s10788_s0 + $0xf28] sm:$0xff]  ;;  %v7293_v61 = vcombine.low %v484_v4, %v492_v22  ;;  %v7308_v7 = vcombine.high %v499_v2, %v507_v14 }
 0x323   :  { %v5342_v16 = vpop.f32.mrf.mxu0  ;;  %5827 = vmatprep.mubr.bf16.mxu1 %v7294_v37  ;;  %v7310_v37 = vcombine.high %v500_v35, %v508_v9  ;;  %v524_v22 = vld [vmem:[%s10788_s0 + $0xfe8] sm:$0xff] }
 0x324   :  { %v10058_v56 = vadd.f32 %v5629_v39, %v5341_v51  ;;  %v5631_v36 = vpop.f32.mrf.mxu1 }
 0x325   :  { %v5343_v13 = vpop.f32.mrf.mxu0 }
 0x326   :  { %v5344_v15 = vadd.f32 %v5343_v13, %v9341_v28  ;;  %v5632_v49 = vpop.f32.mrf.mxu1  ;;  %v515_v28 = vld [vmem:[%s10788_s0 + $0xfa0] sm:$0xff] }
 0x327   :  { %v5345_v52 = vpop.f32.mrf.mxu0 }
 0x328   :  { %v10067_v45 = vadd.f32 %v5632_v49, %v5344_v15  ;;  %v5634_v54 = vpop.f32.mrf.mxu1 }
 0x329   :  { %v5348_v51 = vpop.f32.mrf.mxu0  ;;  %5539 = vmatmul.mubr.bf16.gmra.mxu0 %v7291_v44  ;;  %v7307_v44 = vcombine.low %v499_v2, %v507_v14  ;;  %v29_v2 = vld [vmem:[%s10788_s0 + $0x70] sm:$0xff] }
 0x32a   :  { %v5349_v39 = vadd.f32 %v5348_v51, %v9350_v38  ;;  %v5637_v16 = vpop.f32.mrf.mxu1  ;;  %5828 = vmatmul.mubr.bf16.gmra.mxu1 %v7293_v61  ;;  %5546 = vmatprep.mubr.bf16.mxu0 %v7308_v7  ;;  %v516_v38 = vld [vmem:[%s10788_s0 + $0xfa8] sm:$0xff]  ;;  %v7309_v61 = vcombine.low %v500_v35, %v508_v9  ;;  %v7324_v7 = vcombine.high %v515_v28, %v523_v1  ;;  %v30_v9 = vld [vmem:[%s10788_s0 + $0x78] sm:$0xff] }
 0x32b   :  { %v5350_v36 = vpop.f32.mrf.mxu0  ;;  %5835 = vmatprep.mubr.bf16.mxu1 %v7310_v37  ;;  %v7326_v37 = vcombine.high %v516_v38, %v524_v22 }
 0x32c   :  { %v10076_v31 = vadd.f32 %v5637_v16, %v5349_v39  ;;  %v5639_v4 = vpop.f32.mrf.mxu1 }
 0x32d   :  { %v5351_v13 = vpop.f32.mrf.mxu0 }
 0x32e   :  { %v5352_v15 = vadd.f32 %v5351_v13, %v9359_v41  ;;  %v5640_v49 = vpop.f32.mrf.mxu1  ;;  %v21_v41 = vld [vmem:[%s10788_s0 + $0x30] sm:$0xff] }
 0x32f   :  { %v5353_v52 = vpop.f32.mrf.mxu0 }
 0x330   :  { %v10085_v54 = vadd.f32 %v5640_v49, %v5352_v15  ;;  %v5642_v51 = vpop.f32.mrf.mxu1 }
 0x331   :  { %v5356_v39 = vpop.f32.mrf.mxu0  ;;  %5547 = vmatmul.mubr.bf16.gmra.mxu0 %v7307_v44  ;;  %v7323_v44 = vcombine.low %v515_v28, %v523_v1  ;;  %v45_v28 = vld [vmem:[%s10788_s0 + $0xf0] sm:$0xff] }
 0x332   :  { %v5357_v16 = vadd.f32 %v5356_v39, %v9368_v58  ;;  %v5645_v36 = vpop.f32.mrf.mxu1  ;;  %5836 = vmatmul.mubr.bf16.gmra.mxu1 %v7309_v61  ;;  %5554 = vmatprep.mubr.bf16.mxu0 %v7324_v7  ;;  %v22_v58 = vld [vmem:[%s10788_s0 + $0x38] sm:$0xff]  ;;  %v7325_v61 = vcombine.low %v516_v38, %v524_v22  ;;  %v6832_v7 = vcombine.high %v21_v41, %v29_v2 }
 0x333   :  { %v5358_v4 = vpop.f32.mrf.mxu0  ;;  %5843 = vmatprep.mubr.bf16.mxu1 %v7326_v37  ;;  %v6834_v37 = vcombine.high %v22_v58, %v30_v9  ;;  %v46_v22 = vld [vmem:[%s10788_s0 + $0xf8] sm:$0xff] }
 0x334   :  { %v10094_v14 = vadd.f32 %v5645_v36, %v5357_v16  ;;  %v5647_v35 = vpop.f32.mrf.mxu1 }
 0x335   :  { %v5359_v13 = vpop.f32.mrf.mxu0 }
 0x336   :  { %v5360_v15 = vadd.f32 %v5359_v13, %v9377_v63  ;;  %v5648_v49 = vpop.f32.mrf.mxu1  ;;  %v37_v63 = vld [vmem:[%s10788_s0 + $0xb0] sm:$0xff] }
 0x337   :  { %v5361_v52 = vpop.f32.mrf.mxu0 }
 0x338   :  { %v10103_v51 = vadd.f32 %v5648_v49, %v5360_v15  ;;  %v5650_v39 = vpop.f32.mrf.mxu1 }
 0x339   :  { %v5364_v16 = vpop.f32.mrf.mxu0  ;;  %5555 = vmatmul.mubr.bf16.gmra.mxu0 %v7323_v44  ;;  %v6831_v44 = vcombine.low %v21_v41, %v29_v2  ;;  %v61_v41 = vld [vmem:[%s10788_s0 + $0x170] sm:$0xff] }
 0x33a   :  { %v5365_v36 = vadd.f32 %v5364_v16, %v9380_v60  ;;  %v5653_v4 = vpop.f32.mrf.mxu1  ;;  %5844 = vmatmul.mubr.bf16.gmra.mxu1 %v7325_v61  ;;  %5884 = vmatprep.mubr.bf16.mxu0 %v6832_v7  ;;  %v38_v60 = vld [vmem:[%s10788_s0 + $0xb8] sm:$0xff]  ;;  %v6833_v61 = vcombine.low %v22_v58, %v30_v9  ;;  %v6848_v7 = vcombine.high %v37_v63, %v45_v28 }
 0x33b   :  { %v5366_v35 = vpop.f32.mrf.mxu0  ;;  %6173 = vmatprep.mubr.bf16.mxu1 %v6834_v37  ;;  %v6850_v37 = vcombine.high %v38_v60, %v46_v22  ;;  %v62_v9 = vld [vmem:[%s10788_s0 + $0x178] sm:$0xff] }
 0x33c   :  { %v10112_v1 = vadd.f32 %v5653_v4, %v5365_v36  ;;  %v5655_v38 = vpop.f32.mrf.mxu1 }
 0x33d   :  { %v5367_v13 = vpop.f32.mrf.mxu0 }
 0x33e   :  { %v5368_v15 = vadd.f32 %v5367_v13, %v9401_v23  ;;  %v5656_v49 = vpop.f32.mrf.mxu1  ;;  %v53_v23 = vld [vmem:[%s10788_s0 + $0x130] sm:$0xff] }
 0x33f   :  { %v5369_v52 = vpop.f32.mrf.mxu0 }
 0x340   :  { %v10121_v39 = vadd.f32 %v5656_v49, %v5368_v15  ;;  %v5658_v16 = vpop.f32.mrf.mxu1 }
 0x341   :  { %v5372_v36 = vpop.f32.mrf.mxu0  ;;  %5885 = vmatmul.mubr.bf16.vlgmr.msra.gmra.mxu0 %v6831_v44  ;;  %v6847_v44 = vcombine.low %v37_v63, %v45_v28  ;;  %v77_v63 = vld [vmem:[%s10788_s0 + $0x1f0] sm:$0xff] }
 0x342   :  { %v5373_v4 = vadd.f32 %v5372_v36, %v9416_v18  ;;  %v5661_v35 = vpop.f32.mrf.mxu1  ;;  %6174 = vmatmul.mubr.bf16.vlgmr.msra.gmra.mxu1 %v6833_v61  ;;  %5892 = vmatprep.mubr.bf16.mxu0 %v6848_v7  ;;  %v54_v18 = vld [vmem:[%s10788_s0 + $0x138] sm:$0xff]  ;;  %v6849_v61 = vcombine.low %v38_v60, %v46_v22  ;;  %v6864_v7 = vcombine.high %v53_v23, %v61_v41 }
 0x343   :  { %v5374_v38 = vpop.f32.mrf.mxu0  ;;  %6181 = vmatprep.mubr.bf16.mxu1 %v6850_v37  ;;  %v6866_v37 = vcombine.high %v54_v18, %v62_v9  ;;  %v78_v22 = vld [vmem:[%s10788_s0 + $0x1f8] sm:$0xff] }
 0x344   :  { %v10130_v2 = vadd.f32 %v5661_v35, %v5373_v4  ;;  %v5663_v58 = vpop.f32.mrf.mxu1 }
 0x345   :  { %v5375_v13 = vpop.f32.mrf.mxu0 }
 0x346   :  { %v5376_v15 = vadd.f32 %v5375_v13, %v9431_v24  ;;  %v5664_v49 = vpop.f32.mrf.mxu1  ;;  %v69_v24 = vld [vmem:[%s10788_s0 + $0x1b0] sm:$0xff] }
 0x347   :  { %v5377_v52 = vpop.f32.mrf.mxu0 }
 0x348   :  { %v10139_v16 = vadd.f32 %v5664_v49, %v5376_v15  ;;  %v5666_v36 = vpop.f32.mrf.mxu1 }
 0x349   :  { %v5380_v4 = vpop.f32.mrf.mxu0  ;;  %5893 = vmatmul.mubr.bf16.gmra.mxu0 %v6847_v44  ;;  %v6863_v44 = vcombine.low %v53_v23, %v61_v41  ;;  %v93_v23 = vld [vmem:[%s10788_s0 + $0x270] sm:$0xff] }
 0x34a   :  { %v5381_v35 = vadd.f32 %v5380_v4, %v9451_v0  ;;  %v5669_v38 = vpop.f32.mrf.mxu1  ;;  %6182 = vmatmul.mubr.bf16.gmra.mxu1 %v6849_v61  ;;  %5900 = vmatprep.mubr.bf16.mxu0 %v6864_v7  ;;  %v70_v0 = vld [vmem:[%s10788_s0 + $0x1b8] sm:$0xff]  ;;  %v6865_v61 = vcombine.low %v54_v18, %v62_v9  ;;  %v6880_v7 = vcombine.high %v69_v24, %v77_v63 }
 0x34b   :  { %v5382_v58 = vpop.f32.mrf.mxu0  ;;  %6189 = vmatprep.mubr.bf16.mxu1 %v6866_v37  ;;  %v6882_v37 = vcombine.high %v70_v0, %v78_v22  ;;  %v94_v9 = vld [vmem:[%s10788_s0 + $0x278] sm:$0xff] }
 0x34c   :  { %v10148_v28 = vadd.f32 %v5669_v38, %v5381_v35  ;;  %v5671_v60 = vpop.f32.mrf.mxu1 }
 0x34d   :  { %v5383_v13 = vpop.f32.mrf.mxu0 }
 0x34e   :  { %v5384_v15 = vadd.f32 %v5383_v13, %v9470_v55  ;;  %v5672_v49 = vpop.f32.mrf.mxu1  ;;  %v85_v55 = vld [vmem:[%s10788_s0 + $0x230] sm:$0xff] }
 0x34f   :  { %v5385_v52 = vpop.f32.mrf.mxu0 }
 0x350   :  { %v10157_v36 = vadd.f32 %v5672_v49, %v5384_v15  ;;  %v5674_v4 = vpop.f32.mrf.mxu1 }
 0x351   :  { %v5388_v35 = vpop.f32.mrf.mxu0  ;;  %5901 = vmatmul.mubr.bf16.gmra.mxu0 %v6863_v44  ;;  %v6879_v44 = vcombine.low %v69_v24, %v77_v63  ;;  %v109_v24 = vld [vmem:[%s10788_s0 + $0x2f0] sm:$0xff] }
 0x352   :  { %v5389_v38 = vadd.f32 %v5388_v35, %v9491_v20  ;;  %v5677_v58 = vpop.f32.mrf.mxu1  ;;  %6190 = vmatmul.mubr.bf16.gmra.mxu1 %v6865_v61  ;;  %5908 = vmatprep.mubr.bf16.mxu0 %v6880_v7  ;;  %v86_v20 = vld [vmem:[%s10788_s0 + $0x238] sm:$0xff]  ;;  %v6881_v61 = vcombine.low %v70_v0, %v78_v22  ;;  %v6896_v7 = vcombine.high %v85_v55, %v93_v23 }
 0x353   :  { %v5390_v60 = vpop.f32.mrf.mxu0  ;;  %6197 = vmatprep.mubr.bf16.mxu1 %v6882_v37  ;;  %v6898_v37 = vcombine.high %v86_v20, %v94_v9  ;;  %v110_v22 = vld [vmem:[%s10788_s0 + $0x2f8] sm:$0xff] }
 0x354   :  { %v10166_v41 = vadd.f32 %v5677_v58, %v5389_v38  ;;  %v5679_v18 = vpop.f32.mrf.mxu1 }
 0x355   :  { %v5391_v13 = vpop.f32.mrf.mxu0 }
 0x356   :  { %v5392_v15 = vadd.f32 %v5391_v13, %v9512_v21  ;;  %v5680_v49 = vpop.f32.mrf.mxu1  ;;  %v101_v21 = vld [vmem:[%s10788_s0 + $0x2b0] sm:$0xff] }
 0x357   :  { %v5393_v52 = vpop.f32.mrf.mxu0 }
 0x358   :  { %v10175_v4 = vadd.f32 %v5680_v49, %v5392_v15  ;;  %v5682_v35 = vpop.f32.mrf.mxu1 }
 0x359   :  { %v5396_v38 = vpop.f32.mrf.mxu0  ;;  %5909 = vmatmul.mubr.bf16.gmra.mxu0 %v6879_v44  ;;  %v6895_v44 = vcombine.low %v85_v55, %v93_v23  ;;  %v125_v55 = vld [vmem:[%s10788_s0 + $0x370] sm:$0xff] }
 0x35a   :  { %v5397_v58 = vadd.f32 %v5396_v38, %v9533_v3  ;;  %v5685_v60 = vpop.f32.mrf.mxu1  ;;  %6198 = vmatmul.mubr.bf16.gmra.mxu1 %v6881_v61  ;;  %5916 = vmatprep.mubr.bf16.mxu0 %v6896_v7  ;;  %v102_v3 = vld [vmem:[%s10788_s0 + $0x2b8] sm:$0xff]  ;;  %v6897_v61 = vcombine.low %v86_v20, %v94_v9  ;;  %v6912_v7 = vcombine.high %v101_v21, %v109_v24 }
 0x35b   :  { %v5398_v18 = vpop.f32.mrf.mxu0  ;;  %6205 = vmatprep.mubr.bf16.mxu1 %v6898_v37  ;;  %v6914_v37 = vcombine.high %v102_v3, %v110_v22  ;;  %v126_v9 = vld [vmem:[%s10788_s0 + $0x378] sm:$0xff] }
 0x35c   :  { %v10184_v63 = vadd.f32 %v5685_v60, %v5397_v58  ;;  %v5687_v0 = vpop.f32.mrf.mxu1 }
 0x35d   :  { %v5399_v13 = vpop.f32.mrf.mxu0 }
 0x35e   :  { %v5400_v15 = vadd.f32 %v5399_v13, %v9554_v29  ;;  %v5688_v49 = vpop.f32.mrf.mxu1  ;;  %v117_v29 = vld [vmem:[%s10788_s0 + $0x330] sm:$0xff] }
 0x35f   :  { %v5401_v52 = vpop.f32.mrf.mxu0 }
 0x360   :  { %v10193_v35 = vadd.f32 %v5688_v49, %v5400_v15  ;;  %v5690_v38 = vpop.f32.mrf.mxu1 }
 0x361   :  { %v5404_v58 = vpop.f32.mrf.mxu0  ;;  %5917 = vmatmul.mubr.bf16.gmra.mxu0 %v6895_v44  ;;  %v6911_v44 = vcombine.low %v101_v21, %v109_v24  ;;  %v141_v21 = vld [vmem:[%s10788_s0 + $0x3f0] sm:$0xff] }
 0x362   :  { %v5405_v60 = vadd.f32 %v5404_v58, %v9571_v40  ;;  %v5693_v18 = vpop.f32.mrf.mxu1  ;;  %6206 = vmatmul.mubr.bf16.gmra.mxu1 %v6897_v61  ;;  %5924 = vmatprep.mubr.bf16.mxu0 %v6912_v7  ;;  %v118_v40 = vld [vmem:[%s10788_s0 + $0x338] sm:$0xff]  ;;  %v6913_v61 = vcombine.low %v102_v3, %v110_v22  ;;  %v6928_v7 = vcombine.high %v117_v29, %v125_v55 }
 0x363   :  { %v5406_v0 = vpop.f32.mrf.mxu0  ;;  %6213 = vmatprep.mubr.bf16.mxu1 %v6914_v37  ;;  %v6930_v37 = vcombine.high %v118_v40, %v126_v9  ;;  %v142_v22 = vld [vmem:[%s10788_s0 + $0x3f8] sm:$0xff] }
 0x364   :  { %v10202_v23 = vadd.f32 %v5693_v18, %v5405_v60  ;;  %v5695_v20 = vpop.f32.mrf.mxu1 }
 0x365   :  { %v5407_v13 = vpop.f32.mrf.mxu0 }
 0x366   :  { %v5408_v15 = vadd.f32 %v5407_v13, %v9590_v26  ;;  %v5696_v49 = vpop.f32.mrf.mxu1  ;;  %v133_v26 = vld [vmem:[%s10788_s0 + $0x3b0] sm:$0xff] }
 0x367   :  { %v5409_v52 = vpop.f32.mrf.mxu0 }
 0x368   :  { %v10211_v38 = vadd.f32 %v5696_v49, %v5408_v15  ;;  %v5698_v58 = vpop.f32.mrf.mxu1 }
 0x369   :  { %v5412_v60 = vpop.f32.mrf.mxu0  ;;  %5925 = vmatmul.mubr.bf16.gmra.mxu0 %v6911_v44  ;;  %v6927_v44 = vcombine.low %v117_v29, %v125_v55  ;;  %v157_v29 = vld [vmem:[%s10788_s0 + $0x470] sm:$0xff] }
 0x36a   :  { %v5413_v18 = vadd.f32 %v5412_v60, %v9604_v47  ;;  %v5701_v0 = vpop.f32.mrf.mxu1  ;;  %6214 = vmatmul.mubr.bf16.gmra.mxu1 %v6913_v61  ;;  %5932 = vmatprep.mubr.bf16.mxu0 %v6928_v7  ;;  %v134_v47 = vld [vmem:[%s10788_s0 + $0x3b8] sm:$0xff]  ;;  %v6929_v61 = vcombine.low %v118_v40, %v126_v9  ;;  %v6944_v7 = vcombine.high %v133_v26, %v141_v21 }
 0x36b   :  { %v5414_v20 = vpop.f32.mrf.mxu0  ;;  %6221 = vmatprep.mubr.bf16.mxu1 %v6930_v37  ;;  %v6946_v37 = vcombine.high %v134_v47, %v142_v22  ;;  %v158_v9 = vld [vmem:[%s10788_s0 + $0x478] sm:$0xff] }
 0x36c   :  { %v10220_v24 = vadd.f32 %v5701_v0, %v5413_v18  ;;  %v5703_v3 = vpop.f32.mrf.mxu1 }
 0x36d   :  { %v5415_v13 = vpop.f32.mrf.mxu0 }
 0x36e   :  { %v5416_v15 = vadd.f32 %v5415_v13, %v9615_v25  ;;  %v5704_v49 = vpop.f32.mrf.mxu1  ;;  %v149_v25 = vld [vmem:[%s10788_s0 + $0x430] sm:$0xff] }
 0x36f   :  { %v5417_v52 = vpop.f32.mrf.mxu0 }
 0x370   :  { %v10229_v58 = vadd.f32 %v5704_v49, %v5416_v15  ;;  %v5706_v60 = vpop.f32.mrf.mxu1 }
 0x371   :  { %v5420_v18 = vpop.f32.mrf.mxu0  ;;  %5933 = vmatmul.mubr.bf16.gmra.mxu0 %v6927_v44  ;;  %v6943_v44 = vcombine.low %v133_v26, %v141_v21  ;;  %v173_v26 = vld [vmem:[%s10788_s0 + $0x4f0] sm:$0xff] }
 0x372   :  { %v5421_v0 = vadd.f32 %v5420_v18, %v9627_v10  ;;  %v5709_v20 = vpop.f32.mrf.mxu1  ;;  %6222 = vmatmul.mubr.bf16.gmra.mxu1 %v6929_v61  ;;  %5940 = vmatprep.mubr.bf16.mxu0 %v6944_v7  ;;  %v150_v10 = vld [vmem:[%s10788_s0 + $0x438] sm:$0xff]  ;;  %v6945_v61 = vcombine.low %v134_v47, %v142_v22  ;;  %v6960_v7 = vcombine.high %v149_v25, %v157_v29 }
 0x373   :  { %v5422_v3 = vpop.f32.mrf.mxu0  ;;  %6229 = vmatprep.mubr.bf16.mxu1 %v6946_v37  ;;  %v6962_v37 = vcombine.high %v150_v10, %v158_v9  ;;  %v174_v22 = vld [vmem:[%s10788_s0 + $0x4f8] sm:$0xff] }
 0x374   :  { %v10238_v55 = vadd.f32 %v5709_v20, %v5421_v0  ;;  %v5711_v40 = vpop.f32.mrf.mxu1 }
 0x375   :  { %v5423_v13 = vpop.f32.mrf.mxu0 }
 0x376   :  { %v5424_v15 = vadd.f32 %v5423_v13, %v9641_v62  ;;  %v5712_v49 = vpop.f32.mrf.mxu1  ;;  %v165_v62 = vld [vmem:[%s10788_s0 + $0x4b0] sm:$0xff] }
 0x377   :  { %v5425_v52 = vpop.f32.mrf.mxu0 }
 0x378   :  { %v10247_v60 = vadd.f32 %v5712_v49, %v5424_v15  ;;  %v5714_v18 = vpop.f32.mrf.mxu1 }
 0x379   :  { %v5428_v0 = vpop.f32.mrf.mxu0  ;;  %5941 = vmatmul.mubr.bf16.gmra.mxu0 %v6943_v44  ;;  %v6959_v44 = vcombine.low %v149_v25, %v157_v29  ;;  %v189_v25 = vld [vmem:[%s10788_s0 + $0x570] sm:$0xff] }
 0x37a   :  { %v5429_v20 = vadd.f32 %v5428_v0, %v9650_v48  ;;  %v5717_v3 = vpop.f32.mrf.mxu1  ;;  %6230 = vmatmul.mubr.bf16.gmra.mxu1 %v6945_v61  ;;  %5948 = vmatprep.mubr.bf16.mxu0 %v6960_v7  ;;  %v166_v48 = vld [vmem:[%s10788_s0 + $0x4b8] sm:$0xff]  ;;  %v6961_v61 = vcombine.low %v150_v10, %v158_v9  ;;  %v6976_v7 = vcombine.high %v165_v62, %v173_v26 }
 0x37b   :  { %v5430_v40 = vpop.f32.mrf.mxu0  ;;  %6237 = vmatprep.mubr.bf16.mxu1 %v6962_v37  ;;  %v6978_v37 = vcombine.high %v166_v48, %v174_v22  ;;  %v190_v9 = vld [vmem:[%s10788_s0 + $0x578] sm:$0xff] }
 0x37c   :  { %v10256_v21 = vadd.f32 %v5717_v3, %v5429_v20  ;;  %v5719_v47 = vpop.f32.mrf.mxu1 }
 0x37d   :  { %v5431_v13 = vpop.f32.mrf.mxu0 }
 0x37e   :  { %v5432_v15 = vadd.f32 %v5431_v13, %v9659_v6  ;;  %v5720_v49 = vpop.f32.mrf.mxu1  ;;  %v181_v6 = vld [vmem:[%s10788_s0 + $0x530] sm:$0xff] }
 0x37f   :  { %v5433_v52 = vpop.f32.mrf.mxu0 }
 0x380   :  { %v10265_v18 = vadd.f32 %v5720_v49, %v5432_v15  ;;  %v5722_v0 = vpop.f32.mrf.mxu1 }
 0x381   :  { %v5436_v20 = vpop.f32.mrf.mxu0  ;;  %5949 = vmatmul.mubr.bf16.gmra.mxu0 %v6959_v44  ;;  %v6975_v44 = vcombine.low %v165_v62, %v173_v26  ;;  %v205_v62 = vld [vmem:[%s10788_s0 + $0x5f0] sm:$0xff] }
 0x382   :  { %v5437_v3 = vadd.f32 %v5436_v20, %v9671_v30  ;;  %v5725_v40 = vpop.f32.mrf.mxu1  ;;  %6238 = vmatmul.mubr.bf16.gmra.mxu1 %v6961_v61  ;;  %5956 = vmatprep.mubr.bf16.mxu0 %v6976_v7  ;;  %v182_v30 = vld [vmem:[%s10788_s0 + $0x538] sm:$0xff]  ;;  %v6977_v61 = vcombine.low %v166_v48, %v174_v22  ;;  %v6992_v7 = vcombine.high %v181_v6, %v189_v25 }
 0x383   :  { %v5438_v47 = vpop.f32.mrf.mxu0  ;;  %6245 = vmatprep.mubr.bf16.mxu1 %v6978_v37  ;;  %v6994_v37 = vcombine.high %v182_v30, %v190_v9  ;;  %v206_v22 = vld [vmem:[%s10788_s0 + $0x5f8] sm:$0xff] }
 0x384   :  { %v10274_v29 = vadd.f32 %v5725_v40, %v5437_v3  ;;  %v5727_v10 = vpop.f32.mrf.mxu1 }
 0x385   :  { %v5439_v13 = vpop.f32.mrf.mxu0 }
 0x386   :  { %v5440_v15 = vadd.f32 %v5439_v13, %v9685_v34  ;;  %v5728_v49 = vpop.f32.mrf.mxu1  ;;  %v197_v34 = vld [vmem:[%s10788_s0 + $0x5b0] sm:$0xff] }
 0x387   :  { %v5441_v52 = vpop.f32.mrf.mxu0 }
 0x388   :  { %v10283_v0 = vadd.f32 %v5728_v49, %v5440_v15  ;;  %v5730_v20 = vpop.f32.mrf.mxu1 }
 0x389   :  { %v5444_v3 = vpop.f32.mrf.mxu0  ;;  %5957 = vmatmul.mubr.bf16.gmra.mxu0 %v6975_v44  ;;  %v6991_v44 = vcombine.low %v181_v6, %v189_v25  ;;  %v221_v6 = vld [vmem:[%s10788_s0 + $0x670] sm:$0xff] }
 0x38a   :  { %v5445_v40 = vadd.f32 %v5444_v3, %v9694_v50  ;;  %v5733_v47 = vpop.f32.mrf.mxu1  ;;  %6246 = vmatmul.mubr.bf16.gmra.mxu1 %v6977_v61  ;;  %5964 = vmatprep.mubr.bf16.mxu0 %v6992_v7  ;;  %v198_v50 = vld [vmem:[%s10788_s0 + $0x5b8] sm:$0xff]  ;;  %v6993_v61 = vcombine.low %v182_v30, %v190_v9  ;;  %v7008_v7 = vcombine.high %v197_v34, %v205_v62 }
 0x38b   :  { %v5446_v10 = vpop.f32.mrf.mxu0  ;;  %6253 = vmatprep.mubr.bf16.mxu1 %v6994_v37  ;;  %v7010_v37 = vcombine.high %v198_v50, %v206_v22  ;;  %v222_v9 = vld [vmem:[%s10788_s0 + $0x678] sm:$0xff] }
 0x38c   :  { %v10292_v26 = vadd.f32 %v5733_v47, %v5445_v40  ;;  %v5735_v48 = vpop.f32.mrf.mxu1 }
 0x38d   :  { %v5447_v13 = vpop.f32.mrf.mxu0 }
 0x38e   :  { %v5448_v15 = vadd.f32 %v5447_v13, %v9703_v11  ;;  %v5736_v49 = vpop.f32.mrf.mxu1  ;;  %v213_v11 = vld [vmem:[%s10788_s0 + $0x630] sm:$0xff] }
 0x38f   :  { %v5449_v52 = vpop.f32.mrf.mxu0 }
 0x390   :  { %v10301_v20 = vadd.f32 %v5736_v49, %v5448_v15  ;;  %v5738_v3 = vpop.f32.mrf.mxu1 }
 0x391   :  { %v5452_v40 = vpop.f32.mrf.mxu0  ;;  %5965 = vmatmul.mubr.bf16.gmra.mxu0 %v6991_v44  ;;  %v7007_v44 = vcombine.low %v197_v34, %v205_v62  ;;  %v237_v34 = vld [vmem:[%s10788_s0 + $0x6f0] sm:$0xff] }
 0x392   :  { %v5453_v47 = vadd.f32 %v5452_v40, %v9715_v8  ;;  %v5741_v10 = vpop.f32.mrf.mxu1  ;;  %6254 = vmatmul.mubr.bf16.gmra.mxu1 %v6993_v61  ;;  %5972 = vmatprep.mubr.bf16.mxu0 %v7008_v7  ;;  %v214_v8 = vld [vmem:[%s10788_s0 + $0x638] sm:$0xff]  ;;  %v7009_v61 = vcombine.low %v198_v50, %v206_v22  ;;  %v7024_v7 = vcombine.high %v213_v11, %v221_v6 }
 0x393   :  { %v5454_v48 = vpop.f32.mrf.mxu0  ;;  %6261 = vmatprep.mubr.bf16.mxu1 %v7010_v37  ;;  %v7026_v37 = vcombine.high %v214_v8, %v222_v9  ;;  %v230_v22 = vld [vmem:[%s10788_s0 + $0x6b8] sm:$0xff] }
 0x394   :  { %v10310_v25 = vadd.f32 %v5741_v10, %v5453_v47  ;;  %v5743_v30 = vpop.f32.mrf.mxu1  ;;  %v10864_v10 = vld [vmem:[#allocation25_spill] sm:$0xff] }
 0x395   :  { %v5455_v13 = vpop.f32.mrf.mxu0 }
 0x396   :  { %10862 = vst [vmem:[#allocation22_spill] sm:$0xff] %v10310_v25  ;;  %v5456_v15 = vadd.f32 %v5455_v13, %v9729_v27  ;;  %v5744_v49 = vpop.f32.mrf.mxu1  ;;  %v229_v27 = vld [vmem:[%s10788_s0 + $0x6b0] sm:$0xff] }
 0x397   :  { %v5457_v52 = vpop.f32.mrf.mxu0 }
 0x398   :  { %v10319_v3 = vadd.f32 %v5744_v49, %v5456_v15  ;;  %v5746_v40 = vpop.f32.mrf.mxu1  ;;  %v10866_v15 = vld [vmem:[#allocation26_spill] sm:$0xff]  ;;  %v7040_v52 = vcombine.high %v229_v27, %v237_v34 }
 0x399   :  { %v5460_v47 = vpop.f32.mrf.mxu0  ;;  %5973 = vmatmul.mubr.bf16.gmra.mxu0 %v7007_v44  ;;  %v7023_v44 = vcombine.low %v213_v11, %v221_v6  ;;  %v245_v11 = vld [vmem:[%s10788_s0 + $0x730] sm:$0xff] }
 0x39a   :  { %10863 = vst [vmem:[#allocation23_spill] sm:$0xff] %v10319_v3  ;;  %v5461_v48 = vadd.f32 %v5460_v47, %v10864_v10  ;;  %v5749_v30 = vpop.f32.mrf.mxu1  ;;  %6262 = vmatmul.mubr.bf16.gmra.mxu1 %v7009_v61  ;;  %5980 = vmatprep.mubr.bf16.mxu0 %v7024_v7  ;;  %v7025_v7 = vcombine.low %v214_v8, %v222_v9  ;;  %v253_v6 = vld [vmem:[%s10788_s0 + $0x770] sm:$0xff] }
 0x39b   :  { %v5462_v25 = vpop.f32.mrf.mxu0  ;;  %6269 = vmatprep.mubr.bf16.mxu1 %v7026_v37 }
 0x39c   :  { %v10328_v62 = vadd.f32 %v5749_v30, %v5461_v48  ;;  %v5751_v50 = vpop.f32.mrf.mxu1  ;;  %v238_v25 = vld [vmem:[%s10788_s0 + $0x6f8] sm:$0xff]  ;;  %v10868_v30 = vld [vmem:[#allocation2_spill] sm:$0xff] }
 0x39d   :  { %v5463_v13 = vpop.f32.mrf.mxu0  ;;  %v7042_v40 = vcombine.high %v230_v22, %v238_v25 }
 0x39e   :  { %10865 = vst [vmem:[#allocation24_spill] sm:$0xff] %v10328_v62  ;;  %v5464_v49 = vadd.f32 %v5463_v13, %v10866_v15  ;;  %v5752_v61 = vpop.f32.mrf.mxu1  ;;  %v246_v13 = vld [vmem:[%s10788_s0 + $0x738] sm:$0xff]  ;;  %v7039_v15 = vcombine.low %v229_v27, %v237_v34  ;;  %v261_v27 = vld [vmem:[%s10788_s0 + $0x7b0] sm:$0xff] }
 0x39f   :  { %v5465_v37 = vpop.f32.mrf.mxu0  ;;  %v269_v34 = vld [vmem:[%s10788_s0 + $0x7f0] sm:$0xff] }
 0x3a0   :  { %v10337_v47 = vadd.f32 %v5752_v61, %v5464_v49  ;;  %v5754_v10 = vpop.f32.mrf.mxu1  ;;  %v10870_v49 = vld [vmem:[#allocation3_spill] sm:$0xff]  ;;  %v7056_v37 = vcombine.high %v245_v11, %v253_v6 }
 0x3a1   :  { %v5468_v48 = vpop.f32.mrf.mxu0  ;;  %5981 = vmatmul.mubr.bf16.gmra.mxu0 %v7023_v44 }
 0x3a2   :  { %10867 = vst [vmem:[#allocation25_spill] sm:$0xff] %v10337_v47  ;;  %v5469_v50 = vadd.f32 %v5468_v48, %v10868_v30  ;;  %v5757_v62 = vpop.f32.mrf.mxu1  ;;  %6270 = vmatmul.mubr.bf16.gmra.mxu1 %v7025_v7  ;;  %5988 = vmatprep.mubr.bf16.mxu0 %v7040_v52  ;;  %v7041_v52 = vcombine.low %v230_v22, %v238_v25 }
 0x3a3   :  { %v5470_v3 = vpop.f32.mrf.mxu0  ;;  %6277 = vmatprep.mubr.bf16.mxu1 %v7042_v40 }
 0x3a4   :  { %v10346_v8 = vadd.f32 %v5757_v62, %v5469_v50  ;;  %v5759_v9 = vpop.f32.mrf.mxu1  ;;  %v254_v3 = vld [vmem:[%s10788_s0 + $0x778] sm:$0xff]  ;;  %v10872_v50 = vld [vmem:[#allocation4_spill] sm:$0xff] }
 0x3a5   :  { %v5471_v44 = vpop.f32.mrf.mxu0  ;;  %v7058_v10 = vcombine.high %v246_v13, %v254_v3 }
 0x3a6   :  { %10869 = vst [vmem:[#allocation26_spill] sm:$0xff] %v10346_v8  ;;  %v5472_v61 = vadd.f32 %v5471_v44, %v10870_v49  ;;  %v5760_v7 = vpop.f32.mrf.mxu1  ;;  %v262_v44 = vld [vmem:[%s10788_s0 + $0x7b8] sm:$0xff]  ;;  %v7055_v49 = vcombine.low %v245_v11, %v253_v6  ;;  %v277_v11 = vld [vmem:[%s10788_s0 + $0x830] sm:$0xff] }
 0x3a7   :  { %v5473_v40 = vpop.f32.mrf.mxu0  ;;  %v285_v6 = vld [vmem:[%s10788_s0 + $0x870] sm:$0xff] }
 0x3a8   :  { %v10355_v62 = vadd.f32 %v5760_v7, %v5472_v61  ;;  %v5762_v48 = vpop.f32.mrf.mxu1  ;;  %v10874_v61 = vld [vmem:[#allocation5_spill] sm:$0xff]  ;;  %v7072_v40 = vcombine.high %v261_v27, %v269_v34 }
 0x3a9   :  { %v5476_v30 = vpop.f32.mrf.mxu0  ;;  %5989 = vmatmul.mubr.bf16.gmra.mxu0 %v7039_v15 }
 0x3aa   :  { %10871 = vst [vmem:[#allocation2_spill] sm:$0xff] %v10355_v62  ;;  %v5477_v9 = vadd.f32 %v5476_v30, %v10872_v50  ;;  %v5765_v8 = vpop.f32.mrf.mxu1  ;;  %6278 = vmatmul.mubr.bf16.gmra.mxu1 %v7041_v52  ;;  %5996 = vmatprep.mubr.bf16.mxu0 %v7056_v37  ;;  %v7057_v37 = vcombine.low %v246_v13, %v254_v3 }
 0x3ab   :  { %v5478_v47 = vpop.f32.mrf.mxu0  ;;  %6285 = vmatprep.mubr.bf16.mxu1 %v7058_v10 }
 0x3ac   :  { %v10364_v22 = vadd.f32 %v5765_v8, %v5477_v9  ;;  %v5767_v25 = vpop.f32.mrf.mxu1  ;;  %v270_v47 = vld [vmem:[%s10788_s0 + $0x7f8] sm:$0xff]  ;;  %v10875_v9 = vld [vmem:[#allocation6_spill] sm:$0xff] }
 0x3ad   :  { %v5479_v15 = vpop.f32.mrf.mxu0  ;;  %v7074_v48 = vcombine.high %v262_v44, %v270_v47 }
 0x3ae   :  { %10873 = vst [vmem:[#allocation3_spill] sm:$0xff] %v10364_v22  ;;  %v5480_v7 = vadd.f32 %v5479_v15, %v10874_v61  ;;  %v5768_v52 = vpop.f32.mrf.mxu1  ;;  %v278_v15 = vld [vmem:[%s10788_s0 + $0x838] sm:$0xff]  ;;  %v7071_v61 = vcombine.low %v261_v27, %v269_v34  ;;  %v301_v27 = vld [vmem:[%s10788_s0 + $0x8f0] sm:$0xff] }
 0x3af   :  { %v5481_v10 = vpop.f32.mrf.mxu0 }
 0x3b0   :  { %v10373_v8 = vadd.f32 %v5768_v52, %v5480_v7  ;;  %v5770_v30 = vpop.f32.mrf.mxu1 }
 0x3b1   :  { %v5484_v50 = vpop.f32.mrf.mxu0  ;;  %5997 = vmatmul.mubr.bf16.gmra.mxu0 %v7055_v49 }
 0x3b2   :  { %v5485_v25 = vadd.f32 %v5484_v50, %v10875_v9  ;;  %v5773_v22 = vpop.f32.mrf.mxu1  ;;  %6286 = vmatmul.mubr.bf16.gmra.mxu1 %v7057_v37  ;;  %6004 = vmatprep.mubr.bf16.mxu0 %v7072_v40  ;;  %v7073_v37 = vcombine.low %v262_v44, %v270_v47  ;;  %v7088_v40 = vcombine.high %v277_v11, %v285_v6  ;;  %v10878_v9 = vld [vmem:[#allocation7_spill] sm:$0xff]  ;;  %v294_v47 = vld [vmem:[%s10788_s0 + $0x8b8] sm:$0xff] }
 0x3b3   :  { %v5486_v62 = vpop.f32.mrf.mxu0  ;;  %6293 = vmatprep.mubr.bf16.mxu1 %v7074_v48 }
 0x3b4   :  { %v10382_v13 = vadd.f32 %v5773_v22, %v5485_v25  ;;  %v5775_v3 = vpop.f32.mrf.mxu1  ;;  %v286_v62 = vld [vmem:[%s10788_s0 + $0x878] sm:$0xff] }
 0x3b5   :  { %v5487_v49 = vpop.f32.mrf.mxu0  ;;  %v7090_v48 = vcombine.high %v278_v15, %v286_v62 }
 0x3b6   :  { %10876 = vst [vmem:[#allocation4_spill] sm:$0xff] %v10382_v13  ;;  %v5488_v7 = vadd.f32 %v5487_v49, %v9815_v32  ;;  %v5776_v52 = vpop.f32.mrf.mxu1  ;;  %v293_v32 = vld [vmem:[%s10788_s0 + $0x8b0] sm:$0xff] }
 0x3b7   :  { %v5489_v10 = vpop.f32.mrf.mxu0 }
 0x3b8   :  { %v10391_v22 = vadd.f32 %v5776_v52, %v5488_v7  ;;  %v5778_v30 = vpop.f32.mrf.mxu1  ;;  %v10880_v7 = vld [vmem:[#allocation8_spill] sm:$0xff]  ;;  %v7104_v10 = vcombine.high %v293_v32, %v301_v27 }
 0x3b9   :  { %v5492_v50 = vpop.f32.mrf.mxu0  ;;  %6005 = vmatmul.mubr.bf16.gmra.mxu0 %v7071_v61  ;;  %v7087_v61 = vcombine.low %v277_v11, %v285_v6  ;;  %v309_v11 = vld [vmem:[%s10788_s0 + $0x930] sm:$0xff] }
 0x3ba   :  { %10877 = vst [vmem:[#allocation5_spill] sm:$0xff] %v10391_v22  ;;  %v5493_v25 = vadd.f32 %v5492_v50, %v10878_v9  ;;  %v5781_v3 = vpop.f32.mrf.mxu1  ;;  %6294 = vmatmul.mubr.bf16.gmra.mxu1 %v7073_v37  ;;  %6012 = vmatprep.mubr.bf16.mxu0 %v7088_v40  ;;  %v7089_v40 = vcombine.low %v278_v15, %v286_v62  ;;  %v317_v6 = vld [vmem:[%s10788_s0 + $0x970] sm:$0xff] }
 0x3bb   :  { %v5494_v13 = vpop.f32.mrf.mxu0  ;;  %6301 = vmatprep.mubr.bf16.mxu1 %v7090_v48 }
 0x3bc   :  { %v10400_v34 = vadd.f32 %v5781_v3, %v5493_v25  ;;  %v5783_v44 = vpop.f32.mrf.mxu1  ;;  %v302_v13 = vld [vmem:[%s10788_s0 + $0x8f8] sm:$0xff] }
 0x3bd   :  { %v5495_v49 = vpop.f32.mrf.mxu0  ;;  %v7106_v30 = vcombine.high %v294_v47, %v302_v13  ;;  %v10882_v3 = vld [vmem:[#allocation9_spill] sm:$0xff] }
 0x3be   :  { %10879 = vst [vmem:[#allocation6_spill] sm:$0xff] %v10400_v34  ;;  %v5496_v52 = vadd.f32 %v5495_v49, %v10880_v7  ;;  %v5784_v37 = vpop.f32.mrf.mxu1  ;;  %v310_v49 = vld [vmem:[%s10788_s0 + $0x938] sm:$0xff]  ;;  %v7103_v7 = vcombine.low %v293_v32, %v301_v27  ;;  %v325_v32 = vld [vmem:[%s10788_s0 + $0x9b0] sm:$0xff] }
 0x3bf   :  { %v5497_v48 = vpop.f32.mrf.mxu0  ;;  %v333_v27 = vld [vmem:[%s10788_s0 + $0x9f0] sm:$0xff] }
 0x3c0   :  { %v10409_v50 = vadd.f32 %v5784_v37, %v5496_v52  ;;  %v5786_v9 = vpop.f32.mrf.mxu1  ;;  %v10884_v52 = vld [vmem:[#allocation10_spill] sm:$0xff]  ;;  %v7120_v48 = vcombine.high %v309_v11, %v317_v6 }
 0x3c1   :  { %v5500_v25 = vpop.f32.mrf.mxu0  ;;  %6013 = vmatmul.mubr.bf16.gmra.mxu0 %v7087_v61 }
 0x3c2   :  { %10881 = vst [vmem:[#allocation7_spill] sm:$0xff] %v10409_v50  ;;  %v5501_v44 = vadd.f32 %v5500_v25, %v10882_v3  ;;  %v5789_v34 = vpop.f32.mrf.mxu1  ;;  %6302 = vmatmul.mubr.bf16.gmra.mxu1 %v7089_v40  ;;  %6020 = vmatprep.mubr.bf16.mxu0 %v7104_v10  ;;  %v7105_v10 = vcombine.low %v294_v47, %v302_v13 }
 0x3c3   :  { %v5502_v22 = vpop.f32.mrf.mxu0  ;;  %6309 = vmatprep.mubr.bf16.mxu1 %v7106_v30 }
 0x3c4   :  { %v10418_v15 = vadd.f32 %v5789_v34, %v5501_v44  ;;  %v5791_v62 = vpop.f32.mrf.mxu1  ;;  %v318_v22 = vld [vmem:[%s10788_s0 + $0x978] sm:$0xff]  ;;  %v10886_v44 = vld [vmem:[#allocation11_spill] sm:$0xff] }
 0x3c5   :  { %v5503_v61 = vpop.f32.mrf.mxu0  ;;  %v7122_v9 = vcombine.high %v310_v49, %v318_v22 }
 0x3c6   :  { %10883 = vst [vmem:[#allocation8_spill] sm:$0xff] %v10418_v15  ;;  %v5504_v37 = vadd.f32 %v5503_v61, %v10884_v52  ;;  %v5792_v40 = vpop.f32.mrf.mxu1  ;;  %v326_v61 = vld [vmem:[%s10788_s0 + $0x9b8] sm:$0xff]  ;;  %v7119_v52 = vcombine.low %v309_v11, %v317_v6  ;;  %v341_v11 = vld [vmem:[%s10788_s0 + $0xa30] sm:$0xff] }
 0x3c7   :  { %v5505_v30 = vpop.f32.mrf.mxu0  ;;  %v349_v6 = vld [vmem:[%s10788_s0 + $0xa70] sm:$0xff] }
 0x3c8   :  { %v10427_v34 = vadd.f32 %v5792_v40, %v5504_v37  ;;  %v5794_v25 = vpop.f32.mrf.mxu1  ;;  %v10888_v37 = vld [vmem:[#allocation12_spill] sm:$0xff]  ;;  %v7136_v30 = vcombine.high %v325_v32, %v333_v27 }
 0x3c9   :  { %v5508_v3 = vpop.f32.mrf.mxu0  ;;  %6021 = vmatmul.mubr.bf16.gmra.mxu0 %v7103_v7 }
 0x3ca   :  { %10885 = vst [vmem:[#allocation9_spill] sm:$0xff] %v10427_v34  ;;  %v5509_v62 = vadd.f32 %v5508_v3, %v10886_v44  ;;  %v5797_v15 = vpop.f32.mrf.mxu1  ;;  %6310 = vmatmul.mubr.bf16.gmra.mxu1 %v7105_v10  ;;  %6028 = vmatprep.mubr.bf16.mxu0 %v7120_v48  ;;  %v7121_v48 = vcombine.low %v310_v49, %v318_v22 }
 0x3cb   :  { %v5510_v50 = vpop.f32.mrf.mxu0  ;;  %6317 = vmatprep.mubr.bf16.mxu1 %v7122_v9 }
 0x3cc   :  { %v10436_v47 = vadd.f32 %v5797_v15, %v5509_v62  ;;  %v5799_v13 = vpop.f32.mrf.mxu1  ;;  %v334_v50 = vld [vmem:[%s10788_s0 + $0x9f8] sm:$0xff] }
 0x3cd   :  { %v5511_v7 = vpop.f32.mrf.mxu0  ;;  %v7138_v25 = vcombine.high %v326_v61, %v334_v50  ;;  %v10890_v62 = vld [vmem:[#allocation13_spill] sm:$0xff] }
 0x3ce   :  { %10887 = vst [vmem:[#allocation10_spill] sm:$0xff] %v10436_v47  ;;  %v5512_v40 = vadd.f32 %v5511_v7, %v10888_v37  ;;  %v5800_v10 = vpop.f32.mrf.mxu1  ;;  %v342_v7 = vld [vmem:[%s10788_s0 + $0xa38] sm:$0xff]  ;;  %v7135_v37 = vcombine.low %v325_v32, %v333_v27  ;;  %v357_v32 = vld [vmem:[%s10788_s0 + $0xab0] sm:$0xff] }
 0x3cf   :  { %v5513_v9 = vpop.f32.mrf.mxu0  ;;  %v365_v27 = vld [vmem:[%s10788_s0 + $0xaf0] sm:$0xff] }
 0x3d0   :  { %v10445_v15 = vadd.f32 %v5800_v10, %v5512_v40  ;;  %v5802_v3 = vpop.f32.mrf.mxu1  ;;  %v10892_v40 = vld [vmem:[#allocation14_spill] sm:$0xff]  ;;  %v7152_v9 = vcombine.high %v341_v11, %v349_v6 }
 0x3d1   :  { %v5516_v44 = vpop.f32.mrf.mxu0  ;;  %6029 = vmatmul.mubr.bf16.gmra.mxu0 %v7119_v52 }
 0x3d2   :  { %10889 = vst [vmem:[#allocation11_spill] sm:$0xff] %v10445_v15  ;;  %v5517_v13 = vadd.f32 %v5516_v44, %v10890_v62  ;;  %v5805_v47 = vpop.f32.mrf.mxu1  ;;  %6318 = vmatmul.mubr.bf16.gmra.mxu1 %v7121_v48  ;;  %6036 = vmatprep.mubr.bf16.mxu0 %v7136_v30  ;;  %v7137_v30 = vcombine.low %v326_v61, %v334_v50 }
 0x3d3   :  { %v5518_v34 = vpop.f32.mrf.mxu0  ;;  %6325 = vmatprep.mubr.bf16.mxu1 %v7138_v25 }
 0x3d4   :  { %v10454_v49 = vadd.f32 %v5805_v47, %v5517_v13  ;;  %v5807_v22 = vpop.f32.mrf.mxu1  ;;  %v350_v34 = vld [vmem:[%s10788_s0 + $0xa78] sm:$0xff]  ;;  %v10894_v13 = vld [vmem:[#allocation15_spill] sm:$0xff] }
 0x3d5   :  { %v5519_v52 = vpop.f32.mrf.mxu0  ;;  %v7154_v3 = vcombine.high %v342_v7, %v350_v34 }
 0x3d6   :  { %10891 = vst [vmem:[#allocation12_spill] sm:$0xff] %v10454_v49  ;;  %v5520_v10 = vadd.f32 %v5519_v52, %v10892_v40  ;;  %v5808_v48 = vpop.f32.mrf.mxu1  ;;  %v358_v52 = vld [vmem:[%s10788_s0 + $0xab8] sm:$0xff]  ;;  %v7151_v40 = vcombine.low %v341_v11, %v349_v6  ;;  %v373_v11 = vld [vmem:[%s10788_s0 + $0xb30] sm:$0xff] }
 0x3d7   :  { %v5521_v25 = vpop.f32.mrf.mxu0  ;;  %v381_v6 = vld [vmem:[%s10788_s0 + $0xb70] sm:$0xff] }
 0x3d8   :  { %v10463_v47 = vadd.f32 %v5808_v48, %v5520_v10  ;;  %v5810_v44 = vpop.f32.mrf.mxu1  ;;  %v10896_v10 = vld [vmem:[#allocation16_spill] sm:$0xff]  ;;  %v7168_v25 = vcombine.high %v357_v32, %v365_v27 }
 0x3d9   :  { %v5524_v62 = vpop.f32.mrf.mxu0  ;;  %6037 = vmatmul.mubr.bf16.gmra.mxu0 %v7135_v37 }
 0x3da   :  { %10893 = vst [vmem:[#allocation13_spill] sm:$0xff] %v10463_v47  ;;  %v5525_v22 = vadd.f32 %v5524_v62, %v10894_v13  ;;  %v5813_v49 = vpop.f32.mrf.mxu1  ;;  %6326 = vmatmul.mubr.bf16.gmra.mxu1 %v7137_v30  ;;  %6044 = vmatprep.mubr.bf16.mxu0 %v7152_v9  ;;  %v7153_v9 = vcombine.low %v342_v7, %v350_v34 }
 0x3db   :  { %v5526_v15 = vpop.f32.mrf.mxu0  ;;  %6333 = vmatprep.mubr.bf16.mxu1 %v7154_v3 }
 0x3dc   :  { %v10472_v61 = vadd.f32 %v5813_v49, %v5525_v22  ;;  %v5815_v50 = vpop.f32.mrf.mxu1  ;;  %v366_v15 = vld [vmem:[%s10788_s0 + $0xaf8] sm:$0xff] }
 0x3dd   :  { %v5527_v37 = vpop.f32.mrf.mxu0  ;;  %v7170_v44 = vcombine.high %v358_v52, %v366_v15  ;;  %v10898_v22 = vld [vmem:[#allocation17_spill] sm:$0xff] }
 0x3de   :  { %10895 = vst [vmem:[#allocation14_spill] sm:$0xff] %v10472_v61  ;;  %v5528_v48 = vadd.f32 %v5527_v37, %v10896_v10  ;;  %v5816_v30 = vpop.f32.mrf.mxu1  ;;  %v374_v37 = vld [vmem:[%s10788_s0 + $0xb38] sm:$0xff]  ;;  %v7167_v10 = vcombine.low %v357_v32, %v365_v27  ;;  %v389_v32 = vld [vmem:[%s10788_s0 + $0xbb0] sm:$0xff] }
 0x3df   :  { %v5529_v3 = vpop.f32.mrf.mxu0  ;;  %v397_v27 = vld [vmem:[%s10788_s0 + $0xbf0] sm:$0xff] }
 0x3e0   :  { %v10481_v49 = vadd.f32 %v5816_v30, %v5528_v48  ;;  %v5818_v62 = vpop.f32.mrf.mxu1  ;;  %v10900_v48 = vld [vmem:[#allocation18_spill] sm:$0xff]  ;;  %v7184_v3 = vcombine.high %v373_v11, %v381_v6 }
 0x3e1   :  { %v5532_v13 = vpop.f32.mrf.mxu0  ;;  %6045 = vmatmul.mubr.bf16.gmra.mxu0 %v7151_v40 }
 0x3e2   :  { %10897 = vst [vmem:[#allocation15_spill] sm:$0xff] %v10481_v49  ;;  %v5533_v50 = vadd.f32 %v5532_v13, %v10898_v22  ;;  %v5821_v61 = vpop.f32.mrf.mxu1  ;;  %6334 = vmatmul.mubr.bf16.gmra.mxu1 %v7153_v9  ;;  %6052 = vmatprep.mubr.bf16.mxu0 %v7168_v25  ;;  %v7169_v25 = vcombine.low %v358_v52, %v366_v15 }
 0x3e3   :  { %v5534_v47 = vpop.f32.mrf.mxu0  ;;  %6341 = vmatprep.mubr.bf16.mxu1 %v7170_v44 }
 0x3e4   :  { %v10490_v7 = vadd.f32 %v5821_v61, %v5533_v50  ;;  %v5823_v34 = vpop.f32.mrf.mxu1  ;;  %v382_v47 = vld [vmem:[%s10788_s0 + $0xb78] sm:$0xff]  ;;  %v10902_v50 = vld [vmem:[#allocation19_spill] sm:$0xff] }
 0x3e5   :  { %v5535_v40 = vpop.f32.mrf.mxu0  ;;  %v7186_v62 = vcombine.high %v374_v37, %v382_v47 }
 0x3e6   :  { %10899 = vst [vmem:[#allocation16_spill] sm:$0xff] %v10490_v7  ;;  %v5536_v30 = vadd.f32 %v5535_v40, %v10900_v48  ;;  %v5824_v9 = vpop.f32.mrf.mxu1  ;;  %v390_v40 = vld [vmem:[%s10788_s0 + $0xbb8] sm:$0xff]  ;;  %v7183_v48 = vcombine.low %v373_v11, %v381_v6  ;;  %v405_v11 = vld [vmem:[%s10788_s0 + $0xc30] sm:$0xff] }
 0x3e7   :  { %v5537_v44 = vpop.f32.mrf.mxu0  ;;  %v413_v6 = vld [vmem:[%s10788_s0 + $0xc70] sm:$0xff] }
 0x3e8   :  { %v10499_v61 = vadd.f32 %v5824_v9, %v5536_v30  ;;  %v5826_v13 = vpop.f32.mrf.mxu1  ;;  %v10904_v30 = vld [vmem:[#allocation20_spill] sm:$0xff]  ;;  %v7200_v44 = vcombine.high %v389_v32, %v397_v27 }
 0x3e9   :  { %v5540_v22 = vpop.f32.mrf.mxu0  ;;  %6053 = vmatmul.mubr.bf16.gmra.mxu0 %v7167_v10 }
 0x3ea   :  { %10901 = vst [vmem:[#allocation17_spill] sm:$0xff] %v10499_v61  ;;  %v5541_v34 = vadd.f32 %v5540_v22, %v10902_v50  ;;  %v5829_v7 = vpop.f32.mrf.mxu1  ;;  %6342 = vmatmul.mubr.bf16.gmra.mxu1 %v7169_v25  ;;  %6060 = vmatprep.mubr.bf16.mxu0 %v7184_v3  ;;  %v7185_v3 = vcombine.low %v374_v37, %v382_v47 }
 0x3eb   :  { %v5542_v49 = vpop.f32.mrf.mxu0  ;;  %6349 = vmatprep.mubr.bf16.mxu1 %v7186_v62 }
 0x3ec   :  { %v10508_v52 = vadd.f32 %v5829_v7, %v5541_v34  ;;  %v5831_v15 = vpop.f32.mrf.mxu1  ;;  %v398_v49 = vld [vmem:[%s10788_s0 + $0xbf8] sm:$0xff] }
 0x3ed   :  { %v5543_v10 = vpop.f32.mrf.mxu0  ;;  %v7202_v13 = vcombine.high %v390_v40, %v398_v49  ;;  %v10905_v34 = vld [vmem:[#allocation21_spill] sm:$0xff] }
 0x3ee   :  { %10903 = vst [vmem:[#allocation18_spill] sm:$0xff] %v10508_v52  ;;  %v5544_v9 = vadd.f32 %v5543_v10, %v10904_v30  ;;  %v5832_v25 = vpop.f32.mrf.mxu1  ;;  %v406_v10 = vld [vmem:[%s10788_s0 + $0xc38] sm:$0xff]  ;;  %v7199_v30 = vcombine.low %v389_v32, %v397_v27  ;;  %v429_v32 = vld [vmem:[%s10788_s0 + $0xcf0] sm:$0xff] }
 0x3ef   :  { %v5545_v62 = vpop.f32.mrf.mxu0 }
 0x3f0   :  { %v10517_v7 = vadd.f32 %v5832_v25, %v5544_v9  ;;  %v5834_v22 = vpop.f32.mrf.mxu1 }
 0x3f1   :  { %v5548_v50 = vpop.f32.mrf.mxu0  ;;  %6061 = vmatmul.mubr.bf16.gmra.mxu0 %v7183_v48 }
 0x3f2   :  { %v5549_v15 = vadd.f32 %v5548_v50, %v10905_v34  ;;  %v5837_v52 = vpop.f32.mrf.mxu1  ;;  %6350 = vmatmul.mubr.bf16.gmra.mxu1 %v7185_v3  ;;  %6068 = vmatprep.mubr.bf16.mxu0 %v7200_v44  ;;  %v7201_v3 = vcombine.low %v390_v40, %v398_v49  ;;  %v7216_v44 = vcombine.high %v405_v11, %v413_v6  ;;  %v430_v49 = vld [vmem:[%s10788_s0 + $0xcf8] sm:$0xff] }
 0x3f3   :  { %v5550_v61 = vpop.f32.mrf.mxu0  ;;  %6357 = vmatprep.mubr.bf16.mxu1 %v7202_v13 }
 0x3f4   :  { %v10526_v37 = vadd.f32 %v5837_v52, %v5549_v15  ;;  %v5839_v47 = vpop.f32.mrf.mxu1  ;;  %v414_v61 = vld [vmem:[%s10788_s0 + $0xc78] sm:$0xff] }
 0x3f5   :  { %v5551_v48 = vpop.f32.mrf.mxu0  ;;  %v7218_v13 = vcombine.high %v406_v10, %v414_v61 }
 0x3f6   :  { %v5552_v9 = vadd.f32 %v5551_v48, %v9959_v19  ;;  %v5840_v25 = vpop.f32.mrf.mxu1  ;;  %v421_v19 = vld [vmem:[%s10788_s0 + $0xcb0] sm:$0xff] }
 0x3f7   :  { %v5553_v62 = vpop.f32.mrf.mxu0 }
 0x3f8   :  { %v10535_v52 = vadd.f32 %v5840_v25, %v5552_v9  ;;  %v5842_v22 = vpop.f32.mrf.mxu1 }
 0x3f9   :  { %v5556_v50 = vpop.f32.mrf.mxu0  ;;  %6069 = vmatmul.mubr.bf16.gmra.mxu0 %v7199_v30  ;;  %v7215_v30 = vcombine.low %v405_v11, %v413_v6  ;;  %v445_v11 = vld [vmem:[%s10788_s0 + $0xd70] sm:$0xff] }
 0x3fa   :  { %10906 = vst [vmem:[#allocation19_spill] sm:$0xff] %v10535_v52  ;;  %v5557_v34 = vadd.f32 %v5556_v50, %v9968_v17  ;;  %v5845_v15 = vpop.f32.mrf.mxu1  ;;  %6358 = vmatmul.mubr.bf16.gmra.mxu1 %v7201_v3  ;;  %6076 = vmatprep.mubr.bf16.mxu0 %v7216_v44  ;;  %v422_v17 = vld [vmem:[%s10788_s0 + $0xcb8] sm:$0xff]  ;;  %v7217_v3 = vcombine.low %v406_v10, %v414_v61 }
 0x3fb   :  { %v5558_v47 = vpop.f32.mrf.mxu0  ;;  %6365 = vmatprep.mubr.bf16.mxu1 %v7218_v13  ;;  %v7232_v44 = vcombine.high %v421_v19, %v429_v32  ;;  %v7234_v13 = vcombine.high %v422_v17, %v430_v49  ;;  %v438_v10 = vld [vmem:[%s10788_s0 + $0xd38] sm:$0xff] }
 0x3fc   :  { %v10544_v27 = vadd.f32 %v5845_v15, %v5557_v34  ;;  %v5847_v40 = vpop.f32.mrf.mxu1 }
 0x3fd   :  { %v5559_v48 = vpop.f32.mrf.mxu0 }
 0x3fe   :  { %10907 = vst [vmem:[#allocation20_spill] sm:$0xff] %v10544_v27  ;;  %v5560_v9 = vadd.f32 %v5559_v48, %v9977_v59  ;;  %v5848_v25 = vpop.f32.mrf.mxu1  ;;  %v437_v59 = vld [vmem:[%s10788_s0 + $0xd30] sm:$0xff]  ;;  %v7231_v48 = vcombine.low %v421_v19, %v429_v32 }
 0x3ff   :  { %v5561_v62 = vpop.f32.mrf.mxu0  ;;  %v461_v32 = vld [vmem:[%s10788_s0 + $0xdf0] sm:$0xff] }
 0x400   :  { %v10553_v22 = vadd.f32 %v5848_v25, %v5560_v9  ;;  %v5850_v50 = vpop.f32.mrf.mxu1 }
 0x401   :  { %v5886_v34 = vpop.f32.mrf.mxu0  ;;  %6077 = vmatmul.mubr.bf16.gmra.mxu0 %v7215_v30 }
 0x402   :  { %10908 = vst [vmem:[#allocation21_spill] sm:$0xff] %v10553_v22  ;;  %v5887_v15 = vadd.f32 %v5886_v34, %v9986_v12  ;;  %v6175_v47 = vpop.f32.mrf.mxu1  ;;  %6366 = vmatmul.mubr.bf16.gmra.mxu1 %v7217_v3  ;;  %6084 = vmatprep.mubr.bf16.mxu0 %v7232_v44  ;;  %v446_v12 = vld [vmem:[%s10788_s0 + $0xd78] sm:$0xff]  ;;  %v7233_v3 = vcombine.low %v422_v17, %v430_v49 }
 0x403   :  { %v5888_v40 = vpop.f32.mrf.mxu0  ;;  %6373 = vmatprep.mubr.bf16.mxu1 %v7234_v13  ;;  %v7248_v44 = vcombine.high %v437_v59, %v445_v11  ;;  %v7250_v13 = vcombine.high %v438_v10, %v446_v12 }
 0x404   :  { %v6177_v6 = vpop.f32.mrf.mxu1  ;;  %v6176_v30 = vadd.f32 %v6175_v47, %v5887_v15  ;;  %v454_v15 = vld [vmem:[%s10788_s0 + $0xdb8] sm:$0xff] }
 0x405   :  { %v5889_v61 = vpop.f32.mrf.mxu0 }
 0x406   :  { %v5890_v9 = vadd.f32 %v5889_v61, %v9995_v42  ;;  %v6178_v25 = vpop.f32.mrf.mxu1  ;;  %v6430_v6 = vmax.f32 %v6176_v30, 0.0  ;;  %v453_v42 = vld [vmem:[%s10788_s0 + $0xdb0] sm:$0xff]  ;;  %v7247_v61 = vcombine.low %v437_v59, %v445_v11 }
 0x407   :  { %v5891_v62 = vpop.f32.mrf.mxu0 }
 0x408   :  { %v6179_v50 = vadd.f32 %v6178_v25, %v5890_v9  ;;  %v6180_v34 = vpop.f32.mrf.mxu1  ;;  %v7264_v25 = vcombine.high %v453_v42, %v461_v32 }
 0x409   :  { %v5894_v40 = vpop.f32.mrf.mxu0  ;;  %6085 = vmatmul.mubr.bf16.gmra.mxu0 %v7231_v48 }
 0x40a   :  { %v6431_v22 = vmax.f32 %v6179_v50, 0.0  ;;  %v5895_v27 = vadd.f32 %v5894_v40, %v10004_v33  ;;  %v6183_v52 = vpop.f32.mrf.mxu1  ;;  %6374 = vmatmul.mubr.bf16.gmra.mxu1 %v7233_v3  ;;  %6092 = vmatprep.mubr.bf16.mxu0 %v7248_v44  ;;  %v462_v33 = vld [vmem:[%s10788_s0 + $0xdf8] sm:$0xff] }
 0x40b   :  { %v5896_v19 = vpop.f32.mrf.mxu0  ;;  %6381 = vmatprep.mubr.bf16.mxu1 %v7250_v13  ;;  %v7266_v44 = vcombine.high %v454_v15, %v462_v33 }
 0x40c   :  { %v7590_v17 = vpack.c.bf16 %v6431_v22, %v6430_v6  ;;  %v6185_v49 = vpop.f32.mrf.mxu1  ;;  %v6184_v48 = vadd.f32 %v6183_v52, %v5895_v27  ;;  %v7249_v22 = vcombine.low %v438_v10, %v446_v12  ;;  %v477_v52 = vld [vmem:[%s10788_s0 + $0xe70] sm:$0xff]  ;;  %v470_v12 = vld [vmem:[%s10788_s0 + $0xe38] sm:$0xff] }
 0x40d   :  { %v5897_v47 = vpop.f32.mrf.mxu0 }
 0x40e   :  { %7591 = vst [vmem:[%s10790_s3] sm:$0xff] %v7590_v17   ;;  %v5898_v30 = vadd.f32 %v5897_v47, %v10013_v46  ;;  %v6186_v9 = vpop.f32.mrf.mxu1  ;;  %v6432_v34 = vmax.f32 %v6184_v48, 0.0  ;;  %v469_v46 = vld [vmem:[%s10788_s0 + $0xe30] sm:$0xff]  ;;  %v7263_v17 = vcombine.low %v453_v42, %v461_v32  ;;  %v7265_v48 = vcombine.low %v454_v15, %v462_v33 }
 0x40f   :  { %v5899_v3 = vpop.f32.mrf.mxu0  ;;  %v493_v15 = vld [vmem:[%s10788_s0 + $0xef0] sm:$0xff] }
 0x410   :  { %v6187_v62 = vadd.f32 %v6186_v9, %v5898_v30  ;;  %v6188_v13 = vpop.f32.mrf.mxu1  ;;  %v7280_v30 = vcombine.high %v469_v46, %v477_v52 }
 0x411   :  { %v5902_v50 = vpop.f32.mrf.mxu0  ;;  %6093 = vmatmul.mubr.bf16.gmra.mxu0 %v7247_v61 }
 0x412   :  { %v6433_v40 = vmax.f32 %v6187_v62, 0.0  ;;  %v5903_v59 = vadd.f32 %v5902_v50, %v10022_v5  ;;  %v6191_v11 = vpop.f32.mrf.mxu1  ;;  %6382 = vmatmul.mubr.bf16.gmra.mxu1 %v7249_v22  ;;  %6100 = vmatprep.mubr.bf16.mxu0 %v7264_v25  ;;  %v478_v5 = vld [vmem:[%s10788_s0 + $0xe78] sm:$0xff] }
 0x413   :  { %v5904_v6 = vpop.f32.mrf.mxu0  ;;  %6389 = vmatprep.mubr.bf16.mxu1 %v7266_v44  ;;  %v7282_v22 = vcombine.high %v470_v12, %v478_v5 }
 0x414   :  { %v7595_v27 = vpack.c.bf16 %v6433_v40, %v6432_v34  ;;  %v6193_v10 = vpop.f32.mrf.mxu1  ;;  %v6192_v49 = vadd.f32 %v6191_v11, %v5903_v59  ;;  %v486_v40 = vld [vmem:[%s10788_s0 + $0xeb8] sm:$0xff]  ;;  %v7279_v11 = vcombine.low %v469_v46, %v477_v52 }
 0x415   :  { %v5905_v19 = vpop.f32.mrf.mxu0 }
 0x416   :  { %7747 = vst [vmem:[%s10790_s3 + $0x8] sm:$0xff] %v7595_v27   ;;  %v5906_v47 = vadd.f32 %v5905_v19, %v10031_v53  ;;  %v6194_v61 = vpop.f32.mrf.mxu1  ;;  %v6434_v62 = vmax.f32 %v6192_v49, 0.0  ;;  %v485_v53 = vld [vmem:[%s10788_s0 + $0xeb0] sm:$0xff]  ;;  %v7281_v19 = vcombine.low %v470_v12, %v478_v5 }
 0x417   :  { %v5907_v9 = vpop.f32.mrf.mxu0  ;;  %v509_v12 = vld [vmem:[%s10788_s0 + $0xf70] sm:$0xff] }
 0x418   :  { %v6195_v25 = vadd.f32 %v6194_v61, %v5906_v47  ;;  %v6196_v3 = vpop.f32.mrf.mxu1 }
 0x419   :  { %v5910_v44 = vpop.f32.mrf.mxu0  ;;  %6101 = vmatmul.mubr.bf16.gmra.mxu0 %v7263_v17  ;;  %v7296_v17 = vcombine.high %v485_v53, %v493_v15 }
 0x41a   :  { %v6435_v13 = vmax.f32 %v6195_v25, 0.0  ;;  %v5911_v42 = vadd.f32 %v5910_v44, %v10040_v57  ;;  %v6199_v32 = vpop.f32.mrf.mxu1  ;;  %6390 = vmatmul.mubr.bf16.gmra.mxu1 %v7265_v48  ;;  %6108 = vmatprep.mubr.bf16.mxu0 %v7280_v30  ;;  %v494_v57 = vld [vmem:[%s10788_s0 + $0xef8] sm:$0xff] }
 0x41b   :  { %v5912_v50 = vpop.f32.mrf.mxu0  ;;  %6397 = vmatprep.mubr.bf16.mxu1 %v7282_v22  ;;  %v7298_v47 = vcombine.high %v486_v40, %v494_v57  ;;  %v502_v44 = vld [vmem:[%s10788_s0 + $0xf38] sm:$0xff] }
 0x41c   :  { %v7600_v33 = vpack.c.bf16 %v6435_v13, %v6434_v62  ;;  %v6201_v34 = vpop.f32.mrf.mxu1  ;;  %v6200_v6 = vadd.f32 %v6199_v32, %v5911_v42  ;;  %v7295_v13 = vcombine.low %v485_v53, %v493_v15 }
 0x41d   :  { %v5913_v59 = vpop.f32.mrf.mxu0 }
 0x41e   :  { %7748 = vst [vmem:[%s10790_s3 + $0x10] sm:$0xff] %v7600_v33   ;;  %v5914_v27 = vadd.f32 %v5913_v59, %v10049_v43  ;;  %v6202_v10 = vpop.f32.mrf.mxu1  ;;  %v6436_v9 = vmax.f32 %v6200_v6, 0.0  ;;  %v501_v43 = vld [vmem:[%s10788_s0 + $0xf30] sm:$0xff]  ;;  %v7297_v33 = vcombine.low %v486_v40, %v494_v57 }
 0x41f   :  { %v5915_v49 = vpop.f32.mrf.mxu0  ;;  %v7312_v34 = vcombine.high %v501_v43, %v509_v12  ;;  %v525_v40 = vld [vmem:[%s10788_s0 + $0xff0] sm:$0xff] }
 0x420   :  { %v6203_v61 = vadd.f32 %v6202_v10, %v5914_v27  ;;  %v6204_v48 = vpop.f32.mrf.mxu1 }
 0x421   :  { %v5918_v30 = vpop.f32.mrf.mxu0  ;;  %6109 = vmatmul.mubr.bf16.gmra.mxu0 %v7279_v11 }
 0x422   :  { %v6437_v22 = vmax.f32 %v6203_v61, 0.0  ;;  %v5919_v46 = vadd.f32 %v5918_v30, %v10058_v56  ;;  %v6207_v52 = vpop.f32.mrf.mxu1  ;;  %6398 = vmatmul.mubr.bf16.gmra.mxu1 %v7281_v19  ;;  %6116 = vmatprep.mubr.bf16.mxu0 %v7296_v17  ;;  %v510_v56 = vld [vmem:[%s10788_s0 + $0xf78] sm:$0xff]  ;;  %v7311_v30 = vcombine.low %v501_v43, %v509_v12 }
 0x423   :  { %v5920_v25 = vpop.f32.mrf.mxu0  ;;  %6405 = vmatprep.mubr.bf16.mxu1 %v7298_v47  ;;  %v7314_v11 = vcombine.high %v502_v44, %v510_v56  ;;  %v518_v61 = vld [vmem:[%s10788_s0 + $0xfb8] sm:$0xff] }
 0x424   :  { %v7605_v5 = vpack.c.bf16 %v6437_v22, %v6436_v9  ;;  %v6209_v3 = vpop.f32.mrf.mxu1  ;;  %v6208_v42 = vadd.f32 %v6207_v52, %v5919_v46  ;;  %v7313_v52 = vcombine.low %v502_v44, %v510_v56 }
 0x425   :  { %v5921_v62 = vpop.f32.mrf.mxu0 }
 0x426   :  { %7749 = vst [vmem:[%s10790_s3 + $0x18] sm:$0xff] %v7605_v5   ;;  %v5922_v32 = vadd.f32 %v5921_v62, %v10067_v45  ;;  %v6210_v50 = vpop.f32.mrf.mxu1  ;;  %v6438_v19 = vmax.f32 %v6208_v42, 0.0  ;;  %v517_v45 = vld [vmem:[%s10788_s0 + $0xfb0] sm:$0xff] }
 0x427   :  { %v5923_v59 = vpop.f32.mrf.mxu0  ;;  %v7328_v25 = vcombine.high %v517_v45, %v525_v40  ;;  %v7327_v44 = vcombine.low %v517_v45, %v525_v40 }
 0x428   :  { %v6211_v6 = vadd.f32 %v6210_v50, %v5922_v32  ;;  %v6212_v27 = vpop.f32.mrf.mxu1 }
 0x429   :  { %v5926_v10 = vpop.f32.mrf.mxu0  ;;  %6117 = vmatmul.mubr.bf16.gmra.mxu0 %v7295_v13 }
 0x42a   :  { %v6439_v17 = vmax.f32 %v6211_v6, 0.0  ;;  %v5927_v53 = vadd.f32 %v5926_v10, %v10076_v31  ;;  %v6215_v15 = vpop.f32.mrf.mxu1  ;;  %6406 = vmatmul.mubr.bf16.gmra.mxu1 %v7297_v33  ;;  %6124 = vmatprep.mubr.bf16.mxu0 %v7312_v34  ;;  %v526_v31 = vld [vmem:[%s10788_s0 + $0xff8] sm:$0xff] }
 0x42b   :  { %v5928_v49 = vpop.f32.mrf.mxu0  ;;  %6413 = vmatprep.mubr.bf16.mxu1 %v7314_v11  ;;  %v7330_v3 = vcombine.high %v518_v61, %v526_v31  ;;  %v7329_v27 = vcombine.low %v518_v61, %v526_v31 }
 0x42c   :  { %v7610_v57 = vpack.c.bf16 %v6439_v17, %v6438_v19  ;;  %v6217_v47 = vpop.f32.mrf.mxu1  ;;  %v6216_v9 = vadd.f32 %v6215_v15, %v5927_v53 }
 0x42d   :  { %v5929_v48 = vpop.f32.mrf.mxu0 }
 0x42e   :  { %7750 = vst [vmem:[%s10790_s3 + $0x20] sm:$0xff] %v7610_v57   ;;  %v5930_v22 = vadd.f32 %v5929_v48, %v10085_v54  ;;  %v6218_v46 = vpop.f32.mrf.mxu1  ;;  %v6440_v32 = vmax.f32 %v6216_v9, 0.0 }
 0x42f   :  { %v5931_v5 = vpop.f32.mrf.mxu0 }
 0x430   :  { %v6219_v62 = vadd.f32 %v6218_v46, %v5930_v22  ;;  %v6220_v13 = vpop.f32.mrf.mxu1 }
 0x431   :  { %v5934_v42 = vpop.f32.mrf.mxu0  ;;  %6125 = vmatmul.mubr.bf16.gmra.mxu0 %v7311_v30 }
 0x432   :  { %v6441_v50 = vmax.f32 %v6219_v62, 0.0  ;;  %v5935_v43 = vadd.f32 %v5934_v42, %v10094_v14  ;;  %v6223_v12 = vpop.f32.mrf.mxu1  ;;  %6414 = vmatmul.mubr.bf16.gmra.mxu1 %v7313_v52  ;;  %6132 = vmatprep.mubr.bf16.mxu0 %v7328_v25 }
 0x433   :  { %v5936_v33 = vpop.f32.mrf.mxu0  ;;  %6421 = vmatprep.mubr.bf16.mxu1 %v7330_v3 }
 0x434   :  { %v7615_v34 = vpack.c.bf16 %v6441_v50, %v6440_v32  ;;  %v6225_v54 = vpop.f32.mrf.mxu1  ;;  %v6224_v56 = vadd.f32 %v6223_v12, %v5935_v43 }
 0x435   :  { %v5937_v59 = vpop.f32.mrf.mxu0 }
 0x436   :  { %7751 = vst [vmem:[%s10790_s3 + $0x28] sm:$0xff] %v7615_v34   ;;  %v5938_v11 = vadd.f32 %v5937_v59, %v10103_v51  ;;  %v6226_v6 = vpop.f32.mrf.mxu1  ;;  %v6442_v53 = vmax.f32 %v6224_v56, 0.0 }
 0x437   :  { %v5939_v10 = vpop.f32.mrf.mxu0 }
 0x438   :  { %v6227_v14 = vadd.f32 %v6226_v6, %v5938_v11  ;;  %v6228_v19 = vpop.f32.mrf.mxu1 }
 0x439   :  { %v5942_v17 = vpop.f32.mrf.mxu0  ;;  %6133 = vmatmul.mubr.bf16.gmra.mxu0 %v7327_v44 }
 0x43a   :  { %v6443_v15 = vmax.f32 %v6227_v14, 0.0  ;;  %v5943_v49 = vadd.f32 %v5942_v17, %v10112_v1  ;;  %v6231_v57 = vpop.f32.mrf.mxu1  ;;  %6422 = vmatmul.mubr.bf16.gmra.mxu1 %v7329_v27 }
 0x43b   :  { %v5944_v45 = vpop.f32.mrf.mxu0 }
 0x43c   :  { %v7620_v40 = vpack.c.bf16 %v6443_v15, %v6442_v53  ;;  %v6233_v47 = vpop.f32.mrf.mxu1  ;;  %v6232_v51 = vadd.f32 %v6231_v57, %v5943_v49 }
 0x43d   :  { %v5945_v48 = vpop.f32.mrf.mxu0 }
 0x43e   :  { %7752 = vst [vmem:[%s10790_s3 + $0x30] sm:$0xff] %v7620_v40   ;;  %v5946_v61 = vadd.f32 %v5945_v48, %v10121_v39  ;;  %v6234_v31 = vpop.f32.mrf.mxu1  ;;  %v6444_v52 = vmax.f32 %v6232_v51, 0.0 }
 0x43f   :  { %v5947_v30 = vpop.f32.mrf.mxu0 }
 0x440   :  { %v6235_v9 = vadd.f32 %v6234_v31, %v5946_v61  ;;  %v6236_v22 = vpop.f32.mrf.mxu1 }
 0x441   :  { %v5950_v46 = vpop.f32.mrf.mxu0 }
 0x442   :  { %v6445_v1 = vmax.f32 %v6235_v9, 0.0  ;;  %v5951_v25 = vadd.f32 %v5950_v46, %v10130_v2  ;;  %v6239_v5 = vpop.f32.mrf.mxu1 }
 0x443   :  { %v5952_v3 = vpop.f32.mrf.mxu0 }
 0x444   :  { %v7625_v62 = vpack.c.bf16 %v6445_v1, %v6444_v52  ;;  %v6241_v13 = vpop.f32.mrf.mxu1  ;;  %v6240_v32 = vadd.f32 %v6239_v5, %v5951_v25 }
 0x445   :  { %v5953_v42 = vpop.f32.mrf.mxu0 }
 0x446   :  { %7753 = vst [vmem:[%s10790_s3 + $0x38] sm:$0xff] %v7625_v62   ;;  %v5954_v39 = vadd.f32 %v5953_v42, %v10139_v16  ;;  %v6242_v50 = vpop.f32.mrf.mxu1  ;;  %v6446_v54 = vmax.f32 %v6240_v32, 0.0 }
 0x447   :  { %v5955_v43 = vpop.f32.mrf.mxu0 }
 0x448   :  { %v6243_v12 = vadd.f32 %v6242_v50, %v5954_v39  ;;  %v6244_v33 = vpop.f32.mrf.mxu1 }
 0x449   :  { %v5958_v34 = vpop.f32.mrf.mxu0 }
 0x44a   :  { %v6447_v59 = vmax.f32 %v6243_v12, 0.0  ;;  %v5959_v2 = vadd.f32 %v5958_v34, %v10148_v28  ;;  %v6247_v44 = vpop.f32.mrf.mxu1 }
 0x44b   :  { %v5960_v56 = vpop.f32.mrf.mxu0 }
 0x44c   :  { %v7630_v11 = vpack.c.bf16 %v6447_v59, %v6446_v54  ;;  %v6249_v6 = vpop.f32.mrf.mxu1  ;;  %v6248_v10 = vadd.f32 %v6247_v44, %v5959_v2 }
 0x44d   :  { %v5961_v27 = vpop.f32.mrf.mxu0 }
 0x44e   :  { %7754 = vst [vmem:[%s10790_s3 + $0x40] sm:$0xff] %v7630_v11   ;;  %v5962_v16 = vadd.f32 %v5961_v27, %v10157_v36  ;;  %v6250_v14 = vpop.f32.mrf.mxu1  ;;  %v6448_v49 = vmax.f32 %v6248_v10, 0.0 }
 0x44f   :  { %v5963_v19 = vpop.f32.mrf.mxu0 }
 0x450   :  { %v6251_v17 = vadd.f32 %v6250_v14, %v5962_v16  ;;  %v6252_v53 = vpop.f32.mrf.mxu1 }
 0x451   :  { %v5966_v15 = vpop.f32.mrf.mxu0 }
 0x452   :  { %v6449_v57 = vmax.f32 %v6251_v17, 0.0  ;;  %v5967_v28 = vadd.f32 %v5966_v15, %v10166_v41  ;;  %v6255_v45 = vpop.f32.mrf.mxu1 }
 0x453   :  { %v5968_v40 = vpop.f32.mrf.mxu0 }
 0x454   :  { %v7635_v47 = vpack.c.bf16 %v6449_v57, %v6448_v49  ;;  %v6257_v48 = vpop.f32.mrf.mxu1  ;;  %v6256_v61 = vadd.f32 %v6255_v45, %v5967_v28 }
 0x455   :  { %v5969_v51 = vpop.f32.mrf.mxu0 }
 0x456   :  { %7755 = vst [vmem:[%s10790_s3 + $0x48] sm:$0xff] %v7635_v47   ;;  %v5970_v36 = vadd.f32 %v5969_v51, %v10175_v4  ;;  %v6258_v31 = vpop.f32.mrf.mxu1  ;;  %v6450_v52 = vmax.f32 %v6256_v61, 0.0 }
 0x457   :  { %v5971_v30 = vpop.f32.mrf.mxu0 }
 0x458   :  { %v6259_v9 = vadd.f32 %v6258_v31, %v5970_v36  ;;  %v6260_v22 = vpop.f32.mrf.mxu1 }
 0x459   :  { %v5974_v46 = vpop.f32.mrf.mxu0 }
 0x45a   :  { %v6451_v1 = vmax.f32 %v6259_v9, 0.0  ;;  %v5975_v41 = vadd.f32 %v5974_v46, %v10184_v63  ;;  %v6263_v25 = vpop.f32.mrf.mxu1 }
 0x45b   :  { %v5976_v5 = vpop.f32.mrf.mxu0 }
 0x45c   :  { %v7640_v3 = vpack.c.bf16 %v6451_v1, %v6450_v52  ;;  %v6265_v62 = vpop.f32.mrf.mxu1  ;;  %v6264_v42 = vadd.f32 %v6263_v25, %v5975_v41 }
 0x45d   :  { %v5977_v13 = vpop.f32.mrf.mxu0 }
 0x45e   :  { %7756 = vst [vmem:[%s10790_s3 + $0x50] sm:$0xff] %v7640_v3   ;;  %v5978_v4 = vadd.f32 %v5977_v13, %v10193_v35  ;;  %v6266_v32 = vpop.f32.mrf.mxu1  ;;  %v6452_v33 = vmax.f32 %v6264_v42, 0.0 }
 0x45f   :  { %v5979_v39 = vpop.f32.mrf.mxu0 }
 0x460   :  { %v6267_v50 = vadd.f32 %v6266_v32, %v5978_v4  ;;  %v6268_v43 = vpop.f32.mrf.mxu1 }
 0x461   :  { %v5982_v12 = vpop.f32.mrf.mxu0 }
 0x462   :  { %v6453_v34 = vmax.f32 %v6267_v50, 0.0  ;;  %v5983_v63 = vadd.f32 %v5982_v12, %v10202_v23  ;;  %v6271_v54 = vpop.f32.mrf.mxu1 }
 0x463   :  { %v5984_v59 = vpop.f32.mrf.mxu0 }
 0x464   :  { %v7645_v2 = vpack.c.bf16 %v6453_v34, %v6452_v33  ;;  %v6273_v44 = vpop.f32.mrf.mxu1  ;;  %v6272_v11 = vadd.f32 %v6271_v54, %v5983_v63 }
 0x465   :  { %v5985_v56 = vpop.f32.mrf.mxu0 }
 0x466   :  { %7757 = vst [vmem:[%s10790_s3 + $0x58] sm:$0xff] %v7645_v2   ;;  %v5986_v35 = vadd.f32 %v5985_v56, %v10211_v38  ;;  %v6274_v6 = vpop.f32.mrf.mxu1  ;;  %v6454_v19 = vmax.f32 %v6272_v11, 0.0 }
 0x467   :  { %v5987_v27 = vpop.f32.mrf.mxu0 }
 0x468   :  { %v6275_v10 = vadd.f32 %v6274_v6, %v5986_v35  ;;  %v6276_v16 = vpop.f32.mrf.mxu1 }
 0x469   :  { %v5990_v14 = vpop.f32.mrf.mxu0 }
 0x46a   :  { %v6455_v17 = vmax.f32 %v6275_v10, 0.0  ;;  %v5991_v23 = vadd.f32 %v5990_v14, %v10220_v24  ;;  %v6279_v53 = vpop.f32.mrf.mxu1 }
 0x46b   :  { %v5992_v15 = vpop.f32.mrf.mxu0 }
 0x46c   :  { %v7650_v49 = vpack.c.bf16 %v6455_v17, %v6454_v19  ;;  %v6281_v57 = vpop.f32.mrf.mxu1  ;;  %v6280_v45 = vadd.f32 %v6279_v53, %v5991_v23 }
 0x46d   :  { %v5993_v28 = vpop.f32.mrf.mxu0 }
 0x46e   :  { %7758 = vst [vmem:[%s10790_s3 + $0x60] sm:$0xff] %v7650_v49   ;;  %v5994_v38 = vadd.f32 %v5993_v28, %v10229_v58  ;;  %v6282_v40 = vpop.f32.mrf.mxu1  ;;  %v6456_v36 = vmax.f32 %v6280_v45, 0.0 }
 0x46f   :  { %v5995_v47 = vpop.f32.mrf.mxu0 }
 0x470   :  { %v6283_v48 = vadd.f32 %v6282_v40, %v5994_v38  ;;  %v6284_v51 = vpop.f32.mrf.mxu1 }
 0x471   :  { %v5998_v61 = vpop.f32.mrf.mxu0 }
 0x472   :  { %v6457_v31 = vmax.f32 %v6283_v48, 0.0  ;;  %v5999_v24 = vadd.f32 %v5998_v61, %v10238_v55  ;;  %v6287_v30 = vpop.f32.mrf.mxu1 }
 0x473   :  { %v6000_v9 = vpop.f32.mrf.mxu0 }
 0x474   :  { %v7655_v22 = vpack.c.bf16 %v6457_v31, %v6456_v36  ;;  %v6289_v46 = vpop.f32.mrf.mxu1  ;;  %v6288_v1 = vadd.f32 %v6287_v30, %v5999_v24 }
 0x475   :  { %v6001_v52 = vpop.f32.mrf.mxu0 }
 0x476   :  { %7759 = vst [vmem:[%s10790_s3 + $0x68] sm:$0xff] %v7655_v22   ;;  %v6002_v58 = vadd.f32 %v6001_v52, %v10247_v60  ;;  %v6290_v41 = vpop.f32.mrf.mxu1  ;;  %v6458_v13 = vmax.f32 %v6288_v1, 0.0 }
 0x477   :  { %v6003_v25 = vpop.f32.mrf.mxu0 }
 0x478   :  { %v6291_v5 = vadd.f32 %v6290_v41, %v6002_v58  ;;  %v6292_v3 = vpop.f32.mrf.mxu1 }
 0x479   :  { %v6006_v62 = vpop.f32.mrf.mxu0 }
 0x47a   :  { %v6459_v42 = vmax.f32 %v6291_v5, 0.0  ;;  %v6007_v55 = vadd.f32 %v6006_v62, %v10256_v21  ;;  %v6295_v4 = vpop.f32.mrf.mxu1 }
 0x47b   :  { %v6008_v32 = vpop.f32.mrf.mxu0 }
 0x47c   :  { %v7660_v39 = vpack.c.bf16 %v6459_v42, %v6458_v13  ;;  %v6297_v50 = vpop.f32.mrf.mxu1  ;;  %v6296_v12 = vadd.f32 %v6295_v4, %v6007_v55  ;;  %v10911_v4 = vld [vmem:[#allocation24_spill] sm:$0xff] }
 0x47d   :  { %v6009_v43 = vpop.f32.mrf.mxu0 }
 0x47e   :  { %7760 = vst [vmem:[%s10790_s3 + $0x70] sm:$0xff] %v7660_v39   ;;  %v6010_v60 = vadd.f32 %v6009_v43, %v10265_v18  ;;  %v6298_v33 = vpop.f32.mrf.mxu1  ;;  %v6460_v2 = vmax.f32 %v6296_v12, 0.0 }
 0x47f   :  { %v6011_v34 = vpop.f32.mrf.mxu0 }
 0x480   :  { %v6299_v63 = vadd.f32 %v6298_v33, %v6010_v60  ;;  %v6300_v54 = vpop.f32.mrf.mxu1  ;;  %v10912_v34 = vld [vmem:[#allocation25_spill] sm:$0xff] }
 0x481   :  { %v6014_v59 = vpop.f32.mrf.mxu0 }
 0x482   :  { %v6461_v44 = vmax.f32 %v6299_v63, 0.0  ;;  %v6015_v21 = vadd.f32 %v6014_v59, %v10274_v29  ;;  %v6303_v56 = vpop.f32.mrf.mxu1 }
 0x483   :  { %v6016_v11 = vpop.f32.mrf.mxu0 }
 0x484   :  { %v7665_v35 = vpack.c.bf16 %v6461_v44, %v6460_v2  ;;  %v6305_v6 = vpop.f32.mrf.mxu1  ;;  %v6304_v10 = vadd.f32 %v6303_v56, %v6015_v21 }
 0x485   :  { %v6017_v27 = vpop.f32.mrf.mxu0 }
 0x486   :  { %7761 = vst [vmem:[%s10790_s3 + $0x78] sm:$0xff] %v7665_v35   ;;  %v6018_v18 = vadd.f32 %v6017_v27, %v10283_v0  ;;  %v6306_v16 = vpop.f32.mrf.mxu1  ;;  %v6462_v53 = vmax.f32 %v6304_v10, 0.0  ;;  %v10913_v35 = vld [vmem:[#allocation26_spill] sm:$0xff] }
 0x487   :  { %v6019_v14 = vpop.f32.mrf.mxu0 }
 0x488   :  { %v6307_v19 = vadd.f32 %v6306_v16, %v6018_v18  ;;  %v6308_v17 = vpop.f32.mrf.mxu1 }
 0x489   :  { %v6022_v23 = vpop.f32.mrf.mxu0  ;;  %v10914_v17 = vld [vmem:[#allocation2_spill] sm:$0xff] }
 0x48a   :  { %v6463_v15 = vmax.f32 %v6307_v19, 0.0  ;;  %v6023_v29 = vadd.f32 %v6022_v23, %v10292_v26  ;;  %v6311_v49 = vpop.f32.mrf.mxu1  ;;  %v10909_v26 = vld [vmem:[#allocation22_spill] sm:$0xff] }
 0x48b   :  { %v6024_v57 = vpop.f32.mrf.mxu0 }
 0x48c   :  { %v7670_v28 = vpack.c.bf16 %v6463_v15, %v6462_v53  ;;  %v6313_v45 = vpop.f32.mrf.mxu1  ;;  %v6312_v40 = vadd.f32 %v6311_v49, %v6023_v29 }
 0x48d   :  { %v6025_v38 = vpop.f32.mrf.mxu0 }
 0x48e   :  { %7762 = vst [vmem:[%s10790_s3 + $0x80] sm:$0xff] %v7670_v28   ;;  %v6026_v0 = vadd.f32 %v6025_v38, %v10301_v20  ;;  %v6314_v47 = vpop.f32.mrf.mxu1  ;;  %v6464_v31 = vmax.f32 %v6312_v40, 0.0  ;;  %v10910_v20 = vld [vmem:[#allocation23_spill] sm:$0xff] }
 0x48f   :  { %v6027_v48 = vpop.f32.mrf.mxu0  ;;  %v10915_v38 = vld [vmem:[#allocation3_spill] sm:$0xff] }
 0x490   :  { %v6315_v51 = vadd.f32 %v6314_v47, %v6026_v0  ;;  %v6316_v61 = vpop.f32.mrf.mxu1 }
 0x491   :  { %v6030_v36 = vpop.f32.mrf.mxu0 }
 0x492   :  { %v6465_v24 = vmax.f32 %v6315_v51, 0.0  ;;  %v6031_v30 = vadd.f32 %v6030_v36, %v10909_v26  ;;  %v6319_v9 = vpop.f32.mrf.mxu1 }
 0x493   :  { %v6032_v22 = vpop.f32.mrf.mxu0 }
 0x494   :  { %v7675_v46 = vpack.c.bf16 %v6465_v24, %v6464_v31  ;;  %v6321_v52 = vpop.f32.mrf.mxu1  ;;  %v6320_v58 = vadd.f32 %v6319_v9, %v6031_v30 }
 0x495   :  { %v6033_v1 = vpop.f32.mrf.mxu0 }
 0x496   :  { %7763 = vst [vmem:[%s10790_s3 + $0x88] sm:$0xff] %v7675_v46   ;;  %v6034_v41 = vadd.f32 %v6033_v1, %v10910_v20  ;;  %v6322_v25 = vpop.f32.mrf.mxu1  ;;  %v6466_v42 = vmax.f32 %v6320_v58, 0.0  ;;  %v10916_v1 = vld [vmem:[#allocation4_spill] sm:$0xff] }
 0x497   :  { %v6035_v5 = vpop.f32.mrf.mxu0 }
 0x498   :  { %v6323_v3 = vadd.f32 %v6322_v25, %v6034_v41  ;;  %v6324_v62 = vpop.f32.mrf.mxu1 }
 0x499   :  { %v6038_v13 = vpop.f32.mrf.mxu0 }
 0x49a   :  { %v6467_v55 = vmax.f32 %v6323_v3, 0.0  ;;  %v6039_v32 = vadd.f32 %v6038_v13, %v10911_v4  ;;  %v6327_v39 = vpop.f32.mrf.mxu1 }
 0x49b   :  { %v6040_v50 = vpop.f32.mrf.mxu0 }
 0x49c   :  { %v7680_v43 = vpack.c.bf16 %v6467_v55, %v6466_v42  ;;  %v6329_v12 = vpop.f32.mrf.mxu1  ;;  %v6328_v33 = vadd.f32 %v6327_v39, %v6039_v32 }
 0x49d   :  { %v6041_v60 = vpop.f32.mrf.mxu0  ;;  %v10918_v12 = vld [vmem:[#allocation6_spill] sm:$0xff] }
 0x49e   :  { %7764 = vst [vmem:[%s10790_s3 + $0x90] sm:$0xff] %v7680_v43   ;;  %v6042_v63 = vadd.f32 %v6041_v60, %v10912_v34  ;;  %v6330_v54 = vpop.f32.mrf.mxu1  ;;  %v6468_v56 = vmax.f32 %v6328_v33, 0.0 }
 0x49f   :  { %v6043_v59 = vpop.f32.mrf.mxu0 }
 0x4a0   :  { %v6331_v2 = vadd.f32 %v6330_v54, %v6042_v63  ;;  %v6332_v44 = vpop.f32.mrf.mxu1 }
 0x4a1   :  { %v6046_v21 = vpop.f32.mrf.mxu0  ;;  %v10919_v44 = vld [vmem:[#allocation7_spill] sm:$0xff] }
 0x4a2   :  { %v6469_v11 = vmax.f32 %v6331_v2, 0.0  ;;  %v6047_v6 = vadd.f32 %v6046_v21, %v10913_v35  ;;  %v6335_v27 = vpop.f32.mrf.mxu1 }
 0x4a3   :  { %v6048_v10 = vpop.f32.mrf.mxu0 }
 0x4a4   :  { %v7685_v18 = vpack.c.bf16 %v6469_v11, %v6468_v56  ;;  %v6337_v16 = vpop.f32.mrf.mxu1  ;;  %v6336_v19 = vadd.f32 %v6335_v27, %v6047_v6 }
 0x4a5   :  { %v6049_v14 = vpop.f32.mrf.mxu0  ;;  %v10920_v16 = vld [vmem:[#allocation8_spill] sm:$0xff] }
 0x4a6   :  { %7765 = vst [vmem:[%s10790_s3 + $0x98] sm:$0xff] %v7685_v18   ;;  %v6050_v23 = vadd.f32 %v6049_v14, %v10914_v17  ;;  %v6338_v53 = vpop.f32.mrf.mxu1  ;;  %v6470_v28 = vmax.f32 %v6336_v19, 0.0 }
 0x4a7   :  { %v6051_v15 = vpop.f32.mrf.mxu0 }
 0x4a8   :  { %v6339_v29 = vadd.f32 %v6338_v53, %v6050_v23  ;;  %v6340_v49 = vpop.f32.mrf.mxu1 }
 0x4a9   :  { %v6054_v57 = vpop.f32.mrf.mxu0  ;;  %v10921_v49 = vld [vmem:[#allocation9_spill] sm:$0xff] }
 0x4aa   :  { %v6471_v45 = vmax.f32 %v6339_v29, 0.0  ;;  %v6055_v40 = vadd.f32 %v6054_v57, %v10915_v38  ;;  %v6343_v0 = vpop.f32.mrf.mxu1 }
 0x4ab   :  { %v6056_v47 = vpop.f32.mrf.mxu0 }
 0x4ac   :  { %v7690_v48 = vpack.c.bf16 %v6471_v45, %v6470_v28  ;;  %v6345_v51 = vpop.f32.mrf.mxu1  ;;  %v6344_v36 = vadd.f32 %v6343_v0, %v6055_v40 }
 0x4ad   :  { %v6057_v61 = vpop.f32.mrf.mxu0  ;;  %v10922_v51 = vld [vmem:[#allocation10_spill] sm:$0xff] }
 0x4ae   :  { %7766 = vst [vmem:[%s10790_s3 + $0xa0] sm:$0xff] %v7690_v48   ;;  %v6058_v31 = vadd.f32 %v6057_v61, %v10373_v8  ;;  %v6346_v24 = vpop.f32.mrf.mxu1  ;;  %v6472_v46 = vmax.f32 %v6344_v36, 0.0  ;;  %v10917_v8 = vld [vmem:[#allocation5_spill] sm:$0xff] }
 0x4af   :  { %v6059_v26 = vpop.f32.mrf.mxu0 }
 0x4b0   :  { %v6347_v30 = vadd.f32 %v6346_v24, %v6058_v31  ;;  %v6348_v9 = vpop.f32.mrf.mxu1 }
 0x4b1   :  { %v6062_v22 = vpop.f32.mrf.mxu0 }
 0x4b2   :  { %v6473_v52 = vmax.f32 %v6347_v30, 0.0  ;;  %v6063_v58 = vadd.f32 %v6062_v22, %v10916_v1  ;;  %v6351_v20 = vpop.f32.mrf.mxu1  ;;  %v10923_v22 = vld [vmem:[#allocation11_spill] sm:$0xff] }
 0x4b3   :  { %v6064_v41 = vpop.f32.mrf.mxu0 }
 0x4b4   :  { %v7695_v25 = vpack.c.bf16 %v6473_v52, %v6472_v46  ;;  %v6353_v5 = vpop.f32.mrf.mxu1  ;;  %v6352_v62 = vadd.f32 %v6351_v20, %v6063_v58 }
 0x4b5   :  { %v6065_v3 = vpop.f32.mrf.mxu0 }
 0x4b6   :  { %7767 = vst [vmem:[%s10790_s3 + $0xa8] sm:$0xff] %v7695_v25   ;;  %v6066_v13 = vadd.f32 %v6065_v3, %v10917_v8  ;;  %v6354_v42 = vpop.f32.mrf.mxu1  ;;  %v6474_v50 = vmax.f32 %v6352_v62, 0.0  ;;  %v10924_v3 = vld [vmem:[#allocation12_spill] sm:$0xff] }
 0x4b7   :  { %v6067_v55 = vpop.f32.mrf.mxu0 }
 0x4b8   :  { %v6355_v4 = vadd.f32 %v6354_v42, %v6066_v13  ;;  %v6356_v32 = vpop.f32.mrf.mxu1 }
 0x4b9   :  { %v6070_v39 = vpop.f32.mrf.mxu0 }
 0x4ba   :  { %v6475_v43 = vmax.f32 %v6355_v4, 0.0  ;;  %v6071_v60 = vadd.f32 %v6070_v39, %v10918_v12  ;;  %v6359_v33 = vpop.f32.mrf.mxu1  ;;  %v10925_v39 = vld [vmem:[#allocation13_spill] sm:$0xff] }
 0x4bb   :  { %v6072_v34 = vpop.f32.mrf.mxu0 }
 0x4bc   :  { %v7700_v63 = vpack.c.bf16 %v6475_v43, %v6474_v50  ;;  %v6361_v54 = vpop.f32.mrf.mxu1  ;;  %v6360_v2 = vadd.f32 %v6359_v33, %v6071_v60 }
 0x4bd   :  { %v6073_v59 = vpop.f32.mrf.mxu0 }
 0x4be   :  { %7768 = vst [vmem:[%s10790_s3 + $0xb0] sm:$0xff] %v7700_v63   ;;  %v6074_v21 = vadd.f32 %v6073_v59, %v10919_v44  ;;  %v6362_v56 = vpop.f32.mrf.mxu1  ;;  %v6476_v10 = vmax.f32 %v6360_v2, 0.0  ;;  %v10926_v59 = vld [vmem:[#allocation14_spill] sm:$0xff] }
 0x4bf   :  { %v6075_v11 = vpop.f32.mrf.mxu0 }
 0x4c0   :  { %v6363_v35 = vadd.f32 %v6362_v56, %v6074_v21  ;;  %v6364_v6 = vpop.f32.mrf.mxu1 }
 0x4c1   :  { %v6078_v27 = vpop.f32.mrf.mxu0 }
 0x4c2   :  { %v6477_v18 = vmax.f32 %v6363_v35, 0.0  ;;  %v6079_v14 = vadd.f32 %v6078_v27, %v10920_v16  ;;  %v6367_v19 = vpop.f32.mrf.mxu1  ;;  %v10927_v27 = vld [vmem:[#allocation15_spill] sm:$0xff] }
 0x4c3   :  { %v6080_v17 = vpop.f32.mrf.mxu0 }
 0x4c4   :  { %v7705_v23 = vpack.c.bf16 %v6477_v18, %v6476_v10  ;;  %v6369_v53 = vpop.f32.mrf.mxu1  ;;  %v6368_v29 = vadd.f32 %v6367_v19, %v6079_v14 }
 0x4c5   :  { %v6081_v15 = vpop.f32.mrf.mxu0 }
 0x4c6   :  { %7769 = vst [vmem:[%s10790_s3 + $0xb8] sm:$0xff] %v7705_v23   ;;  %v6082_v57 = vadd.f32 %v6081_v15, %v10921_v49  ;;  %v6370_v28 = vpop.f32.mrf.mxu1  ;;  %v6478_v47 = vmax.f32 %v6368_v29, 0.0  ;;  %v10928_v15 = vld [vmem:[#allocation16_spill] sm:$0xff] }
 0x4c7   :  { %v6083_v45 = vpop.f32.mrf.mxu0 }
 0x4c8   :  { %v6371_v38 = vadd.f32 %v6370_v28, %v6082_v57  ;;  %v6372_v40 = vpop.f32.mrf.mxu1 }
 0x4c9   :  { %v6086_v0 = vpop.f32.mrf.mxu0 }
 0x4ca   :  { %v6479_v48 = vmax.f32 %v6371_v38, 0.0  ;;  %v6087_v61 = vadd.f32 %v6086_v0, %v10922_v51  ;;  %v6375_v36 = vpop.f32.mrf.mxu1  ;;  %v10929_v0 = vld [vmem:[#allocation17_spill] sm:$0xff] }
 0x4cb   :  { %v6088_v31 = vpop.f32.mrf.mxu0 }
 0x4cc   :  { %v7710_v24 = vpack.c.bf16 %v6479_v48, %v6478_v47  ;;  %v6377_v26 = vpop.f32.mrf.mxu1  ;;  %v6376_v9 = vadd.f32 %v6375_v36, %v6087_v61 }
 0x4cd   :  { %v6089_v30 = vpop.f32.mrf.mxu0 }
 0x4ce   :  { %7770 = vst [vmem:[%s10790_s3 + $0xc0] sm:$0xff] %v7710_v24   ;;  %v6090_v46 = vadd.f32 %v6089_v30, %v10923_v22  ;;  %v6378_v52 = vpop.f32.mrf.mxu1  ;;  %v6480_v25 = vmax.f32 %v6376_v9, 0.0  ;;  %v10930_v30 = vld [vmem:[#allocation18_spill] sm:$0xff] }
 0x4cf   :  { %v6091_v1 = vpop.f32.mrf.mxu0 }
 0x4d0   :  { %v6379_v58 = vadd.f32 %v6378_v52, %v6090_v46  ;;  %v6380_v20 = vpop.f32.mrf.mxu1 }
 0x4d1   :  { %v6094_v41 = vpop.f32.mrf.mxu0 }
 0x4d2   :  { %v6481_v5 = vmax.f32 %v6379_v58, 0.0  ;;  %v6095_v62 = vadd.f32 %v6094_v41, %v10924_v3  ;;  %v6383_v8 = vpop.f32.mrf.mxu1 }
 0x4d3   :  { %v6096_v13 = vpop.f32.mrf.mxu0 }
 0x4d4   :  { %v7715_v42 = vpack.c.bf16 %v6481_v5, %v6480_v25  ;;  %v6385_v55 = vpop.f32.mrf.mxu1  ;;  %v6384_v32 = vadd.f32 %v6383_v8, %v6095_v62 }
 0x4d5   :  { %v6097_v4 = vpop.f32.mrf.mxu0 }
 0x4d6   :  { %7771 = vst [vmem:[%s10790_s3 + $0xc8] sm:$0xff] %v7715_v42   ;;  %v6098_v50 = vadd.f32 %v6097_v4, %v10925_v39  ;;  %v6386_v43 = vpop.f32.mrf.mxu1  ;;  %v6482_v63 = vmax.f32 %v6384_v32, 0.0 }
 0x4d7   :  { %v6099_v12 = vpop.f32.mrf.mxu0 }
 0x4d8   :  { %v6387_v60 = vadd.f32 %v6386_v43, %v6098_v50  ;;  %v6388_v33 = vpop.f32.mrf.mxu1 }
 0x4d9   :  { %v6102_v34 = vpop.f32.mrf.mxu0 }
 0x4da   :  { %v6483_v54 = vmax.f32 %v6387_v60, 0.0  ;;  %v6103_v2 = vadd.f32 %v6102_v34, %v10926_v59  ;;  %v6391_v44 = vpop.f32.mrf.mxu1 }
 0x4db   :  { %v6104_v21 = vpop.f32.mrf.mxu0 }
 0x4dc   :  { %v7720_v56 = vpack.c.bf16 %v6483_v54, %v6482_v63  ;;  %v6393_v11 = vpop.f32.mrf.mxu1  ;;  %v6392_v6 = vadd.f32 %v6391_v44, %v6103_v2 }
 0x4dd   :  { %v6105_v35 = vpop.f32.mrf.mxu0 }
 0x4de   :  { %7772 = vst [vmem:[%s10790_s3 + $0xd0] sm:$0xff] %v7720_v56   ;;  %v6106_v10 = vadd.f32 %v6105_v35, %v10927_v27  ;;  %v6394_v18 = vpop.f32.mrf.mxu1  ;;  %v6484_v23 = vmax.f32 %v6392_v6, 0.0 }
 0x4df   :  { %v6107_v16 = vpop.f32.mrf.mxu0 }
 0x4e0   :  { %v6395_v14 = vadd.f32 %v6394_v18, %v6106_v10  ;;  %v6396_v19 = vpop.f32.mrf.mxu1  ;;  %v10933_v18 = vld [vmem:[#allocation21_spill] sm:$0xff] }
 0x4e1   :  { %v6110_v17 = vpop.f32.mrf.mxu0 }
 0x4e2   :  { %v6485_v53 = vmax.f32 %v6395_v14, 0.0  ;;  %v6111_v29 = vadd.f32 %v6110_v17, %v10928_v15  ;;  %v6399_v49 = vpop.f32.mrf.mxu1 }
 0x4e3   :  { %v6112_v57 = vpop.f32.mrf.mxu0 }
 0x4e4   :  { %v7725_v28 = vpack.c.bf16 %v6485_v53, %v6484_v23  ;;  %v6401_v45 = vpop.f32.mrf.mxu1  ;;  %v6400_v40 = vadd.f32 %v6399_v49, %v6111_v29 }
 0x4e5   :  { %v6113_v38 = vpop.f32.mrf.mxu0 }
 0x4e6   :  { %7773 = vst [vmem:[%s10790_s3 + $0xd8] sm:$0xff] %v7725_v28   ;;  %v6114_v47 = vadd.f32 %v6113_v38, %v10929_v0  ;;  %v6402_v48 = vpop.f32.mrf.mxu1  ;;  %v6486_v24 = vmax.f32 %v6400_v40, 0.0 }
 0x4e7   :  { %v6115_v51 = vpop.f32.mrf.mxu0 }
 0x4e8   :  { %v6403_v61 = vadd.f32 %v6402_v48, %v6114_v47  ;;  %v6404_v36 = vpop.f32.mrf.mxu1 }
 0x4e9   :  { %v6118_v31 = vpop.f32.mrf.mxu0 }
 0x4ea   :  { %v6487_v26 = vmax.f32 %v6403_v61, 0.0  ;;  %v6119_v9 = vadd.f32 %v6118_v31, %v10930_v30  ;;  %v6407_v22 = vpop.f32.mrf.mxu1 }
 0x4eb   :  { %v6120_v46 = vpop.f32.mrf.mxu0 }
 0x4ec   :  { %v7730_v52 = vpack.c.bf16 %v6487_v26, %v6486_v24  ;;  %v6409_v1 = vpop.f32.mrf.mxu1  ;;  %v6408_v20 = vadd.f32 %v6407_v22, %v6119_v9 }
 0x4ed   :  { %v6121_v58 = vpop.f32.mrf.mxu0 }
 0x4ee   :  { %7774 = vst [vmem:[%s10790_s3 + $0xe0] sm:$0xff] %v7730_v52   ;;  %v6122_v41 = vadd.f32 %v6121_v58, %v10517_v7  ;;  %v6410_v25 = vpop.f32.mrf.mxu1  ;;  %v6488_v13 = vmax.f32 %v6408_v20, 0.0  ;;  %v10931_v7 = vld [vmem:[#allocation19_spill] sm:$0xff] }
 0x4ef   :  { %v6123_v5 = vpop.f32.mrf.mxu0 }
 0x4f0   :  { %v6411_v3 = vadd.f32 %v6410_v25, %v6122_v41  ;;  %v6412_v62 = vpop.f32.mrf.mxu1 }
 0x4f1   :  { %v6126_v8 = vpop.f32.mrf.mxu0 }
 0x4f2   :  { %v6489_v42 = vmax.f32 %v6411_v3, 0.0  ;;  %v6127_v55 = vadd.f32 %v6126_v8, %v10526_v37  ;;  %v6415_v4 = vpop.f32.mrf.mxu1  ;;  %v10932_v37 = vld [vmem:[#allocation20_spill] sm:$0xff] }
 0x4f3   :  { %v6128_v32 = vpop.f32.mrf.mxu0 }
 0x4f4   :  { %v7735_v39 = vpack.c.bf16 %v6489_v42, %v6488_v13  ;;  %v6417_v50 = vpop.f32.mrf.mxu1  ;;  %v6416_v12 = vadd.f32 %v6415_v4, %v6127_v55 }
 0x4f5   :  { %v6129_v43 = vpop.f32.mrf.mxu0 }
 0x4f6   :  { %7775 = vst [vmem:[%s10790_s3 + $0xe8] sm:$0xff] %v7735_v39   ;;  %v6130_v60 = vadd.f32 %v6129_v43, %v10931_v7  ;;  %v6418_v33 = vpop.f32.mrf.mxu1  ;;  %v6490_v2 = vmax.f32 %v6416_v12, 0.0 }
 0x4f7   :  { %v6131_v34 = vpop.f32.mrf.mxu0 }
 0x4f8   :  { %v6419_v63 = vadd.f32 %v6418_v33, %v6130_v60  ;;  %v6420_v54 = vpop.f32.mrf.mxu1 }
 0x4f9   :  { %v6134_v59 = vpop.f32.mrf.mxu0 }
 0x4fa   :  { %v6491_v44 = vmax.f32 %v6419_v63, 0.0  ;;  %v6135_v21 = vadd.f32 %v6134_v59, %v10932_v37  ;;  %v6423_v56 = vpop.f32.mrf.mxu1 }
 0x4fb   :  { %v6136_v11 = vpop.f32.mrf.mxu0 }
 0x4fc   :  { %v7740_v35 = vpack.c.bf16 %v6491_v44, %v6490_v2  ;;  %v6425_v6 = vpop.f32.mrf.mxu1  ;;  %v6424_v10 = vadd.f32 %v6423_v56, %v6135_v21 }
 0x4fd   :  { %v6137_v27 = vpop.f32.mrf.mxu0 }
 0x4fe   :  { %7776 = vst [vmem:[%s10790_s3 + $0xf0] sm:$0xff] %v7740_v35   ;;  %v6138_v16 = vadd.f32 %v6137_v27, %v10933_v18  ;;  %v6426_v14 = vpop.f32.mrf.mxu1  ;;  %v6492_v53 = vmax.f32 %v6424_v10, 0.0 }
 0x4ff   :  { %v6139_v19 = vpop.f32.mrf.mxu0 }
 0x500   :  { %v6427_v17 = vadd.f32 %v6426_v14, %v6138_v16  ;;  %v6428_v23 = vpop.f32.mrf.mxu1 }
 0x502   :  { %v6493_v15 = vmax.f32 %v6427_v17, 0.0 }
 0x504   :  { %v7745_v29 = vpack.c.bf16 %v6493_v15, %v6492_v53 }
 0x506   :  { %7777 = vst [vmem:[%s10790_s3 + $0xf8] sm:$0xff] %v7745_v29  }

// kernel: encoder_forward.7
= control target key start
LH: loop header
LB: loop body
LE: loop exit
PB: predicated region body
PF: predicated region fallthrough
CT: control target
= control target key end

     0   :  { %s4715_s1 = inlined_call_operand.vmem [shape: bf16[2048,128], index: 1, kind: input, shape index: {}]   ;;  %s4716_s0 = inlined_call_operand.vmem [shape: bf16[128,2048], index: 0, kind: input, shape index: {}]   ;;  %s4717_s2 = inlined_call_operand.vmem [shape: f32[1,128], index: 2, kind: input, shape index: {}]   ;;  %s4718_s3 = inlined_call_operand.vmem [shape: bf16[128,128], index: 3, kind: output, shape index: {}]  }
   0x1   :  { %v3538_v0 = vld [vmem:[%s4715_s1 + $0x78] sm:$0xff]   ;;  %v3542_v4 = vld [vmem:[%s4715_s1 + $0x70] sm:$0xff]   ;;  %v3546_v8 = vld [vmem:[%s4715_s1 + $0x68] sm:$0xff]  }
   0x2   :  { %v3539_v1 = vld [vmem:[%s4715_s1 + $0xf8] sm:$0xff]   ;;  %3026 = vmatprep.subr.bf16.mxu0 %v3538_v0  ;;  %v3543_v5 = vld [vmem:[%s4715_s1 + $0xf0] sm:$0xff]   ;;  %v3547_v9 = vld [vmem:[%s4715_s1 + $0xe8] sm:$0xff]  }
   0x3   :  { %v3540_v2 = vld [vmem:[%s4715_s1 + $0x38] sm:$0xff]   ;;  %3090 = vmatprep.subr.bf16.mxu1 %v3539_v1  ;;  %v3544_v6 = vld [vmem:[%s4715_s1 + $0x30] sm:$0xff]   ;;  %v3548_v10 = vld [vmem:[%s4715_s1 + $0x28] sm:$0xff]  }
   0x4   :  { %v3541_v3 = vld [vmem:[%s4715_s1 + $0xb8] sm:$0xff]   ;;  %3027 = vmatpush3.bf16.msra.mxu0 %v3540_v2  ;;  %v3545_v7 = vld [vmem:[%s4715_s1 + $0xb0] sm:$0xff]   ;;  %v3549_v11 = vld [vmem:[%s4715_s1 + $0xa8] sm:$0xff]  }
   0x5   :  { %3091 = vmatpush3.bf16.msra.mxu1 %v3541_v3  ;;  %3028 = vmatprep.subr.bf16.mxu0 %v3542_v4  ;;  %v3550_v12 = vld [vmem:[%s4715_s1 + $0x60] sm:$0xff]   ;;  %v3554_v16 = vld [vmem:[%s4715_s1 + $0x58] sm:$0xff]   ;;  %v3558_v20 = vld [vmem:[%s4715_s1 + $0x50] sm:$0xff]  }
   0x6   :  { %3092 = vmatprep.subr.bf16.mxu1 %v3543_v5  ;;  %v3551_v13 = vld [vmem:[%s4715_s1 + $0xe0] sm:$0xff]   ;;  %v3555_v17 = vld [vmem:[%s4715_s1 + $0xd8] sm:$0xff]   ;;  %v3559_v21 = vld [vmem:[%s4715_s1 + $0xd0] sm:$0xff]  }
   0x7   :  { %v3552_v14 = vld [vmem:[%s4715_s1 + $0x20] sm:$0xff]   ;;  %v3556_v18 = vld [vmem:[%s4715_s1 + $0x18] sm:$0xff]   ;;  %v3560_v22 = vld [vmem:[%s4715_s1 + $0x10] sm:$0xff]  }
   0x8   :  { %3029 = vmatpush3.bf16.msra.mxu0 %v3544_v6  ;;  %v3553_v15 = vld [vmem:[%s4715_s1 + $0xa0] sm:$0xff]   ;;  %v3557_v19 = vld [vmem:[%s4715_s1 + $0x98] sm:$0xff]   ;;  %v3561_v23 = vld [vmem:[%s4715_s1 + $0x90] sm:$0xff]  }
   0x9   :  { %3093 = vmatpush3.bf16.msra.mxu1 %v3545_v7  ;;  %3030 = vmatprep.subr.bf16.mxu0 %v3546_v8  ;;  %v3562_v24 = vld [vmem:[%s4715_s1 + $0x48] sm:$0xff]   ;;  %v3566_v28 = vld [vmem:[%s4715_s1 + $0x40] sm:$0xff]   ;;  %v3570_v40 = vld [vmem:[%s4715_s1 + $0x178] sm:$0xff]  }
   0xa   :  { %3094 = vmatprep.subr.bf16.mxu1 %v3547_v9  ;;  %v3563_v25 = vld [vmem:[%s4715_s1 + $0xc8] sm:$0xff]   ;;  %v3567_v29 = vld [vmem:[%s4715_s1 + $0xc0] sm:$0xff]   ;;  %v3571_v41 = vld [vmem:[%s4715_s1 + $0x138] sm:$0xff]  }
   0xb   :  { %v3564_v26 = vld [vmem:[%s4715_s1 + $0x8] sm:$0xff]   ;;  %v3568_v30 = vld [vmem:[%s4715_s1] sm:$0xff]   ;;  %v3572_v42 = vld [vmem:[%s4715_s1 + $0x1f8] sm:$0xff]  }
   0xc   :  { %3031 = vmatpush3.bf16.msra.mxu0 %v3548_v10  ;;  %v3565_v27 = vld [vmem:[%s4715_s1 + $0x88] sm:$0xff]   ;;  %v3569_v31 = vld [vmem:[%s4715_s1 + $0x80] sm:$0xff]   ;;  %v3573_v43 = vld [vmem:[%s4715_s1 + $0x1b8] sm:$0xff]  }
   0xd   :  { %3095 = vmatpush3.bf16.msra.mxu1 %v3549_v11  ;;  %3032 = vmatprep.subr.bf16.mxu0 %v3550_v12  ;;  %v15_v32 = vld [vmem:[%s4716_s0] sm:$0xff]  ;;  %v16_v34 = vld [vmem:[%s4716_s0 + $0x8] sm:$0xff]  ;;  %v3574_v50 = vld [vmem:[%s4715_s1 + $0x170] sm:$0xff]  }
   0xe   :  { %3096 = vmatprep.subr.bf16.mxu1 %v3551_v13  ;;  %v23_v33 = vld [vmem:[%s4716_s0 + $0x40] sm:$0xff]  ;;  %v24_v37 = vld [vmem:[%s4716_s0 + $0x48] sm:$0xff]  ;;  %v3575_v52 = vld [vmem:[%s4715_s1 + $0x130] sm:$0xff]  }
   0xf   :  { %v2691_v35 = vcombine.low %v15_v32, %v23_v33  ;;  %v2692_v36 = vcombine.high %v15_v32, %v23_v33  ;;  %v2693_v38 = vcombine.low %v16_v34, %v24_v37  ;;  %v2694_v39 = vcombine.high %v16_v34, %v24_v37  ;;  %v31_v44 = vld [vmem:[%s4716_s0 + $0x80] sm:$0xff]  ;;  %v32_v47 = vld [vmem:[%s4716_s0 + $0x88] sm:$0xff]  ;;  %v3576_v54 = vld [vmem:[%s4715_s1 + $0x1f0] sm:$0xff]  }
  0x10   :  { %3033 = vmatpush3.bf16.msra.mxu0 %v3552_v14  ;;  %v39_v45 = vld [vmem:[%s4716_s0 + $0xc0] sm:$0xff]  ;;  %v40_v48 = vld [vmem:[%s4716_s0 + $0xc8] sm:$0xff]  ;;  %v3577_v55 = vld [vmem:[%s4715_s1 + $0x1b0] sm:$0xff]  }
  0x11   :  { %3097 = vmatpush3.bf16.msra.mxu1 %v3553_v15  ;;  %3034 = vmatprep.subr.bf16.mxu0 %v3554_v16  ;;  %v2708_v46 = vcombine.high %v31_v44, %v39_v45  ;;  %v2710_v49 = vcombine.high %v32_v47, %v40_v48  ;;  %v2707_v51 = vcombine.low %v31_v44, %v39_v45  ;;  %v47_v56 = vld [vmem:[%s4716_s0 + $0x100] sm:$0xff]  ;;  %v48_v58 = vld [vmem:[%s4716_s0 + $0x108] sm:$0xff]  ;;  %v3592_v32 = vld [vmem:[%s4715_s1 + $0x1d0] sm:$0xff]  }
  0x12   :  { %3098 = vmatprep.subr.bf16.mxu1 %v3555_v17  ;;  %1846 = vmatprep.mubr.bf16.mxu0 %v2692_v36  ;;  %v2709_v53 = vcombine.low %v32_v47, %v40_v48  ;;  %v55_v57 = vld [vmem:[%s4716_s0 + $0x140] sm:$0xff]  ;;  %v56_v59 = vld [vmem:[%s4716_s0 + $0x148] sm:$0xff]  ;;  %v3593_v33 = vld [vmem:[%s4715_s1 + $0x190] sm:$0xff]  }
  0x13   :  { %1943 = vmatprep.mubr.bf16.mxu1 %v2694_v39  ;;  %v2724_v60 = vcombine.high %v47_v56, %v55_v57  ;;  %v2726_v61 = vcombine.high %v48_v58, %v56_v59  ;;  %v3578_v62 = vld [vmem:[%s4715_s1 + $0x168] sm:$0xff]   ;;  %v2723_v2 = vcombine.low %v47_v56, %v55_v57  ;;  %v63_v3 = vld [vmem:[%s4716_s0 + $0x180] sm:$0xff]  ;;  %v2725_v6 = vcombine.low %v48_v58, %v56_v59  ;;  %v3602_v56 = vld [vmem:[%s4715_s1 + $0x278] sm:$0xff]  }
  0x14   :  { %3035 = vmatpush3.bf16.msra.mxu0 %v3556_v18  ;;  %v3579_v63 = vld [vmem:[%s4715_s1 + $0x128] sm:$0xff]   ;;  %v71_v4 = vld [vmem:[%s4716_s0 + $0x1c0] sm:$0xff]  ;;  %v3586_v18 = vld [vmem:[%s4715_s1 + $0x158] sm:$0xff]  }
  0x15   :  { %3099 = vmatpush3.bf16.msra.mxu1 %v3557_v19  ;;  %3036 = vmatprep.subr.bf16.mxu0 %v3558_v20  ;;  %v3580_v0 = vld [vmem:[%s4715_s1 + $0x1e8] sm:$0xff]   ;;  %v2740_v7 = vcombine.high %v63_v3, %v71_v4  ;;  %v3582_v10 = vld [vmem:[%s4715_s1 + $0x160] sm:$0xff]   ;;  %v2739_v19 = vcombine.low %v63_v3, %v71_v4  ;;  %v3587_v20 = vld [vmem:[%s4715_s1 + $0x118] sm:$0xff]  }
  0x16   :  { %3100 = vmatprep.subr.bf16.mxu1 %v3559_v21  ;;  %v3581_v1 = vld [vmem:[%s4715_s1 + $0x1a8] sm:$0xff]   ;;  %v3583_v11 = vld [vmem:[%s4715_s1 + $0x120] sm:$0xff]   ;;  %v3604_v58 = vld [vmem:[%s4715_s1 + $0x2f8] sm:$0xff]  }
  0x17   :  { %v64_v5 = vld [vmem:[%s4716_s0 + $0x188] sm:$0xff]  ;;  %v3584_v12 = vld [vmem:[%s4715_s1 + $0x1e0] sm:$0xff]   ;;  %v26_v3 = vld [vmem:[%s4716_s0 + $0x58] sm:$0xff] }
  0x18   :  { %3037 = vmatpush3.bf16.msra.mxu0 %v3560_v22  ;;  %v72_v8 = vld [vmem:[%s4716_s0 + $0x1c8] sm:$0xff]  ;;  %v3585_v13 = vld [vmem:[%s4715_s1 + $0x1a0] sm:$0xff]  }
  0x19   :  { %3101 = vmatpush3.bf16.msra.mxu1 %v3561_v23  ;;  %3038 = vmatprep.subr.bf16.mxu0 %v3562_v24  ;;  %v2742_v9 = vcombine.high %v64_v5, %v72_v8  ;;  %v79_v14 = vld [vmem:[%s4716_s0 + $0x200] sm:$0xff]  ;;  %v80_v16 = vld [vmem:[%s4716_s0 + $0x208] sm:$0xff]  ;;  %v2741_v21 = vcombine.low %v64_v5, %v72_v8  ;;  %v3588_v23 = vld [vmem:[%s4715_s1 + $0x1d8] sm:$0xff]  }
  0x1a   :  { %3102 = vmatprep.subr.bf16.mxu1 %v3563_v25  ;;  %v87_v15 = vld [vmem:[%s4716_s0 + $0x240] sm:$0xff]  ;;  %v88_v17 = vld [vmem:[%s4716_s0 + $0x248] sm:$0xff]  ;;  %v3589_v25 = vld [vmem:[%s4715_s1 + $0x198] sm:$0xff]  }
  0x1b   :  { %v2756_v22 = vcombine.high %v79_v14, %v87_v15  ;;  %v2758_v24 = vcombine.high %v80_v16, %v88_v17  ;;  %v2755_v34 = vcombine.low %v79_v14, %v87_v15  ;;  %v3595_v39 = vld [vmem:[%s4715_s1 + $0x108] sm:$0xff]   ;;  %v3599_v48 = vld [vmem:[%s4715_s1 + $0x100] sm:$0xff]   ;;  %v33_v8 = vld [vmem:[%s4716_s0 + $0x90] sm:$0xff] }
  0x1c   :  { %3039 = vmatpush3.bf16.msra.mxu0 %v3564_v26  ;;  %v95_v26 = vld [vmem:[%s4716_s0 + $0x280] sm:$0xff]  ;;  %v112_v44 = vld [vmem:[%s4716_s0 + $0x308] sm:$0xff]  ;;  %v3605_v15 = vld [vmem:[%s4715_s1 + $0x2b8] sm:$0xff]  }
  0x1d   :  { %3103 = vmatpush3.bf16.msra.mxu1 %v3565_v27  ;;  %3040 = vmatprep.subr.bf16.mxu0 %v3566_v28  ;;  %v103_v27 = vld [vmem:[%s4716_s0 + $0x2c0] sm:$0xff]  ;;  %v3590_v28 = vld [vmem:[%s4715_s1 + $0x150] sm:$0xff]   ;;  %v120_v45 = vld [vmem:[%s4716_s0 + $0x348] sm:$0xff] }
  0x1e   :  { %3104 = vmatprep.subr.bf16.mxu1 %v3567_v29  ;;  %v96_v29 = vld [vmem:[%s4716_s0 + $0x288] sm:$0xff]  ;;  %v2772_v36 = vcombine.high %v95_v26, %v103_v27  ;;  %v2771_v47 = vcombine.low %v95_v26, %v103_v27 }
  0x1f   :  { %v128_v57 = vld [vmem:[%s4716_s0 + $0x388] sm:$0xff] }
  0x20   :  { %3041 = vmatpush3.bf16.msra.mxu0 %v3568_v30  ;;  %v104_v30 = vld [vmem:[%s4716_s0 + $0x2c8] sm:$0xff] }
  0x21   :  { %3105 = vmatpush3.bf16.msra.mxu1 %v3569_v31  ;;  %3154 = vmatprep.subr.bf16.mxu0 %v3570_v40  ;;  %v3591_v31 = vld [vmem:[%s4715_s1 + $0x110] sm:$0xff]   ;;  %v2774_v37 = vcombine.high %v96_v29, %v104_v30  ;;  %v3596_v40 = vld [vmem:[%s4715_s1 + $0x1c8] sm:$0xff]  }
  0x22   :  { %3218 = vmatprep.subr.bf16.mxu1 %v3572_v42  ;;  %v119_v42 = vld [vmem:[%s4716_s0 + $0x340] sm:$0xff]  ;;  %v136_v59 = vld [vmem:[%s4716_s0 + $0x3c8] sm:$0xff] }
  0x23   :  { %1847 = vmatmul.mubr.bf16.vlgmr.msra.gmra.mxu0 %v2691_v35  ;;  %v2757_v35 = vcombine.low %v80_v16, %v88_v17  ;;  %v2805_v5 = vcombine.low %v128_v57, %v136_v59  ;;  %v3606_v17 = vld [vmem:[%s4715_s1 + $0x270] sm:$0xff]   ;;  %v3610_v26 = vld [vmem:[%s4715_s1 + $0x268] sm:$0xff]  }
  0x24   :  { %1944 = vmatmul.mubr.bf16.vlgmr.msra.gmra.mxu1 %v2693_v38  ;;  %3155 = vmatpush3.bf16.msra.mxu0 %v3571_v41  ;;  %v3594_v38 = vld [vmem:[%s4715_s1 + $0x148] sm:$0xff]   ;;  %v111_v41 = vld [vmem:[%s4716_s0 + $0x300] sm:$0xff] }
  0x25   :  { %3219 = vmatpush3.bf16.msra.mxu1 %v3573_v43  ;;  %1854 = vmatprep.mubr.bf16.mxu0 %v2708_v46  ;;  %v3597_v43 = vld [vmem:[%s4715_s1 + $0x188] sm:$0xff]   ;;  %v3598_v46 = vld [vmem:[%s4715_s1 + $0x140] sm:$0xff]  }
  0x26   :  { %1951 = vmatprep.mubr.bf16.mxu1 %v2710_v49  ;;  %3156 = vmatprep.subr.bf16.mxu0 %v3574_v50  ;;  %v2773_v49 = vcombine.low %v96_v29, %v104_v30  ;;  %v2788_v50 = vcombine.high %v111_v41, %v119_v42  ;;  %v3612_v27 = vld [vmem:[%s4715_s1 + $0x2e8] sm:$0xff]  }
  0x27   :  { %3220 = vmatprep.subr.bf16.mxu1 %v3576_v54  ;;  %v127_v54 = vld [vmem:[%s4716_s0 + $0x380] sm:$0xff] }
  0x28   :  { %3157 = vmatpush3.bf16.msra.mxu0 %v3575_v52  ;;  %v2790_v52 = vcombine.high %v112_v44, %v120_v45 }
  0x29   :  { %3221 = vmatpush3.bf16.msra.mxu1 %v3577_v55  ;;  %3158 = vmatprep.subr.bf16.mxu0 %v3578_v62  ;;  %v135_v55 = vld [vmem:[%s4716_s0 + $0x3c0] sm:$0xff] }
  0x2a   :  { %3222 = vmatprep.subr.bf16.mxu1 %v3580_v0  ;;  %v2804_v62 = vcombine.high %v127_v54, %v135_v55  ;;  %v17_v0 = vld [vmem:[%s4716_s0 + $0x10] sm:$0xff]  ;;  %v2803_v4 = vcombine.low %v127_v54, %v135_v55  ;;  %v82_v54 = vld [vmem:[%s4716_s0 + $0x218] sm:$0xff] }
  0x2b   :  { %1855 = vmatmul.mubr.bf16.gmra.mxu0 %v2707_v51  ;;  %v3600_v51 = vld [vmem:[%s4715_s1 + $0x1c0] sm:$0xff]   ;;  %v90_v55 = vld [vmem:[%s4716_s0 + $0x258] sm:$0xff] }
  0x2c   :  { %1952 = vmatmul.mubr.bf16.gmra.mxu1 %v2709_v53  ;;  %1862 = vmatprep.mubr.bf16.mxu0 %v2724_v60  ;;  %v3601_v53 = vld [vmem:[%s4715_s1 + $0x180] sm:$0xff]   ;;  %v2787_v60 = vcombine.low %v111_v41, %v119_v42  ;;  %v3618_v42 = vld [vmem:[%s4715_s1 + $0x258] sm:$0xff]  }
  0x2d   :  { %1959 = vmatprep.mubr.bf16.mxu1 %v2726_v61  ;;  %3159 = vmatpush3.bf16.msra.mxu0 %v3579_v63  ;;  %v2789_v61 = vcombine.low %v112_v44, %v120_v45  ;;  %v2806_v63 = vcombine.high %v128_v57, %v136_v59  ;;  %v3617_v41 = vld [vmem:[%s4715_s1 + $0x2a0] sm:$0xff]   ;;  %v3620_v44 = vld [vmem:[%s4715_s1 + $0x2d8] sm:$0xff]   ;;  %v3625_v57 = vld [vmem:[%s4715_s1 + $0x290] sm:$0xff]  }
  0x2e   :  { %3223 = vmatpush3.bf16.msra.mxu1 %v3581_v1  ;;  %3160 = vmatprep.subr.bf16.mxu0 %v3582_v10  ;;  %v25_v1 = vld [vmem:[%s4716_s0 + $0x50] sm:$0xff] }
  0x2f   :  { %3224 = vmatprep.subr.bf16.mxu1 %v3584_v12  ;;  %v2695_v10 = vcombine.low %v17_v0, %v25_v1  ;;  %v34_v12 = vld [vmem:[%s4716_s0 + $0x98] sm:$0xff] }
  0x31   :  { %3161 = vmatpush3.bf16.msra.mxu0 %v3583_v11  ;;  %v3603_v11 = vld [vmem:[%s4715_s1 + $0x238] sm:$0xff]  }
  0x32   :  { %3225 = vmatpush3.bf16.msra.mxu1 %v3585_v13  ;;  %3162 = vmatprep.subr.bf16.mxu0 %v3586_v18  ;;  %v42_v13 = vld [vmem:[%s4716_s0 + $0xd8] sm:$0xff] }
  0x33   :  { %1863 = vmatmul.mubr.bf16.gmra.mxu0 %v2723_v2  ;;  %3226 = vmatprep.subr.bf16.mxu1 %v3588_v23  ;;  %v18_v2 = vld [vmem:[%s4716_s0 + $0x18] sm:$0xff]  ;;  %v2714_v18 = vcombine.high %v34_v12, %v42_v13  ;;  %v57_v23 = vld [vmem:[%s4716_s0 + $0x150] sm:$0xff]  ;;  %v2713_v29 = vcombine.low %v34_v12, %v42_v13  ;;  %v2761_v13 = vcombine.low %v82_v54, %v90_v55 }
  0x34   :  { %1960 = vmatmul.mubr.bf16.gmra.mxu1 %v2725_v6  ;;  %1870 = vmatprep.mubr.bf16.mxu0 %v2740_v7  ;;  %v2696_v6 = vcombine.high %v17_v0, %v25_v1  ;;  %v2698_v7 = vcombine.high %v18_v2, %v26_v3  ;;  %v2697_v14 = vcombine.low %v18_v2, %v26_v3  ;;  %v3627_v0 = vld [vmem:[%s4715_s1 + $0x208] sm:$0xff]   ;;  %v3630_v2 = vld [vmem:[%s4715_s1 + $0x240] sm:$0xff]   ;;  %v97_v3 = vld [vmem:[%s4716_s0 + $0x290] sm:$0xff] }
  0x35   :  { %1967 = vmatprep.mubr.bf16.mxu1 %v2742_v9  ;;  %3163 = vmatpush3.bf16.msra.mxu0 %v3587_v20  ;;  %v41_v9 = vld [vmem:[%s4716_s0 + $0xd0] sm:$0xff]  ;;  %v3629_v1 = vld [vmem:[%s4715_s1 + $0x288] sm:$0xff]   ;;  %v3636_v12 = vld [vmem:[%s4715_s1 + $0x3f8] sm:$0xff]  }
  0x36   :  { %3227 = vmatpush3.bf16.msra.mxu1 %v3589_v25  ;;  %3164 = vmatprep.subr.bf16.mxu0 %v3590_v28  ;;  %v2712_v16 = vcombine.high %v33_v8, %v41_v9  ;;  %v3608_v20 = vld [vmem:[%s4715_s1 + $0x2f0] sm:$0xff]   ;;  %v58_v25 = vld [vmem:[%s4716_s0 + $0x158] sm:$0xff]  ;;  %v2711_v28 = vcombine.low %v33_v8, %v41_v9  ;;  %v3631_v8 = vld [vmem:[%s4715_s1 + $0x200] sm:$0xff]  }
  0x37   :  { %3228 = vmatprep.subr.bf16.mxu1 %v3592_v32  ;;  %v3611_v32 = vld [vmem:[%s4715_s1 + $0x228] sm:$0xff]   ;;  %v3633_v9 = vld [vmem:[%s4715_s1 + $0x280] sm:$0xff]  }
  0x39   :  { %3165 = vmatpush3.bf16.msra.mxu0 %v3591_v31 }
  0x3a   :  { %3229 = vmatpush3.bf16.msra.mxu1 %v3593_v33  ;;  %3166 = vmatprep.subr.bf16.mxu0 %v3594_v38  ;;  %v3613_v33 = vld [vmem:[%s4715_s1 + $0x2a8] sm:$0xff]   ;;  %v66_v38 = vld [vmem:[%s4716_s0 + $0x198] sm:$0xff] }
  0x3b   :  { %1871 = vmatmul.mubr.bf16.gmra.mxu0 %v2739_v19  ;;  %3230 = vmatprep.subr.bf16.mxu1 %v3596_v40  ;;  %v3607_v19 = vld [vmem:[%s4715_s1 + $0x230] sm:$0xff]   ;;  %v3615_v40 = vld [vmem:[%s4715_s1 + $0x220] sm:$0xff]  }
  0x3c   :  { %1968 = vmatmul.mubr.bf16.gmra.mxu1 %v2741_v21  ;;  %1878 = vmatprep.mubr.bf16.mxu0 %v2756_v22  ;;  %v3609_v21 = vld [vmem:[%s4715_s1 + $0x2b0] sm:$0xff]  }
  0x3d   :  { %1975 = vmatprep.mubr.bf16.mxu1 %v2758_v24  ;;  %3167 = vmatpush3.bf16.msra.mxu0 %v3595_v39  ;;  %v49_v22 = vld [vmem:[%s4716_s0 + $0x110] sm:$0xff]  ;;  %v50_v24 = vld [vmem:[%s4716_s0 + $0x118] sm:$0xff] }
  0x3e   :  { %3231 = vmatpush3.bf16.msra.mxu1 %v3597_v43  ;;  %3168 = vmatprep.subr.bf16.mxu0 %v3598_v46  ;;  %v2728_v30 = vcombine.high %v49_v22, %v57_v23  ;;  %v2730_v31 = vcombine.high %v50_v24, %v58_v25  ;;  %v74_v39 = vld [vmem:[%s4716_s0 + $0x1d8] sm:$0xff]  ;;  %v2727_v43 = vcombine.low %v49_v22, %v57_v23 }
  0x3f   :  { %3232 = vmatprep.subr.bf16.mxu1 %v3600_v51  ;;  %v2729_v45 = vcombine.low %v50_v24, %v58_v25  ;;  %v81_v51 = vld [vmem:[%s4716_s0 + $0x210] sm:$0xff] }
  0x40   :  { %v129_v24 = vld [vmem:[%s4716_s0 + $0x390] sm:$0xff] }
  0x41   :  { %3169 = vmatpush3.bf16.msra.mxu0 %v3599_v48  ;;  %v2746_v48 = vcombine.high %v66_v38, %v74_v39  ;;  %v137_v25 = vld [vmem:[%s4716_s0 + $0x3d0] sm:$0xff] }
  0x42   :  { %3233 = vmatpush3.bf16.msra.mxu1 %v3601_v53  ;;  %3282 = vmatprep.subr.bf16.mxu0 %v3602_v56  ;;  %v89_v53 = vld [vmem:[%s4716_s0 + $0x250] sm:$0xff] }
  0x43   :  { %1879 = vmatmul.mubr.bf16.gmra.mxu0 %v2755_v34  ;;  %3346 = vmatprep.subr.bf16.mxu1 %v3604_v58  ;;  %v3614_v34 = vld [vmem:[%s4715_s1 + $0x260] sm:$0xff]   ;;  %v3623_v56 = vld [vmem:[%s4715_s1 + $0x210] sm:$0xff]   ;;  %v3626_v58 = vld [vmem:[%s4715_s1 + $0x248] sm:$0xff]  }
  0x44   :  { %1976 = vmatmul.mubr.bf16.gmra.mxu1 %v2757_v35  ;;  %1886 = vmatprep.mubr.bf16.mxu0 %v2772_v36  ;;  %v65_v35 = vld [vmem:[%s4716_s0 + $0x190] sm:$0xff] }
  0x45   :  { %1983 = vmatprep.mubr.bf16.mxu1 %v2774_v37  ;;  %v73_v36 = vld [vmem:[%s4716_s0 + $0x1d0] sm:$0xff]  ;;  %v3616_v37 = vld [vmem:[%s4715_s1 + $0x2e0] sm:$0xff]  }
  0x46   :  { %v2744_v46 = vcombine.high %v65_v35, %v73_v36  ;;  %v2743_v59 = vcombine.low %v65_v35, %v73_v36  ;;  %v28_v35 = vld [vmem:[%s4716_s0 + $0x68] sm:$0xff]  ;;  %v2807_v36 = vcombine.low %v129_v24, %v137_v25 }
  0x4b   :  { %1887 = vmatmul.mubr.bf16.gmra.mxu0 %v2771_v47  ;;  %v3619_v47 = vld [vmem:[%s4715_s1 + $0x218] sm:$0xff]  }
  0x4c   :  { %1984 = vmatmul.mubr.bf16.gmra.mxu1 %v2773_v49  ;;  %1894 = vmatprep.mubr.bf16.mxu0 %v2788_v50  ;;  %v3621_v49 = vld [vmem:[%s4715_s1 + $0x298] sm:$0xff]   ;;  %v3622_v50 = vld [vmem:[%s4715_s1 + $0x250] sm:$0xff]  }
  0x4d   :  { %1991 = vmatprep.mubr.bf16.mxu1 %v2790_v52  ;;  %v3624_v52 = vld [vmem:[%s4715_s1 + $0x2d0] sm:$0xff]  }
  0x53   :  { %1895 = vmatmul.mubr.bf16.gmra.mxu0 %v2787_v60  ;;  %v3628_v60 = vld [vmem:[%s4715_s1 + $0x2c8] sm:$0xff]  }
  0x54   :  { %1992 = vmatmul.mubr.bf16.gmra.mxu1 %v2789_v61  ;;  %1902 = vmatprep.mubr.bf16.mxu0 %v2804_v62  ;;  %v2745_v61 = vcombine.low %v66_v38, %v74_v39  ;;  %v2760_v62 = vcombine.high %v81_v51, %v89_v53 }
  0x55   :  { %1999 = vmatprep.mubr.bf16.mxu1 %v2806_v63  ;;  %v2762_v63 = vcombine.high %v82_v54, %v90_v55  ;;  %v51_v54 = vld [vmem:[%s4716_s0 + $0x120] sm:$0xff] }
  0x56   :  { %v59_v55 = vld [vmem:[%s4716_s0 + $0x160] sm:$0xff] }
  0x5b   :  { %1903 = vmatmul.mubr.bf16.gmra.mxu0 %v2803_v4  ;;  %v105_v4 = vld [vmem:[%s4716_s0 + $0x2d0] sm:$0xff] }
  0x5c   :  { %2000 = vmatmul.mubr.bf16.gmra.mxu1 %v2805_v5  ;;  %2040 = vmatprep.mubr.bf16.mxu0 %v2696_v6  ;;  %v3632_v5 = vld [vmem:[%s4715_s1 + $0x2c0] sm:$0xff]   ;;  %v98_v6 = vld [vmem:[%s4716_s0 + $0x298] sm:$0xff] }
  0x5d   :  { %2137 = vmatprep.mubr.bf16.mxu1 %v2698_v7  ;;  %v106_v7 = vld [vmem:[%s4716_s0 + $0x2d8] sm:$0xff] }
  0x63   :  { %2041 = vmatmul.mubr.bf16.vlgmr.msra.gmra.mxu0 %v2695_v10  ;;  %v3634_v10 = vld [vmem:[%s4715_s1 + $0x378] sm:$0xff]  }
  0x64   :  { %2138 = vmatmul.mubr.bf16.vlgmr.msra.gmra.mxu1 %v2697_v14  ;;  %3283 = vmatpush3.bf16.msra.mxu0 %v3603_v11  ;;  %v2759_v11 = vcombine.low %v81_v51, %v89_v53  ;;  %v2776_v14 = vcombine.high %v97_v3, %v105_v4  ;;  %v3640_v51 = vld [vmem:[%s4715_s1 + $0x3f0] sm:$0xff]  }
  0x65   :  { %3347 = vmatpush3.bf16.msra.mxu1 %v3605_v15  ;;  %2048 = vmatprep.mubr.bf16.mxu0 %v2712_v16  ;;  %v2778_v15 = vcombine.high %v98_v6, %v106_v7  ;;  %v113_v16 = vld [vmem:[%s4716_s0 + $0x310] sm:$0xff] }
  0x66   :  { %2145 = vmatprep.mubr.bf16.mxu1 %v2714_v18  ;;  %3284 = vmatprep.subr.bf16.mxu0 %v3606_v17  ;;  %v121_v17 = vld [vmem:[%s4716_s0 + $0x350] sm:$0xff]  ;;  %v114_v18 = vld [vmem:[%s4716_s0 + $0x318] sm:$0xff] }
  0x67   :  { %3348 = vmatprep.subr.bf16.mxu1 %v3608_v20  ;;  %v2775_v20 = vcombine.low %v97_v3, %v105_v4  ;;  %v2792_v22 = vcombine.high %v113_v16, %v121_v17  ;;  %v3641_v53 = vld [vmem:[%s4715_s1 + $0x3b0] sm:$0xff]   ;;  %v3648_v3 = vld [vmem:[%s4715_s1 + $0x3e0] sm:$0xff]  }
  0x68   :  { %3285 = vmatpush3.bf16.msra.mxu0 %v3607_v19  ;;  %v122_v19 = vld [vmem:[%s4716_s0 + $0x358] sm:$0xff]  ;;  %v67_v4 = vld [vmem:[%s4716_s0 + $0x1a0] sm:$0xff] }
  0x69   :  { %3349 = vmatpush3.bf16.msra.mxu1 %v3609_v21  ;;  %3286 = vmatprep.subr.bf16.mxu0 %v3610_v26  ;;  %v2777_v21 = vcombine.low %v98_v6, %v106_v7  ;;  %v2794_v23 = vcombine.high %v114_v18, %v122_v19  ;;  %v130_v26 = vld [vmem:[%s4716_s0 + $0x398] sm:$0xff]  ;;  %v68_v6 = vld [vmem:[%s4716_s0 + $0x1a8] sm:$0xff]  ;;  %v3647_v7 = vld [vmem:[%s4715_s1 + $0x320] sm:$0xff]  }
  0x6a   :  { %3350 = vmatprep.subr.bf16.mxu1 %v3612_v27  ;;  %v138_v27 = vld [vmem:[%s4716_s0 + $0x3d8] sm:$0xff] }
  0x6b   :  { %2049 = vmatmul.mubr.bf16.gmra.mxu0 %v2711_v28  ;;  %v2791_v28 = vcombine.low %v113_v16, %v121_v17  ;;  %v3651_v16 = vld [vmem:[%s4715_s1 + $0x318] sm:$0xff]  }
  0x6c   :  { %2146 = vmatmul.mubr.bf16.gmra.mxu1 %v2713_v29  ;;  %2056 = vmatprep.mubr.bf16.mxu0 %v2728_v30  ;;  %v2793_v29 = vcombine.low %v114_v18, %v122_v19  ;;  %v2808_v30 = vcombine.high %v129_v24, %v137_v25  ;;  %v3653_v17 = vld [vmem:[%s4715_s1 + $0x398] sm:$0xff]   ;;  %v3654_v18 = vld [vmem:[%s4715_s1 + $0x350] sm:$0xff]   ;;  %v92_v24 = vld [vmem:[%s4716_s0 + $0x268] sm:$0xff] }
  0x6d   :  { %2153 = vmatprep.mubr.bf16.mxu1 %v2730_v31  ;;  %3287 = vmatpush3.bf16.msra.mxu0 %v3611_v32  ;;  %v2810_v31 = vcombine.high %v130_v26, %v138_v27  ;;  %v19_v32 = vld [vmem:[%s4716_s0 + $0x20] sm:$0xff]  ;;  %v3656_v19 = vld [vmem:[%s4715_s1 + $0x3d0] sm:$0xff]  }
  0x6e   :  { %3351 = vmatpush3.bf16.msra.mxu1 %v3613_v33  ;;  %3288 = vmatprep.subr.bf16.mxu0 %v3614_v34  ;;  %v27_v33 = vld [vmem:[%s4716_s0 + $0x60] sm:$0xff]  ;;  %v20_v34 = vld [vmem:[%s4716_s0 + $0x28] sm:$0xff]  ;;  %v3657_v25 = vld [vmem:[%s4715_s1 + $0x390] sm:$0xff]  }
  0x6f   :  { %3352 = vmatprep.subr.bf16.mxu1 %v3616_v37  ;;  %v2809_v37 = vcombine.low %v130_v26, %v138_v27  ;;  %v2700_v38 = vcombine.high %v19_v32, %v27_v33  ;;  %v2702_v39 = vcombine.high %v20_v34, %v28_v35  ;;  %v3658_v26 = vld [vmem:[%s4715_s1 + $0x348] sm:$0xff]  }
  0x71   :  { %3289 = vmatpush3.bf16.msra.mxu0 %v3615_v40  ;;  %v35_v40 = vld [vmem:[%s4716_s0 + $0xa0] sm:$0xff] }
  0x72   :  { %3353 = vmatpush3.bf16.msra.mxu1 %v3617_v41  ;;  %3290 = vmatprep.subr.bf16.mxu0 %v3618_v42  ;;  %v43_v41 = vld [vmem:[%s4716_s0 + $0xe0] sm:$0xff]  ;;  %v2699_v42 = vcombine.low %v19_v32, %v27_v33  ;;  %v3659_v32 = vld [vmem:[%s4715_s1 + $0x308] sm:$0xff]  }
  0x73   :  { %2057 = vmatmul.mubr.bf16.gmra.mxu0 %v2727_v43  ;;  %3354 = vmatprep.subr.bf16.mxu1 %v3620_v44  ;;  %v36_v43 = vld [vmem:[%s4716_s0 + $0xa8] sm:$0xff] }
  0x74   :  { %2154 = vmatmul.mubr.bf16.gmra.mxu1 %v2729_v45  ;;  %2064 = vmatprep.mubr.bf16.mxu0 %v2744_v46  ;;  %v44_v44 = vld [vmem:[%s4716_s0 + $0xe8] sm:$0xff]  ;;  %v2701_v45 = vcombine.low %v20_v34, %v28_v35  ;;  %v3635_v46 = vld [vmem:[%s4715_s1 + $0x338] sm:$0xff]   ;;  %v3662_v34 = vld [vmem:[%s4715_s1 + $0x340] sm:$0xff]  }
  0x75   :  { %2161 = vmatprep.mubr.bf16.mxu1 %v2746_v48  ;;  %3291 = vmatpush3.bf16.msra.mxu0 %v3619_v47  ;;  %v3637_v47 = vld [vmem:[%s4715_s1 + $0x3b8] sm:$0xff]   ;;  %v2716_v48 = vcombine.high %v35_v40, %v43_v41  ;;  %v3661_v33 = vld [vmem:[%s4715_s1 + $0x388] sm:$0xff]   ;;  %v3664_v35 = vld [vmem:[%s4715_s1 + $0x3c0] sm:$0xff]  }
  0x76   :  { %3355 = vmatpush3.bf16.msra.mxu1 %v3621_v49  ;;  %3292 = vmatprep.subr.bf16.mxu0 %v3622_v50  ;;  %v2718_v49 = vcombine.high %v36_v43, %v44_v44  ;;  %v3638_v50 = vld [vmem:[%s4715_s1 + $0x370] sm:$0xff]  }
  0x77   :  { %3356 = vmatprep.subr.bf16.mxu1 %v3624_v52  ;;  %v3639_v52 = vld [vmem:[%s4715_s1 + $0x330] sm:$0xff]  }
  0x79   :  { %3293 = vmatpush3.bf16.msra.mxu0 %v3623_v56  ;;  %v3642_v56 = vld [vmem:[%s4715_s1 + $0x368] sm:$0xff]  }
  0x7a   :  { %3357 = vmatpush3.bf16.msra.mxu1 %v3625_v57  ;;  %3294 = vmatprep.subr.bf16.mxu0 %v3626_v58  ;;  %v52_v57 = vld [vmem:[%s4716_s0 + $0x128] sm:$0xff] }
  0x7b   :  { %2065 = vmatmul.mubr.bf16.gmra.mxu0 %v2743_v59  ;;  %3358 = vmatprep.subr.bf16.mxu1 %v3628_v60  ;;  %v60_v58 = vld [vmem:[%s4716_s0 + $0x168] sm:$0xff]  ;;  %v2715_v60 = vcombine.low %v35_v40, %v43_v41  ;;  %v3665_v41 = vld [vmem:[%s4715_s1 + $0x380] sm:$0xff]  }
  0x7c   :  { %2162 = vmatmul.mubr.bf16.gmra.mxu1 %v2745_v61  ;;  %2072 = vmatprep.mubr.bf16.mxu0 %v2760_v62  ;;  %v3644_v59 = vld [vmem:[%s4715_s1 + $0x3e8] sm:$0xff]   ;;  %v2717_v61 = vcombine.low %v36_v43, %v44_v44  ;;  %v2732_v62 = vcombine.high %v51_v54, %v59_v55 }
  0x7d   :  { %2169 = vmatprep.mubr.bf16.mxu1 %v2762_v63  ;;  %3295 = vmatpush3.bf16.msra.mxu0 %v3627_v0  ;;  %v2734_v63 = vcombine.high %v52_v57, %v60_v58  ;;  %v3643_v0 = vld [vmem:[%s4715_s1 + $0x328] sm:$0xff]  }
  0x7e   :  { %3359 = vmatpush3.bf16.msra.mxu1 %v3629_v1  ;;  %3296 = vmatprep.subr.bf16.mxu0 %v3630_v2  ;;  %v3645_v1 = vld [vmem:[%s4715_s1 + $0x3a8] sm:$0xff]   ;;  %v3646_v2 = vld [vmem:[%s4715_s1 + $0x360] sm:$0xff]  }
  0x7f   :  { %3360 = vmatprep.subr.bf16.mxu1 %v3632_v5  ;;  %v75_v5 = vld [vmem:[%s4716_s0 + $0x1e0] sm:$0xff]  ;;  %v108_v40 = vld [vmem:[%s4716_s0 + $0x2e8] sm:$0xff] }
  0x80   :  { %v2747_v27 = vcombine.low %v67_v4, %v75_v5 }
  0x81   :  { %3297 = vmatpush3.bf16.msra.mxu0 %v3631_v8  ;;  %v76_v8 = vld [vmem:[%s4716_s0 + $0x1e8] sm:$0xff] }
  0x82   :  { %3361 = vmatpush3.bf16.msra.mxu1 %v3633_v9  ;;  %3410 = vmatprep.subr.bf16.mxu0 %v3634_v10  ;;  %v3649_v9 = vld [vmem:[%s4715_s1 + $0x3a0] sm:$0xff]   ;;  %v3650_v10 = vld [vmem:[%s4715_s1 + $0x358] sm:$0xff]  }
  0x83   :  { %2073 = vmatmul.mubr.bf16.gmra.mxu0 %v2759_v11  ;;  %3474 = vmatprep.subr.bf16.mxu1 %v3636_v12  ;;  %v2731_v11 = vcombine.low %v51_v54, %v59_v55  ;;  %v3652_v12 = vld [vmem:[%s4715_s1 + $0x3d8] sm:$0xff]   ;;  %v131_v54 = vld [vmem:[%s4716_s0 + $0x3a0] sm:$0xff] }
  0x84   :  { %2170 = vmatmul.mubr.bf16.gmra.mxu1 %v2761_v13  ;;  %2080 = vmatprep.mubr.bf16.mxu0 %v2776_v14  ;;  %v2733_v13 = vcombine.low %v52_v57, %v60_v58  ;;  %v2748_v14 = vcombine.high %v67_v4, %v75_v5  ;;  %v139_v55 = vld [vmem:[%s4716_s0 + $0x3e0] sm:$0xff]  ;;  %v140_v57 = vld [vmem:[%s4716_s0 + $0x3e8] sm:$0xff] }
  0x85   :  { %2177 = vmatprep.mubr.bf16.mxu1 %v2778_v15  ;;  %v2750_v15 = vcombine.high %v68_v6, %v76_v8 }
  0x8b   :  { %2081 = vmatmul.mubr.bf16.gmra.mxu0 %v2775_v20  ;;  %v83_v20 = vld [vmem:[%s4716_s0 + $0x220] sm:$0xff] }
  0x8c   :  { %2178 = vmatmul.mubr.bf16.gmra.mxu1 %v2777_v21  ;;  %2088 = vmatprep.mubr.bf16.mxu0 %v2792_v22  ;;  %v91_v21 = vld [vmem:[%s4716_s0 + $0x260] sm:$0xff]  ;;  %v84_v22 = vld [vmem:[%s4716_s0 + $0x228] sm:$0xff] }
  0x8d   :  { %2185 = vmatprep.mubr.bf16.mxu1 %v2794_v23  ;;  %v3655_v23 = vld [vmem:[%s4715_s1 + $0x310] sm:$0xff]   ;;  %v2765_v43 = vcombine.low %v84_v22, %v92_v24 }
  0x93   :  { %2089 = vmatmul.mubr.bf16.gmra.mxu0 %v2791_v28  ;;  %v3660_v28 = vld [vmem:[%s4715_s1 + $0x3c8] sm:$0xff]  }
  0x94   :  { %2186 = vmatmul.mubr.bf16.gmra.mxu1 %v2793_v29  ;;  %2096 = vmatprep.mubr.bf16.mxu0 %v2808_v30  ;;  %v2749_v29 = vcombine.low %v68_v6, %v76_v8  ;;  %v2764_v30 = vcombine.high %v83_v20, %v91_v21  ;;  %v37_v6 = vld [vmem:[%s4716_s0 + $0xb0] sm:$0xff]  ;;  %v38_v8 = vld [vmem:[%s4716_s0 + $0xb8] sm:$0xff] }
  0x95   :  { %2193 = vmatprep.mubr.bf16.mxu1 %v2810_v31  ;;  %v2766_v31 = vcombine.high %v84_v22, %v92_v24  ;;  %v54_v22 = vld [vmem:[%s4716_s0 + $0x138] sm:$0xff] }
  0x9b   :  { %2097 = vmatmul.mubr.bf16.gmra.mxu0 %v2807_v36  ;;  %v99_v36 = vld [vmem:[%s4716_s0 + $0x2a0] sm:$0xff] }
  0x9c   :  { %2194 = vmatmul.mubr.bf16.gmra.mxu1 %v2809_v37  ;;  %2234 = vmatprep.mubr.bf16.mxu0 %v2700_v38  ;;  %v107_v37 = vld [vmem:[%s4716_s0 + $0x2e0] sm:$0xff] }
  0x9d   :  { %2331 = vmatprep.mubr.bf16.mxu1 %v2702_v39  ;;  %v3663_v38 = vld [vmem:[%s4715_s1 + $0x300] sm:$0xff]   ;;  %v100_v39 = vld [vmem:[%s4716_s0 + $0x2a8] sm:$0xff]  ;;  %v2780_v44 = vcombine.high %v99_v36, %v107_v37 }
  0xa3   :  { %2235 = vmatmul.mubr.bf16.vlgmr.msra.gmra.mxu0 %v2699_v42  ;;  %v2763_v42 = vcombine.low %v83_v20, %v91_v21 }
  0xa4   :  { %2332 = vmatmul.mubr.bf16.vlgmr.msra.gmra.mxu1 %v2701_v45  ;;  %3411 = vmatpush3.bf16.msra.mxu0 %v3635_v46  ;;  %v2782_v45 = vcombine.high %v100_v39, %v108_v40  ;;  %v115_v46 = vld [vmem:[%s4716_s0 + $0x320] sm:$0xff] }
  0xa5   :  { %3475 = vmatpush3.bf16.msra.mxu1 %v3637_v47  ;;  %2242 = vmatprep.mubr.bf16.mxu0 %v2716_v48  ;;  %v123_v47 = vld [vmem:[%s4716_s0 + $0x360] sm:$0xff]  ;;  %v116_v48 = vld [vmem:[%s4716_s0 + $0x328] sm:$0xff] }
  0xa6   :  { %2339 = vmatprep.mubr.bf16.mxu1 %v2718_v49  ;;  %3412 = vmatprep.subr.bf16.mxu0 %v3638_v50  ;;  %v124_v49 = vld [vmem:[%s4716_s0 + $0x368] sm:$0xff]  ;;  %v2779_v50 = vcombine.low %v99_v36, %v107_v37  ;;  %v2795_v58 = vcombine.low %v115_v46, %v123_v47 }
  0xa7   :  { %3476 = vmatprep.subr.bf16.mxu1 %v3640_v51  ;;  %v2781_v51 = vcombine.low %v100_v39, %v108_v40 }
  0xa8   :  { %3413 = vmatpush3.bf16.msra.mxu0 %v3639_v52  ;;  %v2796_v52 = vcombine.high %v115_v46, %v123_v47  ;;  %v70_v46 = vld [vmem:[%s4716_s0 + $0x1b8] sm:$0xff] }
  0xa9   :  { %3477 = vmatpush3.bf16.msra.mxu1 %v3641_v53  ;;  %3414 = vmatprep.subr.bf16.mxu0 %v3642_v56  ;;  %v2798_v53 = vcombine.high %v116_v48, %v124_v49  ;;  %v132_v56 = vld [vmem:[%s4716_s0 + $0x3a8] sm:$0xff]  ;;  %v78_v47 = vld [vmem:[%s4716_s0 + $0x1f8] sm:$0xff] }
  0xaa   :  { %3478 = vmatprep.subr.bf16.mxu1 %v3644_v59  ;;  %v2797_v59 = vcombine.low %v116_v48, %v124_v49 }
  0xab   :  { %2243 = vmatmul.mubr.bf16.gmra.mxu0 %v2715_v60  ;;  %v2812_v60 = vcombine.high %v131_v54, %v139_v55 }
  0xac   :  { %2340 = vmatmul.mubr.bf16.gmra.mxu1 %v2717_v61  ;;  %2250 = vmatprep.mubr.bf16.mxu0 %v2732_v62  ;;  %v2814_v61 = vcombine.high %v132_v56, %v140_v57  ;;  %v21_v62 = vld [vmem:[%s4716_s0 + $0x30] sm:$0xff] }
  0xad   :  { %2347 = vmatprep.mubr.bf16.mxu1 %v2734_v63  ;;  %3415 = vmatpush3.bf16.msra.mxu0 %v3643_v0  ;;  %v29_v63 = vld [vmem:[%s4716_s0 + $0x70] sm:$0xff]  ;;  %v22_v0 = vld [vmem:[%s4716_s0 + $0x38] sm:$0xff] }
  0xae   :  { %3479 = vmatpush3.bf16.msra.mxu1 %v3645_v1  ;;  %3416 = vmatprep.subr.bf16.mxu0 %v3646_v2  ;;  %v30_v1 = vld [vmem:[%s4716_s0 + $0x78] sm:$0xff]  ;;  %v2811_v2 = vcombine.low %v131_v54, %v139_v55  ;;  %v2704_v4 = vcombine.high %v21_v62, %v29_v63 }
  0xaf   :  { %3480 = vmatprep.subr.bf16.mxu1 %v3648_v3  ;;  %v2813_v3 = vcombine.low %v132_v56, %v140_v57  ;;  %v2706_v5 = vcombine.high %v22_v0, %v30_v1  ;;  %v2754_v56 = vcombine.high %v70_v46, %v78_v47 }
  0xb1   :  { %3417 = vmatpush3.bf16.msra.mxu0 %v3647_v7  ;;  %v45_v7 = vld [vmem:[%s4716_s0 + $0xf0] sm:$0xff] }
  0xb2   :  { %3481 = vmatpush3.bf16.msra.mxu1 %v3649_v9  ;;  %3418 = vmatprep.subr.bf16.mxu0 %v3650_v10  ;;  %v46_v9 = vld [vmem:[%s4716_s0 + $0xf8] sm:$0xff]  ;;  %v2703_v10 = vcombine.low %v21_v62, %v29_v63 }
  0xb3   :  { %2251 = vmatmul.mubr.bf16.gmra.mxu0 %v2731_v11  ;;  %3482 = vmatprep.subr.bf16.mxu1 %v3652_v12  ;;  %v2705_v11 = vcombine.low %v22_v0, %v30_v1  ;;  %v2720_v12 = vcombine.high %v37_v6, %v45_v7  ;;  %v85_v1 = vld [vmem:[%s4716_s0 + $0x230] sm:$0xff] }
  0xb4   :  { %2348 = vmatmul.mubr.bf16.gmra.mxu1 %v2733_v13  ;;  %2258 = vmatprep.mubr.bf16.mxu0 %v2748_v14  ;;  %v2722_v13 = vcombine.high %v38_v8, %v46_v9 }
  0xb5   :  { %2355 = vmatprep.mubr.bf16.mxu1 %v2750_v15  ;;  %3419 = vmatpush3.bf16.msra.mxu0 %v3651_v16  ;;  %v4385_v16 = vld [vmem:[%s4717_s2] ss:$0 sm:$0xff] }
  0xb6   :  { %3483 = vmatpush3.bf16.msra.mxu1 %v3653_v17  ;;  %3420 = vmatprep.subr.bf16.mxu0 %v3654_v18  ;;  %v53_v18 = vld [vmem:[%s4716_s0 + $0x130] sm:$0xff] }
  0xb7   :  { %3484 = vmatprep.subr.bf16.mxu1 %v3656_v19  ;;  %v61_v19 = vld [vmem:[%s4716_s0 + $0x170] sm:$0xff] }
  0xb9   :  { %3421 = vmatpush3.bf16.msra.mxu0 %v3655_v23  ;;  %v62_v23 = vld [vmem:[%s4716_s0 + $0x178] sm:$0xff] }
  0xba   :  { %3485 = vmatpush3.bf16.msra.mxu1 %v3657_v25  ;;  %3422 = vmatprep.subr.bf16.mxu0 %v3658_v26  ;;  %v2719_v26 = vcombine.low %v37_v6, %v45_v7  ;;  %v86_v6 = vld [vmem:[%s4716_s0 + $0x238] sm:$0xff] }
  0xbb   :  { %2259 = vmatmul.mubr.bf16.gmra.mxu0 %v2747_v27  ;;  %3486 = vmatprep.subr.bf16.mxu1 %v3660_v28  ;;  %v94_v7 = vld [vmem:[%s4716_s0 + $0x278] sm:$0xff] }
  0xbc   :  { %2356 = vmatmul.mubr.bf16.gmra.mxu1 %v2749_v29  ;;  %2266 = vmatprep.mubr.bf16.mxu0 %v2764_v30  ;;  %v2721_v29 = vcombine.low %v38_v8, %v46_v9  ;;  %v2736_v30 = vcombine.high %v53_v18, %v61_v19 }
  0xbd   :  { %2363 = vmatprep.mubr.bf16.mxu1 %v2766_v31  ;;  %3423 = vmatpush3.bf16.msra.mxu0 %v3659_v32  ;;  %v2738_v32 = vcombine.high %v54_v22, %v62_v23 }
  0xbe   :  { %3487 = vmatpush3.bf16.msra.mxu1 %v3661_v33  ;;  %3424 = vmatprep.subr.bf16.mxu0 %v3662_v34 }
  0xbf   :  { %3488 = vmatprep.subr.bf16.mxu1 %v3664_v35 }
  0xc1   :  { %3425 = vmatpush3.bf16.msra.mxu0 %v3663_v38 }
  0xc2   :  { %3489 = vmatpush3.bf16.msra.mxu1 %v3665_v41  ;;  %v69_v41 = vld [vmem:[%s4716_s0 + $0x1b0] sm:$0xff] }
  0xc3   :  { %2267 = vmatmul.mubr.bf16.gmra.mxu0 %v2763_v42  ;;  %v77_v42 = vld [vmem:[%s4716_s0 + $0x1f0] sm:$0xff] }
  0xc4   :  { %2364 = vmatmul.mubr.bf16.gmra.mxu1 %v2765_v43  ;;  %2274 = vmatprep.mubr.bf16.mxu0 %v2780_v44  ;;  %v2752_v54 = vcombine.high %v69_v41, %v77_v42 }
  0xc5   :  { %2371 = vmatprep.mubr.bf16.mxu1 %v2782_v45 }
  0xcb   :  { %2275 = vmatmul.mubr.bf16.gmra.mxu0 %v2779_v50  ;;  %v2735_v50 = vcombine.low %v53_v18, %v61_v19 }
  0xcc   :  { %2372 = vmatmul.mubr.bf16.gmra.mxu1 %v2781_v51  ;;  %2282 = vmatprep.mubr.bf16.mxu0 %v2796_v52 }
  0xcd   :  { %2379 = vmatprep.mubr.bf16.mxu1 %v2798_v53  ;;  %v2737_v53 = vcombine.low %v54_v22, %v62_v23 }
  0xd3   :  { %2283 = vmatmul.mubr.bf16.gmra.mxu0 %v2795_v58 }
  0xd4   :  { %2380 = vmatmul.mubr.bf16.gmra.mxu1 %v2797_v59  ;;  %2290 = vmatprep.mubr.bf16.mxu0 %v2812_v60 }
  0xd5   :  { %2387 = vmatprep.mubr.bf16.mxu1 %v2814_v61 }
  0xdb   :  { %2291 = vmatmul.mubr.bf16.gmra.mxu0 %v2811_v2  ;;  %v93_v2 = vld [vmem:[%s4716_s0 + $0x270] sm:$0xff] }
  0xdc   :  { %2388 = vmatmul.mubr.bf16.gmra.mxu1 %v2813_v3  ;;  %2428 = vmatprep.mubr.bf16.mxu0 %v2704_v4 }
  0xdd   :  { %2525 = vmatprep.mubr.bf16.mxu1 %v2706_v5 }
  0xe3   :  { %v3042_v14 = vpop.f32.mrf.mxu0  ;;  %2429 = vmatmul.mubr.bf16.vlgmr.msra.gmra.mxu0 %v2703_v10  ;;  %v2751_v10 = vcombine.low %v69_v41, %v77_v42 }
  0xe4   :  { %v3106_v15 = vpop.f32.mrf.mxu1  ;;  %2526 = vmatmul.mubr.bf16.vlgmr.msra.gmra.mxu1 %v2705_v11  ;;  %2436 = vmatprep.mubr.bf16.mxu0 %v2720_v12 }
  0xe5   :  { %v3043_v17 = vpop.f32.mrf.mxu0  ;;  %2533 = vmatprep.mubr.bf16.mxu1 %v2722_v13  ;;  %v2753_v13 = vcombine.low %v70_v46, %v78_v47 }
  0xe6   :  { %v3044_v20 = vadd.f32 %v3043_v17, %v3042_v14  ;;  %v3107_v21 = vpop.f32.mrf.mxu1  ;;  %v2768_v14 = vcombine.high %v85_v1, %v93_v2  ;;  %v2770_v17 = vcombine.high %v86_v6, %v94_v7 }
  0xe7   :  { %v3108_v24 = vadd.f32 %v3107_v21, %v3106_v15  ;;  %v3045_v25 = vpop.f32.mrf.mxu0 }
  0xe8   :  { %v1849_v27 = vadd.f32 %v3044_v20, %v4385_v16  ;;  %v3109_v28 = vpop.f32.mrf.mxu1 }
  0xe9   :  { %v3046_v31 = vpop.f32.mrf.mxu0 }
  0xea   :  { %v4400_v33 = vadd.f32 %v3108_v24, %v1849_v27  ;;  %v3047_v34 = vadd.f32 %v3046_v31, %v3045_v25  ;;  %v3110_v35 = vpop.f32.mrf.mxu1  ;;  %v109_v27 = vld [vmem:[%s4716_s0 + $0x2f0] sm:$0xff]  ;;  %v102_v31 = vld [vmem:[%s4716_s0 + $0x2b8] sm:$0xff] }
  0xeb   :  { %v3111_v36 = vadd.f32 %v3110_v35, %v3109_v28  ;;  %v3048_v37 = vpop.f32.mrf.mxu0  ;;  %2437 = vmatmul.mubr.bf16.gmra.mxu0 %v2719_v26  ;;  %v101_v26 = vld [vmem:[%s4716_s0 + $0x2b0] sm:$0xff] }
  0xec   :  { %v1852_v38 = vadd.f32 %v3047_v34, %v4385_v16  ;;  %v3112_v39 = vpop.f32.mrf.mxu1  ;;  %2534 = vmatmul.mubr.bf16.gmra.mxu1 %v2721_v29  ;;  %2444 = vmatprep.mubr.bf16.mxu0 %v2736_v30 }
  0xed   :  { %v3049_v40 = vpop.f32.mrf.mxu0  ;;  %2541 = vmatprep.mubr.bf16.mxu1 %v2738_v32  ;;  %v110_v32 = vld [vmem:[%s4716_s0 + $0x2f8] sm:$0xff] }
  0xee   :  { %v4409_v43 = vadd.f32 %v3111_v36, %v1852_v38  ;;  %v3050_v44 = vadd.f32 %v3049_v40, %v3048_v37  ;;  %v3113_v45 = vpop.f32.mrf.mxu1  ;;  %v2767_v36 = vcombine.low %v85_v1, %v93_v2  ;;  %v2784_v40 = vcombine.high %v101_v26, %v109_v27 }
  0xef   :  { %v3114_v48 = vadd.f32 %v3113_v45, %v3112_v39  ;;  %v3051_v49 = vpop.f32.mrf.mxu0  ;;  %v2769_v39 = vcombine.low %v86_v6, %v94_v7  ;;  %v2786_v42 = vcombine.high %v102_v31, %v110_v32  ;;  %v2785_v1 = vcombine.low %v102_v31, %v110_v32 }
  0xf0   :  { %v1857_v51 = vadd.f32 %v3050_v44, %v4385_v16  ;;  %v3115_v52 = vpop.f32.mrf.mxu1 }
  0xf1   :  { %v3052_v55 = vpop.f32.mrf.mxu0 }
  0xf2   :  { %v4418_v57 = vadd.f32 %v3114_v48, %v1857_v51  ;;  %v3053_v58 = vadd.f32 %v3052_v55, %v3051_v49  ;;  %v3116_v59 = vpop.f32.mrf.mxu1 }
  0xf3   :  { %v3117_v60 = vadd.f32 %v3116_v59, %v3115_v52  ;;  %v3054_v61 = vpop.f32.mrf.mxu0  ;;  %2445 = vmatmul.mubr.bf16.gmra.mxu0 %v2735_v50  ;;  %v117_v52 = vld [vmem:[%s4716_s0 + $0x330] sm:$0xff]  ;;  %v126_v59 = vld [vmem:[%s4716_s0 + $0x378] sm:$0xff] }
  0xf4   :  { %v1860_v62 = vadd.f32 %v3053_v58, %v4385_v16  ;;  %v3118_v63 = vpop.f32.mrf.mxu1  ;;  %2542 = vmatmul.mubr.bf16.gmra.mxu1 %v2737_v53  ;;  %2452 = vmatprep.mubr.bf16.mxu0 %v2752_v54  ;;  %v125_v53 = vld [vmem:[%s4716_s0 + $0x370] sm:$0xff]  ;;  %v118_v58 = vld [vmem:[%s4716_s0 + $0x338] sm:$0xff] }
  0xf5   :  { %v3055_v0 = vpop.f32.mrf.mxu0  ;;  %2549 = vmatprep.mubr.bf16.mxu1 %v2754_v56  ;;  %v2800_v2 = vcombine.high %v117_v52, %v125_v53 }
  0xf6   :  { %v4427_v3 = vadd.f32 %v3117_v60, %v1860_v62  ;;  %v3056_v4 = vadd.f32 %v3055_v0, %v3054_v61  ;;  %v3119_v5 = vpop.f32.mrf.mxu1  ;;  %v2783_v62 = vcombine.low %v101_v26, %v109_v27 }
  0xf7   :  { %v3120_v8 = vadd.f32 %v3119_v5, %v3118_v63  ;;  %v3057_v9 = vpop.f32.mrf.mxu0  ;;  %v2802_v5 = vcombine.high %v118_v58, %v126_v59 }
  0xf8   :  { %v1865_v11 = vadd.f32 %v3056_v4, %v4385_v16  ;;  %v3121_v12 = vpop.f32.mrf.mxu1 }
  0xf9   :  { %v3058_v15 = vpop.f32.mrf.mxu0 }
  0xfa   :  { %v4436_v18 = vadd.f32 %v3120_v8, %v1865_v11  ;;  %v3059_v19 = vadd.f32 %v3058_v15, %v3057_v9  ;;  %v3122_v20 = vpop.f32.mrf.mxu1  ;;  %v141_v15 = vld [vmem:[%s4716_s0 + $0x3f0] sm:$0xff] }
  0xfb   :  { %v3123_v21 = vadd.f32 %v3122_v20, %v3121_v12  ;;  %v3060_v22 = vpop.f32.mrf.mxu0  ;;  %2453 = vmatmul.mubr.bf16.gmra.mxu0 %v2751_v10 }
  0xfc   :  { %v1868_v23 = vadd.f32 %v3059_v19, %v4385_v16  ;;  %v3124_v24 = vpop.f32.mrf.mxu1  ;;  %2550 = vmatmul.mubr.bf16.gmra.mxu1 %v2753_v13  ;;  %2460 = vmatprep.mubr.bf16.mxu0 %v2768_v14  ;;  %v133_v14 = vld [vmem:[%s4716_s0 + $0x3b0] sm:$0xff] }
  0xfd   :  { %v3061_v25 = vpop.f32.mrf.mxu0  ;;  %2557 = vmatprep.mubr.bf16.mxu1 %v2770_v17 }
  0xfe   :  { %v4445_v28 = vadd.f32 %v3123_v21, %v1868_v23  ;;  %v3062_v29 = vadd.f32 %v3061_v25, %v3060_v22  ;;  %v3125_v30 = vpop.f32.mrf.mxu1  ;;  %v134_v21 = vld [vmem:[%s4716_s0 + $0x3b8] sm:$0xff]  ;;  %v2799_v25 = vcombine.low %v117_v52, %v125_v53 }
  0xff   :  { %v3126_v34 = vadd.f32 %v3125_v30, %v3124_v24  ;;  %v3063_v35 = vpop.f32.mrf.mxu0  ;;  %v142_v22 = vld [vmem:[%s4716_s0 + $0x3f8] sm:$0xff]  ;;  %v2816_v30 = vcombine.high %v133_v14, %v141_v15 }
 0x100   :  { %v1873_v37 = vadd.f32 %v3062_v29, %v4385_v16  ;;  %v3127_v38 = vpop.f32.mrf.mxu1  ;;  %v2801_v29 = vcombine.low %v118_v58, %v126_v59  ;;  %v2818_v32 = vcombine.high %v134_v21, %v142_v22  ;;  %v2817_v52 = vcombine.low %v134_v21, %v142_v22 }
 0x101   :  { %v3064_v41 = vpop.f32.mrf.mxu0 }
 0x102   :  { %v4454_v44 = vadd.f32 %v3126_v34, %v1873_v37  ;;  %v3065_v45 = vadd.f32 %v3064_v41, %v3063_v35  ;;  %v3128_v46 = vpop.f32.mrf.mxu1 }
 0x103   :  { %v3129_v47 = vadd.f32 %v3128_v46, %v3127_v38  ;;  %v3066_v48 = vpop.f32.mrf.mxu0  ;;  %2461 = vmatmul.mubr.bf16.gmra.mxu0 %v2767_v36 }
 0x104   :  { %v1876_v49 = vadd.f32 %v3065_v45, %v4385_v16  ;;  %v3130_v50 = vpop.f32.mrf.mxu1  ;;  %2558 = vmatmul.mubr.bf16.gmra.mxu1 %v2769_v39  ;;  %2468 = vmatprep.mubr.bf16.mxu0 %v2784_v40 }
 0x105   :  { %v3067_v51 = vpop.f32.mrf.mxu0  ;;  %2565 = vmatprep.mubr.bf16.mxu1 %v2786_v42 }
 0x106   :  { %v4463_v54 = vadd.f32 %v3129_v47, %v1876_v49  ;;  %v3068_v55 = vadd.f32 %v3067_v51, %v3066_v48  ;;  %v3131_v56 = vpop.f32.mrf.mxu1  ;;  %v2815_v49 = vcombine.low %v133_v14, %v141_v15 }
 0x107   :  { %v3132_v60 = vadd.f32 %v3131_v56, %v3130_v50  ;;  %v3069_v61 = vpop.f32.mrf.mxu0 }
 0x108   :  { %v1881_v63 = vadd.f32 %v3068_v55, %v4385_v16  ;;  %v3133_v0 = vpop.f32.mrf.mxu1 }
 0x109   :  { %v3070_v4 = vpop.f32.mrf.mxu0 }
 0x10a   :  { %v4472_v6 = vadd.f32 %v3132_v60, %v1881_v63  ;;  %v3071_v7 = vadd.f32 %v3070_v4, %v3069_v61  ;;  %v3134_v8 = vpop.f32.mrf.mxu1 }
 0x10b   :  { %v3135_v9 = vadd.f32 %v3134_v8, %v3133_v0  ;;  %v3072_v10 = vpop.f32.mrf.mxu0  ;;  %2469 = vmatmul.mubr.bf16.gmra.mxu0 %v2783_v62 }
 0x10c   :  { %v1884_v11 = vadd.f32 %v3071_v7, %v4385_v16  ;;  %v3136_v12 = vpop.f32.mrf.mxu1  ;;  %2566 = vmatmul.mubr.bf16.gmra.mxu1 %v2785_v1  ;;  %2476 = vmatprep.mubr.bf16.mxu0 %v2800_v2 }
 0x10d   :  { %v3073_v13 = vpop.f32.mrf.mxu0  ;;  %2573 = vmatprep.mubr.bf16.mxu1 %v2802_v5 }
 0x10e   :  { %v4481_v17 = vadd.f32 %v3135_v9, %v1884_v11  ;;  %v3074_v19 = vadd.f32 %v3073_v13, %v3072_v10  ;;  %v3137_v20 = vpop.f32.mrf.mxu1 }
 0x10f   :  { %v3138_v23 = vadd.f32 %v3137_v20, %v3136_v12  ;;  %v3075_v24 = vpop.f32.mrf.mxu0 }
 0x110   :  { %v1889_v26 = vadd.f32 %v3074_v19, %v4385_v16  ;;  %v3139_v27 = vpop.f32.mrf.mxu1 }
 0x111   :  { %v3076_v31 = vpop.f32.mrf.mxu0 }
 0x112   :  { %v4490_v34 = vadd.f32 %v3138_v23, %v1889_v26  ;;  %v3077_v35 = vadd.f32 %v3076_v31, %v3075_v24  ;;  %v3140_v36 = vpop.f32.mrf.mxu1 }
 0x113   :  { %v3141_v37 = vadd.f32 %v3140_v36, %v3139_v27  ;;  %v3078_v38 = vpop.f32.mrf.mxu0  ;;  %2477 = vmatmul.mubr.bf16.gmra.mxu0 %v2799_v25 }
 0x114   :  { %v1892_v39 = vadd.f32 %v3077_v35, %v4385_v16  ;;  %v3142_v40 = vpop.f32.mrf.mxu1  ;;  %2574 = vmatmul.mubr.bf16.gmra.mxu1 %v2801_v29  ;;  %2484 = vmatprep.mubr.bf16.mxu0 %v2816_v30 }
 0x115   :  { %v3079_v41 = vpop.f32.mrf.mxu0  ;;  %2581 = vmatprep.mubr.bf16.mxu1 %v2818_v32 }
 0x116   :  { %v4493_v42 = vadd.f32 %v3141_v37, %v1892_v39  ;;  %v3080_v45 = vadd.f32 %v3079_v41, %v3078_v38  ;;  %v3143_v46 = vpop.f32.mrf.mxu1 }
 0x117   :  { %v3144_v47 = vadd.f32 %v3143_v46, %v3142_v40  ;;  %v3081_v48 = vpop.f32.mrf.mxu0 }
 0x118   :  { %v1897_v50 = vadd.f32 %v3080_v45, %v4385_v16  ;;  %v3145_v51 = vpop.f32.mrf.mxu1 }
 0x119   :  { %v3082_v53 = vpop.f32.mrf.mxu0 }
 0x11a   :  { %v4496_v55 = vadd.f32 %v3144_v47, %v1897_v50  ;;  %v3083_v56 = vadd.f32 %v3082_v53, %v3081_v48  ;;  %v3146_v58 = vpop.f32.mrf.mxu1 }
 0x11b   :  { %v3147_v59 = vadd.f32 %v3146_v58, %v3145_v51  ;;  %v3084_v60 = vpop.f32.mrf.mxu0  ;;  %2485 = vmatmul.mubr.bf16.gmra.mxu0 %v2815_v49 }
 0x11c   :  { %v1900_v61 = vadd.f32 %v3083_v56, %v4385_v16  ;;  %v3148_v62 = vpop.f32.mrf.mxu1  ;;  %2582 = vmatmul.mubr.bf16.gmra.mxu1 %v2817_v52 }
 0x11d   :  { %v3085_v63 = vpop.f32.mrf.mxu0 }
 0x11e   :  { %v4499_v0 = vadd.f32 %v3147_v59, %v1900_v61  ;;  %v3086_v1 = vadd.f32 %v3085_v63, %v3084_v60  ;;  %v3149_v2 = vpop.f32.mrf.mxu1 }
 0x11f   :  { %v3150_v4 = vadd.f32 %v3149_v2, %v3148_v62  ;;  %v3087_v5 = vpop.f32.mrf.mxu0 }
 0x120   :  { %v1905_v7 = vadd.f32 %v3086_v1, %v4385_v16  ;;  %v3151_v8 = vpop.f32.mrf.mxu1 }
 0x121   :  { %v3088_v9 = vpop.f32.mrf.mxu0 }
 0x122   :  { %v4502_v10 = vadd.f32 %v3150_v4, %v1905_v7  ;;  %v3089_v11 = vadd.f32 %v3088_v9, %v3087_v5  ;;  %v3152_v12 = vpop.f32.mrf.mxu1 }
 0x123   :  { %v3153_v13 = vadd.f32 %v3152_v12, %v3151_v8  ;;  %v3170_v14 = vpop.f32.mrf.mxu0 }
 0x124   :  { %v1908_v15 = vadd.f32 %v3089_v11, %v4385_v16  ;;  %v3234_v19 = vpop.f32.mrf.mxu1 }
 0x125   :  { %v3171_v20 = vpop.f32.mrf.mxu0 }
 0x126   :  { %v4505_v21 = vadd.f32 %v3153_v13, %v1908_v15  ;;  %v3172_v22 = vadd.f32 %v3171_v20, %v3170_v14  ;;  %v3235_v23 = vpop.f32.mrf.mxu1 }
 0x127   :  { %v3236_v24 = vadd.f32 %v3235_v23, %v3234_v19  ;;  %v3173_v25 = vpop.f32.mrf.mxu0 }
 0x128   :  { %v2043_v26 = vadd.f32 %v3172_v22, %v4400_v33  ;;  %v3237_v27 = vpop.f32.mrf.mxu1 }
 0x129   :  { %v3174_v29 = vpop.f32.mrf.mxu0 }
 0x12a   :  { %v4508_v30 = vadd.f32 %v3236_v24, %v2043_v26  ;;  %v3175_v31 = vadd.f32 %v3174_v29, %v3173_v25  ;;  %v3238_v32 = vpop.f32.mrf.mxu1 }
 0x12b   :  { %v3239_v35 = vadd.f32 %v3238_v32, %v3237_v27  ;;  %v3176_v36 = vpop.f32.mrf.mxu0 }
 0x12c   :  { %v2046_v16 = vadd.f32 %v3175_v31, %v4409_v43  ;;  %v3240_v37 = vpop.f32.mrf.mxu1 }
 0x12d   :  { %v3177_v38 = vpop.f32.mrf.mxu0 }
 0x12e   :  { %v4511_v39 = vadd.f32 %v3239_v35, %v2046_v16  ;;  %v3178_v40 = vadd.f32 %v3177_v38, %v3176_v36  ;;  %v3241_v41 = vpop.f32.mrf.mxu1 }
 0x12f   :  { %v3242_v45 = vadd.f32 %v3241_v41, %v3240_v37  ;;  %v3179_v46 = vpop.f32.mrf.mxu0 }
 0x130   :  { %v2051_v33 = vadd.f32 %v3178_v40, %v4418_v57  ;;  %v3243_v47 = vpop.f32.mrf.mxu1 }
 0x131   :  { %v3180_v48 = vpop.f32.mrf.mxu0 }
 0x132   :  { %v4514_v49 = vadd.f32 %v3242_v45, %v2051_v33  ;;  %v3181_v50 = vadd.f32 %v3180_v48, %v3179_v46  ;;  %v3244_v51 = vpop.f32.mrf.mxu1 }
 0x133   :  { %v3245_v52 = vadd.f32 %v3244_v51, %v3243_v47  ;;  %v3182_v53 = vpop.f32.mrf.mxu0 }
 0x134   :  { %v2054_v43 = vadd.f32 %v3181_v50, %v4427_v3  ;;  %v3246_v56 = vpop.f32.mrf.mxu1 }
 0x135   :  { %v3183_v58 = vpop.f32.mrf.mxu0 }
 0x136   :  { %v4517_v59 = vadd.f32 %v3245_v52, %v2054_v43  ;;  %v3184_v60 = vadd.f32 %v3183_v58, %v3182_v53  ;;  %v3247_v61 = vpop.f32.mrf.mxu1 }
 0x137   :  { %v3248_v62 = vadd.f32 %v3247_v61, %v3246_v56  ;;  %v3185_v63 = vpop.f32.mrf.mxu0 }
 0x138   :  { %v2059_v57 = vadd.f32 %v3184_v60, %v4436_v18  ;;  %v3249_v1 = vpop.f32.mrf.mxu1 }
 0x139   :  { %v3186_v2 = vpop.f32.mrf.mxu0 }
 0x13a   :  { %v4520_v4 = vadd.f32 %v3248_v62, %v2059_v57  ;;  %v3187_v5 = vadd.f32 %v3186_v2, %v3185_v63  ;;  %v3250_v7 = vpop.f32.mrf.mxu1 }
 0x13b   :  { %v3251_v8 = vadd.f32 %v3250_v7, %v3249_v1  ;;  %v3188_v9 = vpop.f32.mrf.mxu0 }
 0x13c   :  { %v2062_v3 = vadd.f32 %v3187_v5, %v4445_v28  ;;  %v3252_v11 = vpop.f32.mrf.mxu1 }
 0x13d   :  { %v3189_v12 = vpop.f32.mrf.mxu0 }
 0x13e   :  { %v4523_v13 = vadd.f32 %v3251_v8, %v2062_v3  ;;  %v3190_v14 = vadd.f32 %v3189_v12, %v3188_v9  ;;  %v3253_v15 = vpop.f32.mrf.mxu1 }
 0x13f   :  { %v3254_v19 = vadd.f32 %v3253_v15, %v3252_v11  ;;  %v3191_v20 = vpop.f32.mrf.mxu0 }
 0x140   :  { %v2067_v18 = vadd.f32 %v3190_v14, %v4454_v44  ;;  %v3255_v22 = vpop.f32.mrf.mxu1 }
 0x141   :  { %v3192_v23 = vpop.f32.mrf.mxu0 }
 0x142   :  { %v4526_v24 = vadd.f32 %v3254_v19, %v2067_v18  ;;  %v3193_v25 = vadd.f32 %v3192_v23, %v3191_v20  ;;  %v3256_v26 = vpop.f32.mrf.mxu1 }
 0x143   :  { %v3257_v27 = vadd.f32 %v3256_v26, %v3255_v22  ;;  %v3194_v29 = vpop.f32.mrf.mxu0 }
 0x144   :  { %v2070_v28 = vadd.f32 %v3193_v25, %v4463_v54  ;;  %v3258_v31 = vpop.f32.mrf.mxu1 }
 0x145   :  { %v3195_v32 = vpop.f32.mrf.mxu0 }
 0x146   :  { %v4529_v35 = vadd.f32 %v3257_v27, %v2070_v28  ;;  %v3196_v36 = vadd.f32 %v3195_v32, %v3194_v29  ;;  %v3259_v16 = vpop.f32.mrf.mxu1 }
 0x147   :  { %v3260_v37 = vadd.f32 %v3259_v16, %v3258_v31  ;;  %v3197_v38 = vpop.f32.mrf.mxu0 }
 0x148   :  { %v2075_v44 = vadd.f32 %v3196_v36, %v4472_v6  ;;  %v3261_v40 = vpop.f32.mrf.mxu1 }
 0x149   :  { %v3198_v41 = vpop.f32.mrf.mxu0 }
 0x14a   :  { %v4532_v45 = vadd.f32 %v3260_v37, %v2075_v44  ;;  %v3199_v46 = vadd.f32 %v3198_v41, %v3197_v38  ;;  %v3262_v33 = vpop.f32.mrf.mxu1 }
 0x14b   :  { %v3263_v47 = vadd.f32 %v3262_v33, %v3261_v40  ;;  %v3200_v48 = vpop.f32.mrf.mxu0 }
 0x14c   :  { %v2078_v54 = vadd.f32 %v3199_v46, %v4481_v17  ;;  %v3264_v50 = vpop.f32.mrf.mxu1 }
 0x14d   :  { %v3201_v51 = vpop.f32.mrf.mxu0 }
 0x14e   :  { %v4535_v52 = vadd.f32 %v3263_v47, %v2078_v54  ;;  %v3202_v53 = vadd.f32 %v3201_v51, %v3200_v48  ;;  %v3265_v43 = vpop.f32.mrf.mxu1 }
 0x14f   :  { %v3266_v56 = vadd.f32 %v3265_v43, %v3264_v50  ;;  %v3203_v58 = vpop.f32.mrf.mxu0 }
 0x150   :  { %v2083_v6 = vadd.f32 %v3202_v53, %v4490_v34  ;;  %v3267_v60 = vpop.f32.mrf.mxu1 }
 0x151   :  { %v3204_v61 = vpop.f32.mrf.mxu0 }
 0x152   :  { %v4538_v62 = vadd.f32 %v3266_v56, %v2083_v6  ;;  %v3205_v63 = vadd.f32 %v3204_v61, %v3203_v58  ;;  %v3268_v57 = vpop.f32.mrf.mxu1 }
 0x153   :  { %v3269_v1 = vadd.f32 %v3268_v57, %v3267_v60  ;;  %v3206_v2 = vpop.f32.mrf.mxu0 }
 0x154   :  { %v2086_v17 = vadd.f32 %v3205_v63, %v4493_v42  ;;  %v3270_v5 = vpop.f32.mrf.mxu1 }
 0x155   :  { %v3207_v7 = vpop.f32.mrf.mxu0 }
 0x156   :  { %v4541_v8 = vadd.f32 %v3269_v1, %v2086_v17  ;;  %v3208_v9 = vadd.f32 %v3207_v7, %v3206_v2  ;;  %v3271_v3 = vpop.f32.mrf.mxu1 }
 0x157   :  { %v3272_v11 = vadd.f32 %v3271_v3, %v3270_v5  ;;  %v3209_v12 = vpop.f32.mrf.mxu0 }
 0x158   :  { %v2091_v34 = vadd.f32 %v3208_v9, %v4496_v55  ;;  %v3273_v14 = vpop.f32.mrf.mxu1 }
 0x159   :  { %v3210_v15 = vpop.f32.mrf.mxu0 }
 0x15a   :  { %v4544_v19 = vadd.f32 %v3272_v11, %v2091_v34  ;;  %v3211_v20 = vadd.f32 %v3210_v15, %v3209_v12  ;;  %v3274_v18 = vpop.f32.mrf.mxu1 }
 0x15b   :  { %v3275_v22 = vadd.f32 %v3274_v18, %v3273_v14  ;;  %v3212_v23 = vpop.f32.mrf.mxu0 }
 0x15c   :  { %v2094_v42 = vadd.f32 %v3211_v20, %v4499_v0  ;;  %v3276_v25 = vpop.f32.mrf.mxu1 }
 0x15d   :  { %v3213_v26 = vpop.f32.mrf.mxu0 }
 0x15e   :  { %v4547_v27 = vadd.f32 %v3275_v22, %v2094_v42  ;;  %v3214_v29 = vadd.f32 %v3213_v26, %v3212_v23  ;;  %v3277_v28 = vpop.f32.mrf.mxu1 }
 0x15f   :  { %v3278_v31 = vadd.f32 %v3277_v28, %v3276_v25  ;;  %v3215_v32 = vpop.f32.mrf.mxu0 }
 0x160   :  { %v2099_v55 = vadd.f32 %v3214_v29, %v4502_v10  ;;  %v3279_v36 = vpop.f32.mrf.mxu1 }
 0x161   :  { %v3216_v16 = vpop.f32.mrf.mxu0 }
 0x162   :  { %v4550_v37 = vadd.f32 %v3278_v31, %v2099_v55  ;;  %v3217_v38 = vadd.f32 %v3216_v16, %v3215_v32  ;;  %v3280_v44 = vpop.f32.mrf.mxu1 }
 0x163   :  { %v3281_v40 = vadd.f32 %v3280_v44, %v3279_v36  ;;  %v3298_v41 = vpop.f32.mrf.mxu0 }
 0x164   :  { %v2102_v0 = vadd.f32 %v3217_v38, %v4505_v21  ;;  %v3362_v46 = vpop.f32.mrf.mxu1 }
 0x165   :  { %v3299_v33 = vpop.f32.mrf.mxu0 }
 0x166   :  { %v4553_v47 = vadd.f32 %v3281_v40, %v2102_v0  ;;  %v3300_v48 = vadd.f32 %v3299_v33, %v3298_v41  ;;  %v3363_v54 = vpop.f32.mrf.mxu1 }
 0x167   :  { %v3364_v50 = vadd.f32 %v3363_v54, %v3362_v46  ;;  %v4555_v51 = vpop.f32.mrf.mxu0 }
 0x168   :  { %v2237_v10 = vadd.f32 %v3300_v48, %v4508_v30  ;;  %v4558_v53 = vpop.f32.mrf.mxu1 }
 0x169   :  { %v4560_v43 = vpop.f32.mrf.mxu0 }
 0x16a   :  { %v4562_v56 = vadd.f32 %v3364_v50, %v2237_v10  ;;  %v4564_v58 = vpop.f32.mrf.mxu1 }
 0x16b   :  { %v3304_v21 = vpop.f32.mrf.mxu0 }
 0x16c   :  { %v3368_v6 = vpop.f32.mrf.mxu1 }
 0x16d   :  { %v3305_v60 = vpop.f32.mrf.mxu0 }
 0x16e   :  { %v3306_v61 = vadd.f32 %v3305_v60, %v3304_v21  ;;  %v3369_v63 = vpop.f32.mrf.mxu1 }
 0x16f   :  { %v3370_v57 = vadd.f32 %v3369_v63, %v3368_v6  ;;  %v4566_v1 = vpop.f32.mrf.mxu0 }
 0x170   :  { %v2245_v2 = vadd.f32 %v3306_v61, %v4514_v49  ;;  %v4569_v17 = vpop.f32.mrf.mxu1 }
 0x171   :  { %v4571_v30 = vpop.f32.mrf.mxu0 }
 0x172   :  { %v4573_v5 = vadd.f32 %v3370_v57, %v2245_v2  ;;  %v4575_v7 = vpop.f32.mrf.mxu1 }
 0x173   :  { %v3310_v9 = vpop.f32.mrf.mxu0 }
 0x174   :  { %v3374_v3 = vpop.f32.mrf.mxu1 }
 0x175   :  { %v3311_v11 = vpop.f32.mrf.mxu0 }
 0x176   :  { %v3312_v12 = vadd.f32 %v3311_v11, %v3310_v9  ;;  %v3375_v34 = vpop.f32.mrf.mxu1 }
 0x177   :  { %v3376_v14 = vadd.f32 %v3375_v34, %v3374_v3  ;;  %v4577_v15 = vpop.f32.mrf.mxu0 }
 0x178   :  { %v2253_v20 = vadd.f32 %v3312_v12, %v4520_v4  ;;  %v4580_v18 = vpop.f32.mrf.mxu1 }
 0x179   :  { %v4582_v49 = vpop.f32.mrf.mxu0 }
 0x17a   :  { %v4584_v22 = vadd.f32 %v3376_v14, %v2253_v20  ;;  %v4586_v23 = vpop.f32.mrf.mxu1 }
 0x17b   :  { %v3316_v42 = vpop.f32.mrf.mxu0 }
 0x17c   :  { %v3380_v25 = vpop.f32.mrf.mxu1 }
 0x17d   :  { %v3317_v26 = vpop.f32.mrf.mxu0 }
 0x17e   :  { %v3318_v29 = vadd.f32 %v3317_v26, %v3316_v42  ;;  %v3381_v28 = vpop.f32.mrf.mxu1 }
 0x17f   :  { %v3382_v31 = vadd.f32 %v3381_v28, %v3380_v25  ;;  %v4588_v32 = vpop.f32.mrf.mxu0 }
 0x180   :  { %v2261_v55 = vadd.f32 %v3318_v29, %v4526_v24  ;;  %v4591_v36 = vpop.f32.mrf.mxu1 }
 0x181   :  { %v4593_v4 = vpop.f32.mrf.mxu0 }
 0x182   :  { %v4595_v16 = vadd.f32 %v3382_v31, %v2261_v55  ;;  %v4597_v38 = vpop.f32.mrf.mxu1 }
 0x183   :  { %v3322_v44 = vpop.f32.mrf.mxu0 }
 0x184   :  { %v3386_v40 = vpop.f32.mrf.mxu1 }
 0x185   :  { %v3323_v41 = vpop.f32.mrf.mxu0 }
 0x186   :  { %v3324_v0 = vadd.f32 %v3323_v41, %v3322_v44  ;;  %v3387_v46 = vpop.f32.mrf.mxu1 }
 0x187   :  { %v3388_v33 = vadd.f32 %v3387_v46, %v3386_v40  ;;  %v4599_v48 = vpop.f32.mrf.mxu0 }
 0x188   :  { %v2269_v54 = vadd.f32 %v3324_v0, %v4532_v45  ;;  %v4602_v50 = vpop.f32.mrf.mxu1 }
 0x189   :  { %v4604_v24 = vpop.f32.mrf.mxu0 }
 0x18a   :  { %v4606_v10 = vadd.f32 %v3388_v33, %v2269_v54  ;;  %v4608_v21 = vpop.f32.mrf.mxu1 }
 0x18b   :  { %v3328_v6 = vpop.f32.mrf.mxu0 }
 0x18c   :  { %v3392_v60 = vpop.f32.mrf.mxu1 }
 0x18d   :  { %v3329_v61 = vpop.f32.mrf.mxu0 }
 0x18e   :  { %v3330_v63 = vadd.f32 %v3329_v61, %v3328_v6  ;;  %v3393_v57 = vpop.f32.mrf.mxu1 }
 0x18f   :  { %v3394_v2 = vadd.f32 %v3393_v57, %v3392_v60  ;;  %v4610_v9 = vpop.f32.mrf.mxu0  ;;  %v3303_v57 = vadd.f32 %v4560_v43, %v4555_v51  ;;  %v3309_v43 = vadd.f32 %v4571_v30, %v4566_v1 }
 0x190   :  { %v2277_v3 = vadd.f32 %v3330_v63, %v4538_v62  ;;  %v4613_v11 = vpop.f32.mrf.mxu1 }
 0x191   :  { %v4615_v45 = vpop.f32.mrf.mxu0 }
 0x192   :  { %v4617_v12 = vadd.f32 %v3394_v2, %v2277_v3  ;;  %v4619_v34 = vpop.f32.mrf.mxu1 }
 0x193   :  { %v3334_v14 = vpop.f32.mrf.mxu0 }
 0x194   :  { %v3398_v20 = vpop.f32.mrf.mxu1 }
 0x195   :  { %v3335_v42 = vpop.f32.mrf.mxu0 }
 0x196   :  { %v3336_v25 = vadd.f32 %v3335_v42, %v3334_v14  ;;  %v3399_v26 = vpop.f32.mrf.mxu1 }
 0x197   :  { %v3400_v29 = vadd.f32 %v3399_v26, %v3398_v20  ;;  %v4621_v28 = vpop.f32.mrf.mxu0 }
 0x198   :  { %v2285_v31 = vadd.f32 %v3336_v25, %v4544_v19  ;;  %v4624_v55 = vpop.f32.mrf.mxu1  ;;  %v2240_v25 = vadd.f32 %v3303_v57, %v4511_v39 }
 0x199   :  { %v4626_v62 = vpop.f32.mrf.mxu0 }
 0x19a   :  { %v4628_v44 = vadd.f32 %v3400_v29, %v2285_v31  ;;  %v4630_v40 = vpop.f32.mrf.mxu1 }
 0x19b   :  { %v3340_v41 = vpop.f32.mrf.mxu0 }
 0x19c   :  { %v3404_v0 = vpop.f32.mrf.mxu1 }
 0x19d   :  { %v3341_v46 = vpop.f32.mrf.mxu0 }
 0x19e   :  { %v3342_v33 = vadd.f32 %v3341_v46, %v3340_v41  ;;  %v3405_v54 = vpop.f32.mrf.mxu1 }
 0x19f   :  { %v3406_v6 = vadd.f32 %v3405_v54, %v3404_v0  ;;  %v4632_v60 = vpop.f32.mrf.mxu0 }
 0x1a0   :  { %v2293_v61 = vadd.f32 %v3342_v33, %v4550_v37  ;;  %v4635_v63 = vpop.f32.mrf.mxu1  ;;  %v3367_v37 = vadd.f32 %v4564_v58, %v4558_v53 }
 0x1a1   :  { %v4637_v19 = vpop.f32.mrf.mxu0 }
 0x1a2   :  { %v4641_v2 = vadd.f32 %v3406_v6, %v2293_v61  ;;  %v4643_v3 = vpop.f32.mrf.mxu1  ;;  %v2337_v51 = vadd.f32 %v3367_v37, %v2240_v25  ;;  %v3373_v25 = vadd.f32 %v4575_v7, %v4569_v17 }
 0x1a3   :  { %4720 = vst [vmem:[#allocation3_spill] sm:$0xff] %v4643_v3  ;;  %v3426_v14 = vpop.f32.mrf.mxu0  ;;  %v2248_v3 = vadd.f32 %v3309_v43, %v4517_v59 }
 0x1a4   :  { %4719 = vst [vmem:[#allocation2_spill] sm:$0xff] %v4641_v2  ;;  %v3490_v20 = vpop.f32.mrf.mxu1 }
 0x1a5   :  { %v3427_v42 = vpop.f32.mrf.mxu0 }
 0x1a6   :  { %v3428_v26 = vadd.f32 %v3427_v42, %v3426_v14  ;;  %v3491_v29 = vpop.f32.mrf.mxu1 }
 0x1a7   :  { %v3429_v31 = vpop.f32.mrf.mxu0  ;;  %v3492_v33 = vadd.f32 %v3491_v29, %v3490_v20  ;;  %v3315_v29 = vadd.f32 %v4582_v49, %v4577_v15 }
 0x1a8   :  { %v2431_v41 = vadd.f32 %v3428_v26, %v4562_v56  ;;  %v3493_v0 = vpop.f32.mrf.mxu1 }
 0x1a9   :  { %v3430_v46 = vpop.f32.mrf.mxu0 }
 0x1aa   :  { %v3431_v54 = vadd.f32 %v3430_v46, %v3429_v31  ;;  %v3494_v6 = vpop.f32.mrf.mxu1  ;;  %v2528_v2 = vadd.f32 %v3492_v33, %v2431_v41  ;;  %v2345_v41 = vadd.f32 %v3373_v25, %v2248_v3  ;;  %v3379_v3 = vadd.f32 %v4586_v23, %v4580_v18 }
 0x1ab   :  { %v3432_v61 = vpop.f32.mrf.mxu0  ;;  %v3495_v57 = vadd.f32 %v3494_v6, %v3493_v0 }
 0x1ac   :  { %v2434_v39 = vadd.f32 %v3431_v54, %v2337_v51  ;;  %v3496_v14 = vpop.f32.mrf.mxu1  ;;  %v2590_v37 = vmax.f32 %v2528_v2, 0.0 }
 0x1ad   :  { %v3433_v42 = vpop.f32.mrf.mxu0 }
 0x1ae   :  { %v2531_v53 = vadd.f32 %v3495_v57, %v2434_v39  ;;  %v3434_v58 = vadd.f32 %v3433_v42, %v3432_v61  ;;  %v3497_v56 = vpop.f32.mrf.mxu1 }
 0x1af   :  { %v3435_v26 = vpop.f32.mrf.mxu0  ;;  %v3498_v46 = vadd.f32 %v3497_v56, %v3496_v14  ;;  %v3321_v56 = vadd.f32 %v4593_v4, %v4588_v32  ;;  %v3385_v4 = vadd.f32 %v4597_v38, %v4591_v36 }
 0x1b0   :  { %v2591_v1 = vmax.f32 %v2531_v53, 0.0  ;;  %v2439_v30 = vadd.f32 %v3434_v58, %v4573_v5  ;;  %v3499_v20 = vpop.f32.mrf.mxu1  ;;  %v2256_v5 = vadd.f32 %v3315_v29, %v4523_v13 }
 0x1b1   :  { %v3436_v31 = vpop.f32.mrf.mxu0  ;;  %v2264_v29 = vadd.f32 %v3321_v56, %v4529_v35 }
 0x1b2   :  { %v2982_v0 = vpack.c.bf16 %v2591_v1, %v2590_v37  ;;  %v3437_v59 = vadd.f32 %v3436_v31, %v3435_v26  ;;  %v3500_v51 = vpop.f32.mrf.mxu1  ;;  %v2536_v17 = vadd.f32 %v3498_v46, %v2439_v30  ;;  %v2353_v53 = vadd.f32 %v3379_v3, %v2256_v5 }
 0x1b3   :  { %v3438_v43 = vpop.f32.mrf.mxu0  ;;  %v3501_v2 = vadd.f32 %v3500_v51, %v3499_v20 }
 0x1b4   :  { %2983 = vst [vmem:[%s4718_s3] sm:$0xff] %v2982_v0   ;;  %v2442_v7 = vadd.f32 %v3437_v59, %v2345_v41  ;;  %v3502_v33 = vpop.f32.mrf.mxu1  ;;  %v2592_v39 = vmax.f32 %v2536_v17, 0.0  ;;  %v3327_v17 = vadd.f32 %v4604_v24, %v4599_v48 }
 0x1b5   :  { %v3439_v54 = vpop.f32.mrf.mxu0 }
 0x1b6   :  { %v2539_v6 = vadd.f32 %v3501_v2, %v2442_v7  ;;  %v3440_v15 = vadd.f32 %v3439_v54, %v3438_v43  ;;  %v3503_v49 = vpop.f32.mrf.mxu1  ;;  %v2361_v2 = vadd.f32 %v3385_v4, %v2264_v29 }
 0x1b7   :  { %v3441_v61 = vpop.f32.mrf.mxu0  ;;  %v3504_v13 = vadd.f32 %v3503_v49, %v3502_v33 }
 0x1b8   :  { %v2593_v57 = vmax.f32 %v2539_v6, 0.0  ;;  %v2447_v14 = vadd.f32 %v3440_v15, %v4584_v22  ;;  %v3505_v42 = vpop.f32.mrf.mxu1 }
 0x1b9   :  { %v3442_v58 = vpop.f32.mrf.mxu0 }
 0x1ba   :  { %v2987_v26 = vpack.c.bf16 %v2593_v57, %v2592_v39  ;;  %v3443_v25 = vadd.f32 %v3442_v58, %v3441_v61  ;;  %v3506_v37 = vpop.f32.mrf.mxu1  ;;  %v2544_v18 = vadd.f32 %v3504_v13, %v2447_v14  ;;  %v3391_v39 = vadd.f32 %v4608_v21, %v4602_v50 }
 0x1bb   :  { %v3444_v1 = vpop.f32.mrf.mxu0  ;;  %v3507_v30 = vadd.f32 %v3506_v37, %v3505_v42  ;;  %v3333_v13 = vadd.f32 %v4615_v45, %v4610_v9  ;;  %v3397_v45 = vadd.f32 %v4619_v34, %v4613_v11 }
 0x1bc   :  { %3019 = vst [vmem:[%s4718_s3 + $0x8] sm:$0xff] %v2987_v26   ;;  %v2450_v23 = vadd.f32 %v3443_v25, %v2353_v53  ;;  %v3508_v20 = vpop.f32.mrf.mxu1  ;;  %v2594_v46 = vmax.f32 %v2544_v18, 0.0 }
 0x1bd   :  { %v3445_v22 = vpop.f32.mrf.mxu0 }
 0x1be   :  { %v2547_v31 = vadd.f32 %v3507_v30, %v2450_v23  ;;  %v3446_v41 = vadd.f32 %v3445_v22, %v3444_v1  ;;  %v3509_v0 = vpop.f32.mrf.mxu1 }
 0x1bf   :  { %v3447_v32 = vpop.f32.mrf.mxu0  ;;  %v3510_v5 = vadd.f32 %v3509_v0, %v3508_v20  ;;  %v2280_v20 = vadd.f32 %v3333_v13, %v4541_v8 }
 0x1c0   :  { %v2595_v59 = vmax.f32 %v2547_v31, 0.0  ;;  %v2455_v51 = vadd.f32 %v3446_v41, %v4595_v16  ;;  %v3511_v43 = vpop.f32.mrf.mxu1  ;;  %v2272_v16 = vadd.f32 %v3327_v17, %v4535_v52 }
 0x1c1   :  { %v3448_v7 = vpop.f32.mrf.mxu0 }
 0x1c2   :  { %v2992_v33 = vpack.c.bf16 %v2595_v59, %v2594_v46  ;;  %v3449_v35 = vadd.f32 %v3448_v7, %v3447_v32  ;;  %v3512_v54 = vpop.f32.mrf.mxu1  ;;  %v2552_v36 = vadd.f32 %v3510_v5, %v2455_v51  ;;  %v2369_v56 = vadd.f32 %v3391_v39, %v2272_v16 }
 0x1c3   :  { %v3450_v6 = vpop.f32.mrf.mxu0  ;;  %v3513_v15 = vadd.f32 %v3512_v54, %v3511_v43  ;;  %v3339_v46 = vadd.f32 %v4626_v62, %v4621_v28  ;;  %v2377_v51 = vadd.f32 %v3397_v45, %v2280_v20 }
 0x1c4   :  { %3020 = vst [vmem:[%s4718_s3 + $0x10] sm:$0xff] %v2992_v33   ;;  %v2458_v38 = vadd.f32 %v3449_v35, %v2361_v2  ;;  %v3514_v49 = vpop.f32.mrf.mxu1  ;;  %v2596_v14 = vmax.f32 %v2552_v36, 0.0 }
 0x1c5   :  { %v3451_v3 = vpop.f32.mrf.mxu0 }
 0x1c6   :  { %v2555_v61 = vadd.f32 %v3513_v15, %v2458_v38  ;;  %v3452_v48 = vadd.f32 %v3451_v3, %v3450_v6  ;;  %v3515_v24 = vpop.f32.mrf.mxu1  ;;  %v3403_v6 = vadd.f32 %v4630_v40, %v4624_v55 }
 0x1c7   :  { %v3453_v57 = vpop.f32.mrf.mxu0  ;;  %v3516_v52 = vadd.f32 %v3515_v24, %v3514_v49 }
 0x1c8   :  { %v2597_v42 = vmax.f32 %v2555_v61, 0.0  ;;  %v2463_v53 = vadd.f32 %v3452_v48, %v4606_v10  ;;  %v3517_v58 = vpop.f32.mrf.mxu1  ;;  %v3345_v48 = vadd.f32 %v4637_v19, %v4632_v60  ;;  %v4721_v19 = vld [vmem:[#allocation3_spill] sm:$0xff] }
 0x1c9   :  { %v3454_v26 = vpop.f32.mrf.mxu0 }
 0x1ca   :  { %v2997_v25 = vpack.c.bf16 %v2597_v42, %v2596_v14  ;;  %v3455_v37 = vadd.f32 %v3454_v26, %v3453_v57  ;;  %v3518_v1 = vpop.f32.mrf.mxu1  ;;  %v2560_v50 = vadd.f32 %v3516_v52, %v2463_v53 }
 0x1cb   :  { %v3456_v18 = vpop.f32.mrf.mxu0  ;;  %v3519_v23 = vadd.f32 %v3518_v1, %v3517_v58  ;;  %v2296_v58 = vadd.f32 %v3345_v48, %v4553_v47  ;;  %v4722_v1 = vld [vmem:[#allocation2_spill] sm:$0xff] }
 0x1cc   :  { %3021 = vst [vmem:[%s4718_s3 + $0x18] sm:$0xff] %v2997_v25   ;;  %v2466_v21 = vadd.f32 %v3455_v37, %v2369_v56  ;;  %v3520_v30 = vpop.f32.mrf.mxu1  ;;  %v2598_v41 = vmax.f32 %v2560_v50, 0.0  ;;  %v3409_v25 = vadd.f32 %v4721_v19, %v4635_v63 }
 0x1cd   :  { %v3457_v10 = vpop.f32.mrf.mxu0 }
 0x1ce   :  { %v2563_v22 = vadd.f32 %v3519_v23, %v2466_v21  ;;  %v3458_v29 = vadd.f32 %v3457_v10, %v3456_v18  ;;  %v3521_v31 = vpop.f32.mrf.mxu1  ;;  %v2393_v23 = vadd.f32 %v3409_v25, %v2296_v58 }
 0x1cf   :  { %v3459_v9 = vpop.f32.mrf.mxu0  ;;  %v3522_v17 = vadd.f32 %v3521_v31, %v3520_v30 }
 0x1d0   :  { %v2599_v0 = vmax.f32 %v2563_v22, 0.0  ;;  %v2471_v32 = vadd.f32 %v3458_v29, %v4617_v12  ;;  %v3523_v4 = vpop.f32.mrf.mxu1  ;;  %v2288_v12 = vadd.f32 %v3339_v46, %v4547_v27 }
 0x1d1   :  { %v3460_v59 = vpop.f32.mrf.mxu0 }
 0x1d2   :  { %v3002_v43 = vpack.c.bf16 %v2599_v0, %v2598_v41  ;;  %v3461_v8 = vadd.f32 %v3460_v59, %v3459_v9  ;;  %v3524_v7 = vpop.f32.mrf.mxu1  ;;  %v2568_v11 = vadd.f32 %v3522_v17, %v2471_v32  ;;  %v2385_v3 = vadd.f32 %v3403_v6, %v2288_v12 }
 0x1d3   :  { %v3462_v2 = vpop.f32.mrf.mxu0  ;;  %v3525_v33 = vadd.f32 %v3524_v7, %v3523_v4 }
 0x1d4   :  { %3022 = vst [vmem:[%s4718_s3 + $0x20] sm:$0xff] %v3002_v43   ;;  %v2474_v34 = vadd.f32 %v3461_v8, %v2377_v51  ;;  %v3526_v5 = vpop.f32.mrf.mxu1  ;;  %v2600_v38 = vmax.f32 %v2568_v11, 0.0 }
 0x1d5   :  { %v3463_v35 = vpop.f32.mrf.mxu0 }
 0x1d6   :  { %v2571_v54 = vadd.f32 %v3525_v33, %v2474_v34  ;;  %v3464_v28 = vadd.f32 %v3463_v35, %v3462_v2  ;;  %v3527_v62 = vpop.f32.mrf.mxu1 }
 0x1d7   :  { %v3465_v36 = vpop.f32.mrf.mxu0  ;;  %v3528_v27 = vadd.f32 %v3527_v62, %v3526_v5 }
 0x1d8   :  { %v2601_v15 = vmax.f32 %v2571_v54, 0.0  ;;  %v2479_v49 = vadd.f32 %v3464_v28, %v4628_v44  ;;  %v3529_v16 = vpop.f32.mrf.mxu1 }
 0x1d9   :  { %v3466_v61 = vpop.f32.mrf.mxu0 }
 0x1da   :  { %v3007_v24 = vpack.c.bf16 %v2601_v15, %v2600_v38  ;;  %v3467_v39 = vadd.f32 %v3466_v61, %v3465_v36  ;;  %v3530_v57 = vpop.f32.mrf.mxu1  ;;  %v2576_v55 = vadd.f32 %v3528_v27, %v2479_v49 }
 0x1db   :  { %v3468_v14 = vpop.f32.mrf.mxu0  ;;  %v3531_v42 = vadd.f32 %v3530_v57, %v3529_v16 }
 0x1dc   :  { %3023 = vst [vmem:[%s4718_s3 + $0x28] sm:$0xff] %v3007_v24   ;;  %v2482_v40 = vadd.f32 %v3467_v39, %v2385_v3  ;;  %v3532_v53 = vpop.f32.mrf.mxu1  ;;  %v2602_v52 = vmax.f32 %v2576_v55, 0.0 }
 0x1dd   :  { %v3469_v44 = vpop.f32.mrf.mxu0 }
 0x1de   :  { %v2579_v56 = vadd.f32 %v3531_v42, %v2482_v40  ;;  %v3470_v26 = vadd.f32 %v3469_v44, %v3468_v14  ;;  %v3533_v13 = vpop.f32.mrf.mxu1 }
 0x1df   :  { %v3471_v60 = vpop.f32.mrf.mxu0  ;;  %v3534_v10 = vadd.f32 %v3533_v13, %v3532_v53 }
 0x1e0   :  { %v2603_v37 = vmax.f32 %v2579_v56, 0.0  ;;  %v2487_v18 = vadd.f32 %v3470_v26, %v4722_v1  ;;  %v3535_v50 = vpop.f32.mrf.mxu1 }
 0x1e1   :  { %v3472_v21 = vpop.f32.mrf.mxu0 }
 0x1e2   :  { %v3012_v30 = vpack.c.bf16 %v2603_v37, %v2602_v52  ;;  %v3473_v20 = vadd.f32 %v3472_v21, %v3471_v60  ;;  %v3536_v22 = vpop.f32.mrf.mxu1  ;;  %v2584_v47 = vadd.f32 %v3534_v10, %v2487_v18 }
 0x1e3   :  { %v3537_v31 = vadd.f32 %v3536_v22, %v3535_v50 }
 0x1e4   :  { %3024 = vst [vmem:[%s4718_s3 + $0x30] sm:$0xff] %v3012_v30   ;;  %v2490_v29 = vadd.f32 %v3473_v20, %v2393_v23  ;;  %v2604_v63 = vmax.f32 %v2584_v47, 0.0 }
 0x1e6   :  { %v2587_v9 = vadd.f32 %v3537_v31, %v2490_v29 }
 0x1e8   :  { %v2605_v45 = vmax.f32 %v2587_v9, 0.0 }
 0x1ea   :  { %v3017_v41 = vpack.c.bf16 %v2605_v45, %v2604_v63 }
 0x1ec   :  { %3025 = vst [vmem:[%s4718_s3 + $0x38] sm:$0xff] %v3017_v41  }

// kernel: encoder_forward.8
= control target key start
LH: loop header
LB: loop body
LE: loop exit
PB: predicated region body
PF: predicated region fallthrough
CT: control target
= control target key end

     0   :  { %s3764_s12 = smov 0   ;;  %s3766_s13 = smov 0   ;;  %s4609_s0 = inlined_call_operand.vmem [shape: bf16[32,2048], index: 0, kind: input, shape index: {}]   ;;  %s4610_s1 = inlined_call_operand.vmem [shape: bf16[2048,256], index: 1, kind: input, shape index: {}]   ;;  %s4611_s2 = inlined_call_operand.vmem [shape: f32[1,256], index: 2, kind: input, shape index: {}]   ;;  %s4612_s3 = inlined_call_operand.vmem [shape: bf16[32,256], index: 3, kind: output, shape index: {}]  }
   0x1   :  { %s3768_s14 = smov 0   ;;  %s3770_s15 = smov 0  }
   0x2   :  { %s3772_s16 = smov 0  }
   0x3 LB: > { %s28_s17 = sadd.s32 1, %s3738_s15  ;;  %s3118_s18 = sadd.s32 4294967295, %s3742_s16   ;;  %s3742_s16 = sphi %s3772_s16, %s13_s16   ;;  %s3738_s15 = sphi %s3770_s15, %s4617_s15   ;;  %s3734_s14 = sphi %s3768_s14, %s4616_s14   ;;  %s3730_s13 = sphi %s3766_s13, %s4615_s13   ;;  %s3726_s12 = sphi %s3764_s12, %s4614_s12  }
   0x4   : > { %p30_p0 = scmp.ge.s32.totalorder %s28_s17, 2  ;;  %p76_p1 = scmp.ne.s32.totalorder %s3730_s13, %s3726_s12 }
   0x5   : > { %p77_p2 = scmp.eq.s32.totalorder %s3742_s16, 0  ;;  %p134_p4 = scmp.eq.s32.totalorder %s3118_s18, 1 }
   0x6   : > { %s4619_s17 = smov (%p30_p0, %s28_s17), 0  ;;  %s69_s20 = sadd.s32 1, %s3730_s13 }
   0x7   : > { %p78_p3 = por %p77_p2, %p76_p1  ;;  %s65_s19 = ssub.s32 %s3738_s15, %s4619_s17 }
   0x8   : > { %p67_p5 = scmp.eq.s32.totalorder %s65_s19, 0  ;;  %p3799_p6 = por %p134_p4, %p76_p1 }
   0x9   : > { %p3122_p7 = scmp.ge.s32.totalorder %s3742_s16, 2 }
   0xa   : > { %s3804_s22 = scalar_select %p67_p5, %s3730_s13, %s69_s20  }
   0xb   : > { %171 = sbr.rel (%p3122_p7) target bundleno = 190 (0xbe), region = 20 }
  0x10   : > { %174 = sbr.rel (!%p78_p3) target bundleno = 190 (0xbe), region = 24  ;;  %s176_s23 = sand.u32 (%p78_p3), 1, %s3730_s13  }
  0x11   : > { %s3124_s24 = sshll.u32 (%p78_p3), %s3738_s15, 2  ;;  %s3123_s25 = sshll.u32 (%p78_p3), %s176_s23, 10 }
  0x12   : > { %s3812_s28 = scalar_lea.vmem (%p78_p3), %s4610_s1, %s3124_s24  ;;  %s3816_s29 = scalar_lea.vmem (%p78_p3), [#allocation2], %s3123_s25 }
  0x13   : > { %v200_v0 = vld [vmem:[%s3812_s28] sm:$0xf] (%p78_p3)  ;;  %v202_v1 = vld [vmem:[%s3812_s28 + $0x8] sm:$0xf] (%p78_p3)  ;;  %v204_v2 = vld [vmem:[%s3812_s28 + $0x10] sm:$0xf] (%p78_p3) }
  0x14   : > { %201 = vst [vmem:[%s3816_s29] sm:$0xf] (%p78_p3), %v200_v0  ;;  %203 = vst [vmem:[%s3816_s29 + $0x4] sm:$0xf] (%p78_p3), %v202_v1  ;;  %v206_v3 = vld [vmem:[%s3812_s28 + $0x18] sm:$0xf] (%p78_p3) }
  0x15   : > { %v208_v4 = vld [vmem:[%s3812_s28 + $0x20] sm:$0xf]  ;;  %205 = vst [vmem:[%s3816_s29 + $0x8] sm:$0xf] %v204_v2  ;;  %207 = vst [vmem:[%s3816_s29 + $0xc] sm:$0xf] %v206_v3 }
  0x16   : > { %209 = vst [vmem:[%s3816_s29 + $0x10] sm:$0xf] %v208_v4  ;;  %v210_v5 = vld [vmem:[%s3812_s28 + $0x28] sm:$0xf]  ;;  %v212_v6 = vld [vmem:[%s3812_s28 + $0x30] sm:$0xf] }
  0x17   : > { %v214_v7 = vld [vmem:[%s3812_s28 + $0x38] sm:$0xf]  ;;  %211 = vst [vmem:[%s3816_s29 + $0x14] sm:$0xf] %v210_v5  ;;  %213 = vst [vmem:[%s3816_s29 + $0x18] sm:$0xf] %v212_v6 }
  0x18   : > { %215 = vst [vmem:[%s3816_s29 + $0x1c] sm:$0xf] %v214_v7  ;;  %v216_v8 = vld [vmem:[%s3812_s28 + $0x40] sm:$0xf]  ;;  %v218_v9 = vld [vmem:[%s3812_s28 + $0x48] sm:$0xf] }
  0x19   : > { %v220_v10 = vld [vmem:[%s3812_s28 + $0x50] sm:$0xf]  ;;  %217 = vst [vmem:[%s3816_s29 + $0x20] sm:$0xf] %v216_v8  ;;  %219 = vst [vmem:[%s3816_s29 + $0x24] sm:$0xf] %v218_v9 }
  0x1a   : > { %221 = vst [vmem:[%s3816_s29 + $0x28] sm:$0xf] %v220_v10  ;;  %v222_v11 = vld [vmem:[%s3812_s28 + $0x58] sm:$0xf]  ;;  %v224_v12 = vld [vmem:[%s3812_s28 + $0x60] sm:$0xf] }
  0x1b   : > { %v226_v13 = vld [vmem:[%s3812_s28 + $0x68] sm:$0xf]  ;;  %223 = vst [vmem:[%s3816_s29 + $0x2c] sm:$0xf] %v222_v11  ;;  %225 = vst [vmem:[%s3816_s29 + $0x30] sm:$0xf] %v224_v12 }
  0x1c   : > { %227 = vst [vmem:[%s3816_s29 + $0x34] sm:$0xf] %v226_v13  ;;  %v228_v14 = vld [vmem:[%s3812_s28 + $0x70] sm:$0xf]  ;;  %v230_v15 = vld [vmem:[%s3812_s28 + $0x78] sm:$0xf] }
  0x1d   : > { %v232_v16 = vld [vmem:[%s3812_s28 + $0x80] sm:$0xf]  ;;  %229 = vst [vmem:[%s3816_s29 + $0x38] sm:$0xf] %v228_v14  ;;  %231 = vst [vmem:[%s3816_s29 + $0x3c] sm:$0xf] %v230_v15 }
  0x1e   : > { %233 = vst [vmem:[%s3816_s29 + $0x40] sm:$0xf] %v232_v16  ;;  %v234_v17 = vld [vmem:[%s3812_s28 + $0x88] sm:$0xf]  ;;  %v236_v18 = vld [vmem:[%s3812_s28 + $0x90] sm:$0xf] }
  0x1f   : > { %v238_v19 = vld [vmem:[%s3812_s28 + $0x98] sm:$0xf]  ;;  %235 = vst [vmem:[%s3816_s29 + $0x44] sm:$0xf] %v234_v17  ;;  %237 = vst [vmem:[%s3816_s29 + $0x48] sm:$0xf] %v236_v18 }
  0x20   : > { %239 = vst [vmem:[%s3816_s29 + $0x4c] sm:$0xf] %v238_v19  ;;  %v240_v20 = vld [vmem:[%s3812_s28 + $0xa0] sm:$0xf]  ;;  %v242_v21 = vld [vmem:[%s3812_s28 + $0xa8] sm:$0xf] }
  0x21   : > { %v244_v22 = vld [vmem:[%s3812_s28 + $0xb0] sm:$0xf]  ;;  %241 = vst [vmem:[%s3816_s29 + $0x50] sm:$0xf] %v240_v20  ;;  %243 = vst [vmem:[%s3816_s29 + $0x54] sm:$0xf] %v242_v21 }
  0x22   : > { %245 = vst [vmem:[%s3816_s29 + $0x58] sm:$0xf] %v244_v22  ;;  %v246_v23 = vld [vmem:[%s3812_s28 + $0xb8] sm:$0xf]  ;;  %v248_v24 = vld [vmem:[%s3812_s28 + $0xc0] sm:$0xf] }
  0x23   : > { %v250_v25 = vld [vmem:[%s3812_s28 + $0xc8] sm:$0xf]  ;;  %247 = vst [vmem:[%s3816_s29 + $0x5c] sm:$0xf] %v246_v23  ;;  %249 = vst [vmem:[%s3816_s29 + $0x60] sm:$0xf] %v248_v24 }
  0x24   : > { %251 = vst [vmem:[%s3816_s29 + $0x64] sm:$0xf] %v250_v25  ;;  %v252_v26 = vld [vmem:[%s3812_s28 + $0xd0] sm:$0xf]  ;;  %v254_v27 = vld [vmem:[%s3812_s28 + $0xd8] sm:$0xf] }
  0x25   : > { %v256_v28 = vld [vmem:[%s3812_s28 + $0xe0] sm:$0xf]  ;;  %253 = vst [vmem:[%s3816_s29 + $0x68] sm:$0xf] %v252_v26  ;;  %255 = vst [vmem:[%s3816_s29 + $0x6c] sm:$0xf] %v254_v27 }
  0x26   : > { %257 = vst [vmem:[%s3816_s29 + $0x70] sm:$0xf] %v256_v28  ;;  %v258_v29 = vld [vmem:[%s3812_s28 + $0xe8] sm:$0xf]  ;;  %v260_v30 = vld [vmem:[%s3812_s28 + $0xf0] sm:$0xf] }
  0x27   : > { %v262_v31 = vld [vmem:[%s3812_s28 + $0xf8] sm:$0xf]  ;;  %259 = vst [vmem:[%s3816_s29 + $0x74] sm:$0xf] %v258_v29  ;;  %261 = vst [vmem:[%s3816_s29 + $0x78] sm:$0xf] %v260_v30 }
  0x28   : > { %263 = vst [vmem:[%s3816_s29 + $0x7c] sm:$0xf] %v262_v31  ;;  %v264_v32 = vld [vmem:[%s3812_s28 + $0x100] sm:$0xf]  ;;  %v266_v33 = vld [vmem:[%s3812_s28 + $0x108] sm:$0xf] }
  0x29   : > { %v268_v34 = vld [vmem:[%s3812_s28 + $0x110] sm:$0xf]  ;;  %265 = vst [vmem:[%s3816_s29 + $0x80] sm:$0xf] %v264_v32  ;;  %267 = vst [vmem:[%s3816_s29 + $0x84] sm:$0xf] %v266_v33 }
  0x2a   : > { %269 = vst [vmem:[%s3816_s29 + $0x88] sm:$0xf] %v268_v34  ;;  %v270_v35 = vld [vmem:[%s3812_s28 + $0x118] sm:$0xf]  ;;  %v272_v36 = vld [vmem:[%s3812_s28 + $0x120] sm:$0xf] }
  0x2b   : > { %v274_v37 = vld [vmem:[%s3812_s28 + $0x128] sm:$0xf]  ;;  %271 = vst [vmem:[%s3816_s29 + $0x8c] sm:$0xf] %v270_v35  ;;  %273 = vst [vmem:[%s3816_s29 + $0x90] sm:$0xf] %v272_v36 }
  0x2c   : > { %275 = vst [vmem:[%s3816_s29 + $0x94] sm:$0xf] %v274_v37  ;;  %v276_v38 = vld [vmem:[%s3812_s28 + $0x130] sm:$0xf]  ;;  %v278_v39 = vld [vmem:[%s3812_s28 + $0x138] sm:$0xf] }
  0x2d   : > { %v280_v40 = vld [vmem:[%s3812_s28 + $0x140] sm:$0xf]  ;;  %277 = vst [vmem:[%s3816_s29 + $0x98] sm:$0xf] %v276_v38  ;;  %279 = vst [vmem:[%s3816_s29 + $0x9c] sm:$0xf] %v278_v39 }
  0x2e   : > { %281 = vst [vmem:[%s3816_s29 + $0xa0] sm:$0xf] %v280_v40  ;;  %v282_v41 = vld [vmem:[%s3812_s28 + $0x148] sm:$0xf]  ;;  %v284_v42 = vld [vmem:[%s3812_s28 + $0x150] sm:$0xf] }
  0x2f   : > { %v286_v43 = vld [vmem:[%s3812_s28 + $0x158] sm:$0xf]  ;;  %283 = vst [vmem:[%s3816_s29 + $0xa4] sm:$0xf] %v282_v41  ;;  %285 = vst [vmem:[%s3816_s29 + $0xa8] sm:$0xf] %v284_v42 }
  0x30   : > { %287 = vst [vmem:[%s3816_s29 + $0xac] sm:$0xf] %v286_v43  ;;  %v288_v44 = vld [vmem:[%s3812_s28 + $0x160] sm:$0xf]  ;;  %v290_v45 = vld [vmem:[%s3812_s28 + $0x168] sm:$0xf] }
  0x31   : > { %v292_v46 = vld [vmem:[%s3812_s28 + $0x170] sm:$0xf]  ;;  %289 = vst [vmem:[%s3816_s29 + $0xb0] sm:$0xf] %v288_v44  ;;  %291 = vst [vmem:[%s3816_s29 + $0xb4] sm:$0xf] %v290_v45 }
  0x32   : > { %293 = vst [vmem:[%s3816_s29 + $0xb8] sm:$0xf] %v292_v46  ;;  %v294_v47 = vld [vmem:[%s3812_s28 + $0x178] sm:$0xf]  ;;  %v296_v48 = vld [vmem:[%s3812_s28 + $0x180] sm:$0xf] }
  0x33   : > { %v298_v49 = vld [vmem:[%s3812_s28 + $0x188] sm:$0xf]  ;;  %295 = vst [vmem:[%s3816_s29 + $0xbc] sm:$0xf] %v294_v47  ;;  %297 = vst [vmem:[%s3816_s29 + $0xc0] sm:$0xf] %v296_v48 }
  0x34   : > { %299 = vst [vmem:[%s3816_s29 + $0xc4] sm:$0xf] %v298_v49  ;;  %v300_v50 = vld [vmem:[%s3812_s28 + $0x190] sm:$0xf]  ;;  %v302_v51 = vld [vmem:[%s3812_s28 + $0x198] sm:$0xf] }
  0x35   : > { %v304_v52 = vld [vmem:[%s3812_s28 + $0x1a0] sm:$0xf]  ;;  %301 = vst [vmem:[%s3816_s29 + $0xc8] sm:$0xf] %v300_v50  ;;  %303 = vst [vmem:[%s3816_s29 + $0xcc] sm:$0xf] %v302_v51 }
  0x36   : > { %305 = vst [vmem:[%s3816_s29 + $0xd0] sm:$0xf] %v304_v52  ;;  %v306_v53 = vld [vmem:[%s3812_s28 + $0x1a8] sm:$0xf]  ;;  %v308_v54 = vld [vmem:[%s3812_s28 + $0x1b0] sm:$0xf] }
  0x37   : > { %v310_v55 = vld [vmem:[%s3812_s28 + $0x1b8] sm:$0xf]  ;;  %307 = vst [vmem:[%s3816_s29 + $0xd4] sm:$0xf] %v306_v53  ;;  %309 = vst [vmem:[%s3816_s29 + $0xd8] sm:$0xf] %v308_v54 }
  0x38   : > { %311 = vst [vmem:[%s3816_s29 + $0xdc] sm:$0xf] %v310_v55  ;;  %v312_v56 = vld [vmem:[%s3812_s28 + $0x1c0] sm:$0xf]  ;;  %v314_v57 = vld [vmem:[%s3812_s28 + $0x1c8] sm:$0xf] }
  0x39   : > { %v316_v58 = vld [vmem:[%s3812_s28 + $0x1d0] sm:$0xf]  ;;  %313 = vst [vmem:[%s3816_s29 + $0xe0] sm:$0xf] %v312_v56  ;;  %315 = vst [vmem:[%s3816_s29 + $0xe4] sm:$0xf] %v314_v57 }
  0x3a   : > { %317 = vst [vmem:[%s3816_s29 + $0xe8] sm:$0xf] %v316_v58  ;;  %v318_v59 = vld [vmem:[%s3812_s28 + $0x1d8] sm:$0xf]  ;;  %v320_v60 = vld [vmem:[%s3812_s28 + $0x1e0] sm:$0xf] }
  0x3b   : > { %v322_v61 = vld [vmem:[%s3812_s28 + $0x1e8] sm:$0xf]  ;;  %319 = vst [vmem:[%s3816_s29 + $0xec] sm:$0xf] %v318_v59  ;;  %321 = vst [vmem:[%s3816_s29 + $0xf0] sm:$0xf] %v320_v60 }
  0x3c   : > { %323 = vst [vmem:[%s3816_s29 + $0xf4] sm:$0xf] %v322_v61  ;;  %v324_v62 = vld [vmem:[%s3812_s28 + $0x1f0] sm:$0xf]  ;;  %v326_v63 = vld [vmem:[%s3812_s28 + $0x1f8] sm:$0xf] }
  0x3d   : > { %v328_v0 = vld [vmem:[%s3812_s28 + $0x200] sm:$0xf]  ;;  %325 = vst [vmem:[%s3816_s29 + $0xf8] sm:$0xf] %v324_v62  ;;  %327 = vst [vmem:[%s3816_s29 + $0xfc] sm:$0xf] %v326_v63 }
  0x3e   : > { %329 = vst [vmem:[%s3816_s29 + $0x100] sm:$0xf] %v328_v0  ;;  %v330_v1 = vld [vmem:[%s3812_s28 + $0x208] sm:$0xf]  ;;  %v332_v2 = vld [vmem:[%s3812_s28 + $0x210] sm:$0xf] }
  0x3f   : > { %v334_v3 = vld [vmem:[%s3812_s28 + $0x218] sm:$0xf]  ;;  %331 = vst [vmem:[%s3816_s29 + $0x104] sm:$0xf] %v330_v1  ;;  %333 = vst [vmem:[%s3816_s29 + $0x108] sm:$0xf] %v332_v2 }
  0x40   : > { %335 = vst [vmem:[%s3816_s29 + $0x10c] sm:$0xf] %v334_v3  ;;  %v336_v4 = vld [vmem:[%s3812_s28 + $0x220] sm:$0xf]  ;;  %v338_v5 = vld [vmem:[%s3812_s28 + $0x228] sm:$0xf] }
  0x41   : > { %v340_v6 = vld [vmem:[%s3812_s28 + $0x230] sm:$0xf]  ;;  %337 = vst [vmem:[%s3816_s29 + $0x110] sm:$0xf] %v336_v4  ;;  %339 = vst [vmem:[%s3816_s29 + $0x114] sm:$0xf] %v338_v5 }
  0x42   : > { %341 = vst [vmem:[%s3816_s29 + $0x118] sm:$0xf] %v340_v6  ;;  %v342_v7 = vld [vmem:[%s3812_s28 + $0x238] sm:$0xf]  ;;  %v344_v8 = vld [vmem:[%s3812_s28 + $0x240] sm:$0xf] }
  0x43   : > { %v346_v9 = vld [vmem:[%s3812_s28 + $0x248] sm:$0xf]  ;;  %343 = vst [vmem:[%s3816_s29 + $0x11c] sm:$0xf] %v342_v7  ;;  %345 = vst [vmem:[%s3816_s29 + $0x120] sm:$0xf] %v344_v8 }
  0x44   : > { %347 = vst [vmem:[%s3816_s29 + $0x124] sm:$0xf] %v346_v9  ;;  %v348_v10 = vld [vmem:[%s3812_s28 + $0x250] sm:$0xf]  ;;  %v350_v11 = vld [vmem:[%s3812_s28 + $0x258] sm:$0xf] }
  0x45   : > { %v352_v12 = vld [vmem:[%s3812_s28 + $0x260] sm:$0xf]  ;;  %349 = vst [vmem:[%s3816_s29 + $0x128] sm:$0xf] %v348_v10  ;;  %351 = vst [vmem:[%s3816_s29 + $0x12c] sm:$0xf] %v350_v11 }
  0x46   : > { %353 = vst [vmem:[%s3816_s29 + $0x130] sm:$0xf] %v352_v12  ;;  %v354_v13 = vld [vmem:[%s3812_s28 + $0x268] sm:$0xf]  ;;  %v356_v14 = vld [vmem:[%s3812_s28 + $0x270] sm:$0xf] }
  0x47   : > { %v358_v15 = vld [vmem:[%s3812_s28 + $0x278] sm:$0xf]  ;;  %355 = vst [vmem:[%s3816_s29 + $0x134] sm:$0xf] %v354_v13  ;;  %357 = vst [vmem:[%s3816_s29 + $0x138] sm:$0xf] %v356_v14 }
  0x48   : > { %359 = vst [vmem:[%s3816_s29 + $0x13c] sm:$0xf] %v358_v15  ;;  %v360_v16 = vld [vmem:[%s3812_s28 + $0x280] sm:$0xf]  ;;  %v362_v17 = vld [vmem:[%s3812_s28 + $0x288] sm:$0xf] }
  0x49   : > { %v364_v18 = vld [vmem:[%s3812_s28 + $0x290] sm:$0xf]  ;;  %361 = vst [vmem:[%s3816_s29 + $0x140] sm:$0xf] %v360_v16  ;;  %363 = vst [vmem:[%s3816_s29 + $0x144] sm:$0xf] %v362_v17 }
  0x4a   : > { %365 = vst [vmem:[%s3816_s29 + $0x148] sm:$0xf] %v364_v18  ;;  %v366_v19 = vld [vmem:[%s3812_s28 + $0x298] sm:$0xf]  ;;  %v368_v20 = vld [vmem:[%s3812_s28 + $0x2a0] sm:$0xf] }
  0x4b   : > { %v370_v21 = vld [vmem:[%s3812_s28 + $0x2a8] sm:$0xf]  ;;  %367 = vst [vmem:[%s3816_s29 + $0x14c] sm:$0xf] %v366_v19  ;;  %369 = vst [vmem:[%s3816_s29 + $0x150] sm:$0xf] %v368_v20 }
  0x4c   : > { %371 = vst [vmem:[%s3816_s29 + $0x154] sm:$0xf] %v370_v21  ;;  %v372_v22 = vld [vmem:[%s3812_s28 + $0x2b0] sm:$0xf]  ;;  %v374_v23 = vld [vmem:[%s3812_s28 + $0x2b8] sm:$0xf] }
  0x4d   : > { %v376_v24 = vld [vmem:[%s3812_s28 + $0x2c0] sm:$0xf]  ;;  %373 = vst [vmem:[%s3816_s29 + $0x158] sm:$0xf] %v372_v22  ;;  %375 = vst [vmem:[%s3816_s29 + $0x15c] sm:$0xf] %v374_v23 }
  0x4e   : > { %377 = vst [vmem:[%s3816_s29 + $0x160] sm:$0xf] %v376_v24  ;;  %v378_v25 = vld [vmem:[%s3812_s28 + $0x2c8] sm:$0xf]  ;;  %v380_v26 = vld [vmem:[%s3812_s28 + $0x2d0] sm:$0xf] }
  0x4f   : > { %v382_v27 = vld [vmem:[%s3812_s28 + $0x2d8] sm:$0xf]  ;;  %379 = vst [vmem:[%s3816_s29 + $0x164] sm:$0xf] %v378_v25  ;;  %381 = vst [vmem:[%s3816_s29 + $0x168] sm:$0xf] %v380_v26 }
  0x50   : > { %383 = vst [vmem:[%s3816_s29 + $0x16c] sm:$0xf] %v382_v27  ;;  %v384_v28 = vld [vmem:[%s3812_s28 + $0x2e0] sm:$0xf]  ;;  %v386_v29 = vld [vmem:[%s3812_s28 + $0x2e8] sm:$0xf] }
  0x51   : > { %v388_v30 = vld [vmem:[%s3812_s28 + $0x2f0] sm:$0xf]  ;;  %385 = vst [vmem:[%s3816_s29 + $0x170] sm:$0xf] %v384_v28  ;;  %387 = vst [vmem:[%s3816_s29 + $0x174] sm:$0xf] %v386_v29 }
  0x52   : > { %389 = vst [vmem:[%s3816_s29 + $0x178] sm:$0xf] %v388_v30  ;;  %v390_v31 = vld [vmem:[%s3812_s28 + $0x2f8] sm:$0xf]  ;;  %v392_v32 = vld [vmem:[%s3812_s28 + $0x300] sm:$0xf] }
  0x53   : > { %v394_v33 = vld [vmem:[%s3812_s28 + $0x308] sm:$0xf]  ;;  %391 = vst [vmem:[%s3816_s29 + $0x17c] sm:$0xf] %v390_v31  ;;  %393 = vst [vmem:[%s3816_s29 + $0x180] sm:$0xf] %v392_v32 }
  0x54   : > { %395 = vst [vmem:[%s3816_s29 + $0x184] sm:$0xf] %v394_v33  ;;  %v396_v34 = vld [vmem:[%s3812_s28 + $0x310] sm:$0xf]  ;;  %v398_v35 = vld [vmem:[%s3812_s28 + $0x318] sm:$0xf] }
  0x55   : > { %v400_v36 = vld [vmem:[%s3812_s28 + $0x320] sm:$0xf]  ;;  %397 = vst [vmem:[%s3816_s29 + $0x188] sm:$0xf] %v396_v34  ;;  %399 = vst [vmem:[%s3816_s29 + $0x18c] sm:$0xf] %v398_v35 }
  0x56   : > { %401 = vst [vmem:[%s3816_s29 + $0x190] sm:$0xf] %v400_v36  ;;  %v402_v37 = vld [vmem:[%s3812_s28 + $0x328] sm:$0xf]  ;;  %v404_v38 = vld [vmem:[%s3812_s28 + $0x330] sm:$0xf] }
  0x57   : > { %v406_v39 = vld [vmem:[%s3812_s28 + $0x338] sm:$0xf]  ;;  %403 = vst [vmem:[%s3816_s29 + $0x194] sm:$0xf] %v402_v37  ;;  %405 = vst [vmem:[%s3816_s29 + $0x198] sm:$0xf] %v404_v38 }
  0x58   : > { %407 = vst [vmem:[%s3816_s29 + $0x19c] sm:$0xf] %v406_v39  ;;  %v408_v40 = vld [vmem:[%s3812_s28 + $0x340] sm:$0xf]  ;;  %v410_v41 = vld [vmem:[%s3812_s28 + $0x348] sm:$0xf] }
  0x59   : > { %v412_v42 = vld [vmem:[%s3812_s28 + $0x350] sm:$0xf]  ;;  %409 = vst [vmem:[%s3816_s29 + $0x1a0] sm:$0xf] %v408_v40  ;;  %411 = vst [vmem:[%s3816_s29 + $0x1a4] sm:$0xf] %v410_v41 }
  0x5a   : > { %413 = vst [vmem:[%s3816_s29 + $0x1a8] sm:$0xf] %v412_v42  ;;  %v414_v43 = vld [vmem:[%s3812_s28 + $0x358] sm:$0xf]  ;;  %v416_v44 = vld [vmem:[%s3812_s28 + $0x360] sm:$0xf] }
  0x5b   : > { %v418_v45 = vld [vmem:[%s3812_s28 + $0x368] sm:$0xf]  ;;  %415 = vst [vmem:[%s3816_s29 + $0x1ac] sm:$0xf] %v414_v43  ;;  %417 = vst [vmem:[%s3816_s29 + $0x1b0] sm:$0xf] %v416_v44 }
  0x5c   : > { %419 = vst [vmem:[%s3816_s29 + $0x1b4] sm:$0xf] %v418_v45  ;;  %v420_v46 = vld [vmem:[%s3812_s28 + $0x370] sm:$0xf]  ;;  %v422_v47 = vld [vmem:[%s3812_s28 + $0x378] sm:$0xf] }
  0x5d   : > { %v424_v48 = vld [vmem:[%s3812_s28 + $0x380] sm:$0xf]  ;;  %421 = vst [vmem:[%s3816_s29 + $0x1b8] sm:$0xf] %v420_v46  ;;  %423 = vst [vmem:[%s3816_s29 + $0x1bc] sm:$0xf] %v422_v47 }
  0x5e   : > { %425 = vst [vmem:[%s3816_s29 + $0x1c0] sm:$0xf] %v424_v48  ;;  %v426_v49 = vld [vmem:[%s3812_s28 + $0x388] sm:$0xf]  ;;  %v428_v50 = vld [vmem:[%s3812_s28 + $0x390] sm:$0xf] }
  0x5f   : > { %v430_v51 = vld [vmem:[%s3812_s28 + $0x398] sm:$0xf]  ;;  %427 = vst [vmem:[%s3816_s29 + $0x1c4] sm:$0xf] %v426_v49  ;;  %429 = vst [vmem:[%s3816_s29 + $0x1c8] sm:$0xf] %v428_v50 }
  0x60   : > { %431 = vst [vmem:[%s3816_s29 + $0x1cc] sm:$0xf] %v430_v51  ;;  %v432_v52 = vld [vmem:[%s3812_s28 + $0x3a0] sm:$0xf]  ;;  %v434_v53 = vld [vmem:[%s3812_s28 + $0x3a8] sm:$0xf] }
  0x61   : > { %v436_v54 = vld [vmem:[%s3812_s28 + $0x3b0] sm:$0xf]  ;;  %433 = vst [vmem:[%s3816_s29 + $0x1d0] sm:$0xf] %v432_v52  ;;  %435 = vst [vmem:[%s3816_s29 + $0x1d4] sm:$0xf] %v434_v53 }
  0x62   : > { %437 = vst [vmem:[%s3816_s29 + $0x1d8] sm:$0xf] %v436_v54  ;;  %v438_v55 = vld [vmem:[%s3812_s28 + $0x3b8] sm:$0xf]  ;;  %v440_v56 = vld [vmem:[%s3812_s28 + $0x3c0] sm:$0xf] }
  0x63   : > { %v442_v57 = vld [vmem:[%s3812_s28 + $0x3c8] sm:$0xf]  ;;  %439 = vst [vmem:[%s3816_s29 + $0x1dc] sm:$0xf] %v438_v55  ;;  %441 = vst [vmem:[%s3816_s29 + $0x1e0] sm:$0xf] %v440_v56 }
  0x64   : > { %443 = vst [vmem:[%s3816_s29 + $0x1e4] sm:$0xf] %v442_v57  ;;  %v444_v58 = vld [vmem:[%s3812_s28 + $0x3d0] sm:$0xf]  ;;  %v446_v59 = vld [vmem:[%s3812_s28 + $0x3d8] sm:$0xf] }
  0x65   : > { %v448_v60 = vld [vmem:[%s3812_s28 + $0x3e0] sm:$0xf]  ;;  %445 = vst [vmem:[%s3816_s29 + $0x1e8] sm:$0xf] %v444_v58  ;;  %447 = vst [vmem:[%s3816_s29 + $0x1ec] sm:$0xf] %v446_v59 }
  0x66   : > { %449 = vst [vmem:[%s3816_s29 + $0x1f0] sm:$0xf] %v448_v60  ;;  %v450_v61 = vld [vmem:[%s3812_s28 + $0x3e8] sm:$0xf]  ;;  %v452_v62 = vld [vmem:[%s3812_s28 + $0x3f0] sm:$0xf] }
  0x67   : > { %v454_v63 = vld [vmem:[%s3812_s28 + $0x3f8] sm:$0xf]  ;;  %451 = vst [vmem:[%s3816_s29 + $0x1f4] sm:$0xf] %v450_v61  ;;  %453 = vst [vmem:[%s3816_s29 + $0x1f8] sm:$0xf] %v452_v62 }
  0x68   : > { %455 = vst [vmem:[%s3816_s29 + $0x1fc] sm:$0xf] %v454_v63  ;;  %v456_v0 = vld [vmem:[%s3812_s28 + $0x400] sm:$0xf]  ;;  %v458_v1 = vld [vmem:[%s3812_s28 + $0x408] sm:$0xf] }
  0x69   : > { %v460_v2 = vld [vmem:[%s3812_s28 + $0x410] sm:$0xf]  ;;  %457 = vst [vmem:[%s3816_s29 + $0x200] sm:$0xf] %v456_v0  ;;  %459 = vst [vmem:[%s3816_s29 + $0x204] sm:$0xf] %v458_v1 }
  0x6a   : > { %461 = vst [vmem:[%s3816_s29 + $0x208] sm:$0xf] %v460_v2  ;;  %v462_v3 = vld [vmem:[%s3812_s28 + $0x418] sm:$0xf]  ;;  %v464_v4 = vld [vmem:[%s3812_s28 + $0x420] sm:$0xf] }
  0x6b   : > { %v466_v5 = vld [vmem:[%s3812_s28 + $0x428] sm:$0xf]  ;;  %463 = vst [vmem:[%s3816_s29 + $0x20c] sm:$0xf] %v462_v3  ;;  %465 = vst [vmem:[%s3816_s29 + $0x210] sm:$0xf] %v464_v4 }
  0x6c   : > { %467 = vst [vmem:[%s3816_s29 + $0x214] sm:$0xf] %v466_v5  ;;  %v468_v6 = vld [vmem:[%s3812_s28 + $0x430] sm:$0xf]  ;;  %v470_v7 = vld [vmem:[%s3812_s28 + $0x438] sm:$0xf] }
  0x6d   : > { %v472_v8 = vld [vmem:[%s3812_s28 + $0x440] sm:$0xf]  ;;  %469 = vst [vmem:[%s3816_s29 + $0x218] sm:$0xf] %v468_v6  ;;  %471 = vst [vmem:[%s3816_s29 + $0x21c] sm:$0xf] %v470_v7 }
  0x6e   : > { %473 = vst [vmem:[%s3816_s29 + $0x220] sm:$0xf] %v472_v8  ;;  %v474_v9 = vld [vmem:[%s3812_s28 + $0x448] sm:$0xf]  ;;  %v476_v10 = vld [vmem:[%s3812_s28 + $0x450] sm:$0xf] }
  0x6f   : > { %v478_v11 = vld [vmem:[%s3812_s28 + $0x458] sm:$0xf]  ;;  %475 = vst [vmem:[%s3816_s29 + $0x224] sm:$0xf] %v474_v9  ;;  %477 = vst [vmem:[%s3816_s29 + $0x228] sm:$0xf] %v476_v10 }
  0x70   : > { %479 = vst [vmem:[%s3816_s29 + $0x22c] sm:$0xf] %v478_v11  ;;  %v480_v12 = vld [vmem:[%s3812_s28 + $0x460] sm:$0xf]  ;;  %v482_v13 = vld [vmem:[%s3812_s28 + $0x468] sm:$0xf] }
  0x71   : > { %v484_v14 = vld [vmem:[%s3812_s28 + $0x470] sm:$0xf]  ;;  %481 = vst [vmem:[%s3816_s29 + $0x230] sm:$0xf] %v480_v12  ;;  %483 = vst [vmem:[%s3816_s29 + $0x234] sm:$0xf] %v482_v13 }
  0x72   : > { %485 = vst [vmem:[%s3816_s29 + $0x238] sm:$0xf] %v484_v14  ;;  %v486_v15 = vld [vmem:[%s3812_s28 + $0x478] sm:$0xf]  ;;  %v488_v16 = vld [vmem:[%s3812_s28 + $0x480] sm:$0xf] }
  0x73   : > { %v490_v17 = vld [vmem:[%s3812_s28 + $0x488] sm:$0xf]  ;;  %487 = vst [vmem:[%s3816_s29 + $0x23c] sm:$0xf] %v486_v15  ;;  %489 = vst [vmem:[%s3816_s29 + $0x240] sm:$0xf] %v488_v16 }
  0x74   : > { %491 = vst [vmem:[%s3816_s29 + $0x244] sm:$0xf] %v490_v17  ;;  %v492_v18 = vld [vmem:[%s3812_s28 + $0x490] sm:$0xf]  ;;  %v494_v19 = vld [vmem:[%s3812_s28 + $0x498] sm:$0xf] }
  0x75   : > { %v496_v20 = vld [vmem:[%s3812_s28 + $0x4a0] sm:$0xf]  ;;  %493 = vst [vmem:[%s3816_s29 + $0x248] sm:$0xf] %v492_v18  ;;  %495 = vst [vmem:[%s3816_s29 + $0x24c] sm:$0xf] %v494_v19 }
  0x76   : > { %497 = vst [vmem:[%s3816_s29 + $0x250] sm:$0xf] %v496_v20  ;;  %v498_v21 = vld [vmem:[%s3812_s28 + $0x4a8] sm:$0xf]  ;;  %v500_v22 = vld [vmem:[%s3812_s28 + $0x4b0] sm:$0xf] }
  0x77   : > { %v502_v23 = vld [vmem:[%s3812_s28 + $0x4b8] sm:$0xf]  ;;  %499 = vst [vmem:[%s3816_s29 + $0x254] sm:$0xf] %v498_v21  ;;  %501 = vst [vmem:[%s3816_s29 + $0x258] sm:$0xf] %v500_v22 }
  0x78   : > { %503 = vst [vmem:[%s3816_s29 + $0x25c] sm:$0xf] %v502_v23  ;;  %v504_v24 = vld [vmem:[%s3812_s28 + $0x4c0] sm:$0xf]  ;;  %v506_v25 = vld [vmem:[%s3812_s28 + $0x4c8] sm:$0xf] }
  0x79   : > { %v508_v26 = vld [vmem:[%s3812_s28 + $0x4d0] sm:$0xf]  ;;  %505 = vst [vmem:[%s3816_s29 + $0x260] sm:$0xf] %v504_v24  ;;  %507 = vst [vmem:[%s3816_s29 + $0x264] sm:$0xf] %v506_v25 }
  0x7a   : > { %509 = vst [vmem:[%s3816_s29 + $0x268] sm:$0xf] %v508_v26  ;;  %v510_v27 = vld [vmem:[%s3812_s28 + $0x4d8] sm:$0xf]  ;;  %v512_v28 = vld [vmem:[%s3812_s28 + $0x4e0] sm:$0xf] }
  0x7b   : > { %v514_v29 = vld [vmem:[%s3812_s28 + $0x4e8] sm:$0xf]  ;;  %511 = vst [vmem:[%s3816_s29 + $0x26c] sm:$0xf] %v510_v27  ;;  %513 = vst [vmem:[%s3816_s29 + $0x270] sm:$0xf] %v512_v28 }
  0x7c   : > { %515 = vst [vmem:[%s3816_s29 + $0x274] sm:$0xf] %v514_v29  ;;  %v516_v30 = vld [vmem:[%s3812_s28 + $0x4f0] sm:$0xf]  ;;  %v518_v31 = vld [vmem:[%s3812_s28 + $0x4f8] sm:$0xf] }
  0x7d   : > { %v520_v32 = vld [vmem:[%s3812_s28 + $0x500] sm:$0xf]  ;;  %517 = vst [vmem:[%s3816_s29 + $0x278] sm:$0xf] %v516_v30  ;;  %519 = vst [vmem:[%s3816_s29 + $0x27c] sm:$0xf] %v518_v31 }
  0x7e   : > { %521 = vst [vmem:[%s3816_s29 + $0x280] sm:$0xf] %v520_v32  ;;  %v522_v33 = vld [vmem:[%s3812_s28 + $0x508] sm:$0xf]  ;;  %v524_v34 = vld [vmem:[%s3812_s28 + $0x510] sm:$0xf] }
  0x7f   : > { %v526_v35 = vld [vmem:[%s3812_s28 + $0x518] sm:$0xf]  ;;  %523 = vst [vmem:[%s3816_s29 + $0x284] sm:$0xf] %v522_v33  ;;  %525 = vst [vmem:[%s3816_s29 + $0x288] sm:$0xf] %v524_v34 }
  0x80   : > { %527 = vst [vmem:[%s3816_s29 + $0x28c] sm:$0xf] %v526_v35  ;;  %v528_v36 = vld [vmem:[%s3812_s28 + $0x520] sm:$0xf]  ;;  %v530_v37 = vld [vmem:[%s3812_s28 + $0x528] sm:$0xf] }
  0x81   : > { %v532_v38 = vld [vmem:[%s3812_s28 + $0x530] sm:$0xf]  ;;  %529 = vst [vmem:[%s3816_s29 + $0x290] sm:$0xf] %v528_v36  ;;  %531 = vst [vmem:[%s3816_s29 + $0x294] sm:$0xf] %v530_v37 }
  0x82   : > { %533 = vst [vmem:[%s3816_s29 + $0x298] sm:$0xf] %v532_v38  ;;  %v534_v39 = vld [vmem:[%s3812_s28 + $0x538] sm:$0xf]  ;;  %v536_v40 = vld [vmem:[%s3812_s28 + $0x540] sm:$0xf] }
  0x83   : > { %v538_v41 = vld [vmem:[%s3812_s28 + $0x548] sm:$0xf]  ;;  %535 = vst [vmem:[%s3816_s29 + $0x29c] sm:$0xf] %v534_v39  ;;  %537 = vst [vmem:[%s3816_s29 + $0x2a0] sm:$0xf] %v536_v40 }
  0x84   : > { %539 = vst [vmem:[%s3816_s29 + $0x2a4] sm:$0xf] %v538_v41  ;;  %v540_v42 = vld [vmem:[%s3812_s28 + $0x550] sm:$0xf]  ;;  %v542_v43 = vld [vmem:[%s3812_s28 + $0x558] sm:$0xf] }
  0x85   : > { %v544_v44 = vld [vmem:[%s3812_s28 + $0x560] sm:$0xf]  ;;  %541 = vst [vmem:[%s3816_s29 + $0x2a8] sm:$0xf] %v540_v42  ;;  %543 = vst [vmem:[%s3816_s29 + $0x2ac] sm:$0xf] %v542_v43 }
  0x86   : > { %545 = vst [vmem:[%s3816_s29 + $0x2b0] sm:$0xf] %v544_v44  ;;  %v546_v45 = vld [vmem:[%s3812_s28 + $0x568] sm:$0xf]  ;;  %v548_v46 = vld [vmem:[%s3812_s28 + $0x570] sm:$0xf] }
  0x87   : > { %v550_v47 = vld [vmem:[%s3812_s28 + $0x578] sm:$0xf]  ;;  %547 = vst [vmem:[%s3816_s29 + $0x2b4] sm:$0xf] %v546_v45  ;;  %549 = vst [vmem:[%s3816_s29 + $0x2b8] sm:$0xf] %v548_v46 }
  0x88   : > { %551 = vst [vmem:[%s3816_s29 + $0x2bc] sm:$0xf] %v550_v47  ;;  %v552_v48 = vld [vmem:[%s3812_s28 + $0x580] sm:$0xf]  ;;  %v554_v49 = vld [vmem:[%s3812_s28 + $0x588] sm:$0xf] }
  0x89   : > { %v556_v50 = vld [vmem:[%s3812_s28 + $0x590] sm:$0xf]  ;;  %553 = vst [vmem:[%s3816_s29 + $0x2c0] sm:$0xf] %v552_v48  ;;  %555 = vst [vmem:[%s3816_s29 + $0x2c4] sm:$0xf] %v554_v49 }
  0x8a   : > { %557 = vst [vmem:[%s3816_s29 + $0x2c8] sm:$0xf] %v556_v50  ;;  %v558_v51 = vld [vmem:[%s3812_s28 + $0x598] sm:$0xf]  ;;  %v560_v52 = vld [vmem:[%s3812_s28 + $0x5a0] sm:$0xf] }
  0x8b   : > { %v562_v53 = vld [vmem:[%s3812_s28 + $0x5a8] sm:$0xf]  ;;  %559 = vst [vmem:[%s3816_s29 + $0x2cc] sm:$0xf] %v558_v51  ;;  %561 = vst [vmem:[%s3816_s29 + $0x2d0] sm:$0xf] %v560_v52 }
  0x8c   : > { %563 = vst [vmem:[%s3816_s29 + $0x2d4] sm:$0xf] %v562_v53  ;;  %v564_v54 = vld [vmem:[%s3812_s28 + $0x5b0] sm:$0xf]  ;;  %v566_v55 = vld [vmem:[%s3812_s28 + $0x5b8] sm:$0xf] }
  0x8d   : > { %v568_v56 = vld [vmem:[%s3812_s28 + $0x5c0] sm:$0xf]  ;;  %565 = vst [vmem:[%s3816_s29 + $0x2d8] sm:$0xf] %v564_v54  ;;  %567 = vst [vmem:[%s3816_s29 + $0x2dc] sm:$0xf] %v566_v55 }
  0x8e   : > { %569 = vst [vmem:[%s3816_s29 + $0x2e0] sm:$0xf] %v568_v56  ;;  %v570_v57 = vld [vmem:[%s3812_s28 + $0x5c8] sm:$0xf]  ;;  %v572_v58 = vld [vmem:[%s3812_s28 + $0x5d0] sm:$0xf] }
  0x8f   : > { %v574_v59 = vld [vmem:[%s3812_s28 + $0x5d8] sm:$0xf]  ;;  %571 = vst [vmem:[%s3816_s29 + $0x2e4] sm:$0xf] %v570_v57  ;;  %573 = vst [vmem:[%s3816_s29 + $0x2e8] sm:$0xf] %v572_v58 }
  0x90   : > { %575 = vst [vmem:[%s3816_s29 + $0x2ec] sm:$0xf] %v574_v59  ;;  %v576_v60 = vld [vmem:[%s3812_s28 + $0x5e0] sm:$0xf]  ;;  %v578_v61 = vld [vmem:[%s3812_s28 + $0x5e8] sm:$0xf] }
  0x91   : > { %v580_v62 = vld [vmem:[%s3812_s28 + $0x5f0] sm:$0xf]  ;;  %577 = vst [vmem:[%s3816_s29 + $0x2f0] sm:$0xf] %v576_v60  ;;  %579 = vst [vmem:[%s3816_s29 + $0x2f4] sm:$0xf] %v578_v61 }
  0x92   : > { %581 = vst [vmem:[%s3816_s29 + $0x2f8] sm:$0xf] %v580_v62  ;;  %v582_v63 = vld [vmem:[%s3812_s28 + $0x5f8] sm:$0xf]  ;;  %v584_v0 = vld [vmem:[%s3812_s28 + $0x600] sm:$0xf] }
  0x93   : > { %v586_v1 = vld [vmem:[%s3812_s28 + $0x608] sm:$0xf]  ;;  %583 = vst [vmem:[%s3816_s29 + $0x2fc] sm:$0xf] %v582_v63  ;;  %585 = vst [vmem:[%s3816_s29 + $0x300] sm:$0xf] %v584_v0 }
  0x94   : > { %587 = vst [vmem:[%s3816_s29 + $0x304] sm:$0xf] %v586_v1  ;;  %v588_v2 = vld [vmem:[%s3812_s28 + $0x610] sm:$0xf]  ;;  %v590_v3 = vld [vmem:[%s3812_s28 + $0x618] sm:$0xf] }
  0x95   : > { %v592_v4 = vld [vmem:[%s3812_s28 + $0x620] sm:$0xf]  ;;  %589 = vst [vmem:[%s3816_s29 + $0x308] sm:$0xf] %v588_v2  ;;  %591 = vst [vmem:[%s3816_s29 + $0x30c] sm:$0xf] %v590_v3 }
  0x96   : > { %593 = vst [vmem:[%s3816_s29 + $0x310] sm:$0xf] %v592_v4  ;;  %v594_v5 = vld [vmem:[%s3812_s28 + $0x628] sm:$0xf]  ;;  %v596_v6 = vld [vmem:[%s3812_s28 + $0x630] sm:$0xf] }
  0x97   : > { %v598_v7 = vld [vmem:[%s3812_s28 + $0x638] sm:$0xf]  ;;  %595 = vst [vmem:[%s3816_s29 + $0x314] sm:$0xf] %v594_v5  ;;  %597 = vst [vmem:[%s3816_s29 + $0x318] sm:$0xf] %v596_v6 }
  0x98   : > { %599 = vst [vmem:[%s3816_s29 + $0x31c] sm:$0xf] %v598_v7  ;;  %v600_v8 = vld [vmem:[%s3812_s28 + $0x640] sm:$0xf]  ;;  %v602_v9 = vld [vmem:[%s3812_s28 + $0x648] sm:$0xf] }
  0x99   : > { %v604_v10 = vld [vmem:[%s3812_s28 + $0x650] sm:$0xf]  ;;  %601 = vst [vmem:[%s3816_s29 + $0x320] sm:$0xf] %v600_v8  ;;  %603 = vst [vmem:[%s3816_s29 + $0x324] sm:$0xf] %v602_v9 }
  0x9a   : > { %605 = vst [vmem:[%s3816_s29 + $0x328] sm:$0xf] %v604_v10  ;;  %v606_v11 = vld [vmem:[%s3812_s28 + $0x658] sm:$0xf]  ;;  %v608_v12 = vld [vmem:[%s3812_s28 + $0x660] sm:$0xf] }
  0x9b   : > { %v610_v13 = vld [vmem:[%s3812_s28 + $0x668] sm:$0xf]  ;;  %607 = vst [vmem:[%s3816_s29 + $0x32c] sm:$0xf] %v606_v11  ;;  %609 = vst [vmem:[%s3816_s29 + $0x330] sm:$0xf] %v608_v12 }
  0x9c   : > { %611 = vst [vmem:[%s3816_s29 + $0x334] sm:$0xf] %v610_v13  ;;  %v612_v14 = vld [vmem:[%s3812_s28 + $0x670] sm:$0xf]  ;;  %v614_v15 = vld [vmem:[%s3812_s28 + $0x678] sm:$0xf] }
  0x9d   : > { %v616_v16 = vld [vmem:[%s3812_s28 + $0x680] sm:$0xf]  ;;  %613 = vst [vmem:[%s3816_s29 + $0x338] sm:$0xf] %v612_v14  ;;  %615 = vst [vmem:[%s3816_s29 + $0x33c] sm:$0xf] %v614_v15 }
  0x9e   : > { %617 = vst [vmem:[%s3816_s29 + $0x340] sm:$0xf] %v616_v16  ;;  %v618_v17 = vld [vmem:[%s3812_s28 + $0x688] sm:$0xf]  ;;  %v620_v18 = vld [vmem:[%s3812_s28 + $0x690] sm:$0xf] }
  0x9f   : > { %v622_v19 = vld [vmem:[%s3812_s28 + $0x698] sm:$0xf]  ;;  %619 = vst [vmem:[%s3816_s29 + $0x344] sm:$0xf] %v618_v17  ;;  %621 = vst [vmem:[%s3816_s29 + $0x348] sm:$0xf] %v620_v18 }
  0xa0   : > { %623 = vst [vmem:[%s3816_s29 + $0x34c] sm:$0xf] %v622_v19  ;;  %v624_v20 = vld [vmem:[%s3812_s28 + $0x6a0] sm:$0xf]  ;;  %v626_v21 = vld [vmem:[%s3812_s28 + $0x6a8] sm:$0xf] }
  0xa1   : > { %v628_v22 = vld [vmem:[%s3812_s28 + $0x6b0] sm:$0xf]  ;;  %625 = vst [vmem:[%s3816_s29 + $0x350] sm:$0xf] %v624_v20  ;;  %627 = vst [vmem:[%s3816_s29 + $0x354] sm:$0xf] %v626_v21 }
  0xa2   : > { %629 = vst [vmem:[%s3816_s29 + $0x358] sm:$0xf] %v628_v22  ;;  %v630_v23 = vld [vmem:[%s3812_s28 + $0x6b8] sm:$0xf]  ;;  %v632_v24 = vld [vmem:[%s3812_s28 + $0x6c0] sm:$0xf] }
  0xa3   : > { %v634_v25 = vld [vmem:[%s3812_s28 + $0x6c8] sm:$0xf]  ;;  %631 = vst [vmem:[%s3816_s29 + $0x35c] sm:$0xf] %v630_v23  ;;  %633 = vst [vmem:[%s3816_s29 + $0x360] sm:$0xf] %v632_v24 }
  0xa4   : > { %635 = vst [vmem:[%s3816_s29 + $0x364] sm:$0xf] %v634_v25  ;;  %v636_v26 = vld [vmem:[%s3812_s28 + $0x6d0] sm:$0xf]  ;;  %v638_v27 = vld [vmem:[%s3812_s28 + $0x6d8] sm:$0xf] }
  0xa5   : > { %v640_v28 = vld [vmem:[%s3812_s28 + $0x6e0] sm:$0xf]  ;;  %637 = vst [vmem:[%s3816_s29 + $0x368] sm:$0xf] %v636_v26  ;;  %639 = vst [vmem:[%s3816_s29 + $0x36c] sm:$0xf] %v638_v27 }
  0xa6   : > { %641 = vst [vmem:[%s3816_s29 + $0x370] sm:$0xf] %v640_v28  ;;  %v642_v29 = vld [vmem:[%s3812_s28 + $0x6e8] sm:$0xf]  ;;  %v644_v30 = vld [vmem:[%s3812_s28 + $0x6f0] sm:$0xf] }
  0xa7   : > { %v646_v31 = vld [vmem:[%s3812_s28 + $0x6f8] sm:$0xf]  ;;  %643 = vst [vmem:[%s3816_s29 + $0x374] sm:$0xf] %v642_v29  ;;  %645 = vst [vmem:[%s3816_s29 + $0x378] sm:$0xf] %v644_v30 }
  0xa8   : > { %647 = vst [vmem:[%s3816_s29 + $0x37c] sm:$0xf] %v646_v31  ;;  %v648_v32 = vld [vmem:[%s3812_s28 + $0x700] sm:$0xf]  ;;  %v650_v33 = vld [vmem:[%s3812_s28 + $0x708] sm:$0xf] }
  0xa9   : > { %v652_v34 = vld [vmem:[%s3812_s28 + $0x710] sm:$0xf]  ;;  %649 = vst [vmem:[%s3816_s29 + $0x380] sm:$0xf] %v648_v32  ;;  %651 = vst [vmem:[%s3816_s29 + $0x384] sm:$0xf] %v650_v33 }
  0xaa   : > { %653 = vst [vmem:[%s3816_s29 + $0x388] sm:$0xf] %v652_v34  ;;  %v654_v35 = vld [vmem:[%s3812_s28 + $0x718] sm:$0xf]  ;;  %v656_v36 = vld [vmem:[%s3812_s28 + $0x720] sm:$0xf] }
  0xab   : > { %v658_v37 = vld [vmem:[%s3812_s28 + $0x728] sm:$0xf]  ;;  %655 = vst [vmem:[%s3816_s29 + $0x38c] sm:$0xf] %v654_v35  ;;  %657 = vst [vmem:[%s3816_s29 + $0x390] sm:$0xf] %v656_v36 }
  0xac   : > { %659 = vst [vmem:[%s3816_s29 + $0x394] sm:$0xf] %v658_v37  ;;  %v660_v38 = vld [vmem:[%s3812_s28 + $0x730] sm:$0xf]  ;;  %v662_v39 = vld [vmem:[%s3812_s28 + $0x738] sm:$0xf] }
  0xad   : > { %v664_v40 = vld [vmem:[%s3812_s28 + $0x740] sm:$0xf]  ;;  %661 = vst [vmem:[%s3816_s29 + $0x398] sm:$0xf] %v660_v38  ;;  %663 = vst [vmem:[%s3816_s29 + $0x39c] sm:$0xf] %v662_v39 }
  0xae   : > { %665 = vst [vmem:[%s3816_s29 + $0x3a0] sm:$0xf] %v664_v40  ;;  %v666_v41 = vld [vmem:[%s3812_s28 + $0x748] sm:$0xf]  ;;  %v668_v42 = vld [vmem:[%s3812_s28 + $0x750] sm:$0xf] }
  0xaf   : > { %v670_v43 = vld [vmem:[%s3812_s28 + $0x758] sm:$0xf]  ;;  %667 = vst [vmem:[%s3816_s29 + $0x3a4] sm:$0xf] %v666_v41  ;;  %669 = vst [vmem:[%s3816_s29 + $0x3a8] sm:$0xf] %v668_v42 }
  0xb0   : > { %671 = vst [vmem:[%s3816_s29 + $0x3ac] sm:$0xf] %v670_v43  ;;  %v672_v44 = vld [vmem:[%s3812_s28 + $0x760] sm:$0xf]  ;;  %v674_v45 = vld [vmem:[%s3812_s28 + $0x768] sm:$0xf] }
  0xb1   : > { %v676_v46 = vld [vmem:[%s3812_s28 + $0x770] sm:$0xf]  ;;  %673 = vst [vmem:[%s3816_s29 + $0x3b0] sm:$0xf] %v672_v44  ;;  %675 = vst [vmem:[%s3816_s29 + $0x3b4] sm:$0xf] %v674_v45 }
  0xb2   : > { %677 = vst [vmem:[%s3816_s29 + $0x3b8] sm:$0xf] %v676_v46  ;;  %v678_v47 = vld [vmem:[%s3812_s28 + $0x778] sm:$0xf]  ;;  %v680_v48 = vld [vmem:[%s3812_s28 + $0x780] sm:$0xf] }
  0xb3   : > { %v682_v49 = vld [vmem:[%s3812_s28 + $0x788] sm:$0xf]  ;;  %679 = vst [vmem:[%s3816_s29 + $0x3bc] sm:$0xf] %v678_v47  ;;  %681 = vst [vmem:[%s3816_s29 + $0x3c0] sm:$0xf] %v680_v48 }
  0xb4   : > { %683 = vst [vmem:[%s3816_s29 + $0x3c4] sm:$0xf] %v682_v49  ;;  %v684_v50 = vld [vmem:[%s3812_s28 + $0x790] sm:$0xf]  ;;  %v686_v51 = vld [vmem:[%s3812_s28 + $0x798] sm:$0xf] }
  0xb5   : > { %v688_v52 = vld [vmem:[%s3812_s28 + $0x7a0] sm:$0xf]  ;;  %685 = vst [vmem:[%s3816_s29 + $0x3c8] sm:$0xf] %v684_v50  ;;  %687 = vst [vmem:[%s3816_s29 + $0x3cc] sm:$0xf] %v686_v51 }
  0xb6   : > { %689 = vst [vmem:[%s3816_s29 + $0x3d0] sm:$0xf] %v688_v52  ;;  %v690_v53 = vld [vmem:[%s3812_s28 + $0x7a8] sm:$0xf]  ;;  %v692_v54 = vld [vmem:[%s3812_s28 + $0x7b0] sm:$0xf] }
  0xb7   : > { %v694_v55 = vld [vmem:[%s3812_s28 + $0x7b8] sm:$0xf]  ;;  %691 = vst [vmem:[%s3816_s29 + $0x3d4] sm:$0xf] %v690_v53  ;;  %693 = vst [vmem:[%s3816_s29 + $0x3d8] sm:$0xf] %v692_v54 }
  0xb8   : > { %695 = vst [vmem:[%s3816_s29 + $0x3dc] sm:$0xf] %v694_v55  ;;  %v696_v56 = vld [vmem:[%s3812_s28 + $0x7c0] sm:$0xf]  ;;  %v698_v57 = vld [vmem:[%s3812_s28 + $0x7c8] sm:$0xf] }
  0xb9   : > { %v700_v58 = vld [vmem:[%s3812_s28 + $0x7d0] sm:$0xf]  ;;  %697 = vst [vmem:[%s3816_s29 + $0x3e0] sm:$0xf] %v696_v56  ;;  %699 = vst [vmem:[%s3816_s29 + $0x3e4] sm:$0xf] %v698_v57 }
  0xba   : > { %701 = vst [vmem:[%s3816_s29 + $0x3e8] sm:$0xf] %v700_v58  ;;  %v702_v59 = vld [vmem:[%s3812_s28 + $0x7d8] sm:$0xf]  ;;  %v704_v60 = vld [vmem:[%s3812_s28 + $0x7e0] sm:$0xf] }
  0xbb   : > { %v706_v61 = vld [vmem:[%s3812_s28 + $0x7e8] sm:$0xf]  ;;  %703 = vst [vmem:[%s3816_s29 + $0x3ec] sm:$0xf] %v702_v59  ;;  %705 = vst [vmem:[%s3816_s29 + $0x3f0] sm:$0xf] %v704_v60 }
  0xbc   : > { %707 = vst [vmem:[%s3816_s29 + $0x3f4] sm:$0xf] %v706_v61  ;;  %v708_v62 = vld [vmem:[%s3812_s28 + $0x7f0] sm:$0xf]  ;;  %v710_v63 = vld [vmem:[%s3812_s28 + $0x7f8] sm:$0xf] }
  0xbd   : > { %709 = vst [vmem:[%s3816_s29 + $0x3f8] sm:$0xf] %v708_v62  ;;  %711 = vst [vmem:[%s3816_s29 + $0x3fc] sm:$0xf] %v710_v63 }
  0xbe PF: > { %p3125_p8 = scmp.ge.s32.totalorder %s3742_s16, 1  ;;  %p1252_p9 = scmp.lt.s32.totalorder %s3742_s16, 3 }
  0xc0   : > { %p1253_p10 = pnand %p3125_p8, %p1252_p9 }
  0xc1   : > { %s1259_s30 = sand.u32 (!%p1253_p10), 1, %s3726_s12   ;;  %p1307_p11 = scmp.lt.s32.totalorder (!%p1253_p10), %s3734_s14, 1 }
  0xc2   : > { %1256 = sbr.rel (%p1253_p10) target bundleno = 555 (0x22b), region = 69  ;;  %s3126_s10 = sshll.u32 (!%p1253_p10), %s1259_s30, 10 }
  0xc3   : > { %s4357_s19 = scalar_lea.vmem (!%p1253_p10), [#allocation2], %s3126_s10  ;;  %s3127_s4 = sshll.u32 (!%p1253_p10), %s1259_s30, 4 }
  0xc4   : > { %s1293_s5 = scalar_lea.vmem (!%p1253_p10), [#allocation3], %s3127_s4 }
  0xc7   : > { %v4334_v0 = vld [vmem:[%s4609_s0] sm:$0xff]  ;;  %v4344_v2 = vld [vmem:[%s4609_s0 + $0x8] sm:$0xff]  ;;  %v3576_v6 = vld [vmem:[%s4357_s19 + $0x78] sm:$0xff]   ;;  %s1308_s26 = scalar_select %p1307_p11, %s3734_s14, 1 }
  0xc8   : > { %v4339_v1 = vld [vmem:[%s4609_s0 + $0x40] sm:$0xff]  ;;  %v4353_v4 = vld [vmem:[%s4609_s0 + $0x48] sm:$0xff]  ;;  %v3577_v7 = vld [vmem:[%s4357_s19 + $0xf8] sm:$0xff]   ;;  %3312 = vmatprep.subr.bf16.mxu0 %v3576_v6  ;;  %s3294_s12 = sshll.u32 (%p3799_p6), %s3734_s14, 2 }
  0xc9   : > { %v3130_v3 = vcombine.high %v4334_v0, %v4339_v1  ;;  %v3132_v5 = vcombine.high %v4344_v2, %v4353_v4  ;;  %v3578_v8 = vld [vmem:[%s4357_s19 + $0x38] sm:$0xff]   ;;  %3340 = vmatprep.subr.bf16.mxu1 %v3577_v7  ;;  %v3580_v10 = vld [vmem:[%s4357_s19 + $0x70] sm:$0xff]   ;;  %v3584_v14 = vld [vmem:[%s4357_s19 + $0x68] sm:$0xff]   ;;  %v3129_v42 = vcombine.low %v4334_v0, %v4339_v1  ;;  %v3131_v43 = vcombine.low %v4344_v2, %v4353_v4  ;;  %s1309_s29 = scalar_lea.vmem %s4611_s2, %s1308_s26  ;;  %s2962_s7 = scalar_lea.vmem (%p3799_p6), %s4612_s3, %s3294_s12 }
  0xca   : > { %v3579_v9 = vld [vmem:[%s4357_s19 + $0xb8] sm:$0xff]   ;;  %3313 = vmatpush3.bf16.msra.mxu0 %v3578_v8  ;;  %v3581_v11 = vld [vmem:[%s4357_s19 + $0xf0] sm:$0xff]   ;;  %v3585_v15 = vld [vmem:[%s4357_s19 + $0xe8] sm:$0xff]  }
  0xcb   : > { %2567 = vmatprep.mubr.bf16.mxu0 %v3130_v3  ;;  %2616 = vmatprep.mubr.bf16.mxu1 %v3132_v5  ;;  %v3582_v12 = vld [vmem:[%s4357_s19 + $0x30] sm:$0xff]   ;;  %v3586_v16 = vld [vmem:[%s4357_s19 + $0x28] sm:$0xff]   ;;  %v3588_v18 = vld [vmem:[%s4357_s19 + $0x60] sm:$0xff]  }
  0xcc   : > { %3341 = vmatpush3.bf16.msra.mxu1 %v3579_v9  ;;  %3314 = vmatprep.subr.bf16.mxu0 %v3580_v10  ;;  %v3583_v13 = vld [vmem:[%s4357_s19 + $0xb0] sm:$0xff]   ;;  %v3587_v17 = vld [vmem:[%s4357_s19 + $0xa8] sm:$0xff]   ;;  %v3589_v19 = vld [vmem:[%s4357_s19 + $0xe0] sm:$0xff]  }
  0xcd   : > { %3342 = vmatprep.subr.bf16.mxu1 %v3581_v11  ;;  %v3590_v20 = vld [vmem:[%s4357_s19 + $0x20] sm:$0xff]   ;;  %v3592_v22 = vld [vmem:[%s4357_s19 + $0x58] sm:$0xff]   ;;  %v3596_v26 = vld [vmem:[%s4357_s19 + $0x50] sm:$0xff]  }
  0xce   : > { %3315 = vmatpush3.bf16.msra.mxu0 %v3582_v12  ;;  %v3591_v21 = vld [vmem:[%s4357_s19 + $0xa0] sm:$0xff]   ;;  %v3593_v23 = vld [vmem:[%s4357_s19 + $0xd8] sm:$0xff]   ;;  %v3597_v27 = vld [vmem:[%s4357_s19 + $0xd0] sm:$0xff]  }
  0xcf   : > { %3316 = vmatprep.subr.bf16.mxu0 %v3584_v14  ;;  %v3594_v24 = vld [vmem:[%s4357_s19 + $0x18] sm:$0xff]   ;;  %v3598_v28 = vld [vmem:[%s4357_s19 + $0x10] sm:$0xff]   ;;  %v3600_v30 = vld [vmem:[%s4357_s19 + $0x48] sm:$0xff]  }
  0xd0   : > { %3343 = vmatpush3.bf16.msra.mxu1 %v3583_v13  ;;  %v3595_v25 = vld [vmem:[%s4357_s19 + $0x98] sm:$0xff]   ;;  %v3599_v29 = vld [vmem:[%s4357_s19 + $0x90] sm:$0xff]   ;;  %v3601_v31 = vld [vmem:[%s4357_s19 + $0xc8] sm:$0xff]  }
  0xd1   : > { %3344 = vmatprep.subr.bf16.mxu1 %v3585_v15  ;;  %v3602_v32 = vld [vmem:[%s4357_s19 + $0x8] sm:$0xff]   ;;  %v3604_v34 = vld [vmem:[%s4357_s19 + $0x40] sm:$0xff]   ;;  %v3608_v44 = vld [vmem:[%s4357_s19 + $0x178] sm:$0xff]  }
  0xd2   : > { %3317 = vmatpush3.bf16.msra.mxu0 %v3586_v16  ;;  %v3603_v33 = vld [vmem:[%s4357_s19 + $0x88] sm:$0xff]   ;;  %v1328_v35 = vld [vmem:[%s4609_s0 + $0x80] sm:$0xff]  ;;  %v3609_v45 = vld [vmem:[%s4357_s19 + $0x1f8] sm:$0xff]  }
  0xd3   : > { %3318 = vmatprep.subr.bf16.mxu0 %v3588_v18  ;;  %v1336_v36 = vld [vmem:[%s4609_s0 + $0xc0] sm:$0xff]  ;;  %v1329_v38 = vld [vmem:[%s4609_s0 + $0x88] sm:$0xff]  ;;  %v3610_v47 = vld [vmem:[%s4357_s19 + $0x138] sm:$0xff]  }
  0xd4   : > { %3345 = vmatpush3.bf16.msra.mxu1 %v3587_v17  ;;  %v3605_v37 = vld [vmem:[%s4357_s19 + $0xc0] sm:$0xff]   ;;  %v1337_v39 = vld [vmem:[%s4609_s0 + $0xc8] sm:$0xff]  ;;  %v3146_v46 = vcombine.high %v1328_v35, %v1336_v36  ;;  %v3611_v49 = vld [vmem:[%s4357_s19 + $0x1b8] sm:$0xff]   ;;  %v3145_v54 = vcombine.low %v1328_v35, %v1336_v36 }
  0xd5   : > { %3346 = vmatprep.subr.bf16.mxu1 %v3589_v19  ;;  %v3606_v40 = vld [vmem:[%s4357_s19] sm:$0xff]   ;;  %v3148_v48 = vcombine.high %v1329_v38, %v1337_v39  ;;  %v3612_v50 = vld [vmem:[%s4357_s19 + $0x170] sm:$0xff]   ;;  %v3616_v55 = vld [vmem:[%s4357_s19 + $0x168] sm:$0xff]   ;;  %v3147_v56 = vcombine.low %v1329_v38, %v1337_v39 }
  0xd6   : > { %3319 = vmatpush3.bf16.msra.mxu0 %v3590_v20  ;;  %v3607_v41 = vld [vmem:[%s4357_s19 + $0x80] sm:$0xff]   ;;  %v3613_v51 = vld [vmem:[%s4357_s19 + $0x1f0] sm:$0xff]   ;;  %v3617_v57 = vld [vmem:[%s4357_s19 + $0x1e8] sm:$0xff]  }
  0xd7   : > { %3320 = vmatprep.subr.bf16.mxu0 %v3592_v22  ;;  %v3614_v52 = vld [vmem:[%s4357_s19 + $0x130] sm:$0xff]   ;;  %v3618_v58 = vld [vmem:[%s4357_s19 + $0x128] sm:$0xff]   ;;  %v3620_v60 = vld [vmem:[%s4357_s19 + $0x160] sm:$0xff]  }
  0xd8   : > { %3347 = vmatpush3.bf16.msra.mxu1 %v3591_v21  ;;  %v3615_v53 = vld [vmem:[%s4357_s19 + $0x1b0] sm:$0xff]   ;;  %v3619_v59 = vld [vmem:[%s4357_s19 + $0x1a8] sm:$0xff]   ;;  %v3621_v61 = vld [vmem:[%s4357_s19 + $0x1e0] sm:$0xff]  }
  0xd9   : > { %3348 = vmatprep.subr.bf16.mxu1 %v3593_v23  ;;  %v3622_v62 = vld [vmem:[%s4357_s19 + $0x120] sm:$0xff]   ;;  %v3624_v0 = vld [vmem:[%s4357_s19 + $0x158] sm:$0xff]   ;;  %v3628_v4 = vld [vmem:[%s4357_s19 + $0x150] sm:$0xff]  }
  0xda   : > { %3321 = vmatpush3.bf16.msra.mxu0 %v3594_v24  ;;  %v3623_v63 = vld [vmem:[%s4357_s19 + $0x1a0] sm:$0xff]   ;;  %v3625_v1 = vld [vmem:[%s4357_s19 + $0x1d8] sm:$0xff]   ;;  %v3629_v5 = vld [vmem:[%s4357_s19 + $0x1d0] sm:$0xff]  }
  0xdb   : > { %3322 = vmatprep.subr.bf16.mxu0 %v3596_v26  ;;  %v3626_v2 = vld [vmem:[%s4357_s19 + $0x118] sm:$0xff]   ;;  %v3630_v6 = vld [vmem:[%s4357_s19 + $0x110] sm:$0xff]   ;;  %v3632_v8 = vld [vmem:[%s4357_s19 + $0x148] sm:$0xff]  }
  0xdc   : > { %3349 = vmatpush3.bf16.msra.mxu1 %v3595_v25  ;;  %v3627_v3 = vld [vmem:[%s4357_s19 + $0x198] sm:$0xff]   ;;  %v3631_v7 = vld [vmem:[%s4357_s19 + $0x190] sm:$0xff]   ;;  %v3633_v9 = vld [vmem:[%s4357_s19 + $0x1c8] sm:$0xff]  }
  0xdd   : > { %3350 = vmatprep.subr.bf16.mxu1 %v3597_v27  ;;  %v3634_v10 = vld [vmem:[%s4357_s19 + $0x108] sm:$0xff]   ;;  %v3636_v12 = vld [vmem:[%s4357_s19 + $0x140] sm:$0xff]   ;;  %v1314_v13 = vld [vmem:[%s4609_s0 + $0x10] sm:$0xff] }
  0xde   : > { %3323 = vmatpush3.bf16.msra.mxu0 %v3598_v28  ;;  %v3635_v11 = vld [vmem:[%s4357_s19 + $0x188] sm:$0xff]   ;;  %v3637_v14 = vld [vmem:[%s4357_s19 + $0x1c0] sm:$0xff]   ;;  %v1322_v17 = vld [vmem:[%s4609_s0 + $0x50] sm:$0xff] }
  0xdf   : > { %3324 = vmatprep.subr.bf16.mxu0 %v3600_v30  ;;  %v3638_v15 = vld [vmem:[%s4357_s19 + $0x100] sm:$0xff]   ;;  %v1315_v18 = vld [vmem:[%s4609_s0 + $0x18] sm:$0xff]  ;;  %v3133_v20 = vcombine.low %v1314_v13, %v1322_v17  ;;  %v3134_v21 = vcombine.high %v1314_v13, %v1322_v17  ;;  %v3644_v28 = vld [vmem:[%s4357_s19 + $0x270] sm:$0xff]  }
  0xe0   : > { %3351 = vmatpush3.bf16.msra.mxu1 %v3599_v29  ;;  %v3639_v16 = vld [vmem:[%s4357_s19 + $0x180] sm:$0xff]   ;;  %v1323_v19 = vld [vmem:[%s4609_s0 + $0x58] sm:$0xff]  ;;  %v3645_v29 = vld [vmem:[%s4357_s19 + $0x2f0] sm:$0xff]  }
  0xe1   : > { %3352 = vmatprep.subr.bf16.mxu1 %v3601_v31  ;;  %v3135_v22 = vcombine.low %v1315_v18, %v1323_v19  ;;  %v3136_v23 = vcombine.high %v1315_v18, %v1323_v19  ;;  %v3640_v24 = vld [vmem:[%s4357_s19 + $0x278] sm:$0xff]   ;;  %v3646_v30 = vld [vmem:[%s4357_s19 + $0x230] sm:$0xff]   ;;  %v3648_v36 = vld [vmem:[%s4357_s19 + $0x268] sm:$0xff]  }
  0xe2   : > { %3325 = vmatpush3.bf16.msra.mxu0 %v3602_v32  ;;  %v3641_v25 = vld [vmem:[%s4357_s19 + $0x2f8] sm:$0xff]   ;;  %v3647_v31 = vld [vmem:[%s4357_s19 + $0x2b0] sm:$0xff]   ;;  %v1340_v17 = vld [vmem:[%s4609_s0 + $0xe0] sm:$0xff] }
  0xe3   : > { %3326 = vmatprep.subr.bf16.mxu0 %v3604_v34  ;;  %v3642_v26 = vld [vmem:[%s4357_s19 + $0x238] sm:$0xff]   ;;  %v1330_v32 = vld [vmem:[%s4609_s0 + $0x90] sm:$0xff] }
  0xe4   : > { %3353 = vmatpush3.bf16.msra.mxu1 %v3603_v33  ;;  %v3643_v27 = vld [vmem:[%s4357_s19 + $0x2b8] sm:$0xff]   ;;  %v1338_v33 = vld [vmem:[%s4609_s0 + $0xd0] sm:$0xff] }
  0xe5   : > { %3354 = vmatprep.subr.bf16.mxu1 %v3605_v37  ;;  %v3150_v34 = vcombine.high %v1330_v32, %v1338_v33  ;;  %v3149_v35 = vcombine.low %v1330_v32, %v1338_v33  ;;  %v3649_v37 = vld [vmem:[%s4357_s19 + $0x2e8] sm:$0xff]   ;;  %v1331_v38 = vld [vmem:[%s4609_s0 + $0x98] sm:$0xff]  ;;  %v3677_v13 = vld [vmem:[%s4357_s19 + $0x3f0] sm:$0xff]  }
  0xe6   : > { %3327 = vmatpush3.bf16.msra.mxu0 %v3606_v40  ;;  %v1339_v39 = vld [vmem:[%s4609_s0 + $0xd8] sm:$0xff] }
  0xe7   : > { %3368 = vmatprep.subr.bf16.mxu0 %v3608_v44  ;;  %v3152_v40 = vcombine.high %v1331_v38, %v1339_v39  ;;  %v3652_v44 = vld [vmem:[%s4357_s19 + $0x260] sm:$0xff]   ;;  %v3688_v32 = vld [vmem:[%s4357_s19 + $0x358] sm:$0xff]  }
  0xe8   : > { %3355 = vmatpush3.bf16.msra.mxu1 %v3607_v41  ;;  %v3650_v41 = vld [vmem:[%s4357_s19 + $0x228] sm:$0xff]   ;;  %v3689_v33 = vld [vmem:[%s4357_s19 + $0x3d8] sm:$0xff]  }
  0xe9   : > { %2568 = vmatmul.mubr.bf16.vlgmr.msra.gmra.mxu0 %v3129_v42  ;;  %3396 = vmatprep.subr.bf16.mxu1 %v3609_v45  ;;  %v3151_v42 = vcombine.low %v1331_v38, %v1339_v39  ;;  %v3653_v45 = vld [vmem:[%s4357_s19 + $0x2e0] sm:$0xff]   ;;  %v3694_v38 = vld [vmem:[%s4357_s19 + $0x310] sm:$0xff]  }
  0xea   : > { %3369 = vmatpush3.bf16.msra.mxu0 %v3610_v47  ;;  %2575 = vmatprep.mubr.bf16.mxu0 %v3146_v46  ;;  %v3654_v46 = vld [vmem:[%s4357_s19 + $0x220] sm:$0xff]   ;;  %v3695_v39 = vld [vmem:[%s4357_s19 + $0x390] sm:$0xff]  }
  0xeb   : > { %2617 = vmatmul.mubr.bf16.vlgmr.msra.gmra.mxu1 %v3131_v43  ;;  %3370 = vmatprep.subr.bf16.mxu0 %v3612_v50  ;;  %v3651_v43 = vld [vmem:[%s4357_s19 + $0x2a8] sm:$0xff]   ;;  %v3655_v47 = vld [vmem:[%s4357_s19 + $0x2a0] sm:$0xff]   ;;  %v3658_v50 = vld [vmem:[%s4357_s19 + $0x218] sm:$0xff]  }
  0xec   : > { %3397 = vmatpush3.bf16.msra.mxu1 %v3611_v49  ;;  %2624 = vmatprep.mubr.bf16.mxu1 %v3148_v48  ;;  %v3656_v48 = vld [vmem:[%s4357_s19 + $0x258] sm:$0xff]  }
  0xed   : > { %3398 = vmatprep.subr.bf16.mxu1 %v3613_v51  ;;  %v3657_v49 = vld [vmem:[%s4357_s19 + $0x2d8] sm:$0xff]  }
  0xee   : > { %3371 = vmatpush3.bf16.msra.mxu0 %v3614_v52  ;;  %v3659_v51 = vld [vmem:[%s4357_s19 + $0x298] sm:$0xff]   ;;  %v3660_v52 = vld [vmem:[%s4357_s19 + $0x250] sm:$0xff]  }
  0xef   : > { %3372 = vmatprep.subr.bf16.mxu0 %v3616_v55  ;;  %v3663_v55 = vld [vmem:[%s4357_s19 + $0x290] sm:$0xff]  }
  0xf0   : > { %3399 = vmatpush3.bf16.msra.mxu1 %v3615_v53  ;;  %v3661_v53 = vld [vmem:[%s4357_s19 + $0x2d0] sm:$0xff]  }
  0xf1   : > { %3400 = vmatprep.subr.bf16.mxu1 %v3617_v57  ;;  %2576 = vmatmul.mubr.bf16.gmra.mxu0 %v3145_v54  ;;  %v3662_v54 = vld [vmem:[%s4357_s19 + $0x210] sm:$0xff]   ;;  %v3665_v57 = vld [vmem:[%s4357_s19 + $0x2c8] sm:$0xff]  }
  0xf2   : > { %3373 = vmatpush3.bf16.msra.mxu0 %v3618_v58  ;;  %2665 = vmatprep.mubr.bf16.mxu0 %v3134_v21  ;;  %v3666_v58 = vld [vmem:[%s4357_s19 + $0x208] sm:$0xff]  }
  0xf3   : > { %2625 = vmatmul.mubr.bf16.gmra.mxu1 %v3147_v56  ;;  %3374 = vmatprep.subr.bf16.mxu0 %v3620_v60  ;;  %v3664_v56 = vld [vmem:[%s4357_s19 + $0x248] sm:$0xff]   ;;  %v3668_v60 = vld [vmem:[%s4357_s19 + $0x240] sm:$0xff]  }
  0xf4   : > { %3401 = vmatpush3.bf16.msra.mxu1 %v3619_v59  ;;  %2714 = vmatprep.mubr.bf16.mxu1 %v3136_v23  ;;  %v3667_v59 = vld [vmem:[%s4357_s19 + $0x288] sm:$0xff]  }
  0xf5   : > { %3402 = vmatprep.subr.bf16.mxu1 %v3621_v61  ;;  %v3669_v61 = vld [vmem:[%s4357_s19 + $0x2c0] sm:$0xff]   ;;  %v3681_v21 = vld [vmem:[%s4357_s19 + $0x3e8] sm:$0xff]  }
  0xf6   : > { %3375 = vmatpush3.bf16.msra.mxu0 %v3622_v62  ;;  %v3670_v62 = vld [vmem:[%s4357_s19 + $0x200] sm:$0xff]   ;;  %v1341_v23 = vld [vmem:[%s4609_s0 + $0xe8] sm:$0xff] }
  0xf7   : > { %3376 = vmatprep.subr.bf16.mxu0 %v3624_v0  ;;  %v1316_v0 = vld [vmem:[%s4609_s0 + $0x20] sm:$0xff] }
  0xf8   : > { %3403 = vmatpush3.bf16.msra.mxu1 %v3623_v63  ;;  %v3671_v63 = vld [vmem:[%s4357_s19 + $0x280] sm:$0xff]  }
  0xf9   : > { %3404 = vmatprep.subr.bf16.mxu1 %v3625_v1  ;;  %v1324_v1 = vld [vmem:[%s4609_s0 + $0x60] sm:$0xff] }
  0xfa   : > { %3377 = vmatpush3.bf16.msra.mxu0 %v3626_v2  ;;  %v3137_v2 = vcombine.low %v1316_v0, %v1324_v1 }
  0xfb   : > { %3378 = vmatprep.subr.bf16.mxu0 %v3628_v4  ;;  %v1317_v4 = vld [vmem:[%s4609_s0 + $0x28] sm:$0xff] }
  0xfc   : > { %3405 = vmatpush3.bf16.msra.mxu1 %v3627_v3  ;;  %v3138_v3 = vcombine.high %v1316_v0, %v1324_v1 }
  0xfd   : > { %3406 = vmatprep.subr.bf16.mxu1 %v3629_v5  ;;  %v1325_v5 = vld [vmem:[%s4609_s0 + $0x68] sm:$0xff] }
  0xfe   : > { %3379 = vmatpush3.bf16.msra.mxu0 %v3630_v6  ;;  %v3139_v6 = vcombine.low %v1317_v4, %v1325_v5 }
  0xff   : > { %3380 = vmatprep.subr.bf16.mxu0 %v3632_v8  ;;  %v3672_v8 = vld [vmem:[%s4357_s19 + $0x378] sm:$0xff]  }
 0x100   : > { %3407 = vmatpush3.bf16.msra.mxu1 %v3631_v7  ;;  %v3140_v7 = vcombine.high %v1317_v4, %v1325_v5 }
 0x101   : > { %3408 = vmatprep.subr.bf16.mxu1 %v3633_v9  ;;  %v3673_v9 = vld [vmem:[%s4357_s19 + $0x3f8] sm:$0xff]  }
 0x102   : > { %3381 = vmatpush3.bf16.msra.mxu0 %v3634_v10  ;;  %v3674_v10 = vld [vmem:[%s4357_s19 + $0x338] sm:$0xff]  }
 0x103   : > { %3382 = vmatprep.subr.bf16.mxu0 %v3636_v12  ;;  %v3676_v12 = vld [vmem:[%s4357_s19 + $0x370] sm:$0xff]  }
 0x104   : > { %3409 = vmatpush3.bf16.msra.mxu1 %v3635_v11  ;;  %v3675_v11 = vld [vmem:[%s4357_s19 + $0x3b8] sm:$0xff]  }
 0x105   : > { %3410 = vmatprep.subr.bf16.mxu1 %v3637_v14  ;;  %v3678_v14 = vld [vmem:[%s4357_s19 + $0x330] sm:$0xff]  }
 0x106   : > { %3383 = vmatpush3.bf16.msra.mxu0 %v3638_v15  ;;  %v3679_v15 = vld [vmem:[%s4357_s19 + $0x3b0] sm:$0xff]  }
 0x107   : > { %3424 = vmatprep.subr.bf16.mxu0 %v3640_v24 }
 0x108   : > { %3411 = vmatpush3.bf16.msra.mxu1 %v3639_v16  ;;  %v1332_v16 = vld [vmem:[%s4609_s0 + $0xa0] sm:$0xff] }
 0x109   : > { %2666 = vmatmul.mubr.bf16.vlgmr.msra.gmra.mxu0 %v3133_v20  ;;  %3452 = vmatprep.subr.bf16.mxu1 %v3641_v25  ;;  %v3154_v18 = vcombine.high %v1332_v16, %v1340_v17  ;;  %v3153_v19 = vcombine.low %v1332_v16, %v1340_v17  ;;  %v3680_v20 = vld [vmem:[%s4357_s19 + $0x368] sm:$0xff]  }
 0x10a   : > { %3425 = vmatpush3.bf16.msra.mxu0 %v3642_v26  ;;  %2673 = vmatprep.mubr.bf16.mxu0 %v3150_v34  ;;  %v3682_v25 = vld [vmem:[%s4357_s19 + $0x328] sm:$0xff]   ;;  %v3690_v34 = vld [vmem:[%s4357_s19 + $0x318] sm:$0xff]  }
 0x10b   : > { %2715 = vmatmul.mubr.bf16.vlgmr.msra.gmra.mxu1 %v3135_v22  ;;  %3426 = vmatprep.subr.bf16.mxu0 %v3644_v28  ;;  %v1333_v22 = vld [vmem:[%s4609_s0 + $0xa8] sm:$0xff]  ;;  %v3684_v28 = vld [vmem:[%s4357_s19 + $0x360] sm:$0xff]  }
 0x10c   : > { %3453 = vmatpush3.bf16.msra.mxu1 %v3643_v27  ;;  %2722 = vmatprep.mubr.bf16.mxu1 %v3152_v40  ;;  %v3156_v24 = vcombine.high %v1333_v22, %v1341_v23  ;;  %v3155_v26 = vcombine.low %v1333_v22, %v1341_v23  ;;  %v3683_v27 = vld [vmem:[%s4357_s19 + $0x3a8] sm:$0xff]  }
 0x10d   : > { %3454 = vmatprep.subr.bf16.mxu1 %v3645_v29  ;;  %v3685_v29 = vld [vmem:[%s4357_s19 + $0x3e0] sm:$0xff]   ;;  %v3696_v40 = vld [vmem:[%s4357_s19 + $0x348] sm:$0xff]  }
 0x10e   : > { %3427 = vmatpush3.bf16.msra.mxu0 %v3646_v30  ;;  %v3686_v30 = vld [vmem:[%s4357_s19 + $0x320] sm:$0xff]  }
 0x10f   : > { %3428 = vmatprep.subr.bf16.mxu0 %v3648_v36  ;;  %v3692_v36 = vld [vmem:[%s4357_s19 + $0x350] sm:$0xff]  }
 0x110   : > { %3455 = vmatpush3.bf16.msra.mxu1 %v3647_v31  ;;  %v3687_v31 = vld [vmem:[%s4357_s19 + $0x3a0] sm:$0xff]  }
 0x111   : > { %2674 = vmatmul.mubr.bf16.gmra.mxu0 %v3149_v35  ;;  %3456 = vmatprep.subr.bf16.mxu1 %v3649_v37  ;;  %v3691_v35 = vld [vmem:[%s4357_s19 + $0x398] sm:$0xff]   ;;  %v3693_v37 = vld [vmem:[%s4357_s19 + $0x3d0] sm:$0xff]  }
 0x112   : > { %3429 = vmatpush3.bf16.msra.mxu0 %v3650_v41  ;;  %2763 = vmatprep.mubr.bf16.mxu0 %v3138_v3  ;;  %v3697_v41 = vld [vmem:[%s4357_s19 + $0x3c8] sm:$0xff]  }
 0x113   : > { %2723 = vmatmul.mubr.bf16.gmra.mxu1 %v3151_v42  ;;  %3430 = vmatprep.subr.bf16.mxu0 %v3652_v44  ;;  %v3698_v42 = vld [vmem:[%s4357_s19 + $0x308] sm:$0xff]   ;;  %v3700_v44 = vld [vmem:[%s4357_s19 + $0x340] sm:$0xff]  }
 0x114   : > { %3457 = vmatpush3.bf16.msra.mxu1 %v3651_v43  ;;  %2812 = vmatprep.mubr.bf16.mxu1 %v3140_v7  ;;  %v3699_v43 = vld [vmem:[%s4357_s19 + $0x388] sm:$0xff]  }
 0x115   : > { %3458 = vmatprep.subr.bf16.mxu1 %v3653_v45  ;;  %v3701_v45 = vld [vmem:[%s4357_s19 + $0x3c0] sm:$0xff]  }
 0x116   : > { %3431 = vmatpush3.bf16.msra.mxu0 %v3654_v46  ;;  %v3702_v46 = vld [vmem:[%s4357_s19 + $0x300] sm:$0xff]  }
 0x117   : > { %3432 = vmatprep.subr.bf16.mxu0 %v3656_v48  ;;  %v1318_v48 = vld [vmem:[%s4609_s0 + $0x30] sm:$0xff] }
 0x118   : > { %3459 = vmatpush3.bf16.msra.mxu1 %v3655_v47  ;;  %v3703_v47 = vld [vmem:[%s4357_s19 + $0x380] sm:$0xff]  }
 0x119   : > { %3460 = vmatprep.subr.bf16.mxu1 %v3657_v49  ;;  %v1326_v49 = vld [vmem:[%s4609_s0 + $0x70] sm:$0xff] }
 0x11a   : > { %3433 = vmatpush3.bf16.msra.mxu0 %v3658_v50  ;;  %v1319_v50 = vld [vmem:[%s4609_s0 + $0x38] sm:$0xff] }
 0x11b   : > { %3434 = vmatprep.subr.bf16.mxu0 %v3660_v52  ;;  %v3142_v52 = vcombine.high %v1318_v48, %v1326_v49 }
 0x11c   : > { %3461 = vmatpush3.bf16.msra.mxu1 %v3659_v51  ;;  %v3141_v51 = vcombine.low %v1318_v48, %v1326_v49 }
 0x11d   : > { %3462 = vmatprep.subr.bf16.mxu1 %v3661_v53  ;;  %v1327_v53 = vld [vmem:[%s4609_s0 + $0x78] sm:$0xff] }
 0x11e   : > { %3435 = vmatpush3.bf16.msra.mxu0 %v3662_v54  ;;  %v1334_v54 = vld [vmem:[%s4609_s0 + $0xb0] sm:$0xff] }
 0x11f   : > { %3436 = vmatprep.subr.bf16.mxu0 %v3664_v56  ;;  %v3143_v56 = vcombine.low %v1319_v50, %v1327_v53 }
 0x120   : > { %3463 = vmatpush3.bf16.msra.mxu1 %v3663_v55  ;;  %v1342_v55 = vld [vmem:[%s4609_s0 + $0xf0] sm:$0xff] }
 0x121   : > { %3464 = vmatprep.subr.bf16.mxu1 %v3665_v57  ;;  %v3144_v57 = vcombine.high %v1319_v50, %v1327_v53 }
 0x122   : > { %3437 = vmatpush3.bf16.msra.mxu0 %v3666_v58  ;;  %v3158_v58 = vcombine.high %v1334_v54, %v1342_v55 }
 0x123   : > { %3438 = vmatprep.subr.bf16.mxu0 %v3668_v60  ;;  %v1343_v60 = vld [vmem:[%s4609_s0 + $0xf8] sm:$0xff] }
 0x124   : > { %3465 = vmatpush3.bf16.msra.mxu1 %v3667_v59  ;;  %v1335_v59 = vld [vmem:[%s4609_s0 + $0xb8] sm:$0xff] }
 0x125   : > { %3466 = vmatprep.subr.bf16.mxu1 %v3669_v61  ;;  %v3160_v61 = vcombine.high %v1335_v59, %v1343_v60 }
 0x126   : > { %3439 = vmatpush3.bf16.msra.mxu0 %v3670_v62  ;;  %v3157_v62 = vcombine.low %v1334_v54, %v1342_v55 }
 0x127   : > { %3480 = vmatprep.subr.bf16.mxu0 %v3672_v8 }
 0x128   : > { %3467 = vmatpush3.bf16.msra.mxu1 %v3671_v63  ;;  %v3159_v63 = vcombine.low %v1335_v59, %v1343_v60 }
 0x129   : > { %2764 = vmatmul.mubr.bf16.vlgmr.msra.gmra.mxu0 %v3137_v2  ;;  %3508 = vmatprep.subr.bf16.mxu1 %v3673_v9 }
 0x12a   : > { %3481 = vmatpush3.bf16.msra.mxu0 %v3674_v10  ;;  %2771 = vmatprep.mubr.bf16.mxu0 %v3154_v18 }
 0x12b   : > { %2813 = vmatmul.mubr.bf16.vlgmr.msra.gmra.mxu1 %v3139_v6  ;;  %3482 = vmatprep.subr.bf16.mxu0 %v3676_v12 }
 0x12c   : > { %3509 = vmatpush3.bf16.msra.mxu1 %v3675_v11  ;;  %2820 = vmatprep.mubr.bf16.mxu1 %v3156_v24 }
 0x12d   : > { %3510 = vmatprep.subr.bf16.mxu1 %v3677_v13 }
 0x12e   : > { %3483 = vmatpush3.bf16.msra.mxu0 %v3678_v14 }
 0x12f   : > { %3484 = vmatprep.subr.bf16.mxu0 %v3680_v20 }
 0x130   : > { %3511 = vmatpush3.bf16.msra.mxu1 %v3679_v15 }
 0x131   : > { %2772 = vmatmul.mubr.bf16.gmra.mxu0 %v3153_v19  ;;  %3512 = vmatprep.subr.bf16.mxu1 %v3681_v21 }
 0x132   : > { %3485 = vmatpush3.bf16.msra.mxu0 %v3682_v25  ;;  %2861 = vmatprep.mubr.bf16.mxu0 %v3142_v52 }
 0x133   : > { %2821 = vmatmul.mubr.bf16.gmra.mxu1 %v3155_v26  ;;  %3486 = vmatprep.subr.bf16.mxu0 %v3684_v28 }
 0x134   : > { %3513 = vmatpush3.bf16.msra.mxu1 %v3683_v27  ;;  %2910 = vmatprep.mubr.bf16.mxu1 %v3144_v57 }
 0x135   : > { %3514 = vmatprep.subr.bf16.mxu1 %v3685_v29 }
 0x136   : > { %3487 = vmatpush3.bf16.msra.mxu0 %v3686_v30 }
 0x137   : > { %3488 = vmatprep.subr.bf16.mxu0 %v3688_v32 }
 0x138   : > { %3515 = vmatpush3.bf16.msra.mxu1 %v3687_v31 }
 0x139   : > { %3516 = vmatprep.subr.bf16.mxu1 %v3689_v33 }
 0x13a   : > { %3489 = vmatpush3.bf16.msra.mxu0 %v3690_v34 }
 0x13b   : > { %3490 = vmatprep.subr.bf16.mxu0 %v3692_v36 }
 0x13c   : > { %3517 = vmatpush3.bf16.msra.mxu1 %v3691_v35 }
 0x13d   : > { %3518 = vmatprep.subr.bf16.mxu1 %v3693_v37 }
 0x13e   : > { %3491 = vmatpush3.bf16.msra.mxu0 %v3694_v38 }
 0x13f   : > { %3492 = vmatprep.subr.bf16.mxu0 %v3696_v40  ;;  %v3128_v40 = vld [vmem:[%s1309_s29] ss:$0 sm:$0xff] }
 0x140   : > { %3519 = vmatpush3.bf16.msra.mxu1 %v3695_v39 }
 0x141   : > { %3520 = vmatprep.subr.bf16.mxu1 %v3697_v41 }
 0x142   : > { %3493 = vmatpush3.bf16.msra.mxu0 %v3698_v42 }
 0x143   : > { %3494 = vmatprep.subr.bf16.mxu0 %v3700_v44 }
 0x144   : > { %3521 = vmatpush3.bf16.msra.mxu1 %v3699_v43 }
 0x145   : > { %3522 = vmatprep.subr.bf16.mxu1 %v3701_v45 }
 0x146   : > { %3495 = vmatpush3.bf16.msra.mxu0 %v3702_v46 }
 0x148   : > { %3523 = vmatpush3.bf16.msra.mxu1 %v3703_v47 }
 0x149   : > { %2862 = vmatmul.mubr.bf16.vlgmr.msra.gmra.mxu0 %v3141_v51 }
 0x14a   : > { %2869 = vmatprep.mubr.bf16.mxu0 %v3158_v58 }
 0x14b   : > { %2911 = vmatmul.mubr.bf16.vlgmr.msra.gmra.mxu1 %v3143_v56 }
 0x14c   : > { %2918 = vmatprep.mubr.bf16.mxu1 %v3160_v61 }
 0x151   : > { %2870 = vmatmul.mubr.bf16.gmra.mxu0 %v3157_v62 }
 0x153   : > { %2919 = vmatmul.mubr.bf16.gmra.mxu1 %v3159_v63 }
 0x1a9   : > { %v3328_v0 = vpop.f32.mrf.mxu0 }
 0x1ab   : > { %v3329_v1 = vpop.f32.mrf.mxu0  ;;  %v3356_v2 = vpop.f32.mrf.mxu1 }
 0x1ac   : > { %v3330_v39 = vadd.f32 %v3329_v1, %v3328_v0 }
 0x1ad   : > { %v3331_v3 = vpop.f32.mrf.mxu0  ;;  %v3357_v4 = vpop.f32.mrf.mxu1 }
 0x1ae   : > { %v2570_v43 = vadd.f32 %v3330_v39, %v3128_v40  ;;  %v3358_v44 = vadd.f32 %v3357_v4, %v3356_v2 }
 0x1af   : > { %v3332_v5 = vpop.f32.mrf.mxu0  ;;  %v3359_v6 = vpop.f32.mrf.mxu1 }
 0x1b0   : > { %v3333_v45 = vadd.f32 %v3332_v5, %v3331_v3  ;;  %v2619_v50 = vadd.f32 %v3358_v44, %v2570_v43 }
 0x1b1   : > { %v3334_v7 = vpop.f32.mrf.mxu0  ;;  %v3360_v8 = vpop.f32.mrf.mxu1 }
 0x1b2   : > { %v2573_v51 = vadd.f32 %v3333_v45, %v3128_v40  ;;  %v3361_v53 = vadd.f32 %v3360_v8, %v3359_v6 }
 0x1b3   : > { %v3335_v9 = vpop.f32.mrf.mxu0  ;;  %v3362_v10 = vpop.f32.mrf.mxu1 }
 0x1b4   : > { %v3336_v48 = vadd.f32 %v3335_v9, %v3334_v7  ;;  %v2622_v61 = vadd.f32 %v3361_v53, %v2573_v51 }
 0x1b5   : > { %v3337_v11 = vpop.f32.mrf.mxu0  ;;  %v3363_v12 = vpop.f32.mrf.mxu1 }
 0x1b6   : > { %v2578_v57 = vadd.f32 %v3336_v48, %v3128_v40  ;;  %v3364_v58 = vadd.f32 %v3363_v12, %v3362_v10 }
 0x1b7   : > { %v3338_v13 = vpop.f32.mrf.mxu0  ;;  %v3365_v14 = vpop.f32.mrf.mxu1 }
 0x1b8   : > { %v3339_v59 = vadd.f32 %v3338_v13, %v3337_v11  ;;  %v2627_v3 = vadd.f32 %v3364_v58, %v2578_v57 }
 0x1b9   : > { %v3366_v16 = vpop.f32.mrf.mxu1 }
 0x1ba   : > { %v2581_v4 = vadd.f32 %v3339_v59, %v3128_v40  ;;  %v3367_v5 = vadd.f32 %v3366_v16, %v3365_v14 }
 0x1c9   : > { %v3384_v15 = vpop.f32.mrf.mxu0 }
 0x1cb   : > { %v3385_v17 = vpop.f32.mrf.mxu0  ;;  %v3412_v18 = vpop.f32.mrf.mxu1 }
 0x1cc   : > { %v3386_v47 = vadd.f32 %v3385_v17, %v3384_v15 }
 0x1cd   : > { %v3387_v19 = vpop.f32.mrf.mxu0  ;;  %v3413_v20 = vpop.f32.mrf.mxu1 }
 0x1ce   : > { %v2668_v54 = vadd.f32 %v3386_v47, %v2619_v50  ;;  %v3414_v55 = vadd.f32 %v3413_v20, %v3412_v18 }
 0x1cf   : > { %v3388_v21 = vpop.f32.mrf.mxu0  ;;  %v3415_v22 = vpop.f32.mrf.mxu1 }
 0x1d0   : > { %v3389_v56 = vadd.f32 %v3388_v21, %v3387_v19  ;;  %v2717_v1 = vadd.f32 %v3414_v55, %v2668_v54 }
 0x1d1   : > { %v3390_v23 = vpop.f32.mrf.mxu0  ;;  %v3416_v24 = vpop.f32.mrf.mxu1 }
 0x1d2   : > { %v2671_v2 = vadd.f32 %v3389_v56, %v2622_v61  ;;  %v3417_v9 = vadd.f32 %v3416_v24, %v3415_v22 }
 0x1d3   : > { %v3418_v25 = vpop.f32.mrf.mxu1  ;;  %v3391_v26 = vpop.f32.mrf.mxu0 }
 0x1d4   : > { %v3392_v0 = vadd.f32 %v3391_v26, %v3390_v23  ;;  %v2720_v11 = vadd.f32 %v3417_v9, %v2671_v2  ;;  %v2630_v23 = vadd.f32 %v3367_v5, %v2581_v4 }
 0x1d5   : > { %v3419_v27 = vpop.f32.mrf.mxu1  ;;  %v3393_v28 = vpop.f32.mrf.mxu0 }
 0x1d6   : > { %v2676_v18 = vadd.f32 %v3392_v0, %v2627_v3  ;;  %v3420_v19 = vadd.f32 %v3419_v27, %v3418_v25 }
 0x1d7   : > { %v4575_v29 = vpop.f32.mrf.mxu1  ;;  %v3394_v30 = vpop.f32.mrf.mxu0 }
 0x1d8   : > { %v3395_v12 = vadd.f32 %v3394_v30, %v3393_v28  ;;  %v2725_v14 = vadd.f32 %v3420_v19, %v2676_v18 }
 0x1d9   : > { %v4577_v32 = vpop.f32.mrf.mxu1 }
 0x1da   : > { %v2679_v22 = vadd.f32 %v3395_v12, %v2630_v23  ;;  %v3423_v24 = vadd.f32 %v4577_v32, %v4575_v29 }
 0x1dc   : > { %v2728_v45 = vadd.f32 %v3423_v24, %v2679_v22 }
 0x1e9   : > { %v3440_v31 = vpop.f32.mrf.mxu0 }
 0x1eb   : > { %v3468_v33 = vpop.f32.mrf.mxu1  ;;  %v3441_v34 = vpop.f32.mrf.mxu0 }
 0x1ec   : > { %v3442_v62 = vadd.f32 %v3441_v34, %v3440_v31 }
 0x1ed   : > { %v3469_v35 = vpop.f32.mrf.mxu1  ;;  %v3443_v36 = vpop.f32.mrf.mxu0 }
 0x1ee   : > { %v2766_v15 = vadd.f32 %v3442_v62, %v2717_v1  ;;  %v3470_v6 = vadd.f32 %v3469_v35, %v3468_v33 }
 0x1ef   : > { %v3471_v37 = vpop.f32.mrf.mxu1  ;;  %v3444_v38 = vpop.f32.mrf.mxu0 }
 0x1f0   : > { %v3445_v8 = vadd.f32 %v3444_v38, %v3443_v36  ;;  %v2815_v26 = vadd.f32 %v3470_v6, %v2766_v15 }
 0x1f1   : > { %v3472_v41 = vpop.f32.mrf.mxu1  ;;  %v3446_v42 = vpop.f32.mrf.mxu0 }
 0x1f2   : > { %v2769_v31 = vadd.f32 %v3445_v8, %v2720_v11  ;;  %v3473_v33 = vadd.f32 %v3472_v41, %v3471_v37 }
 0x1f3   : > { %v3474_v46 = vpop.f32.mrf.mxu1  ;;  %v3447_v49 = vpop.f32.mrf.mxu0 }
 0x1f4   : > { %v3448_v20 = vadd.f32 %v3447_v49, %v3446_v42  ;;  %v2818_v30 = vadd.f32 %v3473_v33, %v2769_v31 }
 0x1f5   : > { %v3475_v52 = vpop.f32.mrf.mxu1  ;;  %v3449_v60 = vpop.f32.mrf.mxu0 }
 0x1f6   : > { %v2774_v27 = vadd.f32 %v3448_v20, %v2725_v14  ;;  %v3476_v36 = vadd.f32 %v3475_v52, %v3474_v46 }
 0x1f7   : > { %v3477_v63 = vpop.f32.mrf.mxu1  ;;  %v3450_v7 = vpop.f32.mrf.mxu0 }
 0x1f8   : > { %v3451_v38 = vadd.f32 %v3450_v7, %v3449_v60  ;;  %v2823_v51 = vadd.f32 %v3476_v36, %v2774_v27 }
 0x1f9   : > { %v3478_v17 = vpop.f32.mrf.mxu1 }
 0x1fa   : > { %v2777_v32 = vadd.f32 %v3451_v38, %v2728_v45  ;;  %v3479_v37 = vadd.f32 %v3478_v17, %v3477_v63 }
 0x1fc   : > { %v2826_v59 = vadd.f32 %v3479_v37, %v2777_v32 }
 0x209   : > { %v3496_v10 = vpop.f32.mrf.mxu0 }
 0x20b   : > { %v3524_v13 = vpop.f32.mrf.mxu1  ;;  %v3497_v21 = vpop.f32.mrf.mxu0 }
 0x20c   : > { %v3498_v34 = vadd.f32 %v3497_v21, %v3496_v10 }
 0x20d   : > { %v3525_v39 = vpop.f32.mrf.mxu1  ;;  %v3499_v16 = vpop.f32.mrf.mxu0 }
 0x20e   : > { %v2864_v35 = vadd.f32 %v3498_v34, %v2815_v26  ;;  %v3526_v40 = vadd.f32 %v3525_v39, %v3524_v13 }
 0x20f   : > { %v3527_v25 = vpop.f32.mrf.mxu1  ;;  %v3500_v28 = vpop.f32.mrf.mxu0 }
 0x210   : > { %v3501_v42 = vadd.f32 %v3500_v28, %v3499_v16  ;;  %v2913_v47 = vadd.f32 %v3526_v40, %v2864_v35 }
 0x211   : > { %v3528_v43 = vpop.f32.mrf.mxu1  ;;  %v3502_v44 = vpop.f32.mrf.mxu0 }
 0x212   : > { %v2867_v48 = vadd.f32 %v3501_v42, %v2818_v30  ;;  %v3529_v49 = vadd.f32 %v3528_v43, %v3527_v25  ;;  %v2927_v54 = vmax.f32 %v2913_v47, 0.0 }
 0x213   : > { %v3530_v50 = vpop.f32.mrf.mxu1  ;;  %v3503_v29 = vpop.f32.mrf.mxu0 }
 0x214   : > { %v2916_v41 = vadd.f32 %v3529_v49, %v2867_v48  ;;  %v3504_v46 = vadd.f32 %v3503_v29, %v3502_v44 }
 0x215   : > { %v3531_v52 = vpop.f32.mrf.mxu1  ;;  %v3505_v53 = vpop.f32.mrf.mxu0 }
 0x216   : > { %v2928_v55 = vmax.f32 %v2916_v41, 0.0  ;;  %v2872_v56 = vadd.f32 %v3504_v46, %v2823_v51  ;;  %v3532_v61 = vadd.f32 %v3531_v52, %v3530_v50 }
 0x217   : > { %v3533_v57 = vpop.f32.mrf.mxu1  ;;  %v3506_v58 = vpop.f32.mrf.mxu0 }
 0x218   : > { %v3304_v60 = vpack.c.bf16 %v2928_v55, %v2927_v54  ;;  %v3507_v62 = vadd.f32 %v3506_v58, %v3505_v53  ;;  %v2921_v1 = vadd.f32 %v3532_v61, %v2872_v56 }
 0x219   : > { %v3534_v0 = vpop.f32.mrf.mxu1 }
 0x21a   : > { %3305 = vst [vmem:[%s1293_s5] sm:$0xff] %v3304_v60   ;;  %v2875_v63 = vadd.f32 %v3507_v62, %v2826_v59  ;;  %v3535_v2 = vadd.f32 %v3534_v0, %v3533_v57  ;;  %v2929_v4 = vmax.f32 %v2921_v1, 0.0 }
 0x21c   : > { %v2924_v3 = vadd.f32 %v3535_v2, %v2875_v63 }
 0x21e   : > { %v2930_v5 = vmax.f32 %v2924_v3, 0.0  ;;  %2957 = sbr.rel (!%p3799_p6) target bundleno = 555 (0x22b), region = 77 }
 0x220   : > { %v3309_v7 = vpack.c.bf16 %v2930_v5, %v2929_v4 }
 0x221   : > { %v2979_v9 = vld [vmem:[%s1293_s5] sm:$0xf] (%p3799_p6)  ;;  %v2981_v15 = vld [vmem:[%s1293_s5 + $0x4] sm:$0xf] (%p3799_p6) }
 0x222   : > { %3311 = vst [vmem:[%s1293_s5 + $0x8] sm:$0xff] %v3309_v7   ;;  %2980 = vst [vmem:[%s2962_s7] sm:$0xf] (%p3799_p6), %v2979_v9 }
 0x223   : > { %2982 = vst [vmem:[%s2962_s7 + $0x8] sm:$0xf] %v2981_v15 }
 0x229   : > { %v2983_v6 = vld [vmem:[%s1293_s5 + $0x8] sm:$0xf]  ;;  %v2985_v8 = vld [vmem:[%s1293_s5 + $0xc] sm:$0xf] }
 0x22a   : > { %2984 = vst [vmem:[%s2962_s7 + $0x10] sm:$0xf] %v2983_v6  ;;  %2986 = vst [vmem:[%s2962_s7 + $0x18] sm:$0xf] %v2985_v8 }
 0x22b PF: > { %s13_s16 = sadd.s32 1, %s3742_s16   ;;  %s4614_s12 = smov %s3730_s13 }
 0x22c   : > { %p10_p12 = scmp.ge.s32.totalorder %s13_s16, 4   ;;  %s4615_s13 = smov %s3804_s22 }
 0x22d   : > { %s4616_s14 = smov %s3738_s15  ;;  %s4617_s15 = smov %s4619_s17 }
 0x22e   :  { %12 = sbr.rel (!%p10_p12) target bundleno = 3 (0x3), region = 155 }

// kernel: encoder_forward.9
= control target key start
LH: loop header
LB: loop body
LE: loop exit
PB: predicated region body
PF: predicated region fallthrough
CT: control target
= control target key end

     0   :  { %v3821_v22 = vmov 1966171168   ;;  %v546_v24 = vlaneseq  ;;  %s4674_s1 = inlined_call_operand.vmem [shape: bf16[4096,128], index: 1, kind: input, shape index: {}]   ;;  %s4675_s0 = inlined_call_operand.vmem [shape: bf16[2,4096], index: 0, kind: input, shape index: {}]   ;;  %s4676_s2 = inlined_call_operand.vmem [shape: f32[1,128], index: 2, kind: input, shape index: {}]   ;;  %s4677_s3 = inlined_call_operand.vmem [shape: f32[2,128], index: 3, kind: output, shape index: {}]  }
   0x1   :  { %v3561_v0 = vld [vmem:[%s4674_s1 + $0x78] sm:$0xff]   ;;  %v3565_v4 = vld [vmem:[%s4674_s1 + $0x70] sm:$0xff]   ;;  %v3569_v8 = vld [vmem:[%s4674_s1 + $0x68] sm:$0xff]   ;;  %v544_v23 = vunpack.c.l.s4 %v3821_v22 }
   0x2   :  { %v3562_v1 = vld [vmem:[%s4674_s1 + $0xf8] sm:$0xff]   ;;  %3208 = vmatprep.subr.bf16.mxu0 %v3561_v0  ;;  %v3566_v5 = vld [vmem:[%s4674_s1 + $0xf0] sm:$0xff]   ;;  %v3570_v9 = vld [vmem:[%s4674_s1 + $0xe8] sm:$0xff]   ;;  %v547_v30 = vshrl.u32 %v546_v24, 7 }
   0x3   :  { %v3563_v2 = vld [vmem:[%s4674_s1 + $0x38] sm:$0xff]   ;;  %3230 = vmatprep.subr.bf16.mxu1 %v3562_v1  ;;  %v3567_v6 = vld [vmem:[%s4674_s1 + $0x30] sm:$0xff]   ;;  %v3571_v10 = vld [vmem:[%s4674_s1 + $0x28] sm:$0xff]   ;;  %v545_v29 = vunpack.c.0.s8 %v544_v23 }
   0x4   :  { %v3564_v3 = vld [vmem:[%s4674_s1 + $0xb8] sm:$0xff]   ;;  %3209 = vmatpush3.bf16.msra.mxu0 %v3563_v2  ;;  %v3568_v7 = vld [vmem:[%s4674_s1 + $0xb0] sm:$0xff]   ;;  %v3572_v11 = vld [vmem:[%s4674_s1 + $0xa8] sm:$0xff]  }
   0x5   :  { %3231 = vmatpush3.bf16.msra.mxu1 %v3564_v3  ;;  %3210 = vmatprep.subr.bf16.mxu0 %v3565_v4  ;;  %v3573_v12 = vld [vmem:[%s4674_s1 + $0x60] sm:$0xff]   ;;  %v3577_v16 = vld [vmem:[%s4674_s1 + $0x58] sm:$0xff]   ;;  %v3581_v20 = vld [vmem:[%s4674_s1 + $0x50] sm:$0xff]   ;;  %v3932_v35 = vsub.s32 %v545_v29, %v547_v30 }
   0x6   :  { %3232 = vmatprep.subr.bf16.mxu1 %v3566_v5  ;;  %v3574_v13 = vld [vmem:[%s4674_s1 + $0xe0] sm:$0xff]   ;;  %v3578_v17 = vld [vmem:[%s4674_s1 + $0xd8] sm:$0xff]   ;;  %v3582_v21 = vld [vmem:[%s4674_s1 + $0xd0] sm:$0xff]  }
   0x7   :  { %v3575_v14 = vld [vmem:[%s4674_s1 + $0x20] sm:$0xff]   ;;  %v3579_v18 = vld [vmem:[%s4674_s1 + $0x18] sm:$0xff]   ;;  %v3583_v25 = vld [vmem:[%s4674_s1 + $0x10] sm:$0xff]  }
   0x8   :  { %3211 = vmatpush3.bf16.msra.mxu0 %v3567_v6  ;;  %v3576_v15 = vld [vmem:[%s4674_s1 + $0xa0] sm:$0xff]   ;;  %v3580_v19 = vld [vmem:[%s4674_s1 + $0x98] sm:$0xff]   ;;  %v3584_v26 = vld [vmem:[%s4674_s1 + $0x90] sm:$0xff]  }
   0x9   :  { %3233 = vmatpush3.bf16.msra.mxu1 %v3568_v7  ;;  %3212 = vmatprep.subr.bf16.mxu0 %v3569_v8  ;;  %v3585_v27 = vld [vmem:[%s4674_s1 + $0x48] sm:$0xff]   ;;  %v3589_v33 = vld [vmem:[%s4674_s1 + $0x40] sm:$0xff]   ;;  %v3594_v41 = vld [vmem:[%s4674_s1 + $0x178] sm:$0xff]  }
   0xa   :  { %3234 = vmatprep.subr.bf16.mxu1 %v3570_v9  ;;  %v3586_v28 = vld [vmem:[%s4674_s1 + $0xc8] sm:$0xff]   ;;  %v3590_v34 = vld [vmem:[%s4674_s1 + $0xc0] sm:$0xff]   ;;  %v3595_v42 = vld [vmem:[%s4674_s1 + $0x1f8] sm:$0xff]  }
   0xb   :  { %v3587_v31 = vld [vmem:[%s4674_s1 + $0x8] sm:$0xff]   ;;  %v3591_v36 = vld [vmem:[%s4674_s1] sm:$0xff]   ;;  %v3596_v46 = vld [vmem:[%s4674_s1 + $0x138] sm:$0xff]  }
   0xc   :  { %3213 = vmatpush3.bf16.msra.mxu0 %v3571_v10  ;;  %v3588_v32 = vld [vmem:[%s4674_s1 + $0x88] sm:$0xff]   ;;  %v3592_v37 = vld [vmem:[%s4674_s1 + $0x80] sm:$0xff]   ;;  %v3597_v48 = vld [vmem:[%s4674_s1 + $0x1b8] sm:$0xff]  }
   0xd   :  { %3235 = vmatpush3.bf16.msra.mxu1 %v3572_v11  ;;  %3214 = vmatprep.subr.bf16.mxu0 %v3573_v12  ;;  %v15_v38 = vld [vmem:[%s4675_s0] sm:$0xff]  ;;  %v3598_v51 = vld [vmem:[%s4674_s1 + $0x170] sm:$0xff]   ;;  %v3602_v58 = vld [vmem:[%s4674_s1 + $0x168] sm:$0xff]  }
   0xe   :  { %3236 = vmatprep.subr.bf16.mxu1 %v3574_v13  ;;  %v542_v39 = vcombine.high %v15_v38, %v15_v38  ;;  %v549_v40 = vrot.slane %v15_v38, %v3932_v35  ;;  %v3599_v53 = vld [vmem:[%s4674_s1 + $0x1f0] sm:$0xff]   ;;  %v3603_v59 = vld [vmem:[%s4674_s1 + $0x1e8] sm:$0xff]   ;;  %v3606_v62 = vld [vmem:[%s4674_s1 + $0x160] sm:$0xff]  }
   0xf   :  { %v3600_v55 = vld [vmem:[%s4674_s1 + $0x130] sm:$0xff]   ;;  %v3604_v60 = vld [vmem:[%s4674_s1 + $0x128] sm:$0xff]   ;;  %v3607_v63 = vld [vmem:[%s4674_s1 + $0x1e0] sm:$0xff]  }
  0x10   :  { %3215 = vmatpush3.bf16.msra.mxu0 %v3575_v14  ;;  %v557_v43 = vcombine.high %v549_v40, %v549_v40  ;;  %v565_v44 = vrot.slane %v549_v40, %v3932_v35  ;;  %v3952_v45 = vrot.slane %v542_v39, %v3932_v35  ;;  %v3601_v56 = vld [vmem:[%s4674_s1 + $0x1b0] sm:$0xff]   ;;  %v3605_v61 = vld [vmem:[%s4674_s1 + $0x1a8] sm:$0xff]   ;;  %v3608_v0 = vld [vmem:[%s4674_s1 + $0x120] sm:$0xff]  }
  0x11   :  { %3237 = vmatpush3.bf16.msra.mxu1 %v3576_v15  ;;  %3216 = vmatprep.subr.bf16.mxu0 %v3577_v16  ;;  %v3609_v1 = vld [vmem:[%s4674_s1 + $0x1a0] sm:$0xff]   ;;  %v3610_v2 = vld [vmem:[%s4674_s1 + $0x158] sm:$0xff]   ;;  %v3614_v6 = vld [vmem:[%s4674_s1 + $0x150] sm:$0xff]  }
  0x12   :  { %3238 = vmatprep.subr.bf16.mxu1 %v3578_v17  ;;  %v579_v47 = vrot.slane %v557_v43, %v3932_v35  ;;  %v558_v49 = vcombine.high %v3952_v45, %v3952_v45  ;;  %v587_v50 = vcombine.high %v565_v44, %v565_v44  ;;  %v3611_v3 = vld [vmem:[%s4674_s1 + $0x1d8] sm:$0xff]   ;;  %v3615_v7 = vld [vmem:[%s4674_s1 + $0x1d0] sm:$0xff]   ;;  %v3618_v10 = vld [vmem:[%s4674_s1 + $0x148] sm:$0xff]  }
  0x13   :  { %v3612_v4 = vld [vmem:[%s4674_s1 + $0x118] sm:$0xff]   ;;  %v3616_v8 = vld [vmem:[%s4674_s1 + $0x110] sm:$0xff]   ;;  %v3619_v11 = vld [vmem:[%s4674_s1 + $0x1c8] sm:$0xff]  }
  0x14   :  { %3217 = vmatpush3.bf16.msra.mxu0 %v3579_v18  ;;  %2338 = vmatprep.mubr.bf16.mxu0 %v579_v47  ;;  %v589_v52 = vcombine.high %v579_v47, %v579_v47  ;;  %v586_v54 = vrot.slane %v558_v49, %v3932_v35  ;;  %v3613_v5 = vld [vmem:[%s4674_s1 + $0x198] sm:$0xff]   ;;  %v3617_v9 = vld [vmem:[%s4674_s1 + $0x190] sm:$0xff]   ;;  %v3620_v12 = vld [vmem:[%s4674_s1 + $0x108] sm:$0xff]   ;;  %v572_v18 = vrot.slane %v3952_v45, %v3932_v35 }
  0x15   :  { %3239 = vmatpush3.bf16.msra.mxu1 %v3580_v19  ;;  %3218 = vmatprep.subr.bf16.mxu0 %v3581_v20  ;;  %v3621_v13 = vld [vmem:[%s4674_s1 + $0x188] sm:$0xff]   ;;  %v3622_v14 = vld [vmem:[%s4674_s1 + $0x140] sm:$0xff]   ;;  %v3626_v19 = vld [vmem:[%s4674_s1 + $0x278] sm:$0xff]  }
  0x16   :  { %3240 = vmatprep.subr.bf16.mxu1 %v3582_v21  ;;  %2378 = vmatprep.mubr.bf16.mxu1 %v589_v52  ;;  %v590_v57 = vcombine.high %v586_v54, %v586_v54  ;;  %v3623_v15 = vld [vmem:[%s4674_s1 + $0x1c0] sm:$0xff]   ;;  %v3627_v20 = vld [vmem:[%s4674_s1 + $0x2f8] sm:$0xff]   ;;  %v588_v23 = vcombine.high %v572_v18, %v572_v18  ;;  %v3630_v24 = vld [vmem:[%s4674_s1 + $0x270] sm:$0xff]  }
  0x17   :  { %v3624_v16 = vld [vmem:[%s4674_s1 + $0x100] sm:$0xff]   ;;  %v3628_v21 = vld [vmem:[%s4674_s1 + $0x238] sm:$0xff]   ;;  %v3635_v29 = vld [vmem:[%s4674_s1 + $0x2e8] sm:$0xff]  }
  0x18   :  { %3219 = vmatpush3.bf16.msra.mxu0 %v3583_v25  ;;  %v3625_v17 = vld [vmem:[%s4674_s1 + $0x180] sm:$0xff]   ;;  %v3629_v22 = vld [vmem:[%s4674_s1 + $0x2b8] sm:$0xff]   ;;  %v3631_v25 = vld [vmem:[%s4674_s1 + $0x2f0] sm:$0xff]  }
  0x19   :  { %3241 = vmatpush3.bf16.msra.mxu1 %v3584_v26  ;;  %3220 = vmatprep.subr.bf16.mxu0 %v3585_v27  ;;  %v3632_v26 = vld [vmem:[%s4674_s1 + $0x230] sm:$0xff]   ;;  %v3636_v30 = vld [vmem:[%s4674_s1 + $0x228] sm:$0xff]   ;;  %v3643_v38 = vld [vmem:[%s4674_s1 + $0x2d8] sm:$0xff]  }
  0x1a   :  { %3242 = vmatprep.subr.bf16.mxu1 %v3586_v28  ;;  %v3633_v27 = vld [vmem:[%s4674_s1 + $0x2b0] sm:$0xff]   ;;  %v3634_v28 = vld [vmem:[%s4674_s1 + $0x268] sm:$0xff]   ;;  %v3644_v39 = vld [vmem:[%s4674_s1 + $0x218] sm:$0xff]  }
  0x1b   :  { %v3645_v40 = vld [vmem:[%s4674_s1 + $0x298] sm:$0xff]   ;;  %v3648_v43 = vld [vmem:[%s4674_s1 + $0x210] sm:$0xff]   ;;  %v3650_v45 = vld [vmem:[%s4674_s1 + $0x248] sm:$0xff]  }
  0x1c   :  { %3221 = vmatpush3.bf16.msra.mxu0 %v3587_v31  ;;  %v3637_v31 = vld [vmem:[%s4674_s1 + $0x2a8] sm:$0xff]   ;;  %v3654_v49 = vld [vmem:[%s4674_s1 + $0x240] sm:$0xff]  }
  0x1d   :  { %3243 = vmatpush3.bf16.msra.mxu1 %v3588_v32  ;;  %3222 = vmatprep.subr.bf16.mxu0 %v3589_v33  ;;  %v3638_v32 = vld [vmem:[%s4674_s1 + $0x260] sm:$0xff]   ;;  %v3652_v47 = vld [vmem:[%s4674_s1 + $0x208] sm:$0xff]  }
  0x1e   :  { %3244 = vmatprep.subr.bf16.mxu1 %v3590_v34  ;;  %v3639_v33 = vld [vmem:[%s4674_s1 + $0x2e0] sm:$0xff]   ;;  %v16_v52 = vld [vmem:[%s4675_s0 + $0x8] sm:$0xff] }
  0x1f   :  { %v3640_v34 = vld [vmem:[%s4674_s1 + $0x220] sm:$0xff]  }
  0x20   :  { %3223 = vmatpush3.bf16.msra.mxu0 %v3591_v36  ;;  %v3641_v36 = vld [vmem:[%s4674_s1 + $0x2a0] sm:$0xff]  }
  0x21   :  { %3245 = vmatpush3.bf16.msra.mxu1 %v3592_v37  ;;  %3252 = vmatprep.subr.bf16.mxu0 %v3594_v41  ;;  %v3642_v37 = vld [vmem:[%s4674_s1 + $0x258] sm:$0xff]   ;;  %v3646_v41 = vld [vmem:[%s4674_s1 + $0x250] sm:$0xff]  }
  0x22   :  { %3274 = vmatprep.subr.bf16.mxu1 %v3595_v42  ;;  %v3647_v42 = vld [vmem:[%s4674_s1 + $0x2d0] sm:$0xff]  }
  0x23   :  { %2339 = vmatmul.mubr.bf16.vlgmr.msra.gmra.mxu0 %v565_v44  ;;  %v3649_v44 = vld [vmem:[%s4674_s1 + $0x290] sm:$0xff]  }
  0x24   :  { %3253 = vmatpush3.bf16.msra.mxu0 %v3596_v46  ;;  %2379 = vmatmul.mubr.bf16.vlgmr.msra.gmra.mxu1 %v587_v50  ;;  %v3651_v46 = vld [vmem:[%s4674_s1 + $0x2c8] sm:$0xff]   ;;  %v3655_v50 = vld [vmem:[%s4674_s1 + $0x2c0] sm:$0xff]  }
  0x25   :  { %3254 = vmatprep.subr.bf16.mxu0 %v3598_v51  ;;  %3275 = vmatpush3.bf16.msra.mxu1 %v3597_v48  ;;  %v3653_v48 = vld [vmem:[%s4674_s1 + $0x288] sm:$0xff]   ;;  %v3656_v51 = vld [vmem:[%s4674_s1 + $0x200] sm:$0xff]  }
  0x26   :  { %2418 = vmatprep.mubr.bf16.mxu0 %v586_v54  ;;  %3276 = vmatprep.subr.bf16.mxu1 %v3599_v53  ;;  %v3657_v53 = vld [vmem:[%s4674_s1 + $0x280] sm:$0xff]   ;;  %v598_v54 = vrot.slane %v16_v52, %v3932_v35 }
  0x27   :  { %2458 = vmatprep.mubr.bf16.mxu1 %v590_v57 }
  0x28   :  { %3255 = vmatpush3.bf16.msra.mxu0 %v3600_v55  ;;  %v591_v55 = vcombine.high %v16_v52, %v16_v52  ;;  %v606_v57 = vcombine.high %v598_v54, %v598_v54  ;;  %v3707_v52 = vld [vmem:[%s4674_s1 + $0x458] sm:$0xff]  }
  0x29   :  { %3256 = vmatprep.subr.bf16.mxu0 %v3602_v58  ;;  %3277 = vmatpush3.bf16.msra.mxu1 %v3601_v56  ;;  %v3658_v56 = vld [vmem:[%s4674_s1 + $0x378] sm:$0xff]   ;;  %v614_v58 = vrot.slane %v598_v54, %v3932_v35 }
  0x2a   :  { %3278 = vmatprep.subr.bf16.mxu1 %v3603_v59  ;;  %v3659_v59 = vld [vmem:[%s4674_s1 + $0x3f8] sm:$0xff]  }
  0x2b   :  { %v3709_v54 = vld [vmem:[%s4674_s1 + $0x418] sm:$0xff]  }
  0x2c   :  { %3257 = vmatpush3.bf16.msra.mxu0 %v3604_v60  ;;  %v4158_v60 = vrot.slane %v591_v55, %v3932_v35  ;;  %v3710_v55 = vld [vmem:[%s4674_s1 + $0x498] sm:$0xff]  }
  0x2d   :  { %3258 = vmatprep.subr.bf16.mxu0 %v3606_v62  ;;  %3279 = vmatpush3.bf16.msra.mxu1 %v3605_v61  ;;  %v3660_v61 = vld [vmem:[%s4674_s1 + $0x338] sm:$0xff]   ;;  %v628_v62 = vrot.slane %v606_v57, %v3932_v35  ;;  %v3712_v57 = vld [vmem:[%s4674_s1 + $0x4d0] sm:$0xff]  }
  0x2e   :  { %3280 = vmatprep.subr.bf16.mxu1 %v3607_v63  ;;  %v3661_v63 = vld [vmem:[%s4674_s1 + $0x3b8] sm:$0xff]  }
  0x30   :  { %3259 = vmatpush3.bf16.msra.mxu0 %v3608_v0  ;;  %v607_v0 = vcombine.high %v4158_v60, %v4158_v60 }
  0x31   :  { %3260 = vmatprep.subr.bf16.mxu0 %v3610_v2  ;;  %3281 = vmatpush3.bf16.msra.mxu1 %v3609_v1  ;;  %v636_v1 = vcombine.high %v614_v58, %v614_v58  ;;  %v3662_v2 = vld [vmem:[%s4674_s1 + $0x370] sm:$0xff]  }
  0x32   :  { %3282 = vmatprep.subr.bf16.mxu1 %v3611_v3  ;;  %v638_v3 = vcombine.high %v628_v62, %v628_v62 }
  0x34   :  { %3261 = vmatpush3.bf16.msra.mxu0 %v3612_v4  ;;  %v3663_v4 = vld [vmem:[%s4674_s1 + $0x3f0] sm:$0xff]  }
  0x35   :  { %3262 = vmatprep.subr.bf16.mxu0 %v3614_v6  ;;  %3283 = vmatpush3.bf16.msra.mxu1 %v3613_v5  ;;  %v635_v5 = vrot.slane %v607_v0, %v3932_v35  ;;  %v3664_v6 = vld [vmem:[%s4674_s1 + $0x330] sm:$0xff]   ;;  %v3719_v0 = vld [vmem:[%s4674_s1 + $0x440] sm:$0xff]  }
  0x36   :  { %3284 = vmatprep.subr.bf16.mxu1 %v3615_v7  ;;  %v3665_v7 = vld [vmem:[%s4674_s1 + $0x3b0] sm:$0xff]  }
  0x38   :  { %3263 = vmatpush3.bf16.msra.mxu0 %v3616_v8  ;;  %v639_v8 = vcombine.high %v635_v5, %v635_v5 }
  0x39   :  { %3264 = vmatprep.subr.bf16.mxu0 %v3618_v10  ;;  %3285 = vmatpush3.bf16.msra.mxu1 %v3617_v9  ;;  %v3666_v9 = vld [vmem:[%s4674_s1 + $0x368] sm:$0xff]  }
  0x3a   :  { %3286 = vmatprep.subr.bf16.mxu1 %v3619_v11  ;;  %v3667_v10 = vld [vmem:[%s4674_s1 + $0x3e8] sm:$0xff]  }
  0x3b   :  { %v3668_v11 = vld [vmem:[%s4674_s1 + $0x328] sm:$0xff]  }
  0x3c   :  { %3265 = vmatpush3.bf16.msra.mxu0 %v3620_v12  ;;  %v3669_v12 = vld [vmem:[%s4674_s1 + $0x3a8] sm:$0xff]  }
  0x3d   :  { %3266 = vmatprep.subr.bf16.mxu0 %v3622_v14  ;;  %3287 = vmatpush3.bf16.msra.mxu1 %v3621_v13  ;;  %v3670_v13 = vld [vmem:[%s4674_s1 + $0x360] sm:$0xff]  }
  0x3e   :  { %3288 = vmatprep.subr.bf16.mxu1 %v3623_v15  ;;  %v3671_v14 = vld [vmem:[%s4674_s1 + $0x3e0] sm:$0xff]  }
  0x3f   :  { %v3672_v15 = vld [vmem:[%s4674_s1 + $0x320] sm:$0xff]  }
  0x40   :  { %3267 = vmatpush3.bf16.msra.mxu0 %v3624_v16  ;;  %v3673_v16 = vld [vmem:[%s4674_s1 + $0x3a0] sm:$0xff]  }
  0x41   :  { %3296 = vmatprep.subr.bf16.mxu0 %v3626_v19  ;;  %3289 = vmatpush3.bf16.msra.mxu1 %v3625_v17  ;;  %v3674_v17 = vld [vmem:[%s4674_s1 + $0x358] sm:$0xff]  }
  0x42   :  { %3318 = vmatprep.subr.bf16.mxu1 %v3627_v20  ;;  %v3676_v19 = vld [vmem:[%s4674_s1 + $0x318] sm:$0xff]  }
  0x43   :  { %2419 = vmatmul.mubr.bf16.vlgmr.msra.gmra.mxu0 %v572_v18  ;;  %v3675_v18 = vld [vmem:[%s4674_s1 + $0x3d8] sm:$0xff]  }
  0x44   :  { %3297 = vmatpush3.bf16.msra.mxu0 %v3628_v21  ;;  %2459 = vmatmul.mubr.bf16.vlgmr.msra.gmra.mxu1 %v588_v23  ;;  %v3677_v20 = vld [vmem:[%s4674_s1 + $0x398] sm:$0xff]   ;;  %v3678_v21 = vld [vmem:[%s4674_s1 + $0x350] sm:$0xff]  }
  0x45   :  { %3298 = vmatprep.subr.bf16.mxu0 %v3630_v24  ;;  %3319 = vmatpush3.bf16.msra.mxu1 %v3629_v22  ;;  %v3679_v22 = vld [vmem:[%s4674_s1 + $0x3d0] sm:$0xff]  }
  0x46   :  { %3320 = vmatprep.subr.bf16.mxu1 %v3631_v25  ;;  %2498 = vmatprep.mubr.bf16.mxu0 %v628_v62  ;;  %v3680_v23 = vld [vmem:[%s4674_s1 + $0x310] sm:$0xff]   ;;  %v3682_v25 = vld [vmem:[%s4674_s1 + $0x348] sm:$0xff]  }
  0x47   :  { %2538 = vmatprep.mubr.bf16.mxu1 %v638_v3  ;;  %v3681_v24 = vld [vmem:[%s4674_s1 + $0x390] sm:$0xff]   ;;  %v3717_v62 = vld [vmem:[%s4674_s1 + $0x408] sm:$0xff]  }
  0x48   :  { %3299 = vmatpush3.bf16.msra.mxu0 %v3632_v26  ;;  %v3683_v26 = vld [vmem:[%s4674_s1 + $0x3c8] sm:$0xff]   ;;  %v17_v3 = vld [vmem:[%s4675_s0 + $0x10] sm:$0xff] }
  0x49   :  { %3300 = vmatprep.subr.bf16.mxu0 %v3634_v28  ;;  %3321 = vmatpush3.bf16.msra.mxu1 %v3633_v27  ;;  %v3684_v27 = vld [vmem:[%s4674_s1 + $0x308] sm:$0xff]  }
  0x4a   :  { %3322 = vmatprep.subr.bf16.mxu1 %v3635_v29  ;;  %v3685_v28 = vld [vmem:[%s4674_s1 + $0x388] sm:$0xff]   ;;  %v3686_v29 = vld [vmem:[%s4674_s1 + $0x340] sm:$0xff]  }
  0x4c   :  { %3301 = vmatpush3.bf16.msra.mxu0 %v3636_v30  ;;  %v3687_v30 = vld [vmem:[%s4674_s1 + $0x3c0] sm:$0xff]  }
  0x4d   :  { %3302 = vmatprep.subr.bf16.mxu0 %v3638_v32  ;;  %3323 = vmatpush3.bf16.msra.mxu1 %v3637_v31  ;;  %v3688_v31 = vld [vmem:[%s4674_s1 + $0x300] sm:$0xff]  }
  0x4e   :  { %3324 = vmatprep.subr.bf16.mxu1 %v3639_v33  ;;  %v3689_v32 = vld [vmem:[%s4674_s1 + $0x380] sm:$0xff]   ;;  %v621_v33 = vrot.slane %v4158_v60, %v3932_v35  ;;  %v3715_v60 = vld [vmem:[%s4674_s1 + $0x448] sm:$0xff]  }
  0x50   :  { %3303 = vmatpush3.bf16.msra.mxu0 %v3640_v34  ;;  %v3691_v34 = vld [vmem:[%s4674_s1 + $0x478] sm:$0xff]  }
  0x51   :  { %3304 = vmatprep.subr.bf16.mxu0 %v3642_v37  ;;  %3325 = vmatpush3.bf16.msra.mxu1 %v3641_v36  ;;  %v3692_v36 = vld [vmem:[%s4674_s1 + $0x4f8] sm:$0xff]  }
  0x52   :  { %3326 = vmatprep.subr.bf16.mxu1 %v3643_v38  ;;  %v3693_v37 = vld [vmem:[%s4674_s1 + $0x438] sm:$0xff]  }
  0x53   :  { %v3694_v38 = vld [vmem:[%s4674_s1 + $0x4b8] sm:$0xff]  }
  0x54   :  { %3305 = vmatpush3.bf16.msra.mxu0 %v3644_v39  ;;  %v637_v39 = vcombine.high %v621_v33, %v621_v33 }
  0x55   :  { %3306 = vmatprep.subr.bf16.mxu0 %v3646_v41  ;;  %3327 = vmatpush3.bf16.msra.mxu1 %v3645_v40  ;;  %v3695_v40 = vld [vmem:[%s4674_s1 + $0x470] sm:$0xff]  }
  0x56   :  { %3328 = vmatprep.subr.bf16.mxu1 %v3647_v42  ;;  %v3696_v41 = vld [vmem:[%s4674_s1 + $0x4f0] sm:$0xff]  }
  0x57   :  { %v3697_v42 = vld [vmem:[%s4674_s1 + $0x430] sm:$0xff]  }
  0x58   :  { %3307 = vmatpush3.bf16.msra.mxu0 %v3648_v43  ;;  %v3698_v43 = vld [vmem:[%s4674_s1 + $0x4b0] sm:$0xff]  }
  0x59   :  { %3308 = vmatprep.subr.bf16.mxu0 %v3650_v45  ;;  %3329 = vmatpush3.bf16.msra.mxu1 %v3649_v44  ;;  %v3699_v44 = vld [vmem:[%s4674_s1 + $0x468] sm:$0xff]  }
  0x5a   :  { %3330 = vmatprep.subr.bf16.mxu1 %v3651_v46  ;;  %v3700_v45 = vld [vmem:[%s4674_s1 + $0x4e8] sm:$0xff]  }
  0x5b   :  { %v3701_v46 = vld [vmem:[%s4674_s1 + $0x428] sm:$0xff]  }
  0x5c   :  { %3309 = vmatpush3.bf16.msra.mxu0 %v3652_v47  ;;  %v3702_v47 = vld [vmem:[%s4674_s1 + $0x4a8] sm:$0xff]  }
  0x5d   :  { %3310 = vmatprep.subr.bf16.mxu0 %v3654_v49  ;;  %3331 = vmatpush3.bf16.msra.mxu1 %v3653_v48  ;;  %v3703_v48 = vld [vmem:[%s4674_s1 + $0x460] sm:$0xff]  }
  0x5e   :  { %3332 = vmatprep.subr.bf16.mxu1 %v3655_v50  ;;  %v3704_v49 = vld [vmem:[%s4674_s1 + $0x4e0] sm:$0xff]  }
  0x5f   :  { %v3705_v50 = vld [vmem:[%s4674_s1 + $0x420] sm:$0xff]  }
  0x60   :  { %3311 = vmatpush3.bf16.msra.mxu0 %v3656_v51  ;;  %v3706_v51 = vld [vmem:[%s4674_s1 + $0x4a0] sm:$0xff]  }
  0x61   :  { %3340 = vmatprep.subr.bf16.mxu0 %v3658_v56  ;;  %3333 = vmatpush3.bf16.msra.mxu1 %v3657_v53  ;;  %v3708_v53 = vld [vmem:[%s4674_s1 + $0x4d8] sm:$0xff]   ;;  %v3711_v56 = vld [vmem:[%s4674_s1 + $0x450] sm:$0xff]  }
  0x62   :  { %3362 = vmatprep.subr.bf16.mxu1 %v3659_v59  ;;  %v3714_v59 = vld [vmem:[%s4674_s1 + $0x490] sm:$0xff]  }
  0x63   :  { %2499 = vmatmul.mubr.bf16.vlgmr.msra.gmra.mxu0 %v614_v58  ;;  %v3713_v58 = vld [vmem:[%s4674_s1 + $0x410] sm:$0xff]  }
  0x64   :  { %3341 = vmatpush3.bf16.msra.mxu0 %v3660_v61  ;;  %2539 = vmatmul.mubr.bf16.vlgmr.msra.gmra.mxu1 %v636_v1  ;;  %v3716_v61 = vld [vmem:[%s4674_s1 + $0x4c8] sm:$0xff]   ;;  %v3720_v1 = vld [vmem:[%s4674_s1 + $0x4c0] sm:$0xff]  }
  0x65   :  { %3342 = vmatprep.subr.bf16.mxu0 %v3662_v2  ;;  %3363 = vmatpush3.bf16.msra.mxu1 %v3661_v63  ;;  %v3718_v63 = vld [vmem:[%s4674_s1 + $0x488] sm:$0xff]   ;;  %v3721_v2 = vld [vmem:[%s4674_s1 + $0x400] sm:$0xff]  }
  0x66   :  { %2578 = vmatprep.mubr.bf16.mxu0 %v635_v5  ;;  %3364 = vmatprep.subr.bf16.mxu1 %v3663_v4  ;;  %v3722_v4 = vld [vmem:[%s4674_s1 + $0x480] sm:$0xff]   ;;  %v647_v5 = vrot.slane %v17_v3, %v3932_v35 }
  0x67   :  { %2618 = vmatprep.mubr.bf16.mxu1 %v639_v8 }
  0x68   :  { %3343 = vmatpush3.bf16.msra.mxu0 %v3664_v6  ;;  %v640_v6 = vcombine.high %v17_v3, %v17_v3  ;;  %v655_v8 = vcombine.high %v647_v5, %v647_v5  ;;  %v3772_v3 = vld [vmem:[%s4674_s1 + $0x658] sm:$0xff]  }
  0x69   :  { %3344 = vmatprep.subr.bf16.mxu0 %v3666_v9  ;;  %3365 = vmatpush3.bf16.msra.mxu1 %v3665_v7  ;;  %v3723_v7 = vld [vmem:[%s4674_s1 + $0x578] sm:$0xff]   ;;  %v663_v9 = vrot.slane %v647_v5, %v3932_v35 }
  0x6a   :  { %3366 = vmatprep.subr.bf16.mxu1 %v3667_v10  ;;  %v3724_v10 = vld [vmem:[%s4674_s1 + $0x5f8] sm:$0xff]  }
  0x6b   :  { %v3774_v5 = vld [vmem:[%s4674_s1 + $0x618] sm:$0xff]  }
  0x6c   :  { %3345 = vmatpush3.bf16.msra.mxu0 %v3668_v11  ;;  %v4364_v11 = vrot.slane %v640_v6, %v3932_v35  ;;  %v3775_v6 = vld [vmem:[%s4674_s1 + $0x698] sm:$0xff]  }
  0x6d   :  { %3346 = vmatprep.subr.bf16.mxu0 %v3670_v13  ;;  %3367 = vmatpush3.bf16.msra.mxu1 %v3669_v12  ;;  %v3725_v12 = vld [vmem:[%s4674_s1 + $0x538] sm:$0xff]   ;;  %v677_v13 = vrot.slane %v655_v8, %v3932_v35  ;;  %v3777_v8 = vld [vmem:[%s4674_s1 + $0x6d0] sm:$0xff]  }
  0x6e   :  { %3368 = vmatprep.subr.bf16.mxu1 %v3671_v14  ;;  %v3726_v14 = vld [vmem:[%s4674_s1 + $0x5b8] sm:$0xff]  }
  0x70   :  { %3347 = vmatpush3.bf16.msra.mxu0 %v3672_v15  ;;  %v656_v15 = vcombine.high %v4364_v11, %v4364_v11 }
  0x71   :  { %3348 = vmatprep.subr.bf16.mxu0 %v3674_v17  ;;  %3369 = vmatpush3.bf16.msra.mxu1 %v3673_v16  ;;  %v685_v16 = vcombine.high %v663_v9, %v663_v9  ;;  %v3727_v17 = vld [vmem:[%s4674_s1 + $0x570] sm:$0xff]  }
  0x72   :  { %3370 = vmatprep.subr.bf16.mxu1 %v3675_v18  ;;  %v687_v18 = vcombine.high %v677_v13, %v677_v13 }
  0x74   :  { %3349 = vmatpush3.bf16.msra.mxu0 %v3676_v19  ;;  %v3728_v19 = vld [vmem:[%s4674_s1 + $0x5f0] sm:$0xff]  }
  0x75   :  { %3350 = vmatprep.subr.bf16.mxu0 %v3678_v21  ;;  %3371 = vmatpush3.bf16.msra.mxu1 %v3677_v20  ;;  %v684_v20 = vrot.slane %v656_v15, %v3932_v35  ;;  %v3729_v21 = vld [vmem:[%s4674_s1 + $0x530] sm:$0xff]   ;;  %v3784_v15 = vld [vmem:[%s4674_s1 + $0x640] sm:$0xff]  }
  0x76   :  { %3372 = vmatprep.subr.bf16.mxu1 %v3679_v22  ;;  %v3730_v22 = vld [vmem:[%s4674_s1 + $0x5b0] sm:$0xff]  }
  0x78   :  { %3351 = vmatpush3.bf16.msra.mxu0 %v3680_v23  ;;  %v688_v23 = vcombine.high %v684_v20, %v684_v20 }
  0x79   :  { %3352 = vmatprep.subr.bf16.mxu0 %v3682_v25  ;;  %3373 = vmatpush3.bf16.msra.mxu1 %v3681_v24  ;;  %v3731_v24 = vld [vmem:[%s4674_s1 + $0x568] sm:$0xff]  }
  0x7a   :  { %3374 = vmatprep.subr.bf16.mxu1 %v3683_v26  ;;  %v3732_v25 = vld [vmem:[%s4674_s1 + $0x5e8] sm:$0xff]  }
  0x7b   :  { %v3733_v26 = vld [vmem:[%s4674_s1 + $0x528] sm:$0xff]  }
  0x7c   :  { %3353 = vmatpush3.bf16.msra.mxu0 %v3684_v27  ;;  %v3734_v27 = vld [vmem:[%s4674_s1 + $0x5a8] sm:$0xff]  }
  0x7d   :  { %3354 = vmatprep.subr.bf16.mxu0 %v3686_v29  ;;  %3375 = vmatpush3.bf16.msra.mxu1 %v3685_v28  ;;  %v3735_v28 = vld [vmem:[%s4674_s1 + $0x560] sm:$0xff]  }
  0x7e   :  { %3376 = vmatprep.subr.bf16.mxu1 %v3687_v30  ;;  %v3736_v29 = vld [vmem:[%s4674_s1 + $0x5e0] sm:$0xff]  }
  0x7f   :  { %v3737_v30 = vld [vmem:[%s4674_s1 + $0x520] sm:$0xff]  }
  0x80   :  { %3355 = vmatpush3.bf16.msra.mxu0 %v3688_v31  ;;  %v3738_v31 = vld [vmem:[%s4674_s1 + $0x5a0] sm:$0xff]  }
  0x81   :  { %3384 = vmatprep.subr.bf16.mxu0 %v3691_v34  ;;  %3377 = vmatpush3.bf16.msra.mxu1 %v3689_v32  ;;  %v3739_v32 = vld [vmem:[%s4674_s1 + $0x558] sm:$0xff]  }
  0x82   :  { %3406 = vmatprep.subr.bf16.mxu1 %v3692_v36  ;;  %v3741_v34 = vld [vmem:[%s4674_s1 + $0x518] sm:$0xff]  }
  0x83   :  { %2579 = vmatmul.mubr.bf16.vlgmr.msra.gmra.mxu0 %v621_v33  ;;  %v3740_v33 = vld [vmem:[%s4674_s1 + $0x5d8] sm:$0xff]  }
  0x84   :  { %3385 = vmatpush3.bf16.msra.mxu0 %v3693_v37  ;;  %2619 = vmatmul.mubr.bf16.vlgmr.msra.gmra.mxu1 %v637_v39  ;;  %v3742_v36 = vld [vmem:[%s4674_s1 + $0x598] sm:$0xff]   ;;  %v3743_v37 = vld [vmem:[%s4674_s1 + $0x550] sm:$0xff]  }
  0x85   :  { %3386 = vmatprep.subr.bf16.mxu0 %v3695_v40  ;;  %3407 = vmatpush3.bf16.msra.mxu1 %v3694_v38  ;;  %v3744_v38 = vld [vmem:[%s4674_s1 + $0x5d0] sm:$0xff]  }
  0x86   :  { %3408 = vmatprep.subr.bf16.mxu1 %v3696_v41  ;;  %2658 = vmatprep.mubr.bf16.mxu0 %v677_v13  ;;  %v3745_v39 = vld [vmem:[%s4674_s1 + $0x510] sm:$0xff]   ;;  %v3747_v41 = vld [vmem:[%s4674_s1 + $0x548] sm:$0xff]  }
  0x87   :  { %2698 = vmatprep.mubr.bf16.mxu1 %v687_v18  ;;  %v3746_v40 = vld [vmem:[%s4674_s1 + $0x590] sm:$0xff]   ;;  %v3782_v13 = vld [vmem:[%s4674_s1 + $0x608] sm:$0xff]   ;;  %v18_v18 = vld [vmem:[%s4675_s0 + $0x18] sm:$0xff] }
  0x88   :  { %3387 = vmatpush3.bf16.msra.mxu0 %v3697_v42  ;;  %v3748_v42 = vld [vmem:[%s4674_s1 + $0x5c8] sm:$0xff]  }
  0x89   :  { %3388 = vmatprep.subr.bf16.mxu0 %v3699_v44  ;;  %3409 = vmatpush3.bf16.msra.mxu1 %v3698_v43  ;;  %v3749_v43 = vld [vmem:[%s4674_s1 + $0x508] sm:$0xff]  }
  0x8a   :  { %3410 = vmatprep.subr.bf16.mxu1 %v3700_v45  ;;  %v3750_v44 = vld [vmem:[%s4674_s1 + $0x588] sm:$0xff]   ;;  %v3751_v45 = vld [vmem:[%s4674_s1 + $0x540] sm:$0xff]  }
  0x8c   :  { %3389 = vmatpush3.bf16.msra.mxu0 %v3701_v46  ;;  %v3752_v46 = vld [vmem:[%s4674_s1 + $0x5c0] sm:$0xff]  }
  0x8d   :  { %3390 = vmatprep.subr.bf16.mxu0 %v3703_v48  ;;  %3411 = vmatpush3.bf16.msra.mxu1 %v3702_v47  ;;  %v3753_v47 = vld [vmem:[%s4674_s1 + $0x500] sm:$0xff]  }
  0x8e   :  { %3412 = vmatprep.subr.bf16.mxu1 %v3704_v49  ;;  %v3754_v48 = vld [vmem:[%s4674_s1 + $0x580] sm:$0xff]   ;;  %v670_v49 = vrot.slane %v4364_v11, %v3932_v35  ;;  %v3780_v11 = vld [vmem:[%s4674_s1 + $0x648] sm:$0xff]  }
  0x90   :  { %3391 = vmatpush3.bf16.msra.mxu0 %v3705_v50  ;;  %v3756_v50 = vld [vmem:[%s4674_s1 + $0x678] sm:$0xff]  }
  0x91   :  { %3392 = vmatprep.subr.bf16.mxu0 %v3707_v52  ;;  %3413 = vmatpush3.bf16.msra.mxu1 %v3706_v51  ;;  %v3757_v51 = vld [vmem:[%s4674_s1 + $0x6f8] sm:$0xff]  }
  0x92   :  { %3414 = vmatprep.subr.bf16.mxu1 %v3708_v53  ;;  %v3758_v52 = vld [vmem:[%s4674_s1 + $0x638] sm:$0xff]  }
  0x93   :  { %v3759_v53 = vld [vmem:[%s4674_s1 + $0x6b8] sm:$0xff]  }
  0x94   :  { %3393 = vmatpush3.bf16.msra.mxu0 %v3709_v54  ;;  %v686_v54 = vcombine.high %v670_v49, %v670_v49 }
  0x95   :  { %3394 = vmatprep.subr.bf16.mxu0 %v3711_v56  ;;  %3415 = vmatpush3.bf16.msra.mxu1 %v3710_v55  ;;  %v3760_v55 = vld [vmem:[%s4674_s1 + $0x670] sm:$0xff]  }
  0x96   :  { %3416 = vmatprep.subr.bf16.mxu1 %v3712_v57  ;;  %v3761_v56 = vld [vmem:[%s4674_s1 + $0x6f0] sm:$0xff]  }
  0x97   :  { %v3762_v57 = vld [vmem:[%s4674_s1 + $0x630] sm:$0xff]  }
  0x98   :  { %3395 = vmatpush3.bf16.msra.mxu0 %v3713_v58  ;;  %v3763_v58 = vld [vmem:[%s4674_s1 + $0x6b0] sm:$0xff]  }
  0x99   :  { %3396 = vmatprep.subr.bf16.mxu0 %v3715_v60  ;;  %3417 = vmatpush3.bf16.msra.mxu1 %v3714_v59  ;;  %v3764_v59 = vld [vmem:[%s4674_s1 + $0x668] sm:$0xff]  }
  0x9a   :  { %3418 = vmatprep.subr.bf16.mxu1 %v3716_v61  ;;  %v3765_v60 = vld [vmem:[%s4674_s1 + $0x6e8] sm:$0xff]  }
  0x9b   :  { %v3766_v61 = vld [vmem:[%s4674_s1 + $0x628] sm:$0xff]  }
  0x9c   :  { %3397 = vmatpush3.bf16.msra.mxu0 %v3717_v62  ;;  %v3767_v62 = vld [vmem:[%s4674_s1 + $0x6a8] sm:$0xff]  }
  0x9d   :  { %3398 = vmatprep.subr.bf16.mxu0 %v3719_v0  ;;  %3419 = vmatpush3.bf16.msra.mxu1 %v3718_v63  ;;  %v3768_v63 = vld [vmem:[%s4674_s1 + $0x660] sm:$0xff]  }
  0x9e   :  { %3420 = vmatprep.subr.bf16.mxu1 %v3720_v1  ;;  %v3769_v0 = vld [vmem:[%s4674_s1 + $0x6e0] sm:$0xff]  }
  0x9f   :  { %v3770_v1 = vld [vmem:[%s4674_s1 + $0x620] sm:$0xff]  }
  0xa0   :  { %3399 = vmatpush3.bf16.msra.mxu0 %v3721_v2  ;;  %v3771_v2 = vld [vmem:[%s4674_s1 + $0x6a0] sm:$0xff]  }
  0xa1   :  { %3428 = vmatprep.subr.bf16.mxu0 %v3723_v7  ;;  %3421 = vmatpush3.bf16.msra.mxu1 %v3722_v4  ;;  %v3773_v4 = vld [vmem:[%s4674_s1 + $0x6d8] sm:$0xff]   ;;  %v3776_v7 = vld [vmem:[%s4674_s1 + $0x650] sm:$0xff]  }
  0xa2   :  { %3450 = vmatprep.subr.bf16.mxu1 %v3724_v10  ;;  %v3779_v10 = vld [vmem:[%s4674_s1 + $0x690] sm:$0xff]  }
  0xa3   :  { %2659 = vmatmul.mubr.bf16.vlgmr.msra.gmra.mxu0 %v663_v9  ;;  %v3778_v9 = vld [vmem:[%s4674_s1 + $0x610] sm:$0xff]  }
  0xa4   :  { %3429 = vmatpush3.bf16.msra.mxu0 %v3725_v12  ;;  %2699 = vmatmul.mubr.bf16.vlgmr.msra.gmra.mxu1 %v685_v16  ;;  %v3781_v12 = vld [vmem:[%s4674_s1 + $0x6c8] sm:$0xff]   ;;  %v3785_v16 = vld [vmem:[%s4674_s1 + $0x6c0] sm:$0xff]  }
  0xa5   :  { %3430 = vmatprep.subr.bf16.mxu0 %v3727_v17  ;;  %3451 = vmatpush3.bf16.msra.mxu1 %v3726_v14  ;;  %v3783_v14 = vld [vmem:[%s4674_s1 + $0x688] sm:$0xff]   ;;  %v3786_v17 = vld [vmem:[%s4674_s1 + $0x600] sm:$0xff]  }
  0xa6   :  { %2738 = vmatprep.mubr.bf16.mxu0 %v684_v20  ;;  %3452 = vmatprep.subr.bf16.mxu1 %v3728_v19  ;;  %v696_v19 = vrot.slane %v18_v18, %v3932_v35  ;;  %v3788_v20 = vld [vmem:[%s4674_s1 + $0x778] sm:$0xff]  }
  0xa7   :  { %2778 = vmatprep.mubr.bf16.mxu1 %v688_v23 }
  0xa8   :  { %3431 = vmatpush3.bf16.msra.mxu0 %v3729_v21  ;;  %v689_v21 = vcombine.high %v18_v18, %v18_v18  ;;  %v704_v23 = vcombine.high %v696_v19, %v696_v19 }
  0xa9   :  { %3432 = vmatprep.subr.bf16.mxu0 %v3731_v24  ;;  %3453 = vmatpush3.bf16.msra.mxu1 %v3730_v22  ;;  %v3787_v22 = vld [vmem:[%s4674_s1 + $0x680] sm:$0xff]   ;;  %v712_v24 = vrot.slane %v696_v19, %v3932_v35 }
  0xaa   :  { %3454 = vmatprep.subr.bf16.mxu1 %v3732_v25  ;;  %v3789_v25 = vld [vmem:[%s4674_s1 + $0x7f8] sm:$0xff]  }
  0xac   :  { %3433 = vmatpush3.bf16.msra.mxu0 %v3733_v26  ;;  %v4570_v26 = vrot.slane %v689_v21, %v3932_v35 }
  0xad   :  { %3434 = vmatprep.subr.bf16.mxu0 %v3735_v28  ;;  %3455 = vmatpush3.bf16.msra.mxu1 %v3734_v27  ;;  %v3790_v27 = vld [vmem:[%s4674_s1 + $0x738] sm:$0xff]   ;;  %v726_v28 = vrot.slane %v704_v23, %v3932_v35 }
  0xae   :  { %3456 = vmatprep.subr.bf16.mxu1 %v3736_v29  ;;  %v3791_v29 = vld [vmem:[%s4674_s1 + $0x7b8] sm:$0xff]  }
  0xb0   :  { %3435 = vmatpush3.bf16.msra.mxu0 %v3737_v30  ;;  %v705_v30 = vcombine.high %v4570_v26, %v4570_v26 }
  0xb1   :  { %3436 = vmatprep.subr.bf16.mxu0 %v3739_v32  ;;  %3457 = vmatpush3.bf16.msra.mxu1 %v3738_v31  ;;  %v734_v31 = vcombine.high %v712_v24, %v712_v24  ;;  %v3792_v32 = vld [vmem:[%s4674_s1 + $0x770] sm:$0xff]  }
  0xb2   :  { %3458 = vmatprep.subr.bf16.mxu1 %v3740_v33  ;;  %v736_v33 = vcombine.high %v726_v28, %v726_v28 }
  0xb4   :  { %3437 = vmatpush3.bf16.msra.mxu0 %v3741_v34 }
  0xb5   :  { %3438 = vmatprep.subr.bf16.mxu0 %v3743_v37  ;;  %3459 = vmatpush3.bf16.msra.mxu1 %v3742_v36  ;;  %v2951_v36 = vld [vmem:[%s4676_s2] ss:$0 sm:$0xff]  ;;  %v733_v37 = vrot.slane %v705_v30, %v3932_v35 }
  0xb6   :  { %3460 = vmatprep.subr.bf16.mxu1 %v3744_v38  ;;  %v3793_v38 = vld [vmem:[%s4674_s1 + $0x7f0] sm:$0xff]  }
  0xb8   :  { %3439 = vmatpush3.bf16.msra.mxu0 %v3745_v39 }
  0xb9   :  { %3440 = vmatprep.subr.bf16.mxu0 %v3747_v41  ;;  %3461 = vmatpush3.bf16.msra.mxu1 %v3746_v40  ;;  %v3794_v41 = vld [vmem:[%s4674_s1 + $0x730] sm:$0xff]  }
  0xba   :  { %3462 = vmatprep.subr.bf16.mxu1 %v3748_v42  ;;  %v737_v42 = vcombine.high %v733_v37, %v733_v37 }
  0xbc   :  { %3441 = vmatpush3.bf16.msra.mxu0 %v3749_v43 }
  0xbd   :  { %3442 = vmatprep.subr.bf16.mxu0 %v3751_v45  ;;  %3463 = vmatpush3.bf16.msra.mxu1 %v3750_v44  ;;  %v3796_v44 = vld [vmem:[%s4674_s1 + $0x768] sm:$0xff]  }
  0xbe   :  { %3464 = vmatprep.subr.bf16.mxu1 %v3752_v46 }
  0xc0   :  { %3443 = vmatpush3.bf16.msra.mxu0 %v3753_v47  ;;  %v3795_v47 = vld [vmem:[%s4674_s1 + $0x7b0] sm:$0xff]  }
  0xc1   :  { %3472 = vmatprep.subr.bf16.mxu0 %v3756_v50  ;;  %3465 = vmatpush3.bf16.msra.mxu1 %v3754_v48  ;;  %v3797_v50 = vld [vmem:[%s4674_s1 + $0x7e8] sm:$0xff]  }
  0xc2   :  { %3494 = vmatprep.subr.bf16.mxu1 %v3757_v51 }
  0xc3   :  { %2739 = vmatmul.mubr.bf16.vlgmr.msra.gmra.mxu0 %v670_v49 }
  0xc4   :  { %3473 = vmatpush3.bf16.msra.mxu0 %v3758_v52  ;;  %2779 = vmatmul.mubr.bf16.vlgmr.msra.gmra.mxu1 %v686_v54 }
  0xc5   :  { %3474 = vmatprep.subr.bf16.mxu0 %v3760_v55  ;;  %3495 = vmatpush3.bf16.msra.mxu1 %v3759_v53  ;;  %v3798_v53 = vld [vmem:[%s4674_s1 + $0x728] sm:$0xff]   ;;  %v3800_v55 = vld [vmem:[%s4674_s1 + $0x760] sm:$0xff]  }
  0xc6   :  { %3496 = vmatprep.subr.bf16.mxu1 %v3761_v56  ;;  %2818 = vmatprep.mubr.bf16.mxu0 %v726_v28 }
  0xc7   :  { %2858 = vmatprep.mubr.bf16.mxu1 %v736_v33 }
  0xc8   :  { %3475 = vmatpush3.bf16.msra.mxu0 %v3762_v57  ;;  %v3799_v57 = vld [vmem:[%s4674_s1 + $0x7a8] sm:$0xff]  }
  0xc9   :  { %3476 = vmatprep.subr.bf16.mxu0 %v3764_v59  ;;  %3497 = vmatpush3.bf16.msra.mxu1 %v3763_v58  ;;  %v3801_v58 = vld [vmem:[%s4674_s1 + $0x7e0] sm:$0xff]  }
  0xca   :  { %3498 = vmatprep.subr.bf16.mxu1 %v3765_v60  ;;  %v3802_v59 = vld [vmem:[%s4674_s1 + $0x720] sm:$0xff]   ;;  %v3804_v60 = vld [vmem:[%s4674_s1 + $0x758] sm:$0xff]  }
  0xcc   :  { %3477 = vmatpush3.bf16.msra.mxu0 %v3766_v61  ;;  %v3803_v61 = vld [vmem:[%s4674_s1 + $0x7a0] sm:$0xff]  }
  0xcd   :  { %3478 = vmatprep.subr.bf16.mxu0 %v3768_v63  ;;  %3499 = vmatpush3.bf16.msra.mxu1 %v3767_v62  ;;  %v3805_v62 = vld [vmem:[%s4674_s1 + $0x7d8] sm:$0xff]  }
  0xce   :  { %3500 = vmatprep.subr.bf16.mxu1 %v3769_v0  ;;  %v3806_v63 = vld [vmem:[%s4674_s1 + $0x718] sm:$0xff]   ;;  %v3808_v0 = vld [vmem:[%s4674_s1 + $0x750] sm:$0xff]  }
  0xd0   :  { %3479 = vmatpush3.bf16.msra.mxu0 %v3770_v1  ;;  %v3807_v1 = vld [vmem:[%s4674_s1 + $0x798] sm:$0xff]  }
  0xd1   :  { %3480 = vmatprep.subr.bf16.mxu0 %v3772_v3  ;;  %3501 = vmatpush3.bf16.msra.mxu1 %v3771_v2  ;;  %v3809_v2 = vld [vmem:[%s4674_s1 + $0x7d0] sm:$0xff]  }
  0xd2   :  { %3502 = vmatprep.subr.bf16.mxu1 %v3773_v4  ;;  %v3810_v3 = vld [vmem:[%s4674_s1 + $0x710] sm:$0xff]   ;;  %v3812_v4 = vld [vmem:[%s4674_s1 + $0x748] sm:$0xff]  }
  0xd4   :  { %3481 = vmatpush3.bf16.msra.mxu0 %v3774_v5  ;;  %v3811_v5 = vld [vmem:[%s4674_s1 + $0x790] sm:$0xff]  }
  0xd5   :  { %3482 = vmatprep.subr.bf16.mxu0 %v3776_v7  ;;  %3503 = vmatpush3.bf16.msra.mxu1 %v3775_v6  ;;  %v3813_v6 = vld [vmem:[%s4674_s1 + $0x7c8] sm:$0xff]  }
  0xd6   :  { %3504 = vmatprep.subr.bf16.mxu1 %v3777_v8  ;;  %v3814_v7 = vld [vmem:[%s4674_s1 + $0x708] sm:$0xff]   ;;  %v3816_v8 = vld [vmem:[%s4674_s1 + $0x740] sm:$0xff]  }
  0xd8   :  { %3483 = vmatpush3.bf16.msra.mxu0 %v3778_v9  ;;  %v3815_v9 = vld [vmem:[%s4674_s1 + $0x788] sm:$0xff]  }
  0xd9   :  { %3484 = vmatprep.subr.bf16.mxu0 %v3780_v11  ;;  %3505 = vmatpush3.bf16.msra.mxu1 %v3779_v10  ;;  %v3817_v10 = vld [vmem:[%s4674_s1 + $0x7c0] sm:$0xff]  }
  0xda   :  { %3506 = vmatprep.subr.bf16.mxu1 %v3781_v12  ;;  %v3818_v11 = vld [vmem:[%s4674_s1 + $0x700] sm:$0xff]   ;;  %v719_v12 = vrot.slane %v4570_v26, %v3932_v35 }
  0xdc   :  { %3485 = vmatpush3.bf16.msra.mxu0 %v3782_v13  ;;  %v3819_v13 = vld [vmem:[%s4674_s1 + $0x780] sm:$0xff]  }
  0xdd   :  { %3486 = vmatprep.subr.bf16.mxu0 %v3784_v15  ;;  %3507 = vmatpush3.bf16.msra.mxu1 %v3783_v14  ;;  %v735_v14 = vcombine.high %v719_v12, %v719_v12 }
  0xde   :  { %3508 = vmatprep.subr.bf16.mxu1 %v3785_v16 }
  0xe0   :  { %3487 = vmatpush3.bf16.msra.mxu0 %v3786_v17 }
  0xe1   :  { %3516 = vmatprep.subr.bf16.mxu0 %v3788_v20  ;;  %3509 = vmatpush3.bf16.msra.mxu1 %v3787_v22 }
  0xe2   :  { %3538 = vmatprep.subr.bf16.mxu1 %v3789_v25 }
  0xe3   :  { %v3224_v34 = vpop.f32.mrf.mxu0  ;;  %2819 = vmatmul.mubr.bf16.vlgmr.msra.gmra.mxu0 %v712_v24 }
  0xe4   :  { %v3246_v39 = vpop.f32.mrf.mxu1  ;;  %3517 = vmatpush3.bf16.msra.mxu0 %v3790_v27  ;;  %2859 = vmatmul.mubr.bf16.vlgmr.msra.gmra.mxu1 %v734_v31 }
  0xe5   :  { %v3225_v40 = vpop.f32.mrf.mxu0  ;;  %3518 = vmatprep.subr.bf16.mxu0 %v3792_v32  ;;  %3539 = vmatpush3.bf16.msra.mxu1 %v3791_v29 }
  0xe6   :  { %v3226_v43 = vadd.f32 %v3225_v40, %v3224_v34  ;;  %v3247_v45 = vpop.f32.mrf.mxu1  ;;  %2898 = vmatprep.mubr.bf16.mxu0 %v733_v37  ;;  %3540 = vmatprep.subr.bf16.mxu1 %v3793_v38 }
  0xe7   :  { %v3227_v46 = vpop.f32.mrf.mxu0  ;;  %v3248_v49 = vadd.f32 %v3247_v45, %v3246_v39  ;;  %2938 = vmatprep.mubr.bf16.mxu1 %v737_v42 }
  0xe8   :  { %v2341_v48 = vadd.f32 %v3226_v43, %v2951_v36  ;;  %v3249_v51 = vpop.f32.mrf.mxu1  ;;  %3519 = vmatpush3.bf16.msra.mxu0 %v3794_v41 }
  0xe9   :  { %v3228_v52 = vpop.f32.mrf.mxu0  ;;  %3520 = vmatprep.subr.bf16.mxu0 %v3796_v44  ;;  %3541 = vmatpush3.bf16.msra.mxu1 %v3795_v47 }
  0xea   :  { %v2381_v54 = vadd.f32 %v3248_v49, %v2341_v48  ;;  %v3250_v56 = vpop.f32.mrf.mxu1  ;;  %3542 = vmatprep.subr.bf16.mxu1 %v3797_v50 }
  0xec   :  { %3521 = vmatpush3.bf16.msra.mxu0 %v3798_v53 }
  0xed   :  { %3522 = vmatprep.subr.bf16.mxu0 %v3800_v55  ;;  %3543 = vmatpush3.bf16.msra.mxu1 %v3799_v57 }
  0xee   :  { %3544 = vmatprep.subr.bf16.mxu1 %v3801_v58 }
  0xf0   :  { %3523 = vmatpush3.bf16.msra.mxu0 %v3802_v59 }
  0xf1   :  { %3524 = vmatprep.subr.bf16.mxu0 %v3804_v60  ;;  %3545 = vmatpush3.bf16.msra.mxu1 %v3803_v61 }
  0xf2   :  { %3546 = vmatprep.subr.bf16.mxu1 %v3805_v62 }
  0xf4   :  { %3525 = vmatpush3.bf16.msra.mxu0 %v3806_v63 }
  0xf5   :  { %3526 = vmatprep.subr.bf16.mxu0 %v3808_v0  ;;  %3547 = vmatpush3.bf16.msra.mxu1 %v3807_v1 }
  0xf6   :  { %3548 = vmatprep.subr.bf16.mxu1 %v3809_v2 }
  0xf8   :  { %3527 = vmatpush3.bf16.msra.mxu0 %v3810_v3 }
  0xf9   :  { %3528 = vmatprep.subr.bf16.mxu0 %v3812_v4  ;;  %3549 = vmatpush3.bf16.msra.mxu1 %v3811_v5 }
  0xfa   :  { %3550 = vmatprep.subr.bf16.mxu1 %v3813_v6 }
  0xfc   :  { %3529 = vmatpush3.bf16.msra.mxu0 %v3814_v7 }
  0xfd   :  { %3530 = vmatprep.subr.bf16.mxu0 %v3816_v8  ;;  %3551 = vmatpush3.bf16.msra.mxu1 %v3815_v9 }
  0xfe   :  { %3552 = vmatprep.subr.bf16.mxu1 %v3817_v10 }
 0x100   :  { %3531 = vmatpush3.bf16.msra.mxu0 %v3818_v11 }
 0x101   :  { %3553 = vmatpush3.bf16.msra.mxu1 %v3819_v13 }
 0x103   :  { %v3268_v15 = vpop.f32.mrf.mxu0  ;;  %2899 = vmatmul.mubr.bf16.vlgmr.msra.gmra.mxu0 %v719_v12 }
 0x104   :  { %v3290_v16 = vpop.f32.mrf.mxu1  ;;  %2939 = vmatmul.mubr.bf16.vlgmr.msra.gmra.mxu1 %v735_v14 }
 0x105   :  { %v3269_v17 = vpop.f32.mrf.mxu0 }
 0x106   :  { %v3270_v18 = vadd.f32 %v3269_v17, %v3268_v15  ;;  %v3291_v19 = vpop.f32.mrf.mxu1 }
 0x107   :  { %v3271_v20 = vpop.f32.mrf.mxu0  ;;  %v3292_v22 = vadd.f32 %v3291_v19, %v3290_v16 }
 0x108   :  { %v2421_v21 = vadd.f32 %v3270_v18, %v2381_v54  ;;  %v3293_v35 = vpop.f32.mrf.mxu1 }
 0x109   :  { %v3272_v23 = vpop.f32.mrf.mxu0 }
 0x10a   :  { %v2461_v24 = vadd.f32 %v3292_v22, %v2421_v21  ;;  %v3294_v25 = vpop.f32.mrf.mxu1 }
 0x123   :  { %v3312_v26 = vpop.f32.mrf.mxu0 }
 0x124   :  { %v3334_v27 = vpop.f32.mrf.mxu1 }
 0x125   :  { %v3313_v28 = vpop.f32.mrf.mxu0 }
 0x126   :  { %v3314_v29 = vadd.f32 %v3313_v28, %v3312_v26  ;;  %v3335_v30 = vpop.f32.mrf.mxu1 }
 0x127   :  { %v3315_v31 = vpop.f32.mrf.mxu0  ;;  %v3336_v33 = vadd.f32 %v3335_v30, %v3334_v27 }
 0x128   :  { %v2501_v32 = vadd.f32 %v3314_v29, %v2461_v24  ;;  %v3337_v34 = vpop.f32.mrf.mxu1 }
 0x129   :  { %v3316_v36 = vpop.f32.mrf.mxu0 }
 0x12a   :  { %v2541_v37 = vadd.f32 %v3336_v33, %v2501_v32  ;;  %v3338_v38 = vpop.f32.mrf.mxu1 }
 0x143   :  { %v3356_v39 = vpop.f32.mrf.mxu0 }
 0x144   :  { %v3378_v40 = vpop.f32.mrf.mxu1 }
 0x145   :  { %v3357_v41 = vpop.f32.mrf.mxu0 }
 0x146   :  { %v3358_v42 = vadd.f32 %v3357_v41, %v3356_v39  ;;  %v3379_v43 = vpop.f32.mrf.mxu1 }
 0x147   :  { %v3359_v44 = vpop.f32.mrf.mxu0  ;;  %v3380_v46 = vadd.f32 %v3379_v43, %v3378_v40 }
 0x148   :  { %v2581_v45 = vadd.f32 %v3358_v42, %v2541_v37  ;;  %v3381_v47 = vpop.f32.mrf.mxu1 }
 0x149   :  { %v3360_v48 = vpop.f32.mrf.mxu0 }
 0x14a   :  { %v2621_v49 = vadd.f32 %v3380_v46, %v2581_v45  ;;  %v3382_v50 = vpop.f32.mrf.mxu1 }
 0x163   :  { %v3400_v51 = vpop.f32.mrf.mxu0 }
 0x164   :  { %v3422_v52 = vpop.f32.mrf.mxu1 }
 0x165   :  { %v3401_v53 = vpop.f32.mrf.mxu0 }
 0x166   :  { %v3402_v54 = vadd.f32 %v3401_v53, %v3400_v51  ;;  %v3423_v55 = vpop.f32.mrf.mxu1 }
 0x167   :  { %v3403_v56 = vpop.f32.mrf.mxu0  ;;  %v3424_v58 = vadd.f32 %v3423_v55, %v3422_v52 }
 0x168   :  { %v2661_v57 = vadd.f32 %v3402_v54, %v2621_v49  ;;  %v3425_v59 = vpop.f32.mrf.mxu1 }
 0x169   :  { %v3404_v60 = vpop.f32.mrf.mxu0 }
 0x16a   :  { %v2701_v61 = vadd.f32 %v3424_v58, %v2661_v57  ;;  %v3426_v62 = vpop.f32.mrf.mxu1 }
 0x183   :  { %v3444_v63 = vpop.f32.mrf.mxu0 }
 0x184   :  { %v3466_v0 = vpop.f32.mrf.mxu1 }
 0x185   :  { %v3445_v1 = vpop.f32.mrf.mxu0 }
 0x186   :  { %v3467_v2 = vpop.f32.mrf.mxu1  ;;  %v3446_v15 = vadd.f32 %v3445_v1, %v3444_v63 }
 0x187   :  { %v3447_v3 = vpop.f32.mrf.mxu0  ;;  %v3468_v17 = vadd.f32 %v3467_v2, %v3466_v0 }
 0x188   :  { %v3469_v4 = vpop.f32.mrf.mxu1  ;;  %v2741_v16 = vadd.f32 %v3446_v15, %v2701_v61 }
 0x189   :  { %v3448_v5 = vpop.f32.mrf.mxu0 }
 0x18a   :  { %v3470_v6 = vpop.f32.mrf.mxu1  ;;  %v2781_v19 = vadd.f32 %v3468_v17, %v2741_v16 }
 0x1a3   :  { %v3488_v7 = vpop.f32.mrf.mxu0 }
 0x1a4   :  { %v3510_v8 = vpop.f32.mrf.mxu1 }
 0x1a5   :  { %v3489_v9 = vpop.f32.mrf.mxu0 }
 0x1a6   :  { %v3511_v10 = vpop.f32.mrf.mxu1  ;;  %v3490_v18 = vadd.f32 %v3489_v9, %v3488_v7 }
 0x1a7   :  { %v3491_v11 = vpop.f32.mrf.mxu0  ;;  %v3512_v21 = vadd.f32 %v3511_v10, %v3510_v8 }
 0x1a8   :  { %v3513_v12 = vpop.f32.mrf.mxu1  ;;  %v2821_v20 = vadd.f32 %v3490_v18, %v2781_v19 }
 0x1a9   :  { %v3492_v13 = vpop.f32.mrf.mxu0 }
 0x1aa   :  { %v3514_v14 = vpop.f32.mrf.mxu1  ;;  %v2861_v24 = vadd.f32 %v3512_v21, %v2821_v20 }
 0x1c3   :  { %v3532_v22 = vpop.f32.mrf.mxu0 }
 0x1c4   :  { %v3554_v35 = vpop.f32.mrf.mxu1 }
 0x1c5   :  { %v3533_v23 = vpop.f32.mrf.mxu0 }
 0x1c6   :  { %v3534_v25 = vadd.f32 %v3533_v23, %v3532_v22  ;;  %v3555_v26 = vpop.f32.mrf.mxu1 }
 0x1c7   :  { %v3535_v27 = vpop.f32.mrf.mxu0  ;;  %v3556_v29 = vadd.f32 %v3555_v26, %v3554_v35 }
 0x1c8   :  { %v2901_v28 = vadd.f32 %v3534_v25, %v2861_v24  ;;  %v3557_v30 = vpop.f32.mrf.mxu1 }
 0x1c9   :  { %v3536_v31 = vpop.f32.mrf.mxu0 }
 0x1ca   :  { %v2941_v32 = vadd.f32 %v3556_v29, %v2901_v28  ;;  %v3558_v33 = vpop.f32.mrf.mxu1 }
 0x1cc   :  { %2946 = vst [vmem:[%s4677_s3] sm:$0x3] %v2941_v32 }

</bundles_post_ra>
